<compile_context>
chip_gen: v7x
topology: tpu7x:2x2x1
jax: 0.10.0
libtpu: 0.0.40
codegen_flags: <defaults>
</compile_context>

<pallas_src>
import numpy as np
import jax
import jax.numpy as jnp
from jax import lax
from jax.experimental import pallas as pl
from jax.experimental.pallas import tpu as pltpu


def _ceil_to(n, m):
    return ((n + m - 1) // m) * m


# ----------------------------------------------------------------------------
# Fused Pallas kernel
# ----------------------------------------------------------------------------
def build_fused_forward(B, TB, H, W, Cin, C, K1, P1, K2, R, NC):
    """Builds the fused forward pallas_call for inputs flattened to (B, H, W*Cin)."""
    assert B % TB == 0
    G = B // TB                               # grid steps (>= 2 keeps both v7x TCs busy)
    HO1, WO1 = H, W                           # conv1 keeps spatial (pad=(K1-1)/2)
    HO2, WO2 = HO1 - K2 + 1, WO1 - K2 + 1     # conv2 output spatial
    HO3, WO3 = HO2 - K2 + 1, WO2 - K2 + 1     # conv3 output spatial
    WCI = W * Cin
    WC1, WC2, WC3 = WO1 * C, WO2 * C, WO3 * C
    KP1 = _ceil_to(WCI, 128)                  # lane-aligned per-tap K block, conv1
    KP2 = _ceil_to(WC2, 128)                  # lane-aligned per-tap K block, conv3
    inv_spatial = 1.0 / float(HO3 * WO3)
    bf16, f32 = jnp.bfloat16, jnp.float32

    def kernel(x_ref, t1_ref, b1_ref, w2_ref, b2_ref, t3_ref, b3_ref,
               sel_ref, fold_ref, sw1_ref, sw2_ref, fcw_ref, fcb_ref,
               o_ref, lhs1_ref, lhs3_ref):
        # --- conv1 (5x5, pad=2) + BN + ReLU: one big-K stacked matmul ---------
        # Re-splat every step: scratch is per-TensorCore under megacore
        # "parallel", so an init-once-at-pid-0 pattern would be unsafe on v7x.
        lhs1_ref[...] = jnp.zeros_like(lhs1_ref)
        for t in range(TB):
            xt = x_ref[t]                                     # (H, WCI) f32
            for kh in range(K1):
                r0 = max(0, P1 - kh)                          # valid output rows
                r1 = min(HO1, H + P1 - kh)
                s0 = r0 + kh - P1                             # matching input row
                lhs1_ref[t * HO1 + r0:t * HO1 + r1,
                         kh * KP1:kh * KP1 + WCI] = xt[s0:s0 + (r1 - r0), :]
        a1 = jnp.dot(lhs1_ref[...].astype(bf16), t1_ref[...],
                     preferred_element_type=f32)
        a1 = jnp.maximum(a1 + b1_ref[...], 0.0)               # (TB*HO1, WO1*C)

        # --- conv2 (3x3, groups == channels -> depthwise) + BN + ReLU ---------
        # Lane (kw) shifts hoisted out of the kh loop: 3 relayouts per step
        # instead of 9 per image; the 9 taps are pure VPU MACs.
        sh = [a1[:, kw * C:kw * C + WC2] for kw in range(K2)]
        w2_rows = [w2_ref[i:i + 1, :] for i in range(K2 * K2)]
        b2 = b2_ref[...]
        # conv3 stacked LHS (pad columns stay zero -> matching zero rows in t3).
        lhs3_ref[...] = jnp.zeros_like(lhs3_ref)
        for t in range(TB):
            acc2 = None
            for kw in range(K2):
                for kh in range(K2):
                    term = (sh[kw][t * HO1 + kh:t * HO1 + kh + HO2, :]
                            * w2_rows[kh * K2 + kw])
                    acc2 = term if acc2 is None else acc2 + term
            a2 = jnp.maximum(acc2 + b2, 0.0)                  # (HO2, WO2*C)
            for kh in range(K2):                              # K-stack for conv3
                lhs3_ref[t * HO3:(t + 1) * HO3,
                         kh * KP2:kh * KP2 + WC2] = a2[kh:kh + HO3, :]

        # --- conv3 (3x3, dense) + BN + ReLU: one big-K stacked matmul ---------
        a3 = jnp.dot(lhs3_ref[...].astype(bf16), t3_ref[...],
                     preferred_element_type=f32)
        a3 = jnp.maximum(a3 + b3_ref[...], 0.0)               # (TB*HO3, WO3*C)

        # --- SE head + global avg pool + FC (batched over the TB images) ------
        rowsum = jnp.dot(sel_ref[...], a3,
                         preferred_element_type=f32)          # (TB, WO3*C)
        avg = jnp.dot(rowsum, fold_ref[...],
                      preferred_element_type=f32) * inv_spatial   # (TB, C)
        hse = jnp.maximum(jnp.dot(avg, sw1_ref[...],
                                  preferred_element_type=f32), 0.0)
        z = jnp.dot(hse, sw2_ref[...], preferred_element_type=f32)
        y = pl.reciprocal(1.0 + jnp.exp(-z), approx=True)     # sigmoid, (TB, C)
        pooled = avg * y                                      # == mean_S(x2 * y)
        o_ref[0] = (jnp.dot(pooled, fcw_ref[...],
                            preferred_element_type=f32) + fcb_ref[...])

    return pl.pallas_call(
        kernel,
        out_shape=jax.ShapeDtypeStruct((G, TB, NC), jnp.float32),
        grid_spec=pltpu.PrefetchScalarGridSpec(
            num_scalar_prefetch=0,
            grid=(G,),
            in_specs=[
                pl.BlockSpec((TB, H, WCI), lambda g: (g, 0, 0)),     # x (TB images)
                pl.BlockSpec((K1 * KP1, WC1), lambda g: (0, 0)),     # conv1 Toeplitz (bf16)
                pl.BlockSpec((1, WC1), lambda g: (0, 0)),            # bias1 (tiled)
                pl.BlockSpec((K2 * K2, WC2), lambda g: (0, 0)),      # depthwise taps
                pl.BlockSpec((1, WC2), lambda g: (0, 0)),            # bias2 (tiled)
                pl.BlockSpec((K2 * KP2, WC3), lambda g: (0, 0)),     # conv3 Toeplitz (bf16)
                pl.BlockSpec((1, WC3), lambda g: (0, 0)),            # bias3 (tiled)
                pl.BlockSpec((TB, TB * HO3), lambda g: (0, 0)),      # per-image row fold
                pl.BlockSpec((WC3, C), lambda g: (0, 0)),            # spatial lane fold
                pl.BlockSpec((C, R), lambda g: (0, 0)),              # SE W1^T
                pl.BlockSpec((R, C), lambda g: (0, 0)),              # SE W2^T
                pl.BlockSpec((C, NC), lambda g: (0, 0)),             # FC W^T
                pl.BlockSpec((1, NC), lambda g: (0, 0)),             # FC bias
            ],
            out_specs=pl.BlockSpec((1, TB, NC), lambda g: (g, 0, 0)),
            scratch_shapes=[
                pltpu.VMEM((TB * HO1, K1 * KP1), jnp.float32),       # conv1 stacked LHS
                pltpu.VMEM((TB * HO3, K2 * KP2), jnp.float32),       # conv3 stacked LHS
            ]),
        compiler_params=pltpu.CompilerParams(
            dimension_semantics=("parallel",)),
    )


def aux_layer1_forward(x_nchw, kp, TB):
    B, Cin, H, W = x_nchw.shape
    C, R = kp["se_w1"].shape
    NC = kp["fcb2"].shape[1]
    K1, K2 = kp["k1"], kp["k2"]
    P1 = (K1 - 1) // 2
    x2d = jnp.transpose(x_nchw, (0, 2, 3, 1)).reshape(B, H, W * Cin)   # NCHW -> (B,H,W*Cin)
    fwd = build_fused_forward(B, TB, H, W, Cin, C, K1, P1, K2, R, NC)
    out = fwd(x2d, kp["t1s"], kp["b1t"], kp["w2t"], kp["b2t"],
              kp["t3s"], kp["b3t"], kp["sel"], kp["fold"],
              kp["se_w1"], kp["se_w2"], kp["fc_w_t"], kp["fcb2"])
    return out.reshape(B, NC)


# ----------------------------------------------------------------------------
# Parameter construction (deterministic, synthetic) + kernel-form weights
# ----------------------------------------------------------------------------
def _fold_bn(w, b, gamma, beta, mean, var, eps=1e-5):
    scale = gamma / jnp.sqrt(var + eps)
    return w * scale[:, None, None, None], (b - mean) * scale + beta


def _toeplitz_conv_weight(w_oihw, w_in, pad):
    """(O,I,KH,KW) -> (KH, w_in*I, Wo*O) block-Toeplitz; W zero-padding folded in."""
    w_np = np.asarray(w_oihw)
    O, I, KH, KW = w_np.shape
    Wo = w_in + 2 * pad - KW + 1
    T = np.zeros((KH, w_in * I, Wo * O), np.float32)
    for kh in range(KH):
        for wo in range(Wo):
            for kw in range(KW):
                wi = wo + kw - pad
                if 0 <= wi < w_in:
                    T[kh, wi * I:(wi + 1) * I, wo * O:(wo + 1) * O] = w_np[:, :, kh, kw].T
    return T


def _depthwise_tap_weight(w_gihw, wo):
    """(C,1,KH,KW) -> (KH*KW, wo*C) with [t, j*C+c] = w[c,0,kh,kw]."""
    C, cpg, KH, KW = w_gihw.shape
    assert cpg == 1, "grouped conv is only depthwise when groups == channels"
    base = jnp.transpose(w_gihw[:, 0, :, :], (1, 2, 0)).reshape(KH * KW, C)
    return jnp.tile(base, (1, wo))


def init_params(key, inplanes=8, num_classes=16, reduction=8, groups=32):
    mid = inplanes * 4
    assert mid % groups == 0
    cpg = mid // groups
    ks = jax.random.split(key, 16)

    def bn(k, c):
        k1, k2, k3, k4 = jax.random.split(k, 4)
        return (jax.random.uniform(k1, (c,), jnp.float32, 0.5, 1.5),   # gamma
                0.1 * jax.random.normal(k2, (c,), jnp.float32),        # beta
                0.1 * jax.random.normal(k3, (c,), jnp.float32),        # running_mean
                jax.random.uniform(k4, (c,), jnp.float32, 0.5, 1.5))   # running_var

    # conv1: 5x5 pad 2, inplanes -> mid   (BN folded)
    w1 = 0.1 * jax.random.normal(ks[0], (mid, inplanes, 5, 5), jnp.float32)
    b1 = 0.1 * jax.random.normal(ks[1], (mid,), jnp.float32)
    w1f, b1f = _fold_bn(w1, b1, *bn(ks[2], mid))

    # conv2: 3x3 pad 0, groups=32 (depthwise when mid == groups)   (BN folded)
    w2g = 0.1 * jax.random.normal(ks[3], (mid, cpg, 3, 3), jnp.float32)
    b2 = 0.1 * jax.random.normal(ks[4], (mid,), jnp.float32)
    w2f, b2f = _fold_bn(w2g, b2, *bn(ks[5], mid))

    # conv3: 3x3 pad 0, dense mid -> mid   (BN folded)
    w3 = 0.1 * jax.random.normal(ks[6], (mid, mid, 3, 3), jnp.float32)
    b3 = 0.1 * jax.random.normal(ks[7], (mid,), jnp.float32)
    w3f, b3f = _fold_bn(w3, b3, *bn(ks[8], mid))

    # SE block: Linear(mid, mid/r, bias=False), Linear(mid/r, mid, bias=False)
    r = mid // reduction
    se_w1 = 0.2 * jax.random.normal(ks[9], (mid, r), jnp.float32)    # = W1.T
    se_w2 = 0.2 * jax.random.normal(ks[10], (r, mid), jnp.float32)   # = W2.T

    # FC: Linear(mid, num_classes)
    fc_w_t = 0.1 * jax.random.normal(ks[11], (mid, num_classes), jnp.float32)
    fc_b = 0.1 * jax.random.normal(ks[12], (num_classes,), jnp.float32)

    return dict(w1_oihw=w1f, b1=b1f, w2_gihw=w2f, b2=b2f, w3_oihw=w3f, b3=b3f,
                se_w1=se_w1, se_w2=se_w2, fc_w_t=fc_w_t, fc_b=fc_b)


def prepare_kernel_params(p, H, W, TB):
    C = p["b1"].shape[0]
    Cin = p["w1_oihw"].shape[1]
    K1 = p["w1_oihw"].shape[-1]
    P1 = (K1 - 1) // 2
    K2 = p["w3_oihw"].shape[-1]
    HO1, WO1 = H, W
    HO2, WO2 = HO1 - K2 + 1, WO1 - K2 + 1
    HO3, WO3 = HO2 - K2 + 1, WO2 - K2 + 1
    WCI, WC1, WC2, WC3 = W * Cin, WO1 * C, WO2 * C, WO3 * C
    KP1 = _ceil_to(WCI, 128)
    KP2 = _ceil_to(WC2, 128)

    # K-stacked (and lane-padded) block-Toeplitz conv weights, stored in bf16.
    t1 = _toeplitz_conv_weight(p["w1_oihw"], W, P1)            # (K1, WCI, WC1)
    t1s_np = np.zeros((K1 * KP1, WC1), np.float32)
    for kh in range(K1):
        t1s_np[kh * KP1:kh * KP1 + WCI, :] = t1[kh]
    t1s = jnp.asarray(t1s_np).astype(jnp.bfloat16)

    t3 = _toeplitz_conv_weight(p["w3_oihw"], WO2, 0)           # (K2, WC2, WC3)
    t3s_np = np.zeros((K2 * KP2, WC3), np.float32)
    for kh in range(K2):
        t3s_np[kh * KP2:kh * KP2 + WC2, :] = t3[kh]
    t3s = jnp.asarray(t3s_np).astype(jnp.bfloat16)

    w2t = _depthwise_tap_weight(p["w2_gihw"], WO2)             # (K2*K2, WO2*C) f32
    b1t = jnp.tile(p["b1"], WO1).reshape(1, WC1)
    b2t = jnp.tile(p["b2"], WO2).reshape(1, WC2)
    b3t = jnp.tile(p["b3"], WO3).reshape(1, WC3)
    fold = jnp.tile(jnp.eye(C, dtype=jnp.float32), (WO3, 1))   # (WO3*C, C) 0/1 fold

    sel_np = np.zeros((TB, TB * HO3), np.float32)              # per-image row fold
    for t in range(TB):
        sel_np[t, t * HO3:(t + 1) * HO3] = 1.0
    sel = jnp.asarray(sel_np)

    fcb2 = p["fc_b"].reshape(1, -1)
    return dict(t1s=t1s, b1t=b1t, w2t=w2t, b2t=b2t, t3s=t3s, b3t=b3t,
                sel=sel, fold=fold, se_w1=p["se_w1"], se_w2=p["se_w2"],
                fc_w_t=p["fc_w_t"], fcb2=fcb2, k1=K1, k2=K2)


# ----------------------------------------------------------------------------
# Pure-JAX reference
# ----------------------------------------------------------------------------
def ref_forward(x_nchw, p):
    x = jnp.transpose(x_nchw, (0, 2, 3, 1))

    def conv(x, w_oihw, b, pad, groups=1):
        w_hwio = jnp.transpose(w_oihw, (2, 3, 1, 0))
        y = lax.conv_general_dilated(x, w_hwio, (1, 1),
                                     [(pad, pad), (pad, pad)],
                                     dimension_numbers=("NHWC", "HWIO", "NHWC"),
                                     feature_group_count=groups)
        return jnp.maximum(y + b, 0.0)

    h = conv(x, p["w1_oihw"], p["b1"], 2)
    h = conv(h, p["w2_gihw"], p["b2"], 0, groups=h.shape[-1] // p["w2_gihw"].shape[1])
    h = conv(h, p["w3_oihw"], p["b3"], 0)
    avg = h.mean(axis=(1, 2))
    s = jnp.maximum(avg @ p["se_w1"], 0.0)
    y = jax.nn.sigmoid(s @ p["se_w2"])
    pooled = (h * y[:, None, None, :]).mean(axis=(1, 2))
    return pooled @ p["fc_w_t"] + p["fc_b"]


# ----------------------------------------------------------------------------
if __name__ == "__main__":
    key = jax.random.PRNGKey(0)
    k_x, k_p = jax.random.split(key)

    # mid_channel = inplanes*4 = 32 must be divisible by groups=32 (as in the module)
    B, inplanes, H, W = 8, 8, 16, 16
    num_classes, reduction = 16, 8
    TB = 4                         # images per grid step -> grid=(2,), M = 64 rows/matmul

    params = init_params(k_p, inplanes=inplanes, num_classes=num_classes,
                         reduction=reduction)
    kparams = prepare_kernel_params(params, H, W, TB)
    x = jax.random.normal(k_x, (B, inplanes, H, W), jnp.float32)

    out = jax.block_until_ready(aux_layer1_forward(x, kparams, TB))
    ref = jax.block_until_ready(ref_forward(x, params))

    assert out.shape == (B, num_classes), out.shape
    np.testing.assert_allclose(np.asarray(out), np.asarray(ref), rtol=2e-2, atol=2e-2)

    print("KERNEL_OK")
</pallas_src>

<mosaic_0001>
module attributes {stable_mosaic.version = 11 : i64} {
  func.func @kernel(%arg0: i32, %arg1: memref<4x16x128xf32, #tpu.memory_space<vmem>>, %arg2: memref<640x512xbf16, #tpu.memory_space<vmem>>, %arg3: memref<1x512xf32, #tpu.memory_space<vmem>>, %arg4: memref<9x448xf32, #tpu.memory_space<vmem>>, %arg5: memref<1x448xf32, #tpu.memory_space<vmem>>, %arg6: memref<1536x384xbf16, #tpu.memory_space<vmem>>, %arg7: memref<1x384xf32, #tpu.memory_space<vmem>>, %arg8: memref<4x48xf32, #tpu.memory_space<vmem>>, %arg9: memref<384x32xf32, #tpu.memory_space<vmem>>, %arg10: memref<32x4xf32, #tpu.memory_space<vmem>>, %arg11: memref<4x32xf32, #tpu.memory_space<vmem>>, %arg12: memref<32x16xf32, #tpu.memory_space<vmem>>, %arg13: memref<1x16xf32, #tpu.memory_space<vmem>>, %arg14: memref<1x4x16xf32, #tpu.memory_space<vmem>>, %arg15: memref<64x640xf32, #tpu.memory_space<vmem>>, %arg16: memref<48x1536xf32, #tpu.memory_space<vmem>>) attributes {dimension_semantics = [#tpu.dimension_semantics<parallel>], iteration_bounds = array<i64: 2>, scalar_prefetch = 0 : i64, scratch_operands = 2 : i64, tpu.core_type = #tpu.core_type<tc>, window_params = [{transform_indices = @transform_0, window_bounds = array<i64: 4, 16, 128>}, {pipeline_mode = #tpu.pipeline_mode<synchronous>, transform_indices = @transform_1, window_bounds = array<i64: 640, 512>}, {pipeline_mode = #tpu.pipeline_mode<synchronous>, transform_indices = @transform_2, window_bounds = array<i64: 1, 512>}, {pipeline_mode = #tpu.pipeline_mode<synchronous>, transform_indices = @transform_3, window_bounds = array<i64: 9, 448>}, {pipeline_mode = #tpu.pipeline_mode<synchronous>, transform_indices = @transform_4, window_bounds = array<i64: 1, 448>}, {pipeline_mode = #tpu.pipeline_mode<synchronous>, transform_indices = @transform_5, window_bounds = array<i64: 1536, 384>}, {pipeline_mode = #tpu.pipeline_mode<synchronous>, transform_indices = @transform_6, window_bounds = array<i64: 1, 384>}, {pipeline_mode = #tpu.pipeline_mode<synchronous>, transform_indices = @transform_7, window_bounds = array<i64: 4, 48>}, {pipeline_mode = #tpu.pipeline_mode<synchronous>, transform_indices = @transform_8, window_bounds = array<i64: 384, 32>}, {pipeline_mode = #tpu.pipeline_mode<synchronous>, transform_indices = @transform_9, window_bounds = array<i64: 32, 4>}, {pipeline_mode = #tpu.pipeline_mode<synchronous>, transform_indices = @transform_10, window_bounds = array<i64: 4, 32>}, {pipeline_mode = #tpu.pipeline_mode<synchronous>, transform_indices = @transform_11, window_bounds = array<i64: 32, 16>}, {pipeline_mode = #tpu.pipeline_mode<synchronous>, transform_indices = @transform_12, window_bounds = array<i64: 1, 16>}, {transform_indices = @transform_13, window_bounds = array<i64: 1, 4, 16>}]} {
    %cst = arith.constant 0.000000e+00 : f32
    %0 = vector.broadcast %cst : f32 to vector<64x640xf32>
    %c0 = arith.constant 0 : index
    %c0_0 = arith.constant 0 : index
    %1 = vector.load %arg15[%c0, %c0_0] : memref<64x640xf32, #tpu.memory_space<vmem>>, vector<64x640xf32>
    tpu.vector_store %arg15[%c0, %c0_0], %0 {strides = array<i32>} : memref<64x640xf32, #tpu.memory_space<vmem>>, vector<64x640xf32>,
    %c0_1 = arith.constant 0 : index
    %c0_2 = arith.constant 0 : index
    %c0_3 = arith.constant 0 : index
    %2 = vector.load %arg1[%c0_1, %c0_2, %c0_3] : memref<4x16x128xf32, #tpu.memory_space<vmem>>, vector<1x16x128xf32>
    %3 = vector.shape_cast %2 : vector<1x16x128xf32> to vector<16x128xf32>
    %4 = vector.extract_strided_slice %3 {offsets = [0, 0], sizes = [14, 128], strides = [1, 1]} : vector<16x128xf32> to vector<14x128xf32>
    %c2 = arith.constant 2 : index
    %c0_4 = arith.constant 0 : index
    %5 = vector.load %arg15[%c2, %c0_4] : memref<64x640xf32, #tpu.memory_space<vmem>>, vector<14x128xf32>
    tpu.vector_store %arg15[%c2, %c0_4], %4 {strides = array<i32>} : memref<64x640xf32, #tpu.memory_space<vmem>>, vector<14x128xf32>,
    %6 = vector.extract_strided_slice %3 {offsets = [0, 0], sizes = [15, 128], strides = [1, 1]} : vector<16x128xf32> to vector<15x128xf32>
    %c1 = arith.constant 1 : index
    %c128 = arith.constant 128 : index
    %7 = vector.load %arg15[%c1, %c128] : memref<64x640xf32, #tpu.memory_space<vmem>>, vector<15x128xf32>
    tpu.vector_store %arg15[%c1, %c128], %6 {strides = array<i32>} : memref<64x640xf32, #tpu.memory_space<vmem>>, vector<15x128xf32>,
    %c0_5 = arith.constant 0 : index
    %c256 = arith.constant 256 : index
    %8 = vector.load %arg15[%c0_5, %c256] : memref<64x640xf32, #tpu.memory_space<vmem>>, vector<16x128xf32>
    tpu.vector_store %arg15[%c0_5, %c256], %3 {strides = array<i32>} : memref<64x640xf32, #tpu.memory_space<vmem>>, vector<16x128xf32>,
    %9 = vector.extract_strided_slice %3 {offsets = [1, 0], sizes = [15, 128], strides = [1, 1]} : vector<16x128xf32> to vector<15x128xf32>
    %c0_6 = arith.constant 0 : index
    %c384 = arith.constant 384 : index
    %10 = vector.load %arg15[%c0_6, %c384] : memref<64x640xf32, #tpu.memory_space<vmem>>, vector<15x128xf32>
    tpu.vector_store %arg15[%c0_6, %c384], %9 {strides = array<i32>} : memref<64x640xf32, #tpu.memory_space<vmem>>, vector<15x128xf32>,
    %11 = vector.extract_strided_slice %3 {offsets = [2, 0], sizes = [14, 128], strides = [1, 1]} : vector<16x128xf32> to vector<14x128xf32>
    %c0_7 = arith.constant 0 : index
    %c512 = arith.constant 512 : index
    %12 = vector.load %arg15[%c0_7, %c512] : memref<64x640xf32, #tpu.memory_space<vmem>>, vector<14x128xf32>
    tpu.vector_store %arg15[%c0_7, %c512], %11 {strides = array<i32>} : memref<64x640xf32, #tpu.memory_space<vmem>>, vector<14x128xf32>,
    %c1_8 = arith.constant 1 : index
    %c0_9 = arith.constant 0 : index
    %c0_10 = arith.constant 0 : index
    %13 = vector.load %arg1[%c1_8, %c0_9, %c0_10] : memref<4x16x128xf32, #tpu.memory_space<vmem>>, vector<1x16x128xf32>
    %14 = vector.shape_cast %13 : vector<1x16x128xf32> to vector<16x128xf32>
    %15 = vector.extract_strided_slice %14 {offsets = [0, 0], sizes = [14, 128], strides = [1, 1]} : vector<16x128xf32> to vector<14x128xf32>
    %c18 = arith.constant 18 : index
    %c0_11 = arith.constant 0 : index
    %16 = vector.load %arg15[%c18, %c0_11] : memref<64x640xf32, #tpu.memory_space<vmem>>, vector<14x128xf32>
    tpu.vector_store %arg15[%c18, %c0_11], %15 {strides = array<i32>} : memref<64x640xf32, #tpu.memory_space<vmem>>, vector<14x128xf32>,
    %17 = vector.extract_strided_slice %14 {offsets = [0, 0], sizes = [15, 128], strides = [1, 1]} : vector<16x128xf32> to vector<15x128xf32>
    %c17 = arith.constant 17 : index
    %c128_12 = arith.constant 128 : index
    %18 = vector.load %arg15[%c17, %c128_12] : memref<64x640xf32, #tpu.memory_space<vmem>>, vector<15x128xf32>
    tpu.vector_store %arg15[%c17, %c128_12], %17 {strides = array<i32>} : memref<64x640xf32, #tpu.memory_space<vmem>>, vector<15x128xf32>,
    %c16 = arith.constant 16 : index
    %c256_13 = arith.constant 256 : index
    %19 = vector.load %arg15[%c16, %c256_13] : memref<64x640xf32, #tpu.memory_space<vmem>>, vector<16x128xf32>
    tpu.vector_store %arg15[%c16, %c256_13], %14 {strides = array<i32>} : memref<64x640xf32, #tpu.memory_space<vmem>>, vector<16x128xf32>,
    %20 = vector.extract_strided_slice %14 {offsets = [1, 0], sizes = [15, 128], strides = [1, 1]} : vector<16x128xf32> to vector<15x128xf32>
    %c16_14 = arith.constant 16 : index
    %c384_15 = arith.constant 384 : index
    %21 = vector.load %arg15[%c16_14, %c384_15] : memref<64x640xf32, #tpu.memory_space<vmem>>, vector<15x128xf32>
    tpu.vector_store %arg15[%c16_14, %c384_15], %20 {strides = array<i32>} : memref<64x640xf32, #tpu.memory_space<vmem>>, vector<15x128xf32>,
    %22 = vector.extract_strided_slice %14 {offsets = [2, 0], sizes = [14, 128], strides = [1, 1]} : vector<16x128xf32> to vector<14x128xf32>
    %c16_16 = arith.constant 16 : index
    %c512_17 = arith.constant 512 : index
    %23 = vector.load %arg15[%c16_16, %c512_17] : memref<64x640xf32, #tpu.memory_space<vmem>>, vector<14x128xf32>
    tpu.vector_store %arg15[%c16_16, %c512_17], %22 {strides = array<i32>} : memref<64x640xf32, #tpu.memory_space<vmem>>, vector<14x128xf32>,
    %c2_18 = arith.constant 2 : index
    %c0_19 = arith.constant 0 : index
    %c0_20 = arith.constant 0 : index
    %24 = vector.load %arg1[%c2_18, %c0_19, %c0_20] : memref<4x16x128xf32, #tpu.memory_space<vmem>>, vector<1x16x128xf32>
    %25 = vector.shape_cast %24 : vector<1x16x128xf32> to vector<16x128xf32>
    %26 = vector.extract_strided_slice %25 {offsets = [0, 0], sizes = [14, 128], strides = [1, 1]} : vector<16x128xf32> to vector<14x128xf32>
    %c34 = arith.constant 34 : index
    %c0_21 = arith.constant 0 : index
    %27 = vector.load %arg15[%c34, %c0_21] : memref<64x640xf32, #tpu.memory_space<vmem>>, vector<14x128xf32>
    tpu.vector_store %arg15[%c34, %c0_21], %26 {strides = array<i32>} : memref<64x640xf32, #tpu.memory_space<vmem>>, vector<14x128xf32>,
    %28 = vector.extract_strided_slice %25 {offsets = [0, 0], sizes = [15, 128], strides = [1, 1]} : vector<16x128xf32> to vector<15x128xf32>
    %c33 = arith.constant 33 : index
    %c128_22 = arith.constant 128 : index
    %29 = vector.load %arg15[%c33, %c128_22] : memref<64x640xf32, #tpu.memory_space<vmem>>, vector<15x128xf32>
    tpu.vector_store %arg15[%c33, %c128_22], %28 {strides = array<i32>} : memref<64x640xf32, #tpu.memory_space<vmem>>, vector<15x128xf32>,
    %c32 = arith.constant 32 : index
    %c256_23 = arith.constant 256 : index
    %30 = vector.load %arg15[%c32, %c256_23] : memref<64x640xf32, #tpu.memory_space<vmem>>, vector<16x128xf32>
    tpu.vector_store %arg15[%c32, %c256_23], %25 {strides = array<i32>} : memref<64x640xf32, #tpu.memory_space<vmem>>, vector<16x128xf32>,
    %31 = vector.extract_strided_slice %25 {offsets = [1, 0], sizes = [15, 128], strides = [1, 1]} : vector<16x128xf32> to vector<15x128xf32>
    %c32_24 = arith.constant 32 : index
    %c384_25 = arith.constant 384 : index
    %32 = vector.load %arg15[%c32_24, %c384_25] : memref<64x640xf32, #tpu.memory_space<vmem>>, vector<15x128xf32>
    tpu.vector_store %arg15[%c32_24, %c384_25], %31 {strides = array<i32>} : memref<64x640xf32, #tpu.memory_space<vmem>>, vector<15x128xf32>,
    %33 = vector.extract_strided_slice %25 {offsets = [2, 0], sizes = [14, 128], strides = [1, 1]} : vector<16x128xf32> to vector<14x128xf32>
    %c32_26 = arith.constant 32 : index
    %c512_27 = arith.constant 512 : index
    %34 = vector.load %arg15[%c32_26, %c512_27] : memref<64x640xf32, #tpu.memory_space<vmem>>, vector<14x128xf32>
    tpu.vector_store %arg15[%c32_26, %c512_27], %33 {strides = array<i32>} : memref<64x640xf32, #tpu.memory_space<vmem>>, vector<14x128xf32>,
    %c3 = arith.constant 3 : index
    %c0_28 = arith.constant 0 : index
    %c0_29 = arith.constant 0 : index
    %35 = vector.load %arg1[%c3, %c0_28, %c0_29] : memref<4x16x128xf32, #tpu.memory_space<vmem>>, vector<1x16x128xf32>
    %36 = vector.shape_cast %35 : vector<1x16x128xf32> to vector<16x128xf32>
    %37 = vector.extract_strided_slice %36 {offsets = [0, 0], sizes = [14, 128], strides = [1, 1]} : vector<16x128xf32> to vector<14x128xf32>
    %c50 = arith.constant 50 : index
    %c0_30 = arith.constant 0 : index
    %38 = vector.load %arg15[%c50, %c0_30] : memref<64x640xf32, #tpu.memory_space<vmem>>, vector<14x128xf32>
    tpu.vector_store %arg15[%c50, %c0_30], %37 {strides = array<i32>} : memref<64x640xf32, #tpu.memory_space<vmem>>, vector<14x128xf32>,
    %39 = vector.extract_strided_slice %36 {offsets = [0, 0], sizes = [15, 128], strides = [1, 1]} : vector<16x128xf32> to vector<15x128xf32>
    %c49 = arith.constant 49 : index
    %c128_31 = arith.constant 128 : index
    %40 = vector.load %arg15[%c49, %c128_31] : memref<64x640xf32, #tpu.memory_space<vmem>>, vector<15x128xf32>
    tpu.vector_store %arg15[%c49, %c128_31], %39 {strides = array<i32>} : memref<64x640xf32, #tpu.memory_space<vmem>>, vector<15x128xf32>,
    %c48 = arith.constant 48 : index
    %c256_32 = arith.constant 256 : index
    %41 = vector.load %arg15[%c48, %c256_32] : memref<64x640xf32, #tpu.memory_space<vmem>>, vector<16x128xf32>
    tpu.vector_store %arg15[%c48, %c256_32], %36 {strides = array<i32>} : memref<64x640xf32, #tpu.memory_space<vmem>>, vector<16x128xf32>,
    %42 = vector.extract_strided_slice %36 {offsets = [1, 0], sizes = [15, 128], strides = [1, 1]} : vector<16x128xf32> to vector<15x128xf32>
    %c48_33 = arith.constant 48 : index
    %c384_34 = arith.constant 384 : index
    %43 = vector.load %arg15[%c48_33, %c384_34] : memref<64x640xf32, #tpu.memory_space<vmem>>, vector<15x128xf32>
    tpu.vector_store %arg15[%c48_33, %c384_34], %42 {strides = array<i32>} : memref<64x640xf32, #tpu.memory_space<vmem>>, vector<15x128xf32>,
    %44 = vector.extract_strided_slice %36 {offsets = [2, 0], sizes = [14, 128], strides = [1, 1]} : vector<16x128xf32> to vector<14x128xf32>
    %c48_35 = arith.constant 48 : index
    %c512_36 = arith.constant 512 : index
    %45 = vector.load %arg15[%c48_35, %c512_36] : memref<64x640xf32, #tpu.memory_space<vmem>>, vector<14x128xf32>
    tpu.vector_store %arg15[%c48_35, %c512_36], %44 {strides = array<i32>} : memref<64x640xf32, #tpu.memory_space<vmem>>, vector<14x128xf32>,
    %c0_37 = arith.constant 0 : index
    %c0_38 = arith.constant 0 : index
    %46 = vector.load %arg15[%c0_37, %c0_38] : memref<64x640xf32, #tpu.memory_space<vmem>>, vector<64x640xf32>
    %47 = arith.truncf %46 : vector<64x640xf32> to vector<64x640xbf16>
    %c0_39 = arith.constant 0 : index
    %c0_40 = arith.constant 0 : index
    %48 = vector.load %arg2[%c0_39, %c0_40] : memref<640x512xbf16, #tpu.memory_space<vmem>>, vector<640x512xbf16>
    %cst_41 = arith.constant dense<0.000000e+00> : vector<64x512xf32>
    %49 = tpu.matmul %47, %48, %cst_41 {dimension_numbers = #tpu.dot_dimension_numbers<[1], [0], [0], [1], [0, 0, 1, 1], [], []>} : vector<64x640xbf16>, vector<640x512xbf16>, vector<64x512xf32> -> vector<64x512xf32>
    %c0_42 = arith.constant 0 : index
    %c0_43 = arith.constant 0 : index
    %50 = vector.load %arg3[%c0_42, %c0_43] : memref<1x512xf32, #tpu.memory_space<vmem>>, vector<1x512xf32>
    %51 = vector.broadcast %50 : vector<1x512xf32> to vector<64x512xf32>
    %52 = arith.addf %49, %51 : vector<64x512xf32>
    %cst_44 = arith.constant 0.000000e+00 : f32
    %53 = vector.broadcast %cst_44 : f32 to vector<64x512xf32>
    %54 = arith.maximumf %52, %53 : vector<64x512xf32>
    %55 = vector.extract_strided_slice %54 {offsets = [0, 0], sizes = [64, 448], strides = [1, 1]} : vector<64x512xf32> to vector<64x448xf32>
    %56 = vector.extract_strided_slice %54 {offsets = [0, 32], sizes = [64, 448], strides = [1, 1]} : vector<64x512xf32> to vector<64x448xf32>
    %57 = vector.extract_strided_slice %54 {offsets = [0, 64], sizes = [64, 448], strides = [1, 1]} : vector<64x512xf32> to vector<64x448xf32>
    %c0_45 = arith.constant 0 : index
    %c0_46 = arith.constant 0 : index
    %58 = vector.load %arg4[%c0_45, %c0_46] : memref<9x448xf32, #tpu.memory_space<vmem>>, vector<1x448xf32>
    %c1_47 = arith.constant 1 : index
    %c0_48 = arith.constant 0 : index
    %59 = vector.load %arg4[%c1_47, %c0_48] : memref<9x448xf32, #tpu.memory_space<vmem>>, vector<1x448xf32>
    %c2_49 = arith.constant 2 : index
    %c0_50 = arith.constant 0 : index
    %60 = vector.load %arg4[%c2_49, %c0_50] : memref<9x448xf32, #tpu.memory_space<vmem>>, vector<1x448xf32>
    %c3_51 = arith.constant 3 : index
    %c0_52 = arith.constant 0 : index
    %61 = vector.load %arg4[%c3_51, %c0_52] : memref<9x448xf32, #tpu.memory_space<vmem>>, vector<1x448xf32>
    %c4 = arith.constant 4 : index
    %c0_53 = arith.constant 0 : index
    %62 = vector.load %arg4[%c4, %c0_53] : memref<9x448xf32, #tpu.memory_space<vmem>>, vector<1x448xf32>
    %c5 = arith.constant 5 : index
    %c0_54 = arith.constant 0 : index
    %63 = vector.load %arg4[%c5, %c0_54] : memref<9x448xf32, #tpu.memory_space<vmem>>, vector<1x448xf32>
    %c6 = arith.constant 6 : index
    %c0_55 = arith.constant 0 : index
    %64 = vector.load %arg4[%c6, %c0_55] : memref<9x448xf32, #tpu.memory_space<vmem>>, vector<1x448xf32>
    %c7 = arith.constant 7 : index
    %c0_56 = arith.constant 0 : index
    %65 = vector.load %arg4[%c7, %c0_56] : memref<9x448xf32, #tpu.memory_space<vmem>>, vector<1x448xf32>
    %c8 = arith.constant 8 : index
    %c0_57 = arith.constant 0 : index
    %66 = vector.load %arg4[%c8, %c0_57] : memref<9x448xf32, #tpu.memory_space<vmem>>, vector<1x448xf32>
    %c0_58 = arith.constant 0 : index
    %c0_59 = arith.constant 0 : index
    %67 = vector.load %arg5[%c0_58, %c0_59] : memref<1x448xf32, #tpu.memory_space<vmem>>, vector<1x448xf32>
    %cst_60 = arith.constant 0.000000e+00 : f32
    %68 = vector.broadcast %cst_60 : f32 to vector<48x1536xf32>
    %c0_61 = arith.constant 0 : index
    %c0_62 = arith.constant 0 : index
    %69 = vector.load %arg16[%c0_61, %c0_62] : memref<48x1536xf32, #tpu.memory_space<vmem>>, vector<48x1536xf32>
    tpu.vector_store %arg16[%c0_61, %c0_62], %68 {strides = array<i32>} : memref<48x1536xf32, #tpu.memory_space<vmem>>, vector<48x1536xf32>,
    %70 = vector.extract_strided_slice %55 {offsets = [0, 0], sizes = [14, 448], strides = [1, 1]} : vector<64x448xf32> to vector<14x448xf32>
    %71 = vector.broadcast %58 : vector<1x448xf32> to vector<14x448xf32>
    %72 = arith.mulf %70, %71 : vector<14x448xf32>
    %73 = vector.extract_strided_slice %55 {offsets = [1, 0], sizes = [14, 448], strides = [1, 1]} : vector<64x448xf32> to vector<14x448xf32>
    %74 = vector.broadcast %61 : vector<1x448xf32> to vector<14x448xf32>
    %75 = arith.mulf %73, %74 : vector<14x448xf32>
    %76 = arith.addf %72, %75 : vector<14x448xf32>
    %77 = vector.extract_strided_slice %55 {offsets = [2, 0], sizes = [14, 448], strides = [1, 1]} : vector<64x448xf32> to vector<14x448xf32>
    %78 = vector.broadcast %64 : vector<1x448xf32> to vector<14x448xf32>
    %79 = arith.mulf %77, %78 : vector<14x448xf32>
    %80 = arith.addf %76, %79 : vector<14x448xf32>
    %81 = vector.extract_strided_slice %56 {offsets = [0, 0], sizes = [14, 448], strides = [1, 1]} : vector<64x448xf32> to vector<14x448xf32>
    %82 = vector.broadcast %59 : vector<1x448xf32> to vector<14x448xf32>
    %83 = arith.mulf %81, %82 : vector<14x448xf32>
    %84 = arith.addf %80, %83 : vector<14x448xf32>
    %85 = vector.extract_strided_slice %56 {offsets = [1, 0], sizes = [14, 448], strides = [1, 1]} : vector<64x448xf32> to vector<14x448xf32>
    %86 = vector.broadcast %62 : vector<1x448xf32> to vector<14x448xf32>
    %87 = arith.mulf %85, %86 : vector<14x448xf32>
    %88 = arith.addf %84, %87 : vector<14x448xf32>
    %89 = vector.extract_strided_slice %56 {offsets = [2, 0], sizes = [14, 448], strides = [1, 1]} : vector<64x448xf32> to vector<14x448xf32>
    %90 = vector.broadcast %65 : vector<1x448xf32> to vector<14x448xf32>
    %91 = arith.mulf %89, %90 : vector<14x448xf32>
    %92 = arith.addf %88, %91 : vector<14x448xf32>
    %93 = vector.extract_strided_slice %57 {offsets = [0, 0], sizes = [14, 448], strides = [1, 1]} : vector<64x448xf32> to vector<14x448xf32>
    %94 = vector.broadcast %60 : vector<1x448xf32> to vector<14x448xf32>
    %95 = arith.mulf %93, %94 : vector<14x448xf32>
    %96 = arith.addf %92, %95 : vector<14x448xf32>
    %97 = vector.extract_strided_slice %57 {offsets = [1, 0], sizes = [14, 448], strides = [1, 1]} : vector<64x448xf32> to vector<14x448xf32>
    %98 = vector.broadcast %63 : vector<1x448xf32> to vector<14x448xf32>
    %99 = arith.mulf %97, %98 : vector<14x448xf32>
    %100 = arith.addf %96, %99 : vector<14x448xf32>
    %101 = vector.extract_strided_slice %57 {offsets = [2, 0], sizes = [14, 448], strides = [1, 1]} : vector<64x448xf32> to vector<14x448xf32>
    %102 = vector.broadcast %66 : vector<1x448xf32> to vector<14x448xf32>
    %103 = arith.mulf %101, %102 : vector<14x448xf32>
    %104 = arith.addf %100, %103 : vector<14x448xf32>
    %105 = vector.broadcast %67 : vector<1x448xf32> to vector<14x448xf32>
    %106 = arith.addf %104, %105 : vector<14x448xf32>
    %cst_63 = arith.constant 0.000000e+00 : f32
    %107 = vector.broadcast %cst_63 : f32 to vector<14x448xf32>
    %108 = arith.maximumf %106, %107 : vector<14x448xf32>
    %109 = vector.extract_strided_slice %108 {offsets = [0, 0], sizes = [12, 448], strides = [1, 1]} : vector<14x448xf32> to vector<12x448xf32>
    %c0_64 = arith.constant 0 : index
    %c0_65 = arith.constant 0 : index
    %110 = vector.load %arg16[%c0_64, %c0_65] : memref<48x1536xf32, #tpu.memory_space<vmem>>, vector<12x448xf32>
    tpu.vector_store %arg16[%c0_64, %c0_65], %109 {strides = array<i32>} : memref<48x1536xf32, #tpu.memory_space<vmem>>, vector<12x448xf32>,
    %111 = vector.extract_strided_slice %108 {offsets = [1, 0], sizes = [12, 448], strides = [1, 1]} : vector<14x448xf32> to vector<12x448xf32>
    %c0_66 = arith.constant 0 : index
    %c512_67 = arith.constant 512 : index
    %112 = vector.load %arg16[%c0_66, %c512_67] : memref<48x1536xf32, #tpu.memory_space<vmem>>, vector<12x448xf32>
    tpu.vector_store %arg16[%c0_66, %c512_67], %111 {strides = array<i32>} : memref<48x1536xf32, #tpu.memory_space<vmem>>, vector<12x448xf32>,
    %113 = vector.extract_strided_slice %108 {offsets = [2, 0], sizes = [12, 448], strides = [1, 1]} : vector<14x448xf32> to vector<12x448xf32>
    %c0_68 = arith.constant 0 : index
    %c1024 = arith.constant 1024 : index
    %114 = vector.load %arg16[%c0_68, %c1024] : memref<48x1536xf32, #tpu.memory_space<vmem>>, vector<12x448xf32>
    tpu.vector_store %arg16[%c0_68, %c1024], %113 {strides = array<i32>} : memref<48x1536xf32, #tpu.memory_space<vmem>>, vector<12x448xf32>,
    %115 = vector.extract_strided_slice %55 {offsets = [16, 0], sizes = [14, 448], strides = [1, 1]} : vector<64x448xf32> to vector<14x448xf32>
    %116 = vector.broadcast %58 : vector<1x448xf32> to vector<14x448xf32>
    %117 = arith.mulf %115, %116 : vector<14x448xf32>
    %118 = vector.extract_strided_slice %55 {offsets = [17, 0], sizes = [14, 448], strides = [1, 1]} : vector<64x448xf32> to vector<14x448xf32>
    %119 = vector.broadcast %61 : vector<1x448xf32> to vector<14x448xf32>
    %120 = arith.mulf %118, %119 : vector<14x448xf32>
    %121 = arith.addf %117, %120 : vector<14x448xf32>
    %122 = vector.extract_strided_slice %55 {offsets = [18, 0], sizes = [14, 448], strides = [1, 1]} : vector<64x448xf32> to vector<14x448xf32>
    %123 = vector.broadcast %64 : vector<1x448xf32> to vector<14x448xf32>
    %124 = arith.mulf %122, %123 : vector<14x448xf32>
    %125 = arith.addf %121, %124 : vector<14x448xf32>
    %126 = vector.extract_strided_slice %56 {offsets = [16, 0], sizes = [14, 448], strides = [1, 1]} : vector<64x448xf32> to vector<14x448xf32>
    %127 = vector.broadcast %59 : vector<1x448xf32> to vector<14x448xf32>
    %128 = arith.mulf %126, %127 : vector<14x448xf32>
    %129 = arith.addf %125, %128 : vector<14x448xf32>
    %130 = vector.extract_strided_slice %56 {offsets = [17, 0], sizes = [14, 448], strides = [1, 1]} : vector<64x448xf32> to vector<14x448xf32>
    %131 = vector.broadcast %62 : vector<1x448xf32> to vector<14x448xf32>
    %132 = arith.mulf %130, %131 : vector<14x448xf32>
    %133 = arith.addf %129, %132 : vector<14x448xf32>
    %134 = vector.extract_strided_slice %56 {offsets = [18, 0], sizes = [14, 448], strides = [1, 1]} : vector<64x448xf32> to vector<14x448xf32>
    %135 = vector.broadcast %65 : vector<1x448xf32> to vector<14x448xf32>
    %136 = arith.mulf %134, %135 : vector<14x448xf32>
    %137 = arith.addf %133, %136 : vector<14x448xf32>
    %138 = vector.extract_strided_slice %57 {offsets = [16, 0], sizes = [14, 448], strides = [1, 1]} : vector<64x448xf32> to vector<14x448xf32>
    %139 = vector.broadcast %60 : vector<1x448xf32> to vector<14x448xf32>
    %140 = arith.mulf %138, %139 : vector<14x448xf32>
    %141 = arith.addf %137, %140 : vector<14x448xf32>
    %142 = vector.extract_strided_slice %57 {offsets = [17, 0], sizes = [14, 448], strides = [1, 1]} : vector<64x448xf32> to vector<14x448xf32>
    %143 = vector.broadcast %63 : vector<1x448xf32> to vector<14x448xf32>
    %144 = arith.mulf %142, %143 : vector<14x448xf32>
    %145 = arith.addf %141, %144 : vector<14x448xf32>
    %146 = vector.extract_strided_slice %57 {offsets = [18, 0], sizes = [14, 448], strides = [1, 1]} : vector<64x448xf32> to vector<14x448xf32>
    %147 = vector.broadcast %66 : vector<1x448xf32> to vector<14x448xf32>
    %148 = arith.mulf %146, %147 : vector<14x448xf32>
    %149 = arith.addf %145, %148 : vector<14x448xf32>
    %150 = vector.broadcast %67 : vector<1x448xf32> to vector<14x448xf32>
    %151 = arith.addf %149, %150 : vector<14x448xf32>
    %cst_69 = arith.constant 0.000000e+00 : f32
    %152 = vector.broadcast %cst_69 : f32 to vector<14x448xf32>
    %153 = arith.maximumf %151, %152 : vector<14x448xf32>
    %154 = vector.extract_strided_slice %153 {offsets = [0, 0], sizes = [12, 448], strides = [1, 1]} : vector<14x448xf32> to vector<12x448xf32>
    %c12 = arith.constant 12 : index
    %c0_70 = arith.constant 0 : index
    %155 = vector.load %arg16[%c12, %c0_70] : memref<48x1536xf32, #tpu.memory_space<vmem>>, vector<12x448xf32>
    tpu.vector_store %arg16[%c12, %c0_70], %154 {strides = array<i32>} : memref<48x1536xf32, #tpu.memory_space<vmem>>, vector<12x448xf32>,
    %156 = vector.extract_strided_slice %153 {offsets = [1, 0], sizes = [12, 448], strides = [1, 1]} : vector<14x448xf32> to vector<12x448xf32>
    %c12_71 = arith.constant 12 : index
    %c512_72 = arith.constant 512 : index
    %157 = vector.load %arg16[%c12_71, %c512_72] : memref<48x1536xf32, #tpu.memory_space<vmem>>, vector<12x448xf32>
    tpu.vector_store %arg16[%c12_71, %c512_72], %156 {strides = array<i32>} : memref<48x1536xf32, #tpu.memory_space<vmem>>, vector<12x448xf32>,
    %158 = vector.extract_strided_slice %153 {offsets = [2, 0], sizes = [12, 448], strides = [1, 1]} : vector<14x448xf32> to vector<12x448xf32>
    %c12_73 = arith.constant 12 : index
    %c1024_74 = arith.constant 1024 : index
    %159 = vector.load %arg16[%c12_73, %c1024_74] : memref<48x1536xf32, #tpu.memory_space<vmem>>, vector<12x448xf32>
    tpu.vector_store %arg16[%c12_73, %c1024_74], %158 {strides = array<i32>} : memref<48x1536xf32, #tpu.memory_space<vmem>>, vector<12x448xf32>,
    %160 = vector.extract_strided_slice %55 {offsets = [32, 0], sizes = [14, 448], strides = [1, 1]} : vector<64x448xf32> to vector<14x448xf32>
    %161 = vector.broadcast %58 : vector<1x448xf32> to vector<14x448xf32>
    %162 = arith.mulf %160, %161 : vector<14x448xf32>
    %163 = vector.extract_strided_slice %55 {offsets = [33, 0], sizes = [14, 448], strides = [1, 1]} : vector<64x448xf32> to vector<14x448xf32>
    %164 = vector.broadcast %61 : vector<1x448xf32> to vector<14x448xf32>
    %165 = arith.mulf %163, %164 : vector<14x448xf32>
    %166 = arith.addf %162, %165 : vector<14x448xf32>
    %167 = vector.extract_strided_slice %55 {offsets = [34, 0], sizes = [14, 448], strides = [1, 1]} : vector<64x448xf32> to vector<14x448xf32>
    %168 = vector.broadcast %64 : vector<1x448xf32> to vector<14x448xf32>
    %169 = arith.mulf %167, %168 : vector<14x448xf32>
    %170 = arith.addf %166, %169 : vector<14x448xf32>
    %171 = vector.extract_strided_slice %56 {offsets = [32, 0], sizes = [14, 448], strides = [1, 1]} : vector<64x448xf32> to vector<14x448xf32>
    %172 = vector.broadcast %59 : vector<1x448xf32> to vector<14x448xf32>
    %173 = arith.mulf %171, %172 : vector<14x448xf32>
    %174 = arith.addf %170, %173 : vector<14x448xf32>
    %175 = vector.extract_strided_slice %56 {offsets = [33, 0], sizes = [14, 448], strides = [1, 1]} : vector<64x448xf32> to vector<14x448xf32>
    %176 = vector.broadcast %62 : vector<1x448xf32> to vector<14x448xf32>
    %177 = arith.mulf %175, %176 : vector<14x448xf32>
    %178 = arith.addf %174, %177 : vector<14x448xf32>
    %179 = vector.extract_strided_slice %56 {offsets = [34, 0], sizes = [14, 448], strides = [1, 1]} : vector<64x448xf32> to vector<14x448xf32>
    %180 = vector.broadcast %65 : vector<1x448xf32> to vector<14x448xf32>
    %181 = arith.mulf %179, %180 : vector<14x448xf32>
    %182 = arith.addf %178, %181 : vector<14x448xf32>
    %183 = vector.extract_strided_slice %57 {offsets = [32, 0], sizes = [14, 448], strides = [1, 1]} : vector<64x448xf32> to vector<14x448xf32>
    %184 = vector.broadcast %60 : vector<1x448xf32> to vector<14x448xf32>
    %185 = arith.mulf %183, %184 : vector<14x448xf32>
    %186 = arith.addf %182, %185 : vector<14x448xf32>
    %187 = vector.extract_strided_slice %57 {offsets = [33, 0], sizes = [14, 448], strides = [1, 1]} : vector<64x448xf32> to vector<14x448xf32>
    %188 = vector.broadcast %63 : vector<1x448xf32> to vector<14x448xf32>
    %189 = arith.mulf %187, %188 : vector<14x448xf32>
    %190 = arith.addf %186, %189 : vector<14x448xf32>
    %191 = vector.extract_strided_slice %57 {offsets = [34, 0], sizes = [14, 448], strides = [1, 1]} : vector<64x448xf32> to vector<14x448xf32>
    %192 = vector.broadcast %66 : vector<1x448xf32> to vector<14x448xf32>
    %193 = arith.mulf %191, %192 : vector<14x448xf32>
    %194 = arith.addf %190, %193 : vector<14x448xf32>
    %195 = vector.broadcast %67 : vector<1x448xf32> to vector<14x448xf32>
    %196 = arith.addf %194, %195 : vector<14x448xf32>
    %cst_75 = arith.constant 0.000000e+00 : f32
    %197 = vector.broadcast %cst_75 : f32 to vector<14x448xf32>
    %198 = arith.maximumf %196, %197 : vector<14x448xf32>
    %199 = vector.extract_strided_slice %198 {offsets = [0, 0], sizes = [12, 448], strides = [1, 1]} : vector<14x448xf32> to vector<12x448xf32>
    %c24 = arith.constant 24 : index
    %c0_76 = arith.constant 0 : index
    %200 = vector.load %arg16[%c24, %c0_76] : memref<48x1536xf32, #tpu.memory_space<vmem>>, vector<12x448xf32>
    tpu.vector_store %arg16[%c24, %c0_76], %199 {strides = array<i32>} : memref<48x1536xf32, #tpu.memory_space<vmem>>, vector<12x448xf32>,
    %201 = vector.extract_strided_slice %198 {offsets = [1, 0], sizes = [12, 448], strides = [1, 1]} : vector<14x448xf32> to vector<12x448xf32>
    %c24_77 = arith.constant 24 : index
    %c512_78 = arith.constant 512 : index
    %202 = vector.load %arg16[%c24_77, %c512_78] : memref<48x1536xf32, #tpu.memory_space<vmem>>, vector<12x448xf32>
    tpu.vector_store %arg16[%c24_77, %c512_78], %201 {strides = array<i32>} : memref<48x1536xf32, #tpu.memory_space<vmem>>, vector<12x448xf32>,
    %203 = vector.extract_strided_slice %198 {offsets = [2, 0], sizes = [12, 448], strides = [1, 1]} : vector<14x448xf32> to vector<12x448xf32>
    %c24_79 = arith.constant 24 : index
    %c1024_80 = arith.constant 1024 : index
    %204 = vector.load %arg16[%c24_79, %c1024_80] : memref<48x1536xf32, #tpu.memory_space<vmem>>, vector<12x448xf32>
    tpu.vector_store %arg16[%c24_79, %c1024_80], %203 {strides = array<i32>} : memref<48x1536xf32, #tpu.memory_space<vmem>>, vector<12x448xf32>,
    %205 = vector.extract_strided_slice %55 {offsets = [48, 0], sizes = [14, 448], strides = [1, 1]} : vector<64x448xf32> to vector<14x448xf32>
    %206 = vector.broadcast %58 : vector<1x448xf32> to vector<14x448xf32>
    %207 = arith.mulf %205, %206 : vector<14x448xf32>
    %208 = vector.extract_strided_slice %55 {offsets = [49, 0], sizes = [14, 448], strides = [1, 1]} : vector<64x448xf32> to vector<14x448xf32>
    %209 = vector.broadcast %61 : vector<1x448xf32> to vector<14x448xf32>
    %210 = arith.mulf %208, %209 : vector<14x448xf32>
    %211 = arith.addf %207, %210 : vector<14x448xf32>
    %212 = vector.extract_strided_slice %55 {offsets = [50, 0], sizes = [14, 448], strides = [1, 1]} : vector<64x448xf32> to vector<14x448xf32>
    %213 = vector.broadcast %64 : vector<1x448xf32> to vector<14x448xf32>
    %214 = arith.mulf %212, %213 : vector<14x448xf32>
    %215 = arith.addf %211, %214 : vector<14x448xf32>
    %216 = vector.extract_strided_slice %56 {offsets = [48, 0], sizes = [14, 448], strides = [1, 1]} : vector<64x448xf32> to vector<14x448xf32>
    %217 = vector.broadcast %59 : vector<1x448xf32> to vector<14x448xf32>
    %218 = arith.mulf %216, %217 : vector<14x448xf32>
    %219 = arith.addf %215, %218 : vector<14x448xf32>
    %220 = vector.extract_strided_slice %56 {offsets = [49, 0], sizes = [14, 448], strides = [1, 1]} : vector<64x448xf32> to vector<14x448xf32>
    %221 = vector.broadcast %62 : vector<1x448xf32> to vector<14x448xf32>
    %222 = arith.mulf %220, %221 : vector<14x448xf32>
    %223 = arith.addf %219, %222 : vector<14x448xf32>
    %224 = vector.extract_strided_slice %56 {offsets = [50, 0], sizes = [14, 448], strides = [1, 1]} : vector<64x448xf32> to vector<14x448xf32>
    %225 = vector.broadcast %65 : vector<1x448xf32> to vector<14x448xf32>
    %226 = arith.mulf %224, %225 : vector<14x448xf32>
    %227 = arith.addf %223, %226 : vector<14x448xf32>
    %228 = vector.extract_strided_slice %57 {offsets = [48, 0], sizes = [14, 448], strides = [1, 1]} : vector<64x448xf32> to vector<14x448xf32>
    %229 = vector.broadcast %60 : vector<1x448xf32> to vector<14x448xf32>
    %230 = arith.mulf %228, %229 : vector<14x448xf32>
    %231 = arith.addf %227, %230 : vector<14x448xf32>
    %232 = vector.extract_strided_slice %57 {offsets = [49, 0], sizes = [14, 448], strides = [1, 1]} : vector<64x448xf32> to vector<14x448xf32>
    %233 = vector.broadcast %63 : vector<1x448xf32> to vector<14x448xf32>
    %234 = arith.mulf %232, %233 : vector<14x448xf32>
    %235 = arith.addf %231, %234 : vector<14x448xf32>
    %236 = vector.extract_strided_slice %57 {offsets = [50, 0], sizes = [14, 448], strides = [1, 1]} : vector<64x448xf32> to vector<14x448xf32>
    %237 = vector.broadcast %66 : vector<1x448xf32> to vector<14x448xf32>
    %238 = arith.mulf %236, %237 : vector<14x448xf32>
    %239 = arith.addf %235, %238 : vector<14x448xf32>
    %240 = vector.broadcast %67 : vector<1x448xf32> to vector<14x448xf32>
    %241 = arith.addf %239, %240 : vector<14x448xf32>
    %cst_81 = arith.constant 0.000000e+00 : f32
    %242 = vector.broadcast %cst_81 : f32 to vector<14x448xf32>
    %243 = arith.maximumf %241, %242 : vector<14x448xf32>
    %244 = vector.extract_strided_slice %243 {offsets = [0, 0], sizes = [12, 448], strides = [1, 1]} : vector<14x448xf32> to vector<12x448xf32>
    %c36 = arith.constant 36 : index
    %c0_82 = arith.constant 0 : index
    %245 = vector.load %arg16[%c36, %c0_82] : memref<48x1536xf32, #tpu.memory_space<vmem>>, vector<12x448xf32>
    tpu.vector_store %arg16[%c36, %c0_82], %244 {strides = array<i32>} : memref<48x1536xf32, #tpu.memory_space<vmem>>, vector<12x448xf32>,
    %246 = vector.extract_strided_slice %243 {offsets = [1, 0], sizes = [12, 448], strides = [1, 1]} : vector<14x448xf32> to vector<12x448xf32>
    %c36_83 = arith.constant 36 : index
    %c512_84 = arith.constant 512 : index
    %247 = vector.load %arg16[%c36_83, %c512_84] : memref<48x1536xf32, #tpu.memory_space<vmem>>, vector<12x448xf32>
    tpu.vector_store %arg16[%c36_83, %c512_84], %246 {strides = array<i32>} : memref<48x1536xf32, #tpu.memory_space<vmem>>, vector<12x448xf32>,
    %248 = vector.extract_strided_slice %243 {offsets = [2, 0], sizes = [12, 448], strides = [1, 1]} : vector<14x448xf32> to vector<12x448xf32>
    %c36_85 = arith.constant 36 : index
    %c1024_86 = arith.constant 1024 : index
    %249 = vector.load %arg16[%c36_85, %c1024_86] : memref<48x1536xf32, #tpu.memory_space<vmem>>, vector<12x448xf32>
    tpu.vector_store %arg16[%c36_85, %c1024_86], %248 {strides = array<i32>} : memref<48x1536xf32, #tpu.memory_space<vmem>>, vector<12x448xf32>,
    %c0_87 = arith.constant 0 : index
    %c0_88 = arith.constant 0 : index
    %250 = vector.load %arg16[%c0_87, %c0_88] : memref<48x1536xf32, #tpu.memory_space<vmem>>, vector<48x1536xf32>
    %251 = arith.truncf %250 : vector<48x1536xf32> to vector<48x1536xbf16>
    %c0_89 = arith.constant 0 : index
    %c0_90 = arith.constant 0 : index
    %252 = vector.load %arg6[%c0_89, %c0_90] : memref<1536x384xbf16, #tpu.memory_space<vmem>>, vector<1536x384xbf16>
    %cst_91 = arith.constant dense<0.000000e+00> : vector<48x384xf32>
    %253 = tpu.matmul %251, %252, %cst_91 {dimension_numbers = #tpu.dot_dimension_numbers<[1], [0], [0], [1], [0, 0, 1, 1], [], []>} : vector<48x1536xbf16>, vector<1536x384xbf16>, vector<48x384xf32> -> vector<48x384xf32>
    %c0_92 = arith.constant 0 : index
    %c0_93 = arith.constant 0 : index
    %254 = vector.load %arg7[%c0_92, %c0_93] : memref<1x384xf32, #tpu.memory_space<vmem>>, vector<1x384xf32>
    %255 = vector.broadcast %254 : vector<1x384xf32> to vector<48x384xf32>
    %256 = arith.addf %253, %255 : vector<48x384xf32>
    %cst_94 = arith.constant 0.000000e+00 : f32
    %257 = vector.broadcast %cst_94 : f32 to vector<48x384xf32>
    %258 = arith.maximumf %256, %257 : vector<48x384xf32>
    %c0_95 = arith.constant 0 : index
    %c0_96 = arith.constant 0 : index
    %259 = vector.load %arg8[%c0_95, %c0_96] : memref<4x48xf32, #tpu.memory_space<vmem>>, vector<4x48xf32>
    %cst_97 = arith.constant dense<0.000000e+00> : vector<4x384xf32>
    %260 = tpu.matmul %259, %258, %cst_97 {dimension_numbers = #tpu.dot_dimension_numbers<[1], [0], [0], [1], [0, 0, 1, 1], [], []>} : vector<4x48xf32>, vector<48x384xf32>, vector<4x384xf32> -> vector<4x384xf32>
    %c0_98 = arith.constant 0 : index
    %c0_99 = arith.constant 0 : index
    %261 = vector.load %arg9[%c0_98, %c0_99] : memref<384x32xf32, #tpu.memory_space<vmem>>, vector<384x32xf32>
    %cst_100 = arith.constant dense<0.000000e+00> : vector<4x32xf32>
    %262 = tpu.matmul %260, %261, %cst_100 {dimension_numbers = #tpu.dot_dimension_numbers<[1], [0], [0], [1], [0, 0, 1, 1], [], []>} : vector<4x384xf32>, vector<384x32xf32>, vector<4x32xf32> -> vector<4x32xf32>
    %cst_101 = arith.constant 0.0069444445 : f32
    %263 = vector.broadcast %cst_101 : f32 to vector<4x32xf32>
    %264 = arith.mulf %262, %263 : vector<4x32xf32>
    %c0_102 = arith.constant 0 : index
    %c0_103 = arith.constant 0 : index
    %265 = vector.load %arg10[%c0_102, %c0_103] : memref<32x4xf32, #tpu.memory_space<vmem>>, vector<32x4xf32>
    %cst_104 = arith.constant dense<0.000000e+00> : vector<4x4xf32>
    %266 = tpu.matmul %264, %265, %cst_104 {dimension_numbers = #tpu.dot_dimension_numbers<[1], [0], [0], [1], [0, 0, 1, 1], [], []>} : vector<4x32xf32>, vector<32x4xf32>, vector<4x4xf32> -> vector<4x4xf32>
    %cst_105 = arith.constant 0.000000e+00 : f32
    %267 = vector.broadcast %cst_105 : f32 to vector<4x4xf32>
    %268 = arith.maximumf %266, %267 : vector<4x4xf32>
    %c0_106 = arith.constant 0 : index
    %c0_107 = arith.constant 0 : index
    %269 = vector.load %arg11[%c0_106, %c0_107] : memref<4x32xf32, #tpu.memory_space<vmem>>, vector<4x32xf32>
    %cst_108 = arith.constant dense<0.000000e+00> : vector<4x32xf32>
    %270 = tpu.matmul %268, %269, %cst_108 {dimension_numbers = #tpu.dot_dimension_numbers<[1], [0], [0], [1], [0, 0, 1, 1], [], []>} : vector<4x4xf32>, vector<4x32xf32>, vector<4x32xf32> -> vector<4x32xf32>
    %cst_109 = arith.constant 0.000000e+00 : f32
    %271 = vector.broadcast %cst_109 : f32 to vector<4x32xf32>
    %272 = arith.subf %271, %270 : vector<4x32xf32>
    %273 = math.exp %272 : vector<4x32xf32>
    %cst_110 = arith.constant 1.000000e+00 : f32
    %274 = vector.broadcast %cst_110 : f32 to vector<4x32xf32>
    %275 = arith.addf %274, %273 : vector<4x32xf32>
    %276 = tpu.reciprocal %275 {approx = true} : vector<4x32xf32> -> vector<4x32xf32>
    %277 = arith.mulf %264, %276 : vector<4x32xf32>
    %c0_111 = arith.constant 0 : index
    %c0_112 = arith.constant 0 : index
    %278 = vector.load %arg12[%c0_111, %c0_112] : memref<32x16xf32, #tpu.memory_space<vmem>>, vector<32x16xf32>
    %cst_113 = arith.constant dense<0.000000e+00> : vector<4x16xf32>
    %279 = tpu.matmul %277, %278, %cst_113 {dimension_numbers = #tpu.dot_dimension_numbers<[1], [0], [0], [1], [0, 0, 1, 1], [], []>} : vector<4x32xf32>, vector<32x16xf32>, vector<4x16xf32> -> vector<4x16xf32>
    %c0_114 = arith.constant 0 : index
    %c0_115 = arith.constant 0 : index
    %280 = vector.load %arg13[%c0_114, %c0_115] : memref<1x16xf32, #tpu.memory_space<vmem>>, vector<1x16xf32>
    %281 = vector.broadcast %280 : vector<1x16xf32> to vector<4x16xf32>
    %282 = arith.addf %279, %281 : vector<4x16xf32>
    %c0_116 = arith.constant 0 : index
    %c0_117 = arith.constant 0 : index
    %c0_118 = arith.constant 0 : index
    %283 = vector.load %arg14[%c0_116, %c0_117, %c0_118] : memref<1x4x16xf32, #tpu.memory_space<vmem>>, vector<1x4x16xf32>
    %284 = vector.shape_cast %283 : vector<1x4x16xf32> to vector<4x16xf32>
    %285 = vector.shape_cast %282 : vector<4x16xf32> to vector<1x4x16xf32>
    tpu.vector_store %arg14[%c0_116, %c0_117, %c0_118], %285 {strides = array<i32>} : memref<1x4x16xf32, #tpu.memory_space<vmem>>, vector<1x4x16xf32>,
    return
  }
  func.func @transform_0(%arg0: i32) -> (i32, i32, i32) {
    %c0_i32 = arith.constant 0 : i32
    %c0_i32_0 = arith.constant 0 : i32
    %c0_i32_1 = arith.constant 0 : i32
    return %arg0, %c0_i32, %c0_i32_0 : i32, i32, i32
  }
  func.func @transform_1(%arg0: i32) -> (i32, i32) {
    %c0_i32 = arith.constant 0 : i32
    %c0_i32_0 = arith.constant 0 : i32
    %c0_i32_1 = arith.constant 0 : i32
    return %c0_i32, %c0_i32_0 : i32, i32
  }
  func.func @transform_2(%arg0: i32) -> (i32, i32) {
    %c0_i32 = arith.constant 0 : i32
    %c0_i32_0 = arith.constant 0 : i32
    %c0_i32_1 = arith.constant 0 : i32
    return %c0_i32, %c0_i32_0 : i32, i32
  }
  func.func @transform_3(%arg0: i32) -> (i32, i32) {
    %c0_i32 = arith.constant 0 : i32
    %c0_i32_0 = arith.constant 0 : i32
    %c0_i32_1 = arith.constant 0 : i32
    return %c0_i32, %c0_i32_0 : i32, i32
  }
  func.func @transform_4(%arg0: i32) -> (i32, i32) {
    %c0_i32 = arith.constant 0 : i32
    %c0_i32_0 = arith.constant 0 : i32
    %c0_i32_1 = arith.constant 0 : i32
    return %c0_i32, %c0_i32_0 : i32, i32
  }
  func.func @transform_5(%arg0: i32) -> (i32, i32) {
    %c0_i32 = arith.constant 0 : i32
    %c0_i32_0 = arith.constant 0 : i32
    %c0_i32_1 = arith.constant 0 : i32
    return %c0_i32, %c0_i32_0 : i32, i32
  }
  func.func @transform_6(%arg0: i32) -> (i32, i32) {
    %c0_i32 = arith.constant 0 : i32
    %c0_i32_0 = arith.constant 0 : i32
    %c0_i32_1 = arith.constant 0 : i32
    return %c0_i32, %c0_i32_0 : i32, i32
  }
  func.func @transform_7(%arg0: i32) -> (i32, i32) {
    %c0_i32 = arith.constant 0 : i32
    %c0_i32_0 = arith.constant 0 : i32
    %c0_i32_1 = arith.constant 0 : i32
    return %c0_i32, %c0_i32_0 : i32, i32
  }
  func.func @transform_8(%arg0: i32) -> (i32, i32) {
    %c0_i32 = arith.constant 0 : i32
    %c0_i32_0 = arith.constant 0 : i32
    %c0_i32_1 = arith.constant 0 : i32
    return %c0_i32, %c0_i32_0 : i32, i32
  }
  func.func @transform_9(%arg0: i32) -> (i32, i32) {
    %c0_i32 = arith.constant 0 : i32
    %c0_i32_0 = arith.constant 0 : i32
    %c0_i32_1 = arith.constant 0 : i32
    return %c0_i32, %c0_i32_0 : i32, i32
  }
  func.func @transform_10(%arg0: i32) -> (i32, i32) {
    %c0_i32 = arith.constant 0 : i32
    %c0_i32_0 = arith.constant 0 : i32
    %c0_i32_1 = arith.constant 0 : i32
    return %c0_i32, %c0_i32_0 : i32, i32
  }
  func.func @transform_11(%arg0: i32) -> (i32, i32) {
    %c0_i32 = arith.constant 0 : i32
    %c0_i32_0 = arith.constant 0 : i32
    %c0_i32_1 = arith.constant 0 : i32
    return %c0_i32, %c0_i32_0 : i32, i32
  }
  func.func @transform_12(%arg0: i32) -> (i32, i32) {
    %c0_i32 = arith.constant 0 : i32
    %c0_i32_0 = arith.constant 0 : i32
    %c0_i32_1 = arith.constant 0 : i32
    return %c0_i32, %c0_i32_0 : i32, i32
  }
  func.func @transform_13(%arg0: i32) -> (i32, i32, i32) {
    %c0_i32 = arith.constant 0 : i32
    %c0_i32_0 = arith.constant 0 : i32
    %c0_i32_1 = arith.constant 0 : i32
    return %arg0, %c0_i32, %c0_i32_0 : i32, i32, i32
  }
}

</mosaic_0001>

<bundles_post_ra>
// kernel: tpu_custom_call.1
= control target key start
LH: loop header
LB: loop body
LE: loop exit
PB: predicated region body
PF: predicated region fallthrough
CT: control target
= control target key end

     0   :  { %s14649_s0 = inlined_call_operand.hbm [shape: f32[8,16,128], index: 0, kind: input, shape index: {}]   ;;  %s14650_s1 = inlined_call_operand.hbm [shape: bf16[640,512], index: 1, kind: input, shape index: {}]   ;;  %s14651_s2 = inlined_call_operand.hbm [shape: f32[1,512], index: 2, kind: input, shape index: {}]   ;;  %s14652_s3 = inlined_call_operand.hbm [shape: f32[9,448], index: 3, kind: input, shape index: {}]   ;;  %s14653_s4 = inlined_call_operand.hbm [shape: f32[1,448], index: 4, kind: input, shape index: {}]   ;;  %s14654_s5 = inlined_call_operand.hbm [shape: bf16[1536,384], index: 5, kind: input, shape index: {}]   ;;  %s14655_s6 = inlined_call_operand.hbm [shape: f32[1,384], index: 6, kind: input, shape index: {}]   ;;  %s14656_s7 = inlined_call_operand.hbm [shape: f32[4,48], index: 7, kind: input, shape index: {}]   ;;  %s14657_s8 = inlined_call_operand.vmem [shape: f32[384,32], index: 8, kind: input, shape index: {}]   ;;  %s14658_s9 = inlined_call_operand.vmem [shape: f32[32,4], index: 9, kind: input, shape index: {}]   ;;  %s14659_s10 = inlined_call_operand.hbm [shape: f32[4,32], index: 10, kind: input, shape index: {}]   ;;  %s14660_s11 = inlined_call_operand.vmem [shape: f32[32,16], index: 11, kind: input, shape index: {}]   ;;  %s14661_s12 = inlined_call_operand.hbm [shape: f32[1,16], index: 12, kind: input, shape index: {}]   ;;  %s14662_s13 = inlined_call_operand.hbm [shape: f32[2,4,16], index: 13, kind: output, shape index: {}]  }
   0x1   :  { %14906 = sst [smem:[#allocation151_spill]] %s14649_s0 }
   0x2   :  { %14907 = sst [smem:[#allocation152_spill]] %s14650_s1 }
   0x3   :  { %14908 = sst [smem:[#allocation153_spill]] %s14652_s3 }
   0x4   :  { %14909 = sst [smem:[#allocation154_spill]] %s14657_s8 }
   0x5   :  { %14910 = sst [smem:[#allocation155_spill]] %s14658_s9 }
   0x6   :  { %14911 = sst [smem:[#allocation156_spill]] %s14660_s11 }
   0x7   :  { %14912 = sst [smem:[#allocation157_spill]] %s14662_s13 }
   0x8   :  { %18 = vsyncpa [#allocation5], 0 }
   0x9   :  { %20 = vsyncpa [#allocation5 + $0x1], 0 }
   0xa   :  { %21 = vsyncpa [#allocation8], 0 }
   0xb   :  { %22 = vsyncpa [#allocation11], 0 }
   0xc   :  { %23 = vsyncpa [#allocation14], 0 }
   0xd   :  { %24 = vsyncpa [#allocation17], 0 }
   0xe   :  { %25 = vsyncpa [#allocation20], 0 }
   0xf   :  { %26 = vsyncpa [#allocation6], 0 }
  0x10   :  { %28 = vsyncpa [#allocation6 + $0x1], 0  ;;  %s10800_s25 = smov 0   ;;  %s10802_s26 = smov 0  }
  0x11   :  { %s10804_s27 = smov 0   ;;  %s10806_s28 = smov 0  }
  0x12 LB: > { %s10704_s29 = smov [#allocation7]   ;;  %s10821_s14 = sadd.s32 4294967295, %s10702_s28   ;;  %s10702_s28 = sphi %s10806_s28, %s15441_s28   ;;  %s10698_s27 = sphi %s10804_s27, %s15440_s27   ;;  %s10694_s26 = sphi %s10802_s26, %s15439_s26   ;;  %s10690_s25 = sphi %s10800_s25, %s15438_s25  }
  0x13   : > { %s355_s30 = sshll.u32 %s10704_s29, 4  ;;  %p8450_p0 = scmp.ge.s32.totalorder %s10702_s28, 1  ;;  %s10826_s30 = int_to_ptr.vmem [resolvable:$true] %s355_s30 }
  0x14   : > { %p14668_p1 = scmp.eq.s32.totalorder %s10821_s14, 0  ;;  %p343_p2 = scmp.lt.s32.totalorder %s10702_s28, 3 }
  0x15   : > { %s10705_s16 = smov [#allocation10]   ;;  %s10706_s19 = smov [#allocation13]  }
  0x16   : > { %p10828_p3 = pnand %p8450_p0, %p343_p2  ;;  %s379_s17 = sshll.u32 %s10705_s16, 4  ;;  %s10841_s17 = int_to_ptr.vmem [resolvable:$true] %s379_s17 }
  0x17   : > { %s10843_s20 = sshll.u32 %s10706_s19, 4  ;;  %s14916_s1 = sld [smem:[#allocation152_spill]]  ;;  %s404_s20 = int_to_ptr.vmem [resolvable:$true] %s10843_s20 }
  0x18   : > { %s14913_s15 = scalar_select %p10828_p3, 1, 0 }
  0x19   : > { %p9593_p5 = pneg %p10828_p3 }
  0x1a   : > { %14914 = sst [smem:[#allocation29_spill]] %s14913_s15 }
  0x1b   : > { %p10837_p6 = pnand %p9593_p5, %p14668_p1 }
  0x1d   : > { %s10334_s23 = scalar_lea.hbm %s14916_s1, 20480  ;;  %p10853_p8 = pneg %p10837_p6 }
  0x1e   : > { %p10335_p7 = scmp.ne.s32.totalorder %s14916_s1, %s10334_s23  ;;  %p10341_p11 = scmp.lt.u32.totalorder %s10334_s23, %s14916_s1 }
  0x20   : > { %p10337_p9 = pnand %p10853_p8, %p10335_p7 }
  0x22   : > { %p10338_p10 = pneg %p10337_p9 }
  0x24   : > { %p10343_p12 = pnand %p10341_p11, %p10338_p10 }
  0x26   : > { %10346 = shalt.err (!%p10343_p12)
}
  0x27   : > { %s10347_s21 = scalar_lea.vmem %s10826_s30, 20480  ;;  %p10355_p5 = scmp.lt.s32.totalorder %s10826_s30, %s10826_s30 }
  0x28   : > { %p10348_p13 = scmp.ne.s32.totalorder %s10826_s30, %s10347_s21  ;;  %p10356_p4 = scmp.lt.s32.totalorder %s10347_s21, %s10347_s21 }
  0x2a   : > { %p10350_p0 = pnand %p10348_p13, %p10853_p8  ;;  %p10357_p7 = por %p10356_p4, %p10355_p5 }
  0x2c   : > { %p10351_p2 = pneg %p10350_p0 }
  0x2e   : > { %p10358_p9 = pnand %p10357_p7, %p10351_p2 }
  0x30   : > { %10361 = shalt.err (!%p10358_p9)
}
  0x31   : > { %s10707_s22 = smov 256   ;;  %s10708_s13 = smov 16  }
  0x32   : > { %9596 = dma.hbm_to_vmem [thread:$0]  (!%p10837_p6), %s14916_s1, 20480, %s10826_s30, [#allocation8], %s10707_s22, %s10707_s22, %s10708_s13  }
  0x33   : > { %s14918_s3 = sld [smem:[#allocation153_spill]] }
  0x39   : > { %s10362_s11 = scalar_lea.hbm %s14918_s3, 1024 }
  0x3a   : > { %p10363_p4 = scmp.ne.s32.totalorder %s14918_s3, %s10362_s11  ;;  %p10369_p12 = scmp.lt.u32.totalorder %s10362_s11, %s14918_s3 }
  0x3c   : > { %p10365_p10 = pnand %p10363_p4, %p10853_p8 }
  0x3e   : > { %p10366_p11 = pneg %p10365_p10 }
  0x40   : > { %p10371_p13 = pnand %p10369_p12, %p10366_p11 }
  0x42   : > { %10374 = shalt.err (!%p10371_p13)
}
  0x43   : > { %s10375_s30 = scalar_lea.vmem %s10841_s17, 1024  ;;  %p10383_p7 = scmp.lt.s32.totalorder %s10841_s17, %s10841_s17 }
  0x44   : > { %p10376_p0 = scmp.ne.s32.totalorder %s10841_s17, %s10375_s30  ;;  %p10384_p9 = scmp.lt.s32.totalorder %s10375_s30, %s10375_s30 }
  0x46   : > { %p10378_p2 = pnand %p10376_p0, %p10853_p8  ;;  %p10385_p4 = por %p10384_p9, %p10383_p7 }
  0x48   : > { %p10379_p5 = pneg %p10378_p2 }
  0x4a   : > { %p10386_p10 = pnand %p10385_p4, %p10379_p5 }
  0x4c   : > { %10389 = shalt.err (!%p10386_p10)
}
  0x4d   : > { %s10709_s8 = smov 512   ;;  %s10710_s9 = smov 32  }
  0x4e   : > { %9602 = dma.hbm_to_vmem [thread:$0]  (!%p10837_p6), %s14918_s3, 1024, %s10841_s17, [#allocation11], %s10709_s8, %s10709_s8, %s10710_s9  }
  0x4f   : > { %s10390_s23 = scalar_lea.hbm %s14654_s5, 36864 }
  0x50   : > { %p10391_p11 = scmp.ne.s32.totalorder %s14654_s5, %s10390_s23  ;;  %p10397_p0 = scmp.lt.u32.totalorder %s10390_s23, %s14654_s5 }
  0x52   : > { %p10393_p12 = pnand %p10391_p11, %p10853_p8 }
  0x54   : > { %p10394_p13 = pneg %p10393_p12 }
  0x56   : > { %p10399_p2 = pnand %p10397_p0, %p10394_p13 }
  0x58   : > { %10402 = shalt.err (!%p10399_p2)
}
  0x59   : > { %s10403_s30 = scalar_lea.vmem %s404_s20, 36864  ;;  %p10411_p4 = scmp.lt.s32.totalorder %s404_s20, %s404_s20 }
  0x5a   : > { %p10404_p5 = scmp.ne.s32.totalorder %s404_s20, %s10403_s30  ;;  %p10412_p10 = scmp.lt.s32.totalorder %s10403_s30, %s10403_s30 }
  0x5c   : > { %p10406_p7 = pnand %p10404_p5, %p10853_p8  ;;  %p10413_p1 = por %p10412_p10, %p10411_p4 }
  0x5e   : > { %p10407_p9 = pneg %p10406_p7 }
  0x60   : > { %p10414_p3 = pnand %p10413_p1, %p10407_p9 }
  0x62   : > { %10417 = shalt.err (!%p10414_p3)
}
  0x63   : > { %s10711_s17 = smov 192   ;;  %s10712_s8 = smov 12  }
  0x64   : > { %9608 = dma.hbm_to_vmem [thread:$0]  (!%p10837_p6), %s14654_s5, 36864, %s404_s20, [#allocation14], %s10711_s17, %s10711_s17, %s10712_s8  }
  0x65   : > { %s10713_s15 = smov [#allocation16]   ;;  %s10714_s13 = smov [#allocation9]  }
  0x66   : > { %s428_s22 = sshll.u32 %s10713_s15, 4  ;;  %s369_s23 = sshll.u32 %s10714_s13, 4  ;;  %s429_s22 = int_to_ptr.vmem [resolvable:$true] %s428_s22  ;;  %s370_s23 = int_to_ptr.vmem [resolvable:$true] %s369_s23 }
  0x67   : > { %s10418_s19 = scalar_lea.hbm %s14656_s7, 64 }
  0x68   : > { %p10419_p1 = scmp.ne.s32.totalorder %s14656_s7, %s10418_s19  ;;  %p10425_p12 = scmp.lt.u32.totalorder %s10418_s19, %s14656_s7 }
  0x6a   : > { %p10421_p3 = pnand %p10419_p1, %p10853_p8 }
  0x6c   : > { %p10422_p11 = pneg %p10421_p3 }
  0x6e   : > { %p10427_p13 = pnand %p10425_p12, %p10422_p11 }
  0x70   : > { %10430 = shalt.err (!%p10427_p13)
}
  0x71   : > { %s10431_s20 = scalar_lea.vmem %s429_s22, 64  ;;  %p10439_p7 = scmp.lt.s32.totalorder %s429_s22, %s429_s22 }
  0x72   : > { %p10432_p0 = scmp.ne.s32.totalorder %s429_s22, %s10431_s20  ;;  %p10440_p9 = scmp.lt.s32.totalorder %s10431_s20, %s10431_s20 }
  0x74   : > { %p10434_p2 = pnand %p10432_p0, %p10853_p8  ;;  %p10441_p4 = por %p10440_p9, %p10439_p7 }
  0x76   : > { %p10435_p5 = pneg %p10434_p2 }
  0x78   : > { %p10442_p10 = pnand %p10441_p4, %p10435_p5 }
  0x7a   : > { %10445 = shalt.err (!%p10442_p10)
}
  0x7b   : > { %9614 = dma.hbm_to_vmem [thread:$0]  (!%p10837_p6), %s14656_s7, 64, %s429_s22, [#allocation17]  }
  0x7c   : > { %s10446_s9 = scalar_lea.hbm %s14651_s2, 64 }
  0x7d   : > { %p10447_p1 = scmp.ne.s32.totalorder %s14651_s2, %s10446_s9  ;;  %p10453_p12 = scmp.lt.u32.totalorder %s10446_s9, %s14651_s2 }
  0x7f   : > { %p10449_p3 = pnand %p10447_p1, %p10853_p8 }
  0x81   : > { %p10450_p11 = pneg %p10449_p3 }
  0x83   : > { %p10455_p13 = pnand %p10453_p12, %p10450_p11 }
  0x85   : > { %10458 = shalt.err (!%p10455_p13)
}
  0x86   : > { %s10459_s29 = scalar_lea.vmem %s370_s23, 64  ;;  %p10467_p7 = scmp.lt.s32.totalorder %s370_s23, %s370_s23 }
  0x87   : > { %p10460_p0 = scmp.ne.s32.totalorder %s370_s23, %s10459_s29  ;;  %p10468_p9 = scmp.lt.s32.totalorder %s10459_s29, %s10459_s29 }
  0x89   : > { %p10462_p2 = pnand %p10460_p0, %p10853_p8  ;;  %p10469_p4 = por %p10468_p9, %p10467_p7 }
  0x8b   : > { %p10463_p5 = pneg %p10462_p2 }
  0x8d   : > { %p10470_p10 = pnand %p10469_p4, %p10463_p5 }
  0x8f   : > { %10473 = shalt.err (!%p10470_p10)
}
  0x90   : > { %9599 = dma.hbm_to_vmem [thread:$0]  (!%p10837_p6), %s14651_s2, 64, %s370_s23, [#allocation8]  }
  0x91   : > { %s10715_s21 = smov [#allocation12]   ;;  %s10716_s20 = smov [#allocation15]  }
  0x92   : > { %s393_s30 = sshll.u32 %s10715_s21, 4  ;;  %s417_s17 = sshll.u32 %s10716_s20, 4  ;;  %s394_s30 = int_to_ptr.vmem [resolvable:$true] %s393_s30  ;;  %s418_s17 = int_to_ptr.vmem [resolvable:$true] %s417_s17 }
  0x93   : > { %s10474_s3 = scalar_lea.hbm %s14653_s4, 64 }
  0x94   : > { %p10475_p1 = scmp.ne.s32.totalorder %s14653_s4, %s10474_s3  ;;  %p10481_p12 = scmp.lt.u32.totalorder %s10474_s3, %s14653_s4 }
  0x96   : > { %p10477_p3 = pnand %p10475_p1, %p10853_p8 }
  0x98   : > { %p10478_p11 = pneg %p10477_p3 }
  0x9a   : > { %p10483_p13 = pnand %p10481_p12, %p10478_p11 }
  0x9c   : > { %10486 = shalt.err (!%p10483_p13)
}
  0x9d   : > { %s10487_s23 = scalar_lea.vmem %s394_s30, 64  ;;  %p10495_p7 = scmp.lt.s32.totalorder %s394_s30, %s394_s30 }
  0x9e   : > { %p10488_p0 = scmp.ne.s32.totalorder %s394_s30, %s10487_s23  ;;  %p10496_p9 = scmp.lt.s32.totalorder %s10487_s23, %s10487_s23 }
  0xa0   : > { %p10490_p2 = pnand %p10488_p0, %p10853_p8  ;;  %p10497_p4 = por %p10496_p9, %p10495_p7 }
  0xa2   : > { %p10491_p5 = pneg %p10490_p2 }
  0xa4   : > { %p10498_p10 = pnand %p10497_p4, %p10491_p5 }
  0xa6   : > { %10501 = shalt.err (!%p10498_p10)
}
  0xa7   : > { %9605 = dma.hbm_to_vmem [thread:$0]  (!%p10837_p6), %s14653_s4, 64, %s394_s30, [#allocation11]  }
  0xa8   : > { %s10502_s21 = scalar_lea.hbm %s14655_s6, 48 }
  0xa9   : > { %p10503_p1 = scmp.ne.s32.totalorder %s14655_s6, %s10502_s21  ;;  %p10509_p12 = scmp.lt.u32.totalorder %s10502_s21, %s14655_s6 }
  0xab   : > { %p10505_p3 = pnand %p10503_p1, %p10853_p8 }
  0xad   : > { %p10506_p11 = pneg %p10505_p3 }
  0xaf   : > { %p10511_p13 = pnand %p10509_p12, %p10506_p11 }
  0xb1   : > { %10514 = shalt.err (!%p10511_p13)
}
  0xb2   : > { %s10515_s9 = scalar_lea.vmem %s418_s17, 48  ;;  %s10522_s30 = scalar_lea.vmem %s418_s17, 64 }
  0xb3   : > { %p10516_p0 = scmp.ne.s32.totalorder %s418_s17, %s10515_s9  ;;  %p10523_p7 = scmp.lt.s32.totalorder %s418_s17, %s418_s17 }
  0xb4   : > { %p10524_p9 = scmp.lt.s32.totalorder %s10522_s30, %s10515_s9 }
  0xb5   : > { %p10518_p2 = pnand %p10516_p0, %p10853_p8 }
  0xb6   : > { %p10525_p4 = por %p10524_p9, %p10523_p7 }
  0xb7   : > { %p10519_p5 = pneg %p10518_p2 }
  0xb9   : > { %p10526_p10 = pnand %p10525_p4, %p10519_p5 }
  0xbb   : > { %10529 = shalt.err (!%p10526_p10)
}
  0xbc   : > { %9611 = dma.hbm_to_vmem [thread:$0]  (!%p10837_p6), %s14655_s6, 48, %s418_s17, [#allocation14]  }
  0xbd   : > { %s10717_s13 = smov [#allocation18]   ;;  %s10718_s24 = smov [#allocation19]  }
  0xbe   : > { %s445_s23 = sshll.u32 %s10717_s13, 4  ;;  %s459_s29 = sshll.u32 %s10718_s24, 4  ;;  %s446_s23 = int_to_ptr.vmem [resolvable:$true] %s445_s23  ;;  %s460_s29 = int_to_ptr.vmem [resolvable:$true] %s459_s29 }
  0xbf   : > { %s10530_s21 = scalar_lea.hbm %s14659_s10, 64 }
  0xc0   : > { %p10531_p1 = scmp.ne.s32.totalorder %s14659_s10, %s10530_s21  ;;  %p10537_p12 = scmp.lt.u32.totalorder %s10530_s21, %s14659_s10 }
  0xc2   : > { %p10533_p3 = pnand %p10531_p1, %p10853_p8 }
  0xc4   : > { %p10534_p11 = pneg %p10533_p3 }
  0xc6   : > { %p10539_p13 = pnand %p10537_p12, %p10534_p11 }
  0xc8   : > { %10542 = shalt.err (!%p10539_p13)
}
  0xc9   : > { %s10543_s17 = scalar_lea.vmem %s446_s23, 64  ;;  %p10551_p7 = scmp.lt.s32.totalorder %s446_s23, %s446_s23 }
  0xca   : > { %p10544_p0 = scmp.ne.s32.totalorder %s446_s23, %s10543_s17  ;;  %p10552_p9 = scmp.lt.s32.totalorder %s10543_s17, %s10543_s17 }
  0xcc   : > { %p10546_p2 = pnand %p10544_p0, %p10853_p8  ;;  %p10553_p4 = por %p10552_p9, %p10551_p7 }
  0xce   : > { %p10547_p5 = pneg %p10546_p2 }
  0xd0   : > { %p10554_p10 = pnand %p10553_p4, %p10547_p5 }
  0xd2   : > { %10557 = shalt.err (!%p10554_p10)
}
  0xd3   : > { %9617 = dma.hbm_to_vmem [thread:$0]  (!%p10837_p6), %s14659_s10, 64, %s446_s23, [#allocation17]  }
  0xd4   : > { %s10558_s13 = scalar_lea.hbm %s14661_s12, 16 }
  0xd5   : > { %p10559_p1 = scmp.ne.s32.totalorder %s14661_s12, %s10558_s13  ;;  %p10565_p12 = scmp.lt.u32.totalorder %s10558_s13, %s14661_s12 }
  0xd7   : > { %p10561_p3 = pnand %p10559_p1, %p10853_p8 }
  0xd9   : > { %p10562_p11 = pneg %p10561_p3 }
  0xdb   : > { %p10567_p13 = pnand %p10565_p12, %p10562_p11 }
  0xdd   : > { %10570 = shalt.err (!%p10567_p13)
}
  0xde   : > { %s10571_s20 = scalar_lea.vmem %s460_s29, 16  ;;  %s10578_s23 = scalar_lea.vmem %s460_s29, 32 }
  0xdf   : > { %p10572_p0 = scmp.ne.s32.totalorder %s460_s29, %s10571_s20  ;;  %p10579_p7 = scmp.lt.s32.totalorder %s460_s29, %s460_s29 }
  0xe0   : > { %p10580_p9 = scmp.lt.s32.totalorder %s10578_s23, %s10571_s20 }
  0xe1   : > { %p10574_p2 = pnand %p10572_p0, %p10853_p8 }
  0xe2   : > { %p10581_p4 = por %p10580_p9, %p10579_p7 }
  0xe3   : > { %p10575_p5 = pneg %p10574_p2 }
  0xe5   : > { %p10582_p10 = pnand %p10581_p4, %p10575_p5 }
  0xe7   : > { %10585 = shalt.err (!%p10582_p10)
}
  0xe8   : > { %9620 = dma.hbm_to_vmem [thread:$0]  (!%p10837_p6), %s14661_s12, 16, %s460_s29, [#allocation20]  }
  0xe9   : > { %s8449_s16 = sadd.s32 4294967294, %s10702_s28   ;;  %s11026_s18 = sadd.s32 1, %s10702_s28  }
  0xea   : > { %s41_s3 = sadd.s32 1, %s10698_s27  ;;  %s38_s17 = ssub.s32 %s10702_s28, %s11026_s18 }
  0xeb   : > { %p48_p8 = scmp.ne.s32.totalorder %s10698_s27, %s10694_s26  ;;  %p39_p1 = scmp.eq.s32.totalorder %s38_s17, 0 }
  0xec   : > { %p49_p3 = scmp.eq.s32.totalorder %s10702_s28, 0  ;;  %p54_p11 = scmp.ne.s32.totalorder %s10694_s26, %s10690_s25 }
  0xed   : > { %p330_p12 = scmp.eq.s32.totalorder %s10821_s14, 1  ;;  %p14919_p0 = scmp.eq.s32.totalorder %s10821_s14, 0 }
  0xee   : > { %s11038_s9 = scalar_select %p39_p1, %s10698_s27, %s41_s3  }
  0xef   : > { %p50_p13 = por %p49_p3, %p48_p8  ;;  %p11042_p2 = por %p14919_p0, %p54_p11 }
  0xf0   : > { %p11046_p6 = por %p330_p12, %p48_p8  ;;  %p336_p5 = scmp.eq.s32.totalorder %s8449_s16, 1 }
  0xf1   : > { %p9638_p7 = scmp.lt.s32.totalorder %s10702_s28, 2  ;;  %s470_s11 = sand.u32 1, %s10698_s27  }
  0xf2   : > { %s14921_s29 = scalar_select %p11046_p6, 1, 0 }
  0xf3   : > { %p11052_p9 = por %p336_p5, %p54_p11  ;;  %s8461_s13 = sshll.u32 %s470_s11, 6 }
  0xf4   : > { %s8943_s24 = sshll.u32 %s10702_s28, 10  ;;  %s14923_s0 = sld [smem:[#allocation151_spill]] }
  0xf5   : > { %s14922_s15 = scalar_select %p11052_p9, 1, 0 }
  0xf6   : > { %s474_s20 = scalar_lea.vmem [#allocation4], %s8461_s13  ;;  %p11062_p4 = pnand %p9638_p7, %p50_p13 }
  0xf7   : > { %s482_s23 = sshll.u32 %s474_s20, 4  ;;  %s11068_s1 = scalar_lea.sflag [#allocation5], %s470_s11  ;;  %s11066_s23 = int_to_ptr.vmem [resolvable:$true] %s482_s23 }
  0xf8   : > { %p10588_p8 = pneg %p11062_p4 }
  0xfa   : > { %s11060_s21 = scalar_lea.hbm %s14923_s0, %s8943_s24  ;;  %s10591_s13 = scalar_lea.hbm %s14923_s0, 2048 }
  0xfb   : > { %s10586_s16 = scalar_lea.hbm %s11060_s21, 1024  ;;  %p10592_p11 = scmp.lt.u32.totalorder %s11060_s21, %s14923_s0 }
  0xfc   : > { %p10587_p10 = scmp.ne.s32.totalorder %s11060_s21, %s10586_s16  ;;  %p10593_p12 = scmp.lt.u32.totalorder %s10591_s13, %s10586_s16 }
  0xfd   : > { %p10595_p0 = scmp.lt.u32.totalorder %s10586_s16, %s11060_s21 }
  0xfe   : > { %p10589_p1 = pnand %p10588_p8, %p10587_p10  ;;  %p10594_p13 = por %p10593_p12, %p10592_p11 }
 0x100   : > { %p10590_p3 = pneg %p10589_p1  ;;  %p10596_p5 = por %p10595_p0, %p10594_p13 }
 0x102   : > { %p10597_p7 = pnand %p10596_p5, %p10590_p3 }
 0x104   : > { %10600 = shalt.err (!%p10597_p7)
}
 0x105   : > { %s10601_s11 = scalar_lea.vmem %s11066_s23, 1024  ;;  %s10719_s19 = smov [#allocation4]  }
 0x106   : > { %p10602_p10 = scmp.ne.s32.totalorder %s11066_s23, %s10601_s11  ;;  %s10606_s20 = sshll.u32 %s10719_s19, 4  ;;  %s10607_s20 = int_to_ptr.vmem [resolvable:$false] %s10606_s20 }
 0x107   : > { %s10608_s3 = scalar_lea.vmem %s10607_s20, 2048  ;;  %p10609_p6 = scmp.lt.s32.totalorder %s11066_s23, %s10607_s20 }
 0x108   : > { %p10604_p1 = pnand %p10602_p10, %p10588_p8  ;;  %p10610_p11 = scmp.lt.s32.totalorder %s10608_s3, %s10601_s11 }
 0x10a   : > { %p10605_p9 = pneg %p10604_p1  ;;  %p10611_p12 = por %p10610_p11, %p10609_p6 }
 0x10c   : > { %p10612_p13 = pnand %p10611_p12, %p10605_p9 }
 0x10e   : > { %10615 = shalt.err (!%p10612_p13)
}
 0x10f   : > { %s10720_s16 = smov 128   ;;  %s10721_s17 = smov 8  }
 0x110   : > { %9624 = dma.hbm_to_vmem [thread:$0]  (!%p11062_p4), %s11060_s21, 1024, %s11066_s23, %s11068_s1, %s10720_s16, %s10720_s16, %s10721_s17  }
 0x111   : > { %s14925_s13 = sld [smem:[#allocation29_spill]] }
 0x117   : > { %p14926_p8 = scmp.ne.s32.totalorder %s14925_s13, 0 }
 0x119   : > { %494 = sbr.rel (%p14926_p8) target bundleno = 2774 (0xad6), region = 72 }
 0x120   : > { %s11099_s24 = sand.u32 1, %s10694_s26  }
 0x121   : > { %s8466_s22 = sshll.u32 %s11099_s24, 6  ;;  %s497_s11 = scalar_lea.sflag [#allocation5], %s11099_s24 }
 0x122   : > { %s11103_s19 = scalar_lea.vmem [#allocation4], %s8466_s22 }
 0x123   : > { %10661 = dma.done.wait (%p11042_p2), %s497_s11, 1024  }
 0x124   : > { %10663 = vsyncadd (%p11042_p2), %s497_s11, 4294966272  ;;  %p14927_p6 = scmp.eq.s32.totalorder %s10821_s14, 0 }
 0x126   : > { %10665 = dma.done.wait (%p14927_p6), [#allocation8], 20544   ;;  %p14928_p9 = pmov %p14927_p6 }
 0x127   : > { %p14929_p4 = pmov %p14927_p6 }
 0x128   : > { %10667 = vsyncadd (%p14928_p9), [#allocation8], 4294946752 }
 0x129   : > { %10669 = dma.done.wait (%p14929_p4), [#allocation11], 1088   ;;  %p14930_p3 = pmov %p14929_p4 }
 0x12b   : > { %10671 = vsyncadd (%p14930_p3), [#allocation11], 4294966208  ;;  %p14931_p0 = pmov %p14930_p3 }
 0x12d   : > { %10673 = dma.done.wait (%p14931_p0), [#allocation14], 36912   ;;  %p14932_p5 = pmov %p14931_p0 }
 0x12e   : > { %p14933_p2 = pmov %p14931_p0 }
 0x12f   : > { %10675 = vsyncadd (%p14932_p5), [#allocation14], 4294930384 }
 0x130   : > { %10677 = dma.done.wait (%p14933_p2), [#allocation17], 128   ;;  %p14934_p7 = pmov %p14931_p0 }
 0x131   : > { %p14935_p10 = pmov %p14931_p0 }
 0x132   : > { %10679 = vsyncadd (%p14934_p7), [#allocation17], 4294967168 }
 0x133   : > { %10681 = dma.done.wait (%p14935_p10), [#allocation20], 16   ;;  %p14936_p1 = pmov %p14931_p0 }
 0x134   : > { %v10722_v0 = vmov 0   ;;  %v14671_v1 = vmov 0.0   ;;  %v9705_v2 = vld [vmem:[#allocation7 + $0x4] ss:$16 sps:$4 sm:$0xff]   ;;  %v9709_v4 = vld [vmem:[#allocation7] ss:$16 sps:$4 sm:$0xff]  }
 0x135   : > { %10683 = vsyncadd (%p14936_p1), [#allocation20], 4294967280  ;;  %1984 = vmatprep.mubr.bf16.mxu1 %v10722_v0  ;;  %590 = vst [vmem:[#allocation2 + $0x48] sm:$0xff] %v14671_v1  ;;  %v9707_v3 = vld [vmem:[#allocation7 + $0x404] ss:$16 sps:$4 sm:$0xff]   ;;  %1806 = vmatprep.subr.bf16.mxu0 %v9705_v2  ;;  %v622_v32 = vld [vmem:[%s11103_s19 + $0x8] sm:$0xff] }
 0x136   : > { %581 = vst [vmem:[#allocation2] sm:$0xff] %v14671_v1  ;;  %582 = vst [vmem:[#allocation2 + $0x8] sm:$0xff] %v14671_v1  ;;  %v9710_v5 = vld [vmem:[#allocation7 + $0x400] ss:$16 sps:$4 sm:$0xff]   ;;  %1952 = vmatprep.subr.bf16.mxu1 %v9707_v3  ;;  %v9711_v6 = vld [vmem:[#allocation7 + $0x24] ss:$16 sps:$4 sm:$0xff]   ;;  %1807 = vmatpush1.bf16.msra.mxu0 %v9709_v4 }
 0x137   : > { %589 = vst [vmem:[#allocation2 + $0x40] sm:$0xff] %v14671_v1  ;;  %591 = vst [vmem:[#allocation2 + $0x50] sm:$0xff] %v14671_v1  ;;  %1953 = vmatpush1.bf16.msra.mxu1 %v9710_v5  ;;  %v9713_v7 = vld [vmem:[#allocation7 + $0x424] ss:$16 sps:$4 sm:$0xff]   ;;  %v9715_v8 = vld [vmem:[#allocation7 + $0x20] ss:$16 sps:$4 sm:$0xff]   ;;  %1808 = vmatprep.subr.bf16.mxu0 %v9711_v6 }
 0x138   : > { %592 = vst [vmem:[#allocation2 + $0x58] sm:$0xff] %v14671_v1  ;;  %599 = vst [vmem:[#allocation2 + $0x90] sm:$0xff] %v14671_v1  ;;  %v9716_v9 = vld [vmem:[#allocation7 + $0x420] ss:$16 sps:$4 sm:$0xff]   ;;  %1954 = vmatprep.subr.bf16.mxu1 %v9713_v7  ;;  %v9717_v10 = vld [vmem:[#allocation7 + $0x44] ss:$16 sps:$4 sm:$0xff]  }
 0x139   : > { %600 = vst [vmem:[#allocation2 + $0x98] sm:$0xff] %v14671_v1  ;;  %601 = vst [vmem:[#allocation2 + $0xa0] sm:$0xff] %v14671_v1  ;;  %v9719_v11 = vld [vmem:[#allocation7 + $0x444] ss:$16 sps:$4 sm:$0xff]   ;;  %v9721_v12 = vld [vmem:[#allocation7 + $0x40] ss:$16 sps:$4 sm:$0xff]  }
 0x13a   : > { %602 = vst [vmem:[#allocation2 + $0xa8] sm:$0xff] %v14671_v1  ;;  %609 = vst [vmem:[#allocation2 + $0xe0] sm:$0xff] %v14671_v1  ;;  %v9722_v13 = vld [vmem:[#allocation7 + $0x440] ss:$16 sps:$4 sm:$0xff]   ;;  %1809 = vmatpush1.bf16.msra.mxu0 %v9715_v8  ;;  %v9723_v14 = vld [vmem:[#allocation7 + $0x64] ss:$16 sps:$4 sm:$0xff]  }
 0x13b   : > { %610 = vst [vmem:[#allocation2 + $0xe8] sm:$0xff] %v14671_v1  ;;  %611 = vst [vmem:[#allocation2 + $0xf0] sm:$0xff] %v14671_v1  ;;  %1955 = vmatpush1.bf16.msra.mxu1 %v9716_v9  ;;  %1810 = vmatprep.subr.bf16.mxu0 %v9717_v10  ;;  %v9725_v15 = vld [vmem:[#allocation7 + $0x464] ss:$16 sps:$4 sm:$0xff]   ;;  %v9727_v16 = vld [vmem:[#allocation7 + $0x60] ss:$16 sps:$4 sm:$0xff]  }
 0x13c   : > { %612 = vst [vmem:[#allocation2 + $0xf8] sm:$0xff] %v14671_v1  ;;  %619 = vst [vmem:[#allocation2 + $0x130] sm:$0xff] %v14671_v1  ;;  %1956 = vmatprep.subr.bf16.mxu1 %v9719_v11  ;;  %v9728_v17 = vld [vmem:[#allocation7 + $0x460] ss:$16 sps:$4 sm:$0xff]   ;;  %v9729_v18 = vld [vmem:[#allocation7 + $0x84] ss:$16 sps:$4 sm:$0xff]  }
 0x13d   : > { %620 = vst [vmem:[#allocation2 + $0x138] sm:$0xff] %v14671_v1  ;;  %2297 = vst [vmem:[#allocation3 + $0x18] sm:$0xff] %v14671_v1  ;;  %v9731_v19 = vld [vmem:[#allocation7 + $0x484] ss:$16 sps:$4 sm:$0xff]   ;;  %v9733_v20 = vld [vmem:[#allocation7 + $0x80] ss:$16 sps:$4 sm:$0xff]  }
 0x13e   : > { %2301 = vst [vmem:[#allocation3 + $0x38] sm:$0xff] %v14671_v1  ;;  %2305 = vst [vmem:[#allocation3 + $0x58] sm:$0xff] %v14671_v1  ;;  %1811 = vmatpush1.bf16.msra.mxu0 %v9721_v12  ;;  %v9734_v21 = vld [vmem:[#allocation7 + $0x480] ss:$16 sps:$4 sm:$0xff]   ;;  %v9735_v22 = vld [vmem:[#allocation7 + $0xa4] ss:$16 sps:$4 sm:$0xff]  }
 0x13f   : > { %2306 = vst [vmem:[#allocation3 + $0x60] sm:$0xff] %v14671_v1  ;;  %2307 = vst [vmem:[#allocation3 + $0x68] sm:$0xff] %v14671_v1  ;;  %1957 = vmatpush1.bf16.msra.mxu1 %v9722_v13  ;;  %1812 = vmatprep.subr.bf16.mxu0 %v9723_v14  ;;  %v9737_v23 = vld [vmem:[#allocation7 + $0x4a4] ss:$16 sps:$4 sm:$0xff]   ;;  %v9739_v24 = vld [vmem:[#allocation7 + $0xa0] ss:$16 sps:$4 sm:$0xff]  }
 0x140   : > { %2308 = vst [vmem:[#allocation3 + $0x70] sm:$0xff] %v14671_v1  ;;  %2309 = vst [vmem:[#allocation3 + $0x78] sm:$0xff] %v14671_v1  ;;  %1958 = vmatprep.subr.bf16.mxu1 %v9725_v15  ;;  %v9740_v25 = vld [vmem:[#allocation7 + $0x4a0] ss:$16 sps:$4 sm:$0xff]   ;;  %v9741_v26 = vld [vmem:[#allocation7 + $0xc4] ss:$16 sps:$4 sm:$0xff]  }
 0x141   : > { %2310 = vst [vmem:[#allocation3 + $0x80] sm:$0xff] %v14671_v1  ;;  %2311 = vst [vmem:[#allocation3 + $0x88] sm:$0xff] %v14671_v1  ;;  %v9743_v27 = vld [vmem:[#allocation7 + $0x4c4] ss:$16 sps:$4 sm:$0xff]   ;;  %v9745_v28 = vld [vmem:[#allocation7 + $0xc0] ss:$16 sps:$4 sm:$0xff]  }
 0x142   : > { %2312 = vst [vmem:[#allocation3 + $0x90] sm:$0xff] %v14671_v1  ;;  %2313 = vst [vmem:[#allocation3 + $0x98] sm:$0xff] %v14671_v1  ;;  %1813 = vmatpush1.bf16.msra.mxu0 %v9727_v16  ;;  %v9746_v29 = vld [vmem:[#allocation7 + $0x4c0] ss:$16 sps:$4 sm:$0xff]   ;;  %v9747_v30 = vld [vmem:[#allocation7 + $0xe4] ss:$16 sps:$4 sm:$0xff]  }
 0x143   : > { %2314 = vst [vmem:[#allocation3 + $0xa0] sm:$0xff] %v14671_v1  ;;  %2315 = vst [vmem:[#allocation3 + $0xa8] sm:$0xff] %v14671_v1  ;;  %1959 = vmatpush1.bf16.msra.mxu1 %v9728_v17  ;;  %1814 = vmatprep.subr.bf16.mxu0 %v9729_v18  ;;  %v621_v31 = vld [vmem:[%s11103_s19] sm:$0xff]  ;;  %vm651_vm0 = vcmask 1045504   ;;  %v653_v35 = vrot.slane %v622_v32, 2  ;;  %vm633_vm1 = vcmask 1040384  }
 0x144   : > { %2316 = vst [vmem:[#allocation3 + $0xb0] sm:$0xff] %v14671_v1  ;;  %2317 = vst [vmem:[#allocation3 + $0xb8] sm:$0xff] %v14671_v1  ;;  %1960 = vmatprep.subr.bf16.mxu1 %v9731_v19  ;;  %v9749_v33 = vld [vmem:[#allocation7 + $0x4e4] ss:$16 sps:$4 sm:$0xff]   ;;  %v652_v34 = vrot.slane %v621_v31, 2  ;;  %v11184_v36 = vpack.c.bf16 %v622_v32, %v621_v31  ;;  %v634_v37 = vrot.slane %v621_v31, 7 }
 0x145   : > { %2321 = vst [vmem:[#allocation3 + $0xd8] sm:$0xff] %v14671_v1  ;;  %2325 = vst [vmem:[#allocation3 + $0xf8] sm:$0xff] %v14671_v1  ;;  %vm625_vm2 = vcmask 1041408   ;;  %v9751_v38 = vld [vmem:[#allocation7 + $0xe0] ss:$16 sps:$4 sm:$0xff]   ;;  %v635_v40 = vrot.slane %v622_v32, 7 }
 0x146   : > { %2329 = vst [vmem:[#allocation3 + $0x118] sm:$0xff] %v14671_v1  ;;  %2333 = vst [vmem:[#allocation3 + $0x138] sm:$0xff] %v14671_v1  ;;  %1815 = vmatpush1.bf16.msra.mxu0 %v9733_v20  ;;  %v654_v39 = vsel %vm651_vm0, %v652_v34, %v653_v35  ;;  %v626_v41 = vrot.slane %v621_v31, 6  ;;  %v9752_v42 = vld [vmem:[#allocation7 + $0x4e0] ss:$16 sps:$4 sm:$0xff]   ;;  %v627_v43 = vrot.slane %v622_v32, 6 }
 0x147   : > { %2337 = vst [vmem:[#allocation3 + $0x158] sm:$0xff] %v14671_v1  ;;  %2341 = vst [vmem:[#allocation3 + $0x178] sm:$0xff] %v14671_v1  ;;  %1961 = vmatpush1.bf16.msra.mxu1 %v9734_v21  ;;  %1816 = vmatprep.subr.bf16.mxu0 %v9735_v22  ;;  %v644_v44 = vrot.slane %v621_v31, 1  ;;  %v9753_v45 = vld [vmem:[#allocation7 + $0x104] ss:$16 sps:$4 sm:$0xff]   ;;  %v636_v47 = vsel %vm633_vm1, %v634_v37, %v635_v40  ;;  %vm643_vm3 = vcmask 1046528  }
 0x148   : > { %2342 = vst [vmem:[#allocation3 + $0x180] sm:$0xff] %v14671_v1  ;;  %2343 = vst [vmem:[#allocation3 + $0x188] sm:$0xff] %v14671_v1  ;;  %1962 = vmatprep.subr.bf16.mxu1 %v9737_v23  ;;  %v9757_v46 = vld [vmem:[#allocation7 + $0xc] ss:$16 sps:$4 sm:$0xff]   ;;  %v11189_v48 = vsel %vm625_vm2, %v626_v41, %v627_v43  ;;  %v645_v49 = vrot.slane %v622_v32, 1  ;;  %v8477_v14 = vld [vmem:[%s11103_s19 + $0x10] sm:$0xff] }
 0x149   : > { %2344 = vst [vmem:[#allocation3 + $0x190] sm:$0xff] %v14671_v1  ;;  %2345 = vst [vmem:[#allocation3 + $0x198] sm:$0xff] %v14671_v1  ;;  %v9758_v50 = vld [vmem:[#allocation7 + $0x100] ss:$16 sps:$4 sm:$0xff]   ;;  %v9759_v52 = vld [vmem:[#allocation7 + $0x124] ss:$16 sps:$4 sm:$0xff]  }
 0x14a   : > { %2346 = vst [vmem:[#allocation3 + $0x1a0] sm:$0xff] %v14671_v1  ;;  %2347 = vst [vmem:[#allocation3 + $0x1a8] sm:$0xff] %v14671_v1  ;;  %1817 = vmatpush1.bf16.msra.mxu0 %v9739_v24  ;;  %v11192_v51 = vsel %vm643_vm3, %v644_v44, %v645_v49  ;;  %v9755_v53 = vld [vmem:[#allocation7 + $0x8] ss:$16 sps:$4 sm:$0xff]   ;;  %v9763_v56 = vld [vmem:[#allocation7 + $0x2c] ss:$16 sps:$4 sm:$0xff]  }
 0x14b   : > { %2348 = vst [vmem:[#allocation3 + $0x1b0] sm:$0xff] %v14671_v1  ;;  %2349 = vst [vmem:[#allocation3 + $0x1b8] sm:$0xff] %v14671_v1  ;;  %1963 = vmatpush1.bf16.msra.mxu1 %v9740_v25  ;;  %1818 = vmatprep.subr.bf16.mxu0 %v9741_v26  ;;  %v9764_v57 = vld [vmem:[#allocation7 + $0x120] ss:$16 sps:$4 sm:$0xff]   ;;  %v9765_v58 = vld [vmem:[#allocation7 + $0x144] ss:$16 sps:$4 sm:$0xff]  }
 0x14c   : > { %2350 = vst [vmem:[#allocation3 + $0x1c0] sm:$0xff] %v14671_v1  ;;  %2351 = vst [vmem:[#allocation3 + $0x1c8] sm:$0xff] %v14671_v1  ;;  %1964 = vmatprep.subr.bf16.mxu1 %v9743_v27  ;;  %v9761_v59 = vld [vmem:[#allocation7 + $0x28] ss:$16 sps:$4 sm:$0xff]   ;;  %v9769_v60 = vld [vmem:[#allocation7 + $0x4c] ss:$16 sps:$4 sm:$0xff]  }
 0x14d   : > { %2352 = vst [vmem:[#allocation3 + $0x1d0] sm:$0xff] %v14671_v1  ;;  %2353 = vst [vmem:[#allocation3 + $0x1d8] sm:$0xff] %v14671_v1  ;;  %v9770_v61 = vld [vmem:[#allocation7 + $0x140] ss:$16 sps:$4 sm:$0xff]   ;;  %v9771_v62 = vld [vmem:[#allocation7 + $0x164] ss:$16 sps:$4 sm:$0xff]  }
 0x14e   : > { %2357 = vst [vmem:[#allocation3 + $0x1f8] sm:$0xff] %v14671_v1  ;;  %2361 = vst [vmem:[#allocation3 + $0x218] sm:$0xff] %v14671_v1  ;;  %1819 = vmatpush1.bf16.msra.mxu0 %v9745_v28  ;;  %v9767_v63 = vld [vmem:[#allocation7 + $0x48] ss:$16 sps:$4 sm:$0xff]   ;;  %v9775_v2 = vld [vmem:[#allocation7 + $0x6c] ss:$16 sps:$4 sm:$0xff]  }
 0x14f   : > { %2365 = vst [vmem:[#allocation3 + $0x238] sm:$0xff] %v14671_v1  ;;  %658 = vst [vmem:[#allocation2 + $0x48] sm:$0x3f] %v653_v35  ;;  %1965 = vmatpush1.bf16.msra.mxu1 %v9746_v29  ;;  %1820 = vmatprep.subr.bf16.mxu0 %v9747_v30  ;;  %v9776_v4 = vld [vmem:[#allocation7 + $0x160] ss:$16 sps:$4 sm:$0xff]   ;;  %v8478_v15 = vld [vmem:[%s11103_s19 + $0x18] sm:$0xff] }
 0x150   : > { %639 = vst [vmem:[#allocation2 + $0x8] sm:$0xfe] %v634_v37  ;;  %1966 = vmatprep.subr.bf16.mxu1 %v9749_v33  ;;  %631 = vst [vmem:[#allocation2] sm:$0xfc] %v626_v41  ;;  %v9777_v6 = vld [vmem:[#allocation7 + $0x184] ss:$16 sps:$4 sm:$0xff]   ;;  %v11203_v19 = vpack.c.bf16 %v8478_v15, %v8477_v14 }
 0x151   : > { %650 = vst [vmem:[#allocation2 + $0x40] sm:$0x7f] %v645_v49  ;;  %v9773_v7 = vld [vmem:[#allocation7 + $0x68] ss:$16 sps:$4 sm:$0xff]   ;;  %v9781_v8 = vld [vmem:[#allocation7 + $0x8c] ss:$16 sps:$4 sm:$0xff]  }
 0x152   : > { %1821 = vmatpush1.bf16.msra.mxu0 %v9751_v38  ;;  %v9782_v9 = vld [vmem:[#allocation7 + $0x180] ss:$16 sps:$4 sm:$0xff]   ;;  %v9783_v10 = vld [vmem:[#allocation7 + $0x1a4] ss:$16 sps:$4 sm:$0xff]   ;;  %v9779_v11 = vld [vmem:[#allocation7 + $0x88] ss:$16 sps:$4 sm:$0xff]  }
 0x153   : > { %1967 = vmatpush1.bf16.msra.mxu1 %v9752_v42  ;;  %1822 = vmatprep.subr.bf16.mxu0 %v9753_v45  ;;  %v9787_v12 = vld [vmem:[#allocation7 + $0xac] ss:$16 sps:$4 sm:$0xff]   ;;  %v9788_v13 = vld [vmem:[#allocation7 + $0x1a0] ss:$16 sps:$4 sm:$0xff]   ;;  %v9789_v16 = vld [vmem:[#allocation7 + $0x1c4] ss:$16 sps:$4 sm:$0xff]  }
 0x154   : > { %2025 = vmatprep.subr.bf16.mxu1 %v9757_v46  ;;  %v687_v17 = vrot.slane %v8477_v14, 2  ;;  %v688_v18 = vrot.slane %v8478_v15, 2  ;;  %v9785_v20 = vld [vmem:[#allocation7 + $0xa8] ss:$16 sps:$4 sm:$0xff]   ;;  %v671_v21 = vrot.slane %v8477_v14, 7  ;;  %v672_v22 = vrot.slane %v8478_v15, 7 }
 0x155   : > { %v9793_v23 = vld [vmem:[#allocation7 + $0xcc] ss:$16 sps:$4 sm:$0xff]   ;;  %v664_v25 = vrot.slane %v8477_v14, 6  ;;  %v9791_v26 = vld [vmem:[#allocation7 + $0xc8] ss:$16 sps:$4 sm:$0xff]   ;;  %v665_v29 = vrot.slane %v8478_v15, 6 }
 0x156   : > { %v773_v54 = vld [vmem:[#allocation2 + $0x48] sm:$0xff]  ;;  %1823 = vmatpush1.bf16.msra.mxu0 %v9758_v50  ;;  %v689_v24 = vsel %vm651_vm0, %v687_v17, %v688_v18  ;;  %693 = vst [vmem:[#allocation2 + $0x98] sm:$0x3f] %v688_v18  ;;  %v9794_v27 = vld [vmem:[#allocation7 + $0x1c0] ss:$16 sps:$4 sm:$0xff]   ;;  %v11207_v28 = vsel %vm633_vm1, %v671_v21, %v672_v22  ;;  %v680_v31 = vrot.slane %v8477_v14, 1 }
 0x157   : > { %v11194_v55 = vpack.c.bf16 %v773_v54, %v654_v39  ;;  %1824 = vmatprep.subr.bf16.mxu0 %v9759_v52  ;;  %v765_v3 = vld [vmem:[#allocation2 + $0x8] sm:$0xff]  ;;  %676 = vst [vmem:[#allocation2 + $0x58] sm:$0xfe] %v671_v21  ;;  %v9795_v30 = vld [vmem:[#allocation7 + $0x1e4] ss:$16 sps:$4 sm:$0xff]   ;;  %v681_v32 = vrot.slane %v8478_v15, 1  ;;  %v11212_v37 = vsel %vm625_vm2, %v664_v25, %v665_v29 }
 0x158   : > { %v11198_v5 = vpack.c.bf16 %v636_v47, %v765_v3  ;;  %669 = vst [vmem:[#allocation2 + $0x50] sm:$0xfc] %v664_v25  ;;  %v9799_v33 = vld [vmem:[#allocation7 + $0xec] ss:$16 sps:$4 sm:$0xff]   ;;  %v8479_v34 = vld [vmem:[%s11103_s19 + $0x20] sm:$0xff]  ;;  %s10724_s30 = smov 32  }
 0x159   : > { %1985 = vmatmul.mubr.bf16.vlgmr.msra.gmra.mrb[0].mxu1 %v11194_v55  ;;  %v8480_v35 = vld [vmem:[%s11103_s19 + $0x28] sm:$0xff]  ;;  %v9800_v38 = vld [vmem:[#allocation7 + $0x1e0] ss:$16 sps:$4 sm:$0xff]   ;;  %v722_v39 = vrot.slane %v8479_v34, 2  ;;  %v11215_v41 = vsel %vm643_vm3, %v680_v31, %v681_v32  ;;  %686 = vst [vmem:[#allocation2 + $0x90] sm:$0x7f] %v681_v32 }
 0x15a   : > { %2026 = vmatpush1.bf16.msra.mxu1 %v9755_v53  ;;  %1994 = vmatprep.mubr.bf16.mxu1 %v10722_v0  ;;  %v723_v40 = vrot.slane %v8480_v35, 2  ;;  %v11217_v42 = vpack.c.bf16 %v8480_v35, %v8479_v34  ;;  %v764_v43 = vld [vmem:[#allocation2] sm:$0xff]  ;;  %v706_v44 = vrot.slane %v8479_v34, 7  ;;  %v707_v45 = vrot.slane %v8480_v35, 7  ;;  %v9797_v50 = vld [vmem:[#allocation7 + $0xe8] ss:$16 sps:$4 sm:$0xff]  }
 0x15b   : > { %2027 = vmatprep.subr.bf16.mxu1 %v9763_v56  ;;  %1825 = vmatpush1.bf16.msra.mxu0 %v9764_v57  ;;  %v9803_v46 = vld [vmem:[#allocation7 + $0x204] ss:$16 sps:$4 sm:$0xff]   ;;  %v699_v49 = vrot.slane %v8479_v34, 6  ;;  %v700_v54 = vrot.slane %v8480_v35, 6  ;;  %v715_v56 = vrot.slane %v8479_v34, 1  ;;  %v8482_v3 = vld [vmem:[%s11103_s19 + $0x38] sm:$0xff] }
 0x15c   : > { %1826 = vmatprep.subr.bf16.mxu0 %v9765_v58  ;;  %1838 = vmatprep.mubr.bf16.mxu0 %v11198_v5  ;;  %v724_v47 = vsel %vm651_vm0, %v722_v39, %v723_v40  ;;  %728 = vst [vmem:[#allocation2 + $0xe8] sm:$0x3f] %v723_v40  ;;  %v11221_v53 = vsel %vm633_vm1, %v706_v44, %v707_v45  ;;  %711 = vst [vmem:[#allocation2 + $0xa8] sm:$0xfe] %v706_v44  ;;  %v9806_v57 = vld [vmem:[#allocation7 + $0x10c] ss:$16 sps:$4 sm:$0xff]  }
 0x15d   : > { %v783_v52 = vld [vmem:[#allocation2 + $0x98] sm:$0xff]  ;;  %v11224_v58 = vpack.c.bf16 %v11189_v48, %v764_v43  ;;  %704 = vst [vmem:[#allocation2 + $0xa0] sm:$0xfc] %v699_v49  ;;  %v751_v18 = vrot.slane %v8482_v3, 1  ;;  %v9819_v39 = vld [vmem:[#allocation7 + $0x260] ss:$16 sps:$4 sm:$0xff]  }
 0x15e   : > { %2028 = vmatpush1.bf16.msra.mxu1 %v9761_v59  ;;  %v11226_v59 = vpack.c.bf16 %v783_v52, %v689_v24  ;;  %v9816_v29 = vld [vmem:[#allocation7 + $0x148] ss:$16 sps:$4 sm:$0xff]   ;;  %v9824_v34 = vld [vmem:[#allocation7 + $0x16c] ss:$16 sps:$4 sm:$0xff]   ;;  %v9827_v40 = vld [vmem:[#allocation7 + $0x284] ss:$16 sps:$4 sm:$0xff]  }
 0x15f   : > { %2029 = vmatprep.subr.bf16.mxu1 %v9769_v60  ;;  %1827 = vmatpush1.bf16.msra.mxu0 %v9770_v61  ;;  %v716_v60 = vrot.slane %v8480_v35, 1  ;;  %v9801_v61 = vld [vmem:[#allocation7 + $0x200] ss:$16 sps:$4 sm:$0xff]   ;;  %756 = vst [vmem:[#allocation2 + $0x130] sm:$0x7f] %v751_v18  ;;  %v775_v31 = vld [vmem:[#allocation2 + $0x58] sm:$0xff] }
 0x160   : > { %1828 = vmatprep.subr.bf16.mxu0 %v9771_v62  ;;  %v9809_v62 = vld [vmem:[#allocation7 + $0x224] ss:$16 sps:$4 sm:$0xff]   ;;  %v11254_v32 = vpack.c.bf16 %v11207_v28, %v775_v31  ;;  %v9822_v28 = vld [vmem:[#allocation7 + $0x168] ss:$16 sps:$4 sm:$0xff]   ;;  %v9825_v44 = vld [vmem:[#allocation7 + $0x280] ss:$16 sps:$4 sm:$0xff]  }
 0x161   : > { %1995 = vmatmul.mubr.bf16.gmra.mrb[4].mxu1 %v11226_v59  ;;  %v11235_v48 = vsel %vm643_vm3, %v715_v56, %v716_v60  ;;  %721 = vst [vmem:[#allocation2 + $0xe0] sm:$0x7f] %v716_v60  ;;  %v9830_v45 = vld [vmem:[#allocation7 + $0x18c] ss:$16 sps:$4 sm:$0xff]   ;;  %v9828_v52 = vld [vmem:[#allocation7 + $0x188] ss:$16 sps:$4 sm:$0xff]  }
 0x162   : > { %2030 = vmatpush1.bf16.msra.mxu1 %v9767_v63  ;;  %v8481_v63 = vld [vmem:[%s11103_s19 + $0x30] sm:$0xff]  ;;  %2004 = vmatprep.mubr.bf16.mxu1 %v10722_v0  ;;  %s10725_s21 = smov 64   ;;  %vm2550_vm4 = vcmask 261120   ;;  %s10726_s23 = smov 96   ;;  %vm2834_vm5 = vcmask 523264   ;;  %vm2590_vm6 = vcmask 785408  }
 0x163   : > { %2031 = vmatprep.subr.bf16.mxu1 %v9775_v2  ;;  %1829 = vmatpush1.bf16.msra.mxu0 %v9776_v4  ;;  %v11230_v2 = vsel %vm625_vm2, %v699_v49, %v700_v54  ;;  %v757_v4 = vrot.slane %v8481_v63, 2  ;;  %v793_v14 = vld [vmem:[#allocation2 + $0xe8] sm:$0xff]  ;;  %v750_v17 = vrot.slane %v8481_v63, 1  ;;  %v9831_v56 = vld [vmem:[#allocation7 + $0x2a0] ss:$16 sps:$4 sm:$0xff]   ;;  %vm3694_vm7 = vcmask 1043456  }
 0x164   : > { %1830 = vmatprep.subr.bf16.mxu0 %v9777_v6  ;;  %v741_v6 = vrot.slane %v8481_v63, 7  ;;  %v11242_v21 = vpack.c.bf16 %v793_v14, %v724_v47  ;;  %v784_v47 = vld [vmem:[#allocation2 + $0xa0] sm:$0xff]  ;;  %v9836_v54 = vld [vmem:[#allocation7 + $0x1ac] ss:$16 sps:$4 sm:$0xff]   ;;  %vm3724_vm8 = vcmask 1042432   ;;  %vm3718_vm9 = vcmask 523268  }
 0x165   : > { %v11249_v25 = vsel %vm643_vm3, %v750_v17, %v751_v18  ;;  %v9839_v60 = vld [vmem:[#allocation7 + $0x2c4] ss:$16 sps:$4 sm:$0xff]   ;;  %v9849_v14 = vld [vmem:[#allocation7 + $0x300] ss:$16 sps:$4 sm:$0xff]   ;;  %v9860_v17 = vld [vmem:[#allocation7 + $0x22c] ss:$16 sps:$4 sm:$0xff]  }
 0x166   : > { %2032 = vmatpush1.bf16.msra.mxu1 %v9773_v7  ;;  %v734_v7 = vrot.slane %v8481_v63, 6  ;;  %746 = vst [vmem:[#allocation2 + $0xf8] sm:$0xfe] %v741_v6  ;;  %v9855_v18 = vld [vmem:[#allocation7 + $0x320] ss:$16 sps:$4 sm:$0xff]   ;;  %vm3136_vm10 = vcmask 519168  }
 0x167   : > { %2033 = vmatprep.subr.bf16.mxu1 %v9781_v8  ;;  %1831 = vmatpush1.bf16.msra.mxu0 %v9782_v9  ;;  %v9804_v8 = vld [vmem:[#allocation7 + $0x108] ss:$16 sps:$4 sm:$0xff]   ;;  %v758_v9 = vrot.slane %v8482_v3, 2  ;;  %v9875_v31 = vld [vmem:[#allocation7 + $0x384] ss:$16 sps:$4 sm:$0xff]   ;;  %vm7697_vm11 = vcmask 392192  }
 0x168   : > { %1832 = vmatprep.subr.bf16.mxu0 %v9783_v10  ;;  %v11238_v10 = vpack.c.bf16 %v8482_v3, %v8481_v63  ;;  %739 = vst [vmem:[#allocation2 + $0xf0] sm:$0xfc] %v734_v7  ;;  %vm10728_vm12 = vmmov 0   ;;  %s15431_s20 = sld [smem:[#allocation154_spill]]  ;;  %s15432_s3 = sld [smem:[#allocation155_spill]]  ;;  %vm8110_vm13 = vcmask 31744  }
 0x169   : > { %v759_v15 = vsel %vm651_vm0, %v757_v4, %v758_v9  ;;  %763 = vst [vmem:[#allocation2 + $0x138] sm:$0x3f] %v758_v9  ;;  %2005 = vmatmul.mubr.bf16.gmra.mrb[8].mxu1 %v11242_v21  ;;  %v9840_v4 = vld [vmem:[#allocation7 + $0x1c8] ss:$16 sps:$4 sm:$0xff]   ;;  %v9851_v9 = vld [vmem:[#allocation7 + $0x304] ss:$16 sps:$4 sm:$0xff]  }
 0x16a   : > { %2034 = vmatpush1.bf16.msra.mxu1 %v9779_v11  ;;  %v9807_v11 = vld [vmem:[#allocation7 + $0x220] ss:$16 sps:$4 sm:$0xff]   ;;  %2014 = vmatprep.mubr.bf16.mxu1 %v10722_v0  ;;  %s8476_s11 = sshll.u32 %s11099_s24, 2  ;;  %s8939_s19 = sshll.u32 %s10821_s14, 6  ;;  %vm8277_vm14 = vcmask 125952  }
 0x16b   : > { %2035 = vmatprep.subr.bf16.mxu1 %v9787_v12  ;;  %1833 = vmatpush1.bf16.msra.mxu0 %v9788_v13  ;;  %v9812_v12 = vld [vmem:[#allocation7 + $0x12c] ss:$16 sps:$4 sm:$0xff]   ;;  %v742_v13 = vrot.slane %v8482_v3, 7  ;;  %s15434_s16 = sld [smem:[#allocation157_spill]]  ;;  %s8280_s13 = scalar_lea.sflag [#allocation6], %s11099_s24 }
 0x16c   : > { %1834 = vmatprep.subr.bf16.mxu0 %v9789_v16  ;;  %v735_v16 = vrot.slane %v8482_v3, 6  ;;  %p15435_p12 = scmp.ne.s32.totalorder %s14921_s29, 0  ;;  %s10729_s14 = smov [#allocation21]  }
 0x16d   : > { %v743_v22 = vsel %vm633_vm1, %v741_v6, %v742_v13  ;;  %v9843_v6 = vld [vmem:[#allocation7 + $0x2e0] ss:$16 sps:$4 sm:$0xff]   ;;  %v9854_v13 = vld [vmem:[#allocation7 + $0x20c] ss:$16 sps:$4 sm:$0xff]  }
 0x16e   : > { %2036 = vmatpush1.bf16.msra.mxu1 %v9785_v20  ;;  %v9815_v20 = vld [vmem:[#allocation7 + $0x244] ss:$16 sps:$4 sm:$0xff]   ;;  %v11246_v24 = vsel %vm625_vm2, %v734_v7, %v735_v16  ;;  %v9848_v7 = vld [vmem:[#allocation7 + $0x1ec] ss:$16 sps:$4 sm:$0xff]   ;;  %v9852_v16 = vld [vmem:[#allocation7 + $0x208] ss:$16 sps:$4 sm:$0xff]  }
 0x16f   : > { %2037 = vmatprep.subr.bf16.mxu1 %v9793_v23  ;;  %1835 = vmatpush1.bf16.msra.mxu0 %v9794_v27  ;;  %v9810_v23 = vld [vmem:[#allocation7 + $0x128] ss:$16 sps:$4 sm:$0xff]   ;;  %v9813_v27 = vld [vmem:[#allocation7 + $0x240] ss:$16 sps:$4 sm:$0xff]  }
 0x170   : > { %1836 = vmatprep.subr.bf16.mxu0 %v9795_v30  ;;  %v9821_v30 = vld [vmem:[#allocation7 + $0x264] ss:$16 sps:$4 sm:$0xff]   ;;  %v803_v35 = vld [vmem:[#allocation2 + $0x138] sm:$0xff] }
 0x171   : > { %v11260_v43 = vpack.c.bf16 %v803_v35, %v759_v15  ;;  %v9857_v15 = vld [vmem:[#allocation7 + $0x324] ss:$16 sps:$4 sm:$0xff]   ;;  %s14605_s17 = scalar_lea.hbm %s15434_s16, %s8939_s19 }
 0x172   : > { %2038 = vmatpush1.bf16.msra.mxu1 %v9791_v26  ;;  %v9818_v26 = vld [vmem:[#allocation7 + $0x14c] ss:$16 sps:$4 sm:$0xff]  }
 0x173   : > { %2039 = vmatprep.subr.bf16.mxu1 %v9799_v33  ;;  %1837 = vmatpush1.bf16.msra.mxu0 %v9800_v38  ;;  %v774_v33 = vld [vmem:[#allocation2 + $0x50] sm:$0xff] }
 0x174   : > { %1879 = vmatprep.subr.bf16.mxu0 %v9803_v46  ;;  %v11257_v38 = vpack.c.bf16 %v11212_v37, %v774_v33  ;;  %v785_v46 = vld [vmem:[#allocation2 + $0xa8] sm:$0xff]  ;;  %v9833_v37 = vld [vmem:[#allocation7 + $0x2a4] ss:$16 sps:$4 sm:$0xff]   ;;  %2015 = vmatmul.mubr.bf16.gmra.mrb[12].mxu1 %v11260_v43 }
 0x175   : > { %v11265_v49 = vpack.c.bf16 %v11221_v53, %v785_v46  ;;  %2057 = vmatprep.mubr.bf16.mxu1 %v11198_v5  ;;  %v795_v53 = vld [vmem:[#allocation2 + $0xf8] sm:$0xff]  ;;  %v9837_v5 = vld [vmem:[#allocation7 + $0x2c0] ss:$16 sps:$4 sm:$0xff]  }
 0x176   : > { %2040 = vmatpush1.bf16.msra.mxu1 %v9797_v50  ;;  %1839 = vmatmul.mubr.bf16.vlgmr.msra.gmra.mrb[0].mxu0 %v11224_v58  ;;  %v11268_v50 = vpack.c.bf16 %v11230_v2, %v784_v47  ;;  %v11273_v63 = vpack.c.bf16 %v743_v22, %v795_v53  ;;  %v9845_v2 = vld [vmem:[#allocation7 + $0x2e4] ss:$16 sps:$4 sm:$0xff]   ;;  %v9866_v22 = vld [vmem:[#allocation7 + $0x24c] ss:$16 sps:$4 sm:$0xff]  }
 0x177   : > { %2041 = vmatprep.subr.bf16.mxu1 %v9806_v57  ;;  %1880 = vmatpush1.bf16.msra.mxu0 %v9801_v61  ;;  %v9834_v57 = vld [vmem:[#allocation7 + $0x1a8] ss:$16 sps:$4 sm:$0xff]   ;;  %v794_v61 = vld [vmem:[#allocation2 + $0xf0] sm:$0xff]  ;;  %v9878_v33 = vld [vmem:[#allocation7 + $0x28c] ss:$16 sps:$4 sm:$0xff]  }
 0x178   : > { %1881 = vmatprep.subr.bf16.mxu0 %v9809_v62  ;;  %1848 = vmatprep.mubr.bf16.mxu0 %v11254_v32  ;;  %v9842_v62 = vld [vmem:[#allocation7 + $0x1cc] ss:$16 sps:$4 sm:$0xff]   ;;  %v11277_v3 = vpack.c.bf16 %v11246_v24, %v794_v61  ;;  %v986_v24 = vlaneseq  ;;  %v9888_v61 = vld [vmem:[#allocation7 + $0x2c8] ss:$16 sps:$4 sm:$0xff]  }
 0x17a   : > { %2042 = vmatpush1.bf16.msra.mxu1 %v9804_v8  ;;  %v772_v8 = vld [vmem:[#allocation2 + $0x40] sm:$0xff] }
 0x17b   : > { %2043 = vmatprep.subr.bf16.mxu1 %v9812_v12  ;;  %1882 = vmatpush1.bf16.msra.mxu0 %v9807_v11  ;;  %v11281_v11 = vpack.c.bf16 %v772_v8, %v11192_v51  ;;  %v9846_v12 = vld [vmem:[#allocation7 + $0x1e8] ss:$16 sps:$4 sm:$0xff]   ;;  %v9863_v51 = vld [vmem:[#allocation7 + $0x344] ss:$16 sps:$4 sm:$0xff]   ;;  %v9899_v8 = vld [vmem:[#allocation7 + $0x30c] ss:$16 sps:$4 sm:$0xff]  }
 0x17c   : > { %1883 = vmatprep.subr.bf16.mxu0 %v9815_v20  ;;  %v9858_v20 = vld [vmem:[#allocation7 + $0x228] ss:$16 sps:$4 sm:$0xff]  }
 0x17e   : > { %2044 = vmatpush1.bf16.msra.mxu1 %v9810_v23  ;;  %1849 = vmatmul.mubr.bf16.gmra.mrb[4].mxu0 %v11257_v38  ;;  %v9861_v23 = vld [vmem:[#allocation7 + $0x340] ss:$16 sps:$4 sm:$0xff]  }
 0x17f   : > { %2045 = vmatprep.subr.bf16.mxu1 %v9818_v26  ;;  %1884 = vmatpush1.bf16.msra.mxu0 %v9813_v27  ;;  %v9869_v26 = vld [vmem:[#allocation7 + $0x364] ss:$16 sps:$4 sm:$0xff]   ;;  %v9864_v27 = vld [vmem:[#allocation7 + $0x248] ss:$16 sps:$4 sm:$0xff]  }
 0x180   : > { %1885 = vmatprep.subr.bf16.mxu0 %v9821_v30  ;;  %1858 = vmatprep.mubr.bf16.mxu0 %v11265_v49  ;;  %v9867_v30 = vld [vmem:[#allocation7 + $0x360] ss:$16 sps:$4 sm:$0xff]  }
 0x182   : > { %2046 = vmatpush1.bf16.msra.mxu1 %v9816_v29  ;;  %v9872_v29 = vld [vmem:[#allocation7 + $0x26c] ss:$16 sps:$4 sm:$0xff]  }
 0x183   : > { %2047 = vmatprep.subr.bf16.mxu1 %v9824_v34  ;;  %1886 = vmatpush1.bf16.msra.mxu0 %v9819_v39  ;;  %v9873_v34 = vld [vmem:[#allocation7 + $0x380] ss:$16 sps:$4 sm:$0xff]  }
 0x184   : > { %1887 = vmatprep.subr.bf16.mxu0 %v9827_v40  ;;  %v9881_v40 = vld [vmem:[#allocation7 + $0x3a4] ss:$16 sps:$4 sm:$0xff]  }
 0x186   : > { %2048 = vmatpush1.bf16.msra.mxu1 %v9822_v28  ;;  %1859 = vmatmul.mubr.bf16.gmra.mrb[8].mxu0 %v11268_v50  ;;  %v9876_v28 = vld [vmem:[#allocation7 + $0x288] ss:$16 sps:$4 sm:$0xff]  }
 0x187   : > { %2049 = vmatprep.subr.bf16.mxu1 %v9830_v45  ;;  %1888 = vmatpush1.bf16.msra.mxu0 %v9825_v44  ;;  %v11296_v44 = vld [vmem:[#allocation10 + $0x4] ss:$8 sm:$0xf] }
 0x188   : > { %1889 = vmatprep.subr.bf16.mxu0 %v9833_v37  ;;  %1868 = vmatprep.mubr.bf16.mxu0 %v11273_v63  ;;  %v9879_v45 = vld [vmem:[#allocation7 + $0x3a0] ss:$16 sps:$4 sm:$0xff]  }
 0x18a   : > { %2050 = vmatpush1.bf16.msra.mxu1 %v9828_v52  ;;  %v9882_v52 = vld [vmem:[#allocation7 + $0x2a8] ss:$16 sps:$4 sm:$0xff]  }
 0x18b   : > { %2051 = vmatprep.subr.bf16.mxu1 %v9836_v54  ;;  %1890 = vmatpush1.bf16.msra.mxu0 %v9831_v56  ;;  %v9887_v54 = vld [vmem:[#allocation7 + $0x3c4] ss:$16 sps:$4 sm:$0xff]   ;;  %v9890_v56 = vld [vmem:[#allocation7 + $0x2cc] ss:$16 sps:$4 sm:$0xff]  }
 0x18c   : > { %1891 = vmatprep.subr.bf16.mxu0 %v9839_v60  ;;  %v9893_v60 = vld [vmem:[#allocation7 + $0x3e4] ss:$16 sps:$4 sm:$0xff]  }
 0x18e   : > { %2052 = vmatpush1.bf16.msra.mxu1 %v9834_v57  ;;  %1869 = vmatmul.mubr.bf16.gmra.mrb[12].mxu0 %v11277_v3  ;;  %v9885_v57 = vld [vmem:[#allocation7 + $0x3c0] ss:$16 sps:$4 sm:$0xff]  }
 0x18f   : > { %2053 = vmatprep.subr.bf16.mxu1 %v9842_v62  ;;  %1892 = vmatpush1.bf16.msra.mxu0 %v9837_v5  ;;  %v9891_v5 = vld [vmem:[#allocation7 + $0x3e0] ss:$16 sps:$4 sm:$0xff]  }
 0x190   : > { %1893 = vmatprep.subr.bf16.mxu0 %v9845_v2  ;;  %1911 = vmatprep.mubr.bf16.mxu0 %v11281_v11 }
 0x192   : > { %2054 = vmatpush1.bf16.msra.mxu1 %v9840_v4  ;;  %v11318_v4 = vld [vmem:[#allocation10 + $0x7] ss:$8 sm:$0xf] }
 0x193   : > { %2055 = vmatprep.subr.bf16.mxu1 %v9848_v7  ;;  %1894 = vmatpush1.bf16.msra.mxu0 %v9843_v6  ;;  %v9894_v6 = vld [vmem:[#allocation7 + $0x2e8] ss:$16 sps:$4 sm:$0xff]  }
 0x194   : > { %1895 = vmatprep.subr.bf16.mxu0 %v9851_v9  ;;  %v9897_v9 = vld [vmem:[#allocation7 + $0x308] ss:$16 sps:$4 sm:$0xff]  }
 0x196   : > { %2056 = vmatpush1.bf16.msra.mxu1 %v9846_v12 }
 0x197   : > { %2098 = vmatprep.subr.bf16.mxu1 %v9854_v13  ;;  %1896 = vmatpush1.bf16.msra.mxu0 %v9849_v14  ;;  %v11332_v14 = vld [vmem:[#allocation10 + $0x5] ss:$8 sm:$0xf] }
 0x198   : > { %1897 = vmatprep.subr.bf16.mxu0 %v9857_v15  ;;  %v9902_v15 = vld [vmem:[#allocation7 + $0x32c] ss:$16 sps:$4 sm:$0xff]  }
 0x199   : > { %2058 = vmatmul.mubr.bf16.vlgmr.msra.gmra.mrb[16].mxu1 %v11224_v58  ;;  %v11286_v58 = vshrl.u32 %v986_v24, 7  ;;  %v9908_v24 = vld [vmem:[#allocation7 + $0x36c] ss:$16 sps:$4 sm:$0xff]  }
 0x19a   : > { %2099 = vmatpush1.bf16.msra.mxu1 %v9852_v16  ;;  %2067 = vmatprep.mubr.bf16.mxu1 %v11254_v32  ;;  %v9870_v32 = vld [vmem:[#allocation7 + $0x268] ss:$16 sps:$4 sm:$0xff]  }
 0x19b   : > { %2100 = vmatprep.subr.bf16.mxu1 %v9860_v17  ;;  %1898 = vmatpush1.bf16.msra.mxu0 %v9855_v18  ;;  %v11291_v35 = vsub.s32 2, %v11286_v58  ;;  %v11294_v39 = vsub.s32 0, %v11286_v58  ;;  %v11303_v37 = vsub.s32 1, %v11286_v58  ;;  %v9900_v16 = vld [vmem:[#allocation7 + $0x328] ss:$16 sps:$4 sm:$0xff]  }
 0x19c   : > { %1899 = vmatprep.subr.bf16.mxu0 %v9863_v51  ;;  %v9905_v17 = vld [vmem:[#allocation7 + $0x34c] ss:$16 sps:$4 sm:$0xff]  }
 0x19d   : > { %14937 = vst [vmem:[#allocation30_spill] sm:$0xff] %v11291_v35  ;;  %14938 = vst [vmem:[#allocation31_spill] sm:$0xff] %v11294_v39  ;;  %v2625_v46 = vrot.slane %v11296_v44, %v11291_v35  ;;  %v2617_v47 = vrot.slane %v11296_v44, %v11294_v39  ;;  %v2621_v62 = vrot.slane %v11296_v44, %v11303_v37  ;;  %v11344_v51 = vld [vmem:[#allocation10 + $0x2] ss:$8 sm:$0xf] }
 0x19e   : > { %2101 = vmatpush1.bf16.msra.mxu1 %v9858_v20  ;;  %14939 = vst [vmem:[#allocation32_spill] sm:$0xff] %v11303_v37  ;;  %v2715_v13 = vrot.slane %v11318_v4, %v11294_v39  ;;  %v2900_v18 = vrot.slane %v11332_v14, %v11294_v39  ;;  %v9903_v20 = vld [vmem:[#allocation7 + $0x348] ss:$16 sps:$4 sm:$0xff]  }
 0x19f   : > { %2102 = vmatprep.subr.bf16.mxu1 %v9866_v22  ;;  %1900 = vmatpush1.bf16.msra.mxu0 %v9861_v23  ;;  %v2904_v23 = vrot.slane %v11332_v14, %v11303_v37 }
 0x1a0   : > { %1901 = vmatprep.subr.bf16.mxu0 %v9869_v26  ;;  %2634 = vrot.lane.b32.xlu1 %v2625_v46, %s10724_s30  ;;  %v2908_v26 = vrot.slane %v11332_v14, %v11291_v35  ;;  %v11376_v46 = vsub.s32 3, %v11286_v58 }
 0x1a1   : > { %2068 = vmatmul.mubr.bf16.gmra.mrb[20].mxu1 %v11257_v38  ;;  %v9884_v38 = vld [vmem:[#allocation7 + $0x2ac] ss:$16 sps:$4 sm:$0xff]   ;;  %2630 = vrot.lane.b32.xlu0 %v2617_v47, %s10724_s30 }
 0x1a2   : > { %2103 = vmatpush1.bf16.msra.mxu1 %v9864_v27  ;;  %2077 = vmatprep.mubr.bf16.mxu1 %v11265_v49  ;;  %v11305_v49 = vld [vmem:[#allocation10 + $0x1] ss:$8 sm:$0xf]  ;;  %14940 = vst [vmem:[#allocation33_spill] sm:$0xff] %v11376_v46  ;;  %v2629_v58 = vrot.slane %v11296_v44, %v11376_v46 }
 0x1a3   : > { %2104 = vmatprep.subr.bf16.mxu1 %v9872_v29  ;;  %1902 = vmatpush1.bf16.msra.mxu0 %v9867_v30  ;;  %v2529_v53 = vrot.slane %v11305_v49, %v11294_v39  ;;  %v2537_v2 = vrot.slane %v11305_v49, %v11291_v35  ;;  %v2533_v7 = vrot.slane %v11305_v49, %v11303_v37  ;;  %v802_v27 = vld [vmem:[#allocation2 + $0x130] sm:$0xff]  ;;  %v9906_v29 = vld [vmem:[#allocation7 + $0x368] ss:$16 sps:$4 sm:$0xff]   ;;  %v9917_v47 = vld [vmem:[#allocation7 + $0x3cc] ss:$16 sps:$4 sm:$0xff]  }
 0x1a4   : > { %1903 = vmatprep.subr.bf16.mxu0 %v9875_v31  ;;  %v2292_v30 = vld [vmem:[#allocation10 + $0x20] ss:$8 sm:$0xf] }
 0x1a5   : > { %2542 = vrot.lane.b32.xlu1 %v2529_v53, %s10724_s30  ;;  %2632 = vrot.lane.b32.xlu0 %v2621_v62, %s10724_s30  ;;  %v9911_v31 = vld [vmem:[#allocation7 + $0x38c] ss:$16 sps:$4 sm:$0xff]   ;;  %v3010_v53 = vrot.slane %v2292_v30, %v11376_v46  ;;  %v2541_v62 = vrot.slane %v11305_v49, %v11376_v46  ;;  %v2825_v49 = vrot.slane %v11344_v51, %v11376_v46 }
 0x1a6   : > { %2105 = vmatpush1.bf16.msra.mxu1 %v9870_v32  ;;  %v2817_v32 = vrot.slane %v11344_v51, %v11303_v37  ;;  %v9926_v44 = vld [vmem:[#allocation7 + $0x42c] ss:$16 sps:$4 sm:$0xff]  }
 0x1a7   : > { %2106 = vmatprep.subr.bf16.mxu1 %v9878_v33  ;;  %1904 = vmatpush1.bf16.msra.mxu0 %v9873_v34  ;;  %v9909_v33 = vld [vmem:[#allocation7 + $0x388] ss:$16 sps:$4 sm:$0xff]   ;;  %v11364_v34 = vpack.c.bf16 %v802_v27, %v11249_v25  ;;  %v3002_v25 = vrot.slane %v2292_v30, %v11303_v37 }
 0x1a8   : > { %1905 = vmatprep.subr.bf16.mxu0 %v9881_v40  ;;  %v2821_v40 = vrot.slane %v11344_v51, %v11291_v35 }
 0x1a9   : > { %2078 = vmatmul.mubr.bf16.gmra.mrb[24].mxu1 %v11268_v50  ;;  %v9896_v50 = vld [vmem:[#allocation7 + $0x2ec] ss:$16 sps:$4 sm:$0xff]   ;;  %2546 = vrot.lane.b32.xlu1 %v2537_v2, %s10724_s30 }
 0x1aa   : > { %2107 = vmatpush1.bf16.msra.mxu1 %v9876_v28  ;;  %2087 = vmatprep.mubr.bf16.mxu1 %v11273_v63  ;;  %v782_v63 = vld [vmem:[#allocation2 + $0x90] sm:$0xff]  ;;  %v9914_v28 = vld [vmem:[#allocation7 + $0x3ac] ss:$16 sps:$4 sm:$0xff]  }
 0x1ab   : > { %2108 = vmatprep.subr.bf16.mxu1 %v9884_v38  ;;  %1906 = vmatpush1.bf16.msra.mxu0 %v9879_v45  ;;  %v11327_v12 = vpack.c.bf16 %v782_v63, %v11215_v41  ;;  %v2723_v41 = vrot.slane %v11318_v4, %v11291_v35  ;;  %v2998_v38 = vrot.slane %v2292_v30, %v11294_v39  ;;  %v9912_v45 = vld [vmem:[#allocation7 + $0x3a8] ss:$16 sps:$4 sm:$0xff]   ;;  %v9929_v2 = vld [vmem:[#allocation7 + $0x44c] ss:$16 sps:$4 sm:$0xff]  }
 0x1ac   : > { %1907 = vmatprep.subr.bf16.mxu0 %v9887_v54  ;;  %2544 = vrot.lane.b32.xlu0 %v2533_v7, %s10724_s30  ;;  %v9915_v54 = vld [vmem:[#allocation7 + $0x3c8] ss:$16 sps:$4 sm:$0xff]  }
 0x1ad   : > { %v9924_v63 = vld [vmem:[#allocation7 + $0x428] ss:$16 sps:$4 sm:$0xff]  }
 0x1ae   : > { %2109 = vmatpush1.bf16.msra.mxu1 %v9882_v52  ;;  %v3006_v52 = vrot.slane %v2292_v30, %v11291_v35  ;;  %v9930_v7 = vld [vmem:[#allocation7 + $0x468] ss:$16 sps:$4 sm:$0xff]  }
 0x1af   : > { %2110 = vmatprep.subr.bf16.mxu1 %v9890_v56  ;;  %1908 = vmatpush1.bf16.msra.mxu0 %v9885_v57  ;;  %v2727_v56 = vrot.slane %v11318_v4, %v11376_v46  ;;  %v9920_v57 = vld [vmem:[#allocation7 + $0x3ec] ss:$16 sps:$4 sm:$0xff]  }
 0x1b0   : > { %1909 = vmatprep.subr.bf16.mxu0 %v9893_v60  ;;  %2728 = vrot.lane.b32.xlu0 %v2715_v13, %s10724_s30  ;;  %v9918_v60 = vld [vmem:[#allocation7 + $0x3e8] ss:$16 sps:$4 sm:$0xff]   ;;  %v9941_v13 = vld [vmem:[#allocation7 + $0x4cc] ss:$16 sps:$4 sm:$0xff]  }
 0x1b1   : > { %2088 = vmatmul.mubr.bf16.gmra.mrb[28].mxu1 %v11277_v3  ;;  %v2719_v3 = vrot.slane %v11318_v4, %v11303_v37  ;;  %v9927_v4 = vld [vmem:[#allocation7 + $0x448] ss:$16 sps:$4 sm:$0xff]  }
 0x1b2   : > { %2111 = vmatpush1.bf16.msra.mxu1 %v9888_v61  ;;  %2130 = vmatprep.mubr.bf16.mxu1 %v11281_v11  ;;  %v792_v11 = vld [vmem:[#allocation2 + $0xe0] sm:$0xff]  ;;  %v9923_v61 = vld [vmem:[#allocation7 + $0x40c] ss:$16 sps:$4 sm:$0xff]  }
 0x1b3   : > { %2112 = vmatprep.subr.bf16.mxu1 %v9896_v50  ;;  %1910 = vmatpush1.bf16.msra.mxu0 %v9891_v5  ;;  %v11347_v22 = vpack.c.bf16 %v792_v11, %v11235_v48  ;;  %v2813_v48 = vrot.slane %v11344_v51, %v11294_v39  ;;  %v9921_v50 = vld [vmem:[#allocation7 + $0x408] ss:$16 sps:$4 sm:$0xff]   ;;  %v2912_v5 = vrot.slane %v11332_v14, %v11376_v46 }
 0x1b4   : > { %2730 = vrot.lane.b32.xlu1 %v2719_v3, %s10724_s30  ;;  %2732 = vrot.lane.b32.xlu0 %v2723_v41, %s10724_s30  ;;  %v9939_v14 = vld [vmem:[#allocation7 + $0x4c8] ss:$16 sps:$4 sm:$0xff]  }
 0x1b6   : > { %2113 = vmatpush1.bf16.msra.mxu1 %v9894_v6  ;;  %1912 = vmatmul.mubr.bf16.vlgmr.msra.gmra.mrb[0].mxu0 %v11184_v36  ;;  %v9932_v6 = vld [vmem:[#allocation7 + $0x46c] ss:$16 sps:$4 sm:$0xff]  }
 0x1b7   : > { %2114 = vmatprep.subr.bf16.mxu1 %v9899_v8  ;;  %1921 = vmatprep.mubr.bf16.mxu0 %v11327_v12  ;;  %v9933_v8 = vld [vmem:[#allocation7 + $0x488] ss:$16 sps:$4 sm:$0xff]  }
 0x1b8   : > { %2913 = vrot.lane.b32.xlu1 %v2900_v18, %s10725_s21  ;;  %2915 = vrot.lane.b32.xlu0 %v2904_v23, %s10725_s21 }
 0x1ba   : > { %2115 = vmatpush1.bf16.msra.mxu1 %v9897_v9  ;;  %v9938_v9 = vld [vmem:[#allocation7 + $0x4ac] ss:$16 sps:$4 sm:$0xff]  }
 0x1bb   : > { %2116 = vmatprep.subr.bf16.mxu1 %v9902_v15  ;;  %v9944_v15 = vld [vmem:[#allocation7 + $0x4ec] ss:$16 sps:$4 sm:$0xff]  }
 0x1bc   : > { %2917 = vrot.lane.b32.xlu1 %v2908_v26, %s10725_s21  ;;  %2826 = vrot.lane.b32.xlu0 %v2813_v48, %s10725_s21 }
 0x1be   : > { %2117 = vmatpush1.bf16.msra.mxu1 %v9900_v16  ;;  %1922 = vmatmul.mubr.bf16.gmra.mrb[4].mxu0 %v11203_v19 }
 0x1bf   : > { %2118 = vmatprep.subr.bf16.mxu1 %v9905_v17  ;;  %1931 = vmatprep.mubr.bf16.mxu0 %v11347_v22 }
 0x1c0   : > { %2828 = vrot.lane.b32.xlu1 %v2817_v32, %s10725_s21  ;;  %2830 = vrot.lane.b32.xlu0 %v2821_v40, %s10725_s21  ;;  %v11453_v32 = vld [vmem:[#allocation9] sm:$0xf] }
 0x1c1   : > { %v11461_v40 = vrot.slane %v11453_v32, %v11294_v39 }
 0x1c2   : > { %2119 = vmatpush1.bf16.msra.mxu1 %v9903_v20 }
 0x1c3   : > { %2120 = vmatprep.subr.bf16.mxu1 %v9908_v24 }
 0x1c4   : > { %3011 = vrot.lane.b32.xlu1 %v2998_v38, %s10725_s21  ;;  %3013 = vrot.lane.b32.xlu0 %v3002_v25, %s10725_s21 }
 0x1c6   : > { %2121 = vmatpush1.bf16.msra.mxu1 %v9906_v29  ;;  %1932 = vmatmul.mubr.bf16.gmra.mrb[8].mxu0 %v11217_v42 }
 0x1c7   : > { %2122 = vmatprep.subr.bf16.mxu1 %v9911_v31  ;;  %1941 = vmatprep.mubr.bf16.mxu0 %v11364_v34 }
 0x1c8   : > { %3015 = vrot.lane.b32.xlu1 %v3006_v52, %s10725_s21  ;;  %2734 = vrot.lane.b32.xlu0 %v2727_v56, %s10724_s30 }
 0x1ca   : > { %2123 = vmatpush1.bf16.msra.mxu1 %v9909_v33 }
 0x1cb   : > { %2124 = vmatprep.subr.bf16.mxu1 %v9914_v28  ;;  %v11465_v28 = vrot.slane %v11453_v32, %v11303_v37  ;;  %v11703_v37 = vld [vmem:[#allocation10 + $0x3] ss:$8 sm:$0xf] }
 0x1cc   : > { %2636 = vrot.lane.b32.xlu1 %v2629_v58, %s10724_s30  ;;  %3017 = vrot.lane.b32.xlu0 %v3010_v53, %s10725_s21  ;;  %14957 = vst [vmem:[#allocation48_spill] sm:$0xff] %v11703_v37 }
 0x1ce   : > { %2125 = vmatpush1.bf16.msra.mxu1 %v9912_v45  ;;  %1942 = vmatmul.mubr.bf16.gmra.mrb[12].mxu0 %v11238_v10 }
 0x1cf   : > { %2126 = vmatprep.subr.bf16.mxu1 %v9917_v47 }
 0x1d0   : > { %2548 = vrot.lane.b32.xlu1 %v2541_v62, %s10724_s30  ;;  %s578_s30 = scalar_lea.vmem [#allocation21], %s8476_s11  ;;  %s10620_s11 = sshll.u32 %s10729_s14, 4  ;;  %s10621_s11 = int_to_ptr.vmem [resolvable:$false] %s10620_s11 }
 0x1d1   : > { %s10622_s0 = scalar_lea.vmem %s10621_s11, 128 }
 0x1d2   : > { %2127 = vmatpush1.bf16.msra.mxu1 %v9915_v54 }
 0x1d3   : > { %2128 = vmatprep.subr.bf16.mxu1 %v9920_v57 }
 0x1d4   : > { %2919 = vrot.lane.b32.xlu1 %v2912_v5, %s10725_s21 }
 0x1d6   : > { %2129 = vmatpush1.bf16.msra.mxu1 %v9918_v60 }
 0x1d7   : > { %2171 = vmatprep.subr.bf16.mxu1 %v9923_v61 }
 0x1d8   : > { %2832 = vrot.lane.b32.xlu1 %v2825_v49, %s10725_s21 }
 0x1d9   : > { %2131 = vmatmul.mubr.bf16.vlgmr.msra.gmra.mrb[16].mxu1 %v11184_v36  ;;  %v9935_v36 = vld [vmem:[#allocation7 + $0x48c] ss:$16 sps:$4 sm:$0xff]  }
 0x1da   : > { %2172 = vmatpush1.bf16.msra.mxu1 %v9921_v50  ;;  %2140 = vmatprep.mubr.bf16.mxu1 %v11327_v12  ;;  %v9936_v12 = vld [vmem:[#allocation7 + $0x4a8] ss:$16 sps:$4 sm:$0xff]  }
 0x1db   : > { %2173 = vmatprep.subr.bf16.mxu1 %v9926_v44 }
 0x1de   : > { %2174 = vmatpush1.bf16.msra.mxu1 %v9924_v63 }
 0x1df   : > { %2175 = vmatprep.subr.bf16.mxu1 %v9929_v2 }
 0x1e1   : > { %2141 = vmatmul.mubr.bf16.gmra.mrb[20].mxu1 %v11203_v19  ;;  %v9942_v19 = vld [vmem:[#allocation7 + $0x4e8] ss:$16 sps:$4 sm:$0xff]  }
 0x1e2   : > { %2176 = vmatpush1.bf16.msra.mxu1 %v9927_v4  ;;  %2150 = vmatprep.mubr.bf16.mxu1 %v11347_v22 }
 0x1e3   : > { %2177 = vmatprep.subr.bf16.mxu1 %v9932_v6 }
 0x1e6   : > { %2178 = vmatpush1.bf16.msra.mxu1 %v9930_v7 }
 0x1e7   : > { %2179 = vmatprep.subr.bf16.mxu1 %v9935_v36 }
 0x1e9   : > { %2151 = vmatmul.mubr.bf16.gmra.mrb[24].mxu1 %v11217_v42 }
 0x1ea   : > { %2180 = vmatpush1.bf16.msra.mxu1 %v9933_v8  ;;  %2160 = vmatprep.mubr.bf16.mxu1 %v11364_v34 }
 0x1eb   : > { %2181 = vmatprep.subr.bf16.mxu1 %v9938_v9 }
 0x1ee   : > { %2182 = vmatpush1.bf16.msra.mxu1 %v9936_v12 }
 0x1ef   : > { %2183 = vmatprep.subr.bf16.mxu1 %v9941_v13 }
 0x1f1   : > { %2161 = vmatmul.mubr.bf16.gmra.mrb[28].mxu1 %v11238_v10 }
 0x1f2   : > { %2184 = vmatpush1.bf16.msra.mxu1 %v9939_v14  ;;  %2203 = vmatprep.mubr.bf16.mxu1 %v10722_v0 }
 0x1f3   : > { %2185 = vmatprep.subr.bf16.mxu1 %v9944_v15 }
 0x1f6   : > { %2186 = vmatpush1.bf16.msra.mxu1 %v9942_v19 }
 0x1f9   : > { %2204 = vmatmul.mubr.bf16.vlgmr.msra.gmra.mrb[16].mxu1 %v11194_v55 }
 0x1fa   : > { %2213 = vmatprep.mubr.bf16.mxu1 %v10722_v0 }
 0x201   : > { %2214 = vmatmul.mubr.bf16.gmra.mrb[20].mxu1 %v11226_v59 }
 0x202   : > { %2223 = vmatprep.mubr.bf16.mxu1 %v10722_v0 }
 0x209   : > { %2224 = vmatmul.mubr.bf16.gmra.mrb[24].mxu1 %v11242_v21 }
 0x20a   : > { %2233 = vmatprep.mubr.bf16.mxu1 %v10722_v0 }
 0x211   : > { %2234 = vmatmul.mubr.bf16.gmra.mrb[28].mxu1 %v11260_v43 }
 0x212   : > { %v11439_v24 = vpop.permute.xlu1 %2634 }
 0x213   : > { %v11437_v23 = vpop.permute.xlu0 %2630 }
 0x214   : > { %14941 = vst [vmem:[#allocation34_spill] sm:$0xff] %v11437_v23 }
 0x217   : > { %v11441_v26 = vpop.permute.xlu0 %2632  ;;  %v11443_v27 = vpop.permute.xlu1 %2542 }
 0x218   : > { %14942 = vst [vmem:[#allocation35_spill] sm:$0xff] %v11443_v27 }
 0x21b   : > { %v11447_v48 = vpop.permute.xlu1 %2546 }
 0x21c   : > { %14944 = vst [vmem:[#allocation37_spill] sm:$0xff] %v11447_v48 }
 0x21e   : > { %v11445_v29 = vpop.permute.xlu0 %2544 }
 0x21f   : > { %14943 = vst [vmem:[#allocation36_spill] sm:$0xff] %v11445_v29 }
 0x222   : > { %v11449_v30 = vpop.permute.xlu0 %2728 }
 0x223   : > { %14945 = vst [vmem:[#allocation38_spill] sm:$0xff] %v11449_v30 }
 0x226   : > { %v11451_v31 = vpop.permute.xlu1 %2730  ;;  %v11455_v33 = vpop.permute.xlu0 %2732 }
 0x22a   : > { %v11457_v34 = vpop.permute.xlu1 %2913  ;;  %v11468_v47 = vpop.permute.xlu0 %2915 }
 0x22c   : > { %v1986_v42 = vpop.f32.mrb[0].mxu1 }
 0x22d   : > { %v1988_v10 = vpop.f32.mrb[1].mxu1 }
 0x22e   : > { %v1990_v3 = vpop.f32.mrb[2].mxu1  ;;  %v11471_v56 = vpop.permute.xlu1 %2917 }
 0x22f   : > { %v1992_v11 = vpop.f32.mrb[3].mxu1  ;;  %v11483_v49 = vpop.permute.xlu0 %2826 }
 0x230   : > { %14947 = vst [vmem:[#allocation40_spill] sm:$0xff] %v11483_v49 }
 0x232   : > { %v11485_v6 = vpop.permute.xlu1 %2828 }
 0x233   : > { %14948 = vst [vmem:[#allocation41_spill] sm:$0xff] %v11485_v6 }
 0x234   : > { %v1996_v16 = vpop.f32.mrb[4].mxu1 }
 0x235   : > { %v11415_v41 = vpop.f32.mrb[5].mxu1 }
 0x236   : > { %v11417_v55 = vpop.f32.mrb[6].mxu1 }
 0x237   : > { %v11419_v17 = vpop.f32.mrb[7].mxu1 }
 0x23c   : > { %v11421_v59 = vpop.f32.mrb[8].mxu1 }
 0x23d   : > { %v11423_v18 = vpop.f32.mrb[9].mxu1 }
 0x23e   : > { %v11425_v21 = vpop.f32.mrb[10].mxu1 }
 0x23f   : > { %v11427_v0 = vpop.f32.mrb[11].mxu1 }
 0x247   : > { %v11429_v43 = vpop.f32.mrb[12].mxu1 }
 0x248   : > { %v11431_v51 = vpop.f32.mrb[13].mxu1 }
 0x249   : > { %v11433_v20 = vpop.f32.mrb[14].mxu1 }
 0x24a   : > { %v11435_v22 = vpop.f32.mrb[15].mxu1 }
 0x289   : > { %v1913_v38 = vpop.f32.mrb[0].mxu0 }
 0x28a   : > { %v9385_v45 = vadd.f32 %v1913_v38, %v11461_v40  ;;  %v1915_v25 = vpop.f32.mrb[1].mxu0 }
 0x28b   : > { %v9387_v52 = vadd.f32 %v1915_v25, %v11465_v28  ;;  %v1917_v54 = vpop.f32.mrb[2].mxu0 }
 0x28c   : > { %v9386_v57 = vadd.f32 %v9385_v45, %v1986_v42  ;;  %v9389_v58 = vadd.f32 %v1917_v54, %v11461_v40  ;;  %v1919_v60 = vpop.f32.mrb[3].mxu0  ;;  %v11508_v45 = vsel %vm2550_vm4, %v11437_v23, %v11441_v26 }
 0x28d   : > { %v9388_v53 = vadd.f32 %v9387_v52, %v1988_v10  ;;  %v9391_v61 = vadd.f32 %v1919_v60, %v11465_v28  ;;  %v11530_v60 = vsel %vm2550_vm4, %v11443_v27, %v11445_v29 }
 0x28e   : > { %v11475_v62 = vmax.f32 %v9386_v57, 0.0  ;;  %v9390_v50 = vadd.f32 %v9389_v58, %v1990_v3 }
 0x28f   : > { %v9392_v44 = vadd.f32 %v9391_v61, %v1992_v11  ;;  %v11497_v13 = vmax.f32 %v9388_v53, 0.0  ;;  %v11542_v61 = vsel %vm2834_vm5, %v11483_v49, %v11485_v6 }
 0x290   : > { %v11477_v5 = vmax.f32 %v9390_v50, 0.0  ;;  %v2558_v63 = vmul.f32 %v11443_v27, %v11475_v62  ;;  %v2645_v2 = vmul.f32 %v11437_v23, %v11475_v62  ;;  %v2842_v19 = vmul.f32 %v11483_v49, %v11475_v62  ;;  %14951 = vst [vmem:[#allocation44_spill] sm:$0xff] %v11542_v61  ;;  %v11544_v50 = vpop.permute.xlu1 %3011 }
 0x291   : > { %v1923_v4 = vpop.f32.mrb[4].mxu0  ;;  %v11487_v7 = vmax.f32 %v9392_v44, 0.0  ;;  %14950 = vst [vmem:[#allocation43_spill] sm:$0xff] %v11497_v13  ;;  %v2743_v54 = vmul.f32 %v11449_v30, %v11475_v62  ;;  %v2559_v44 = vmul.f32 %v11530_v60, %v11497_v13  ;;  %v3026_v1 = vmul.f32 %v11544_v50, %v11475_v62 }
 0x292   : > { %14946 = vst [vmem:[#allocation39_spill] sm:$0xff] %v11477_v5  ;;  %v9393_v36 = vadd.f32 %v1923_v4, %v11461_v40  ;;  %2574 = vrot.lane.b32.xlu1 %v2558_v63, %s10726_s23  ;;  %v1925_v8 = vpop.f32.mrb[5].mxu0  ;;  %v2562_v9 = vmul.f32 %v11443_v27, %v11477_v5  ;;  %v11495_v12 = vmul.f32 %v11437_v23, %v11477_v5  ;;  %v2661_v11 = vrot.slane %v2645_v2, 1 }
 0x293   : > { %14949 = vst [vmem:[#allocation42_spill] sm:$0xff] %v11487_v7  ;;  %v9395_v14 = vadd.f32 %v1925_v8, %v11465_v28  ;;  %v1927_v15 = vpop.f32.mrb[6].mxu0  ;;  %v2846_v57 = vmul.f32 %v11483_v49, %v11477_v5  ;;  %v11522_v58 = vmul.f32 %v11508_v45, %v11487_v7  ;;  %v11537_v53 = vmul.f32 %v11449_v30, %v11477_v5 }
 0x294   : > { %v9397_v42 = vadd.f32 %v1927_v15, %v11461_v40  ;;  %v9394_v10 = vadd.f32 %v9393_v36, %v1996_v16  ;;  %2582 = vrot.lane.b32.xlu0 %v2562_v9, %s10726_s23  ;;  %v1929_v3 = vpop.f32.mrb[7].mxu0  ;;  %v14678_v38 = vrot.slane %v11495_v12, 1  ;;  %v11553_v63 = vmul.f32 %v11457_v34, %v11477_v5 }
 0x295   : > { %v11511_v25 = vadd.f32 %v9395_v14, %v11415_v41  ;;  %v9399_v52 = vadd.f32 %v1929_v3, %v11465_v28  ;;  %v2759_v4 = vrot.slane %v2743_v54, 2  ;;  %v14675_v36 = vrot.slane %v11537_v53, 2 }
 0x296   : > { %v9398_v16 = vadd.f32 %v9397_v42, %v11417_v55  ;;  %2858 = vrot.lane.b32.xlu1 %v2842_v19, %s10725_s21  ;;  %v2663_v41 = vsel %vm643_vm3, %v2661_v11, %v14678_v38  ;;  %v11558_v8 = vmul.f32 %v11544_v50, %v11477_v5  ;;  %v14673_v15 = vrot.slane %v11522_v58, 1 }
 0x297   : > { %v11533_v55 = vadd.f32 %v9399_v52, %v11419_v17  ;;  %v2928_v17 = vmul.f32 %v11457_v34, %v11475_v62  ;;  %v14674_v42 = vrot.slane %v11553_v63, 1  ;;  %v2843_v52 = vmul.f32 %v11542_v61, %v11497_v13 }
 0x298   : > { %2866 = vrot.lane.b32.xlu0 %v2846_v57, %s10725_s21  ;;  %v2761_v54 = vsel %vm651_vm0, %v2759_v4, %v14675_v36  ;;  %v14677_v57 = vrot.slane %v11558_v8, 2  ;;  %v11586_v4 = vsel %vm2550_vm4, %v11449_v30, %v11451_v31 }
 0x299   : > { %v1933_v2 = vpop.f32.mrb[8].mxu0  ;;  %v2944_v19 = vrot.slane %v2928_v17, 1 }
 0x29a   : > { %v9401_v9 = vadd.f32 %v1933_v2, %v11461_v40  ;;  %2576 = vrot.lane.b32.xlu1 %v2559_v44, %s10726_s23  ;;  %v1935_v14 = vpop.f32.mrb[9].mxu0 }
 0x29b   : > { %v9403_v3 = vadd.f32 %v1935_v14, %v11465_v28  ;;  %v1937_v11 = vpop.f32.mrb[10].mxu0  ;;  %v2946_v14 = vsel %vm643_vm3, %v2944_v19, %v14674_v42  ;;  %v11598_v19 = vmul.f32 %v11586_v4, %v11487_v7  ;;  %v11600_v42 = vmax.f32 %v9398_v16, 0.0 }
 0x29c   : > { %v9405_v44 = vadd.f32 %v1937_v11, %v11461_v40  ;;  %v11573_v2 = vadd.f32 %v9401_v9, %v11421_v59  ;;  %2683 = vrot.lane.b32.xlu0 %v14673_v15, %s10726_s23  ;;  %v1939_v17 = vpop.f32.mrb[11].mxu0  ;;  %v3042_v15 = vrot.slane %v3026_v1, 2 }
 0x29d   : > { %v11589_v59 = vadd.f32 %v9403_v3, %v11423_v18  ;;  %v9407_v9 = vadd.f32 %v1939_v17, %v11465_v28  ;;  %14952 = vst [vmem:[#allocation45_spill] sm:$0xff] %v11600_v42  ;;  %v2563_v18 = vmul.f32 %v11530_v60, %v11487_v7  ;;  %v14676_v16 = vrot.slane %v11598_v19, 2 }
 0x29e   : > { %v11593_v11 = vadd.f32 %v9405_v44, %v11425_v21  ;;  %2860 = vrot.lane.b32.xlu1 %v2843_v52, %s10725_s21  ;;  %v11611_v21 = vsel %vm651_vm0, %v3042_v15, %v14677_v57  ;;  %v11621_v17 = vmul.f32 %v11449_v30, %v11600_v42 }
 0x29f   : > { %v11603_v36 = vadd.f32 %v9407_v9, %v11427_v0  ;;  %v11616_v0 = vmax.f32 %v9394_v10, 0.0  ;;  %v2847_v10 = vmul.f32 %v11542_v61, %v11487_v7 }
 0x2a0   : > { %2673 = vrot.lane.b32.xlu0 %v2663_v41, %s10726_s23  ;;  %v14679_v38 = vrot.slane %v11621_v17, 2 }
 0x2a1   : > { %v1943_v3 = vpop.f32.mrb[12].mxu0  ;;  %v3352_v6 = vmul.f32 %v11437_v23, %v11616_v0  ;;  %v3538_v29 = vmul.f32 %v11457_v34, %v11616_v0 }
 0x2a2   : > { %v9409_v52 = vadd.f32 %v1943_v3, %v11461_v40  ;;  %2584 = vrot.lane.b32.xlu1 %v2563_v18, %s10726_s23  ;;  %v1945_v1 = vpop.f32.mrb[13].mxu0  ;;  %v11634_v3 = vmul.f32 %v11544_v50, %v11600_v42 }
 0x2a3   : > { %v9411_v41 = vadd.f32 %v1945_v1, %v11465_v28  ;;  %v1947_v44 = vpop.f32.mrb[14].mxu0  ;;  %v11639_v1 = vsel %vm2834_vm5, %v11457_v34, %v11468_v47 }
 0x2a4   : > { %v9413_v15 = vadd.f32 %v1947_v44, %v11461_v40  ;;  %v11625_v9 = vadd.f32 %v9409_v52, %v11429_v43  ;;  %2781 = vrot.lane.b32.xlu0 %v14676_v16, %s10726_s23  ;;  %v1949_v18 = vpop.f32.mrb[15].mxu0  ;;  %v11641_v40 = vpop.permute.xlu0 %2830  ;;  %v11653_v16 = vmul.f32 %v11639_v1, %v11487_v7 }
 0x2a5   : > { %14954 = vst [vmem:[#allocation47_spill] sm:$0xff] %v11641_v40  ;;  %v11644_v43 = vadd.f32 %v9411_v41, %v11431_v51  ;;  %v9415_v52 = vadd.f32 %v1949_v18, %v11465_v28  ;;  %v3418_v51 = vmul.f32 %v11449_v30, %v11616_v0  ;;  %v14684_v28 = vrot.slane %v11634_v3, 2  ;;  %v11717_v40 = vld [vmem:[#allocation10] ss:$8 sm:$0xf] }
 0x2a6   : > { %14953 = vst [vmem:[#allocation46_spill] sm:$0xff] %v11625_v9  ;;  %v11648_v44 = vadd.f32 %v9413_v15, %v11433_v20  ;;  %2868 = vrot.lane.b32.xlu1 %v2847_v10, %s10725_s21  ;;  %v3604_v20 = vmul.f32 %v11544_v50, %v11616_v0  ;;  %v14955_v15 = vrot.slane %v11495_v12, 1  ;;  %v3356_v18 = vmul.f32 %v11437_v23, %v11600_v42 }
 0x2a7   : > { %v11656_v57 = vadd.f32 %v9415_v52, %v11435_v22  ;;  %v3434_v41 = vrot.slane %v3418_v51, 2  ;;  %v2948_v22 = vrot.slane %v11653_v16, 1  ;;  %v11673_v10 = vmul.f32 %v11457_v34, %v11600_v42  ;;  %14960 = vst [vmem:[#allocation50_spill] sm:$0xff] %v11717_v40 }
 0x2a8   : > { %2771 = vrot.lane.b32.xlu0 %v2761_v54, %s10726_s23  ;;  %v3620_v54 = vrot.slane %v3604_v20, 2  ;;  %v11675_v52 = vpop.permute.xlu0 %3013  ;;  %v14965_v30 = vrot.slane %v11522_v58, 1 }
 0x2a9   : > { %v11680_v51 = vsel %vm651_vm0, %v3434_v41, %v14679_v38  ;;  %v11685_v12 = vsel %vm2834_vm5, %v11544_v50, %v11675_v52  ;;  %v3369_v41 = vrot.slane %v3356_v18, 1  ;;  %v3555_v38 = vrot.slane %v11673_v10, 1 }
 0x2aa   : > { %2681 = vrot.lane.b32.xlu1 %v14955_v15, %s10726_s23  ;;  %v11691_v16 = vsel %vm651_vm0, %v3620_v54, %v14684_v28  ;;  %v3031_v20 = vmul.f32 %v11685_v12, %v11487_v7  ;;  %v14956_v15 = vrot.slane %v11537_v53, 2  ;;  %v3368_v54 = vrot.slane %v3352_v6, 1  ;;  %v11706_v7 = vld [vmem:[#allocation10 + $0x6] ss:$8 sm:$0xf] }
 0x2ab   : > { %v3554_v28 = vrot.slane %v3538_v29, 1  ;;  %14958 = vst [vmem:[#allocation49_spill] sm:$0xff] %v11706_v7  ;;  %v14959_v53 = vrot.slane %v11553_v63, 1  ;;  %v11725_v29 = vrot.slane %v11706_v7, %v11294_v39  ;;  %v2646_v6 = vmul.f32 %v11508_v45, %v11497_v13 }
 0x2ac   : > { %2966 = vrot.lane.b32.xlu0 %v2948_v22, %s10725_s21  ;;  %v3046_v18 = vrot.slane %v3031_v20, 2  ;;  %v11712_v10 = vsel %vm643_vm3, %v3368_v54, %v3369_v41  ;;  %v14963_v63 = vrot.slane %v11558_v8, 2  ;;  %v3488_v8 = vmul.f32 %v11483_v49, %v11600_v42 }
 0x2ad   : > { %14962 = vst [vmem:[#allocation52_spill] sm:$0xff] %v11725_v29  ;;  %v2481_v54 = vmul.f32 %v11725_v29, %v11475_v62  ;;  %v2744_v7 = vmul.f32 %v11586_v4, %v11497_v13 }
 0x2ae   : > { %2779 = vrot.lane.b32.xlu1 %v14956_v15, %s10726_s23  ;;  %v11715_v15 = vsel %vm643_vm3, %v3554_v28, %v3555_v38  ;;  %v11735_v28 = vrot.slane %v11717_v40, %v11294_v39 }
 0x2af   : > { %v2762_v23 = vrot.slane %v2744_v7, 2  ;;  %v14968_v7 = vrot.slane %v11621_v17, 2 }
 0x2b0   : > { %2956 = vrot.lane.b32.xlu0 %v2946_v14, %s10725_s21  ;;  %v11721_v14 = vrot.slane %v11703_v37, %v11294_v39  ;;  %14964 = vst [vmem:[#allocation53_spill] sm:$0xff] %v11735_v28  ;;  %v2664_v39 = vrot.slane %v2646_v6, 1  ;;  %v2387_v48 = vmul.f32 %v11735_v28, %v11475_v62 }
 0x2b2   : > { %2964 = vrot.lane.b32.xlu1 %v14959_v53, %s10725_s21  ;;  %14961 = vst [vmem:[#allocation51_spill] sm:$0xff] %v11721_v14  ;;  %v2416_v20 = vmul.f32 %v11721_v14, %v11475_v62  ;;  %v11743_v53 = vmul.f32 %v11721_v14, %v11477_v5  ;;  %v2929_v62 = vmul.f32 %v11639_v1, %v11497_v13 }
 0x2b4   : > { %3064 = vrot.lane.b32.xlu0 %v3046_v18, %s10725_s21  ;;  %v2432_v37 = vrot.slane %v2416_v20, 1  ;;  %v14703_v40 = vrot.slane %v11743_v53, 1 }
 0x2b6   : > { %3062 = vrot.lane.b32.xlu1 %v14963_v63, %s10725_s21  ;;  %v11751_v63 = vmul.f32 %v11725_v29, %v11477_v5  ;;  %v2666_v5 = vsel %vm643_vm3, %v2664_v39, %v14965_v30  ;;  %v2434_v6 = vsel %vm643_vm3, %v2432_v37, %v14703_v40  ;;  %v11776_v39 = vmax.f32 %v11603_v36, 0.0 }
 0x2b7   : > { %v2452_v20 = vadd.f32 %v2434_v6, %v2387_v48  ;;  %v14967_v37 = vrot.slane %v11598_v19, 2  ;;  %v2947_v48 = vrot.slane %v2929_v62, 1  ;;  %v3254_v6 = vmul.f32 %v11725_v29, %v11616_v0 }
 0x2b8   : > { %3054 = vrot.lane.b32.xlu0 %v11611_v21, %s10725_s21  ;;  %v2497_v21 = vrot.slane %v2481_v54, 2  ;;  %v14702_v9 = vrot.slane %v11751_v63, 2  ;;  %14966 = vst [vmem:[#allocation54_spill] sm:$0xff] %v11776_v39  ;;  %v11793_v19 = vmul.f32 %v11639_v1, %v11776_v39  ;;  %v11799_v54 = vmul.f32 %v11685_v12, %v11776_v39 }
 0x2b9   : > { %v2764_v30 = vsel %vm651_vm0, %v2762_v23, %v14967_v37  ;;  %v2949_v36 = vsel %vm643_vm3, %v2947_v48, %v2948_v22  ;;  %v3298_v62 = vmul.f32 %v11443_v27, %v11616_v0 }
 0x2ba   : > { %3508 = vrot.lane.b32.xlu1 %v3488_v8, %s10725_s21  ;;  %v2499_v8 = vsel %vm651_vm0, %v2497_v21, %v14702_v9  ;;  %v3210_v21 = vmul.f32 %v11721_v14, %v11616_v0  ;;  %v14706_v37 = vrot.slane %v11799_v54, 2 }
 0x2bb   : > { %v11773_v58 = vadd.f32 %v2499_v8, %v2452_v20  ;;  %v11812_v20 = vmul.f32 %v11721_v14, %v11600_v42  ;;  %v14972_v8 = vrot.slane %v11634_v3, 2 }
 0x2bc   : > { %2675 = vrot.lane.b32.xlu0 %v2666_v5, %s10726_s23  ;;  %v3027_v5 = vmul.f32 %v11685_v12, %v11497_v13 }
 0x2bd   : > { %14970 = vst [vmem:[#allocation56_spill] sm:$0xff] %v11812_v20  ;;  %v14705_v3 = vrot.slane %v11812_v20, 1 }
 0x2be   : > { %3388 = vrot.lane.b32.xlu1 %v3369_v41, %s10726_s23  ;;  %v11788_v41 = vmax.f32 %v11589_v59, 0.0  ;;  %v3045_v23 = vrot.slane %v3027_v5, 2  ;;  %v14707_v59 = vrot.slane %v11793_v19, 1 }
 0x2c0   : > { %2773 = vrot.lane.b32.xlu0 %v2764_v30, %s10726_s23  ;;  %14969 = vst [vmem:[#allocation55_spill] sm:$0xff] %v11788_v41  ;;  %v3047_v17 = vsel %vm651_vm0, %v3045_v23, %v3046_v18  ;;  %v4118_v22 = vmul.f32 %v11639_v1, %v11788_v41  ;;  %v11816_v18 = vmul.f32 %v11725_v29, %v11600_v42  ;;  %v3226_v30 = vrot.slane %v3210_v21, 1 }
 0x2c1   : > { %v4184_v48 = vmul.f32 %v11685_v12, %v11788_v41  ;;  %v3202_v21 = vmul.f32 %v11735_v28, %v11616_v0 }
 0x2c2   : > { %3454 = vrot.lane.b32.xlu1 %v14968_v7, %s10726_s23  ;;  %14971 = vst [vmem:[#allocation57_spill] sm:$0xff] %v11816_v18  ;;  %v14704_v23 = vrot.slane %v11816_v18, 2 }
 0x2c4   : > { %2958 = vrot.lane.b32.xlu0 %v2949_v36, %s10725_s21  ;;  %v3270_v36 = vrot.slane %v3254_v6, 2  ;;  %v3228_v6 = vsel %vm643_vm3, %v3226_v30, %v14705_v3 }
 0x2c6   : > { %3574 = vrot.lane.b32.xlu1 %v3555_v38, %s10725_s21  ;;  %v4136_v38 = vrot.slane %v4118_v22, 1 }
 0x2c8   : > { %3056 = vrot.lane.b32.xlu0 %v3047_v17, %s10725_s21  ;;  %v11831_v7 = vsel %vm643_vm3, %v4136_v38, %v14707_v59  ;;  %v11836_v17 = vmax.f32 %v11533_v55, 0.0  ;;  %v3272_v38 = vsel %vm651_vm0, %v3270_v36, %v14704_v23  ;;  %v11852_v55 = vmax.f32 %v11511_v25, 0.0 }
 0x2c9   : > { %14973 = vst [vmem:[#allocation58_spill] sm:$0xff] %v11831_v7  ;;  %v11901_v59 = vmax.f32 %v11593_v11, 0.0 }
 0x2ca   : > { %3640 = vrot.lane.b32.xlu1 %v14972_v8, %s10725_s21  ;;  %14974 = vst [vmem:[#allocation59_spill] sm:$0xff] %v11836_v17  ;;  %v4202_v8 = vrot.slane %v4184_v48, 2  ;;  %14975 = vst [vmem:[#allocation60_spill] sm:$0xff] %v11852_v55  ;;  %v3246_v48 = vadd.f32 %v3228_v6, %v3202_v21  ;;  %v3357_v25 = vmul.f32 %v11508_v45, %v11836_v17 }
 0x2cb   : > { %v3353_v21 = vmul.f32 %v11508_v45, %v11852_v55  ;;  %v3485_v23 = vmul.f32 %v11542_v61, %v11852_v55 }
 0x2cc   : > { %v11826_v5 = vpop.f32.mrb[16].mxu1  ;;  %3314 = vrot.lane.b32.xlu0 %v3298_v62, %s10726_s23  ;;  %v3484_v62 = vmul.f32 %v11483_v49, %v11616_v0  ;;  %v11863_v30 = vsel %vm651_vm0, %v4202_v8, %v14706_v37  ;;  %v11868_v36 = vadd.f32 %v3272_v38, %v3246_v48  ;;  %v3372_v8 = vrot.slane %v3357_v25, 1 }
 0x2cd   : > { %v11838_v22 = vpop.f32.mrb[17].mxu1  ;;  %14977 = vst [vmem:[#allocation62_spill] sm:$0xff] %v11863_v30  ;;  %v3539_v25 = vmul.f32 %v11639_v1, %v11852_v55  ;;  %v11897_v37 = vrot.slane %v11453_v32, %v11291_v35 }
 0x2ce   : > { %v11843_v9 = vpop.f32.mrb[18].mxu1  ;;  %3446 = vrot.lane.b32.xlu1 %v11680_v51, %s10726_s23  ;;  %14978 = vst [vmem:[#allocation63_spill] sm:$0xff] %v11868_v36  ;;  %v3299_v51 = vmul.f32 %v11530_v60, %v11852_v55 }
 0x2cf   : > { %v11854_v40 = vpop.f32.mrb[19].mxu1  ;;  %v3557_v18 = vrot.slane %v3539_v25, 1 }
 0x2d0   : > { %14976 = vst [vmem:[#allocation61_spill] sm:$0xff] %v11854_v40  ;;  %3500 = vrot.lane.b32.xlu0 %v3484_v62, %s10725_s21  ;;  %v11881_v62 = vrot.slane %v11453_v32, %v11376_v46 }
 0x2d2   : > { %3632 = vrot.lane.b32.xlu1 %v11691_v16, %s10725_s21  ;;  %v11885_v16 = vmul.f32 %v11639_v1, %v11836_v17 }
 0x2d4   : > { %v2215_v0 = vpop.f32.mrb[20].mxu1  ;;  %3316 = vrot.lane.b32.xlu0 %v3299_v51, %s10726_s23  ;;  %v3371_v51 = vrot.slane %v3353_v21, 1  ;;  %v14711_v36 = vrot.slane %v11885_v16, 1  ;;  %v3302_v21 = vmul.f32 %v11443_v27, %v11600_v42 }
 0x2d5   : > { %v11876_v6 = vpop.f32.mrb[21].mxu1 }
 0x2d6   : > { %14979 = vst [vmem:[#allocation64_spill] sm:$0xff] %v11876_v6  ;;  %v2219_v38 = vpop.f32.mrb[22].mxu1  ;;  %3390 = vrot.lane.b32.xlu1 %v3372_v8, %s10726_s23  ;;  %v3373_v13 = vsel %vm643_vm3, %v3371_v51, %v3372_v8 }
 0x2d7   : > { %v2221_v48 = vpop.f32.mrb[23].mxu1 }
 0x2d8   : > { %v11891_v3 = vadd.f32 %v2221_v48, %v11881_v62  ;;  %3502 = vrot.lane.b32.xlu0 %v3485_v23, %s10725_s21  ;;  %v9421_v48 = vadd.f32 %v2215_v0, %v11897_v37 }
 0x2da   : > { %14980 = vst [vmem:[#allocation65_spill] sm:$0xff] %v11891_v3  ;;  %3382 = vrot.lane.b32.xlu1 %v3373_v13, %s10726_s23  ;;  %v11910_v3 = vmax.f32 %v11573_v2, 0.0  ;;  %v3559_v13 = vsel %vm643_vm3, %v3557_v18, %v14711_v36  ;;  %v11924_v2 = vmul.f32 %v11457_v34, %v11901_v59  ;;  %v11926_v51 = vmax.f32 %v9421_v48, 0.0 }
 0x2db   : > { %v4068_v48 = vmul.f32 %v11542_v61, %v11776_v39  ;;  %v11950_v36 = vmul.f32 %v11544_v50, %v11901_v59 }
 0x2dc   : > { %v2225_v32 = vpop.f32.mrb[24].mxu1  ;;  %3322 = vrot.lane.b32.xlu0 %v3302_v21, %s10726_s23  ;;  %14982 = vst [vmem:[#allocation67_spill] sm:$0xff] %v11926_v51  ;;  %v3303_v21 = vmul.f32 %v11530_v60, %v11836_v17  ;;  %v4117_v18 = vmul.f32 %v11457_v34, %v11910_v3  ;;  %v14987_v30 = vrot.slane %v11924_v2, 1 }
 0x2dd   : > { %v11913_v23 = vadd.f32 %v2225_v32, %v11897_v37  ;;  %v2227_v11 = vpop.f32.mrb[25].mxu1  ;;  %14984 = vst [vmem:[#allocation69_spill] sm:$0xff] %v11950_v36 }
 0x2de   : > { %v11917_v8 = vadd.f32 %v2227_v11, %v11881_v62  ;;  %v2229_v0 = vpop.f32.mrb[26].mxu1  ;;  %3568 = vrot.lane.b32.xlu1 %v3559_v13, %s10725_s21  ;;  %v9423_v13 = vadd.f32 %v2219_v38, %v11897_v37 }
 0x2df   : > { %14981 = vst [vmem:[#allocation66_spill] sm:$0xff] %v11913_v23  ;;  %v11929_v25 = vadd.f32 %v2229_v0, %v11897_v37  ;;  %v2231_v32 = vpop.f32.mrb[27].mxu1  ;;  %v11945_v0 = vsel %vm2550_vm4, %v11451_v31, %v11455_v33  ;;  %v4133_v23 = vrot.slane %v4117_v18, 1  ;;  %v4183_v31 = vmul.f32 %v11544_v50, %v11910_v3 }
 0x2e0   : > { %v11935_v11 = vadd.f32 %v2231_v32, %v11881_v62  ;;  %3324 = vrot.lane.b32.xlu0 %v3303_v21, %s10726_s23  ;;  %v3489_v32 = vmul.f32 %v11542_v61, %v11836_v17  ;;  %v11957_v21 = vmul.f32 %v11945_v0, %v11926_v51  ;;  %v14714_v18 = vrot.slane %v11950_v36, 2 }
 0x2e1   : > { %14983 = vst [vmem:[#allocation68_spill] sm:$0xff] %v11929_v25 }
 0x2e2   : > { %4089 = vrot.lane.b32.xlu1 %v4068_v48, %s10725_s21  ;;  %14985 = vst [vmem:[#allocation70_spill] sm:$0xff] %v11957_v21  ;;  %v4135_v21 = vsel %vm643_vm3, %v4133_v23, %v14987_v30  ;;  %v11987_v30 = vmax.f32 %v9423_v13, 0.0 }
 0x2e4   : > { %v2235_v25 = vpop.f32.mrb[28].mxu1  ;;  %3510 = vrot.lane.b32.xlu0 %v3489_v32, %s10725_s21  ;;  %14990 = vst [vmem:[#allocation74_spill] sm:$0xff] %v11987_v30 }
 0x2e5   : > { %v11963_v20 = vadd.f32 %v2235_v25, %v11897_v37  ;;  %v2237_v42 = vpop.f32.mrb[29].mxu1  ;;  %v11977_v25 = vpop.permute.xlu1 %3015 }
 0x2e6   : > { %v11967_v48 = vadd.f32 %v2237_v42, %v11881_v62  ;;  %v2239_v6 = vpop.f32.mrb[30].mxu1  ;;  %4145 = vrot.lane.b32.xlu1 %v4135_v21, %s10725_s21  ;;  %v4199_v42 = vrot.slane %v4183_v31, 2  ;;  %v12015_v31 = vmul.f32 %v11725_v29, %v11901_v59  ;;  %v12035_v29 = vmax.f32 %v11644_v43, 0.0 }
 0x2e7   : > { %14986 = vst [vmem:[#allocation71_spill] sm:$0xff] %v11963_v20  ;;  %v11974_v7 = vadd.f32 %v2239_v6, %v11897_v37  ;;  %v2241_v38 = vpop.f32.mrb[31].mxu1  ;;  %v11985_v20 = vsel %vm2834_vm5, %v11675_v52, %v11977_v25  ;;  %v11993_v6 = vmul.f32 %v11721_v14, %v11901_v59  ;;  %v3423_v52 = vmul.f32 %v11586_v4, %v11836_v17 }
 0x2e8   : > { %v11980_v32 = vadd.f32 %v2241_v38, %v11881_v62  ;;  %14989 = vst [vmem:[#allocation73_spill] sm:$0xff] %v11985_v20  ;;  %3380 = vrot.lane.b32.xlu0 %v11712_v10, %s10726_s23  ;;  %v4201_v23 = vsel %vm651_vm0, %v4199_v42, %v14714_v18  ;;  %v12000_v21 = vmul.f32 %v11985_v20, %v11926_v51  ;;  %14993 = vst [vmem:[#allocation77_spill] sm:$0xff] %v12015_v31 }
 0x2e9   : > { %14988 = vst [vmem:[#allocation72_spill] sm:$0xff] %v11974_v7  ;;  %14991 = vst [vmem:[#allocation75_spill] sm:$0xff] %v11993_v6  ;;  %v12008_v10 = vsel %vm2550_vm4, %v11441_v26, %v11439_v24  ;;  %v14995_v42 = vrot.slane %v11793_v19, 1  ;;  %v3785_v26 = vmul.f32 %v11735_v28, %v11901_v59  ;;  %v14721_v19 = vrot.slane %v12015_v31, 2 }
 0x2ea   : > { %14992 = vst [vmem:[#allocation76_spill] sm:$0xff] %v12000_v21  ;;  %4211 = vrot.lane.b32.xlu1 %v4201_v23, %s10725_s21  ;;  %v12019_v38 = vmul.f32 %v12008_v10, %v11987_v30  ;;  %v3438_v23 = vrot.slane %v3423_v52, 2  ;;  %v3354_v13 = vmul.f32 %v12008_v10, %v11926_v51  ;;  %v14996_v52 = vrot.slane %v11993_v6, 1 }
 0x2eb   : > { %v14998_v18 = vrot.slane %v11799_v54, 2  ;;  %v3609_v43 = vmul.f32 %v11685_v12, %v11836_v17  ;;  %v12060_v6 = vmax.f32 %v11648_v44, 0.0  ;;  %v15003_v54 = vrot.slane %v11885_v16, 1  ;;  %v2735_v17 = vpop.permute.xlu0 %2734 }
 0x2ec   : > { %3566 = vrot.lane.b32.xlu0 %v11715_v15, %s10725_s21  ;;  %14994 = vst [vmem:[#allocation78_spill] sm:$0xff] %v12019_v38  ;;  %v12029_v15 = vsel %vm2834_vm5, %v11468_v47, %v11471_v56  ;;  %v3374_v47 = vrot.slane %v3354_v13, 1  ;;  %v15000_v21 = vrot.slane %v12019_v38, 1  ;;  %v3419_v13 = vmul.f32 %v11586_v4, %v11852_v55  ;;  %v15010_v38 = vld [vmem:[#allocation46_spill] sm:$0xff] }
 0x2ed   : > { %v12043_v14 = vmul.f32 %v12029_v15, %v11926_v51  ;;  %15002 = vst [vmem:[#allocation82_spill] sm:$0xff] %v12060_v6  ;;  %v4437_v44 = vmul.f32 %v11443_v27, %v12060_v6  ;;  %v3605_v16 = vmul.f32 %v11685_v12, %v11852_v55  ;;  %v12156_v20 = vsel %vm2550_vm4, %v11455_v33, %v2735_v17 }
 0x2ee   : > { %4155 = vrot.lane.b32.xlu1 %v14995_v42, %s10725_s21  ;;  %v3829_v42 = vadd.f32 %v14996_v52, %v3785_v26  ;;  %v12057_v26 = vsel %vm643_vm3, %v3374_v47, %v15000_v21  ;;  %v2637_v52 = vpop.permute.xlu1 %2636  ;;  %v3437_v21 = vrot.slane %v3419_v13, 2  ;;  %v12181_v17 = vmax.f32 %v11935_v11, 0.0 }
 0x2ef   : > { %14997 = vst [vmem:[#allocation79_spill] sm:$0xff] %v12043_v14  ;;  %15001 = vst [vmem:[#allocation81_spill] sm:$0xff] %v12057_v26 }
 0x2f0   : > { %3456 = vrot.lane.b32.xlu0 %v3438_v23, %s10726_s23  ;;  %v12052_v36 = vadd.f32 %v14721_v19, %v3829_v42  ;;  %v3624_v42 = vrot.slane %v3609_v43, 2  ;;  %v3439_v47 = vsel %vm651_vm0, %v3437_v21, %v3438_v23  ;;  %v4623_v43 = vmul.f32 %v11483_v49, %v12060_v6  ;;  %v3018_v21 = vpop.permute.xlu0 %3017  ;;  %15018 = vst [vmem:[#allocation90_spill] sm:$0xff] %v12181_v17 }
 0x2f1   : > { %v12202_v11 = vsel %vm2834_vm5, %v11977_v25, %v3018_v21  ;;  %v4067_v25 = vmul.f32 %v11483_v49, %v11901_v59 }
 0x2f2   : > { %4221 = vrot.lane.b32.xlu1 %v14998_v18, %s10725_s21  ;;  %14999 = vst [vmem:[#allocation80_spill] sm:$0xff] %v12052_v36  ;;  %v4434_v18 = vmul.f32 %v11530_v60, %v12035_v29  ;;  %v2549_v19 = vpop.permute.xlu1 %2548  ;;  %v12078_v36 = vmax.f32 %v11656_v57, 0.0  ;;  %v15005_v57 = vld [vmem:[#allocation34_spill] sm:$0xff]  ;;  %15022 = vst [vmem:[#allocation91_spill] sm:$0xff] %v12202_v11 }
 0x2f4   : > { %3576 = vrot.lane.b32.xlu0 %v15003_v54, %s10725_s21  ;;  %15004 = vst [vmem:[#allocation83_spill] sm:$0xff] %v12078_v36  ;;  %v4438_v23 = vmul.f32 %v11530_v60, %v12078_v36  ;;  %v12116_v14 = vmul.f32 %v11508_v45, %v12078_v36  ;;  %v12134_v51 = vmul.f32 %v11639_v1, %v12078_v36 }
 0x2f6   : > { %4451 = vrot.lane.b32.xlu1 %v4434_v18, %s10726_s23  ;;  %v2920_v54 = vpop.permute.xlu1 %2919  ;;  %v3623_v18 = vrot.slane %v3605_v16, 2  ;;  %v3877_v16 = vmul.f32 %v11443_v27, %v11910_v3  ;;  %v14745_v7 = vrot.slane %v12134_v51, 1 }
 0x2f7   : > { %v12175_v33 = vsel %vm2834_vm5, %v11471_v56, %v2920_v54  ;;  %v12194_v56 = vmul.f32 %v11685_v12, %v12078_v36  ;;  %v15024_v54 = vld [vmem:[#allocation32_spill] sm:$0xff] }
 0x2f8   : > { %3642 = vrot.lane.b32.xlu0 %v3624_v42, %s10725_s21  ;;  %v3625_v13 = vsel %vm651_vm0, %v3623_v18, %v3624_v42 }
 0x2fa   : > { %4457 = vrot.lane.b32.xlu1 %v4437_v44, %s10726_s23  ;;  %v2833_v55 = vpop.permute.xlu1 %2832  ;;  %v12090_v44 = vmul.f32 %v15005_v57, %v12060_v6 }
 0x2fc   : > { %3448 = vrot.lane.b32.xlu0 %v3439_v47, %s10726_s23  ;;  %15006 = vst [vmem:[#allocation34_spill] sm:$0xff] %v12090_v44  ;;  %v14727_v42 = vrot.slane %v12090_v44, 1  ;;  %v12126_v44 = vmax.f32 %v15010_v38, 0.0  ;;  %v4064_v38 = vmul.f32 %v11542_v61, %v11788_v41  ;;  %v15016_v61 = vld [vmem:[#allocation37_spill] sm:$0xff] }
 0x2fd   : > { %v12164_v40 = vsel %vm2550_vm4, %v15016_v61, %v2549_v19  ;;  %v15020_v61 = vld [vmem:[#allocation39_spill] sm:$0xff] }
 0x2fe   : > { %4643 = vrot.lane.b32.xlu1 %v4623_v43, %s10725_s21  ;;  %v15007_v43 = vld [vmem:[#allocation38_spill] sm:$0xff]  ;;  %15011 = vst [vmem:[#allocation46_spill] sm:$0xff] %v12126_v44  ;;  %v4739_v21 = vmul.f32 %v11544_v50, %v12126_v44 }
 0x2ff   : > { %v12101_v18 = vmul.f32 %v15007_v43, %v12060_v6 }
 0x300   : > { %3634 = vrot.lane.b32.xlu0 %v3625_v13, %s10725_s21 }
 0x301   : > { %15008 = vst [vmem:[#allocation38_spill] sm:$0xff] %v12101_v18 }
 0x302   : > { %4459 = vrot.lane.b32.xlu1 %v4438_v23, %s10726_s23  ;;  %v4063_v23 = vmul.f32 %v11483_v49, %v11910_v3  ;;  %v12247_v49 = vmul.f32 %v11639_v1, %v12035_v29  ;;  %v15037_v1 = vrot.slane %v12194_v56, 2 }
 0x304   : > { %v12095_v47 = vpop.permute.xlu1 %2574  ;;  %3893 = vrot.lane.b32.xlu0 %v3877_v16, %s10726_s23  ;;  %v14735_v16 = vrot.slane %v12101_v18, 2  ;;  %v12138_v18 = vmul.f32 %v11457_v34, %v12060_v6 }
 0x306   : > { %v12103_v13 = vpop.permute.xlu0 %2582  ;;  %4523 = vrot.lane.b32.xlu1 %v14727_v42, %s10726_s23  ;;  %v3878_v42 = vmul.f32 %v11530_v60, %v11788_v41  ;;  %15013 = vst [vmem:[#allocation86_spill] sm:$0xff] %v12138_v18 }
 0x308   : > { %v12110_v31 = vpop.permute.xlu1 %2858  ;;  %4079 = vrot.lane.b32.xlu0 %v4063_v23, %s10725_s21  ;;  %v14742_v23 = vrot.slane %v12116_v14, 1 }
 0x309   : > { %15009 = vst [vmem:[#allocation84_spill] sm:$0xff] %v12110_v31 }
 0x30a   : > { %v12118_v26 = vpop.permute.xlu0 %2866  ;;  %4589 = vrot.lane.b32.xlu1 %v14735_v16, %s10726_s23 }
 0x30c   : > { %v12128_v30 = vpop.permute.xlu1 %2576  ;;  %3895 = vrot.lane.b32.xlu0 %v3878_v42, %s10726_s23  ;;  %v4673_v42 = vmul.f32 %v11457_v34, %v12126_v44 }
 0x30d   : > { %15012 = vst [vmem:[#allocation85_spill] sm:$0xff] %v12128_v30 }
 0x30e   : > { %v12140_v16 = vpop.permute.xlu0 %2683  ;;  %4525 = vrot.lane.b32.xlu1 %v14742_v23, %s10726_s23  ;;  %v12160_v23 = vsel %vm2550_vm4, %v11439_v24, %v2637_v52  ;;  %v12178_v24 = vmax.f32 %v11917_v8, 0.0  ;;  %v4689_v19 = vrot.slane %v4673_v42, 1  ;;  %v15019_v52 = vld [vmem:[#allocation47_spill] sm:$0xff]  ;;  %v12198_v8 = vmul.f32 %v11544_v50, %v12060_v6  ;;  %v15025_v42 = vld [vmem:[#allocation50_spill] sm:$0xff] }
 0x30f   : > { %15014 = vst [vmem:[#allocation87_spill] sm:$0xff] %v12140_v16  ;;  %v12185_v46 = vsel %vm2834_vm5, %v15019_v52, %v2833_v55  ;;  %v15023_v55 = vrot.slane %v12138_v18, 1  ;;  %v15035_v50 = vrot.slane %v11751_v63, 2 }
 0x310   : > { %v12149_v35 = vpop.permute.xlu1 %2860  ;;  %4081 = vrot.lane.b32.xlu0 %v4064_v38, %s10725_s21  ;;  %v3881_v38 = vmul.f32 %v11443_v27, %v11901_v59  ;;  %15017 = vst [vmem:[#allocation89_spill] sm:$0xff] %v12178_v24  ;;  %v15029_v27 = vrot.slane %v11743_v53, 1  ;;  %v3934_v53 = vmul.f32 %v12160_v23, %v12178_v24 }
 0x311   : > { %15015 = vst [vmem:[#allocation88_spill] sm:$0xff] %v12149_v35 }
 0x312   : > { %v12166_v34 = vpop.permute.xlu0 %2673  ;;  %4711 = vrot.lane.b32.xlu1 %v14745_v7, %s10725_s21  ;;  %v2391_v7 = vmul.f32 %v11735_v28, %v15020_v61  ;;  %v4691_v61 = vsel %vm643_vm3, %v4689_v19, %v15023_v55  ;;  %v12209_v28 = vrot.slane %v15025_v42, %v15024_v54  ;;  %v12226_v19 = vmul.f32 %v15005_v57, %v11901_v59 }
 0x313   : > { %v4488_v55 = vmul.f32 %v11508_v45, %v12035_v29  ;;  %v3882_v42 = vmul.f32 %v11530_v60, %v11776_v39 }
 0x314   : > { %v12189_v31 = vpop.permute.xlu1 %2584  ;;  %3901 = vrot.lane.b32.xlu0 %v3881_v38, %s10726_s23  ;;  %15026 = vst [vmem:[#allocation92_spill] sm:$0xff] %v12209_v28  ;;  %v15027_v38 = vld [vmem:[#allocation48_spill] sm:$0xff]  ;;  %v2456_v6 = vadd.f32 %v15029_v27, %v2391_v7  ;;  %v12232_v27 = vmul.f32 %v15007_v43, %v11901_v59  ;;  %v12238_v7 = vmul.f32 %v12160_v23, %v12181_v17  ;;  %v15033_v59 = vld [vmem:[#allocation49_spill] sm:$0xff]  ;;  %v3956_v28 = vrot.slane %v3934_v53, 1 }
 0x315   : > { %15021 = vst [vmem:[#allocation39_spill] sm:$0xff] %v12189_v31  ;;  %v12213_v52 = vrot.slane %v15027_v38, %v15024_v54  ;;  %v12251_v44 = vrot.slane %v15033_v59, %v15024_v54  ;;  %v2293_v38 = vld [vmem:[#allocation12] sm:$0xf]  ;;  %v12266_v59 = vmul.f32 %v11685_v12, %v12035_v29  ;;  %v2594_v60 = vsel %vm2590_vm6, %v12103_v13, %v12189_v31 }
 0x316   : > { %v12217_v35 = vpop.permute.xlu0 %2781  ;;  %4701 = vrot.lane.b32.xlu1 %v4691_v61, %s10725_s21  ;;  %15031 = vst [vmem:[#allocation95_spill] sm:$0xff] %v12238_v7  ;;  %v2521_v36 = vadd.f32 %v15035_v50, %v2456_v6  ;;  %v4506_v53 = vrot.slane %v4488_v55, 1  ;;  %v15040_v54 = vld [vmem:[#allocation31_spill] sm:$0xff]  ;;  %v12287_v13 = vmul.f32 %v15005_v57, %v11910_v3  ;;  %v15041_v55 = vrot.slane %v12116_v14, 1 }
 0x317   : > { %15028 = vst [vmem:[#allocation93_spill] sm:$0xff] %v12213_v52  ;;  %15030 = vst [vmem:[#allocation94_spill] sm:$0xff] %v12217_v35  ;;  %v4755_v52 = vrot.slane %v4739_v21, 2  ;;  %v15039_v21 = vrot.slane %v12198_v8, 2  ;;  %v12310_v14 = vmul.f32 %v11586_v4, %v11776_v39  ;;  %v4186_v31 = vmul.f32 %v12202_v11, %v12178_v24 }
 0x318   : > { %v12240_v61 = vpop.permute.xlu1 %2868  ;;  %4087 = vrot.lane.b32.xlu0 %v4067_v25, %s10725_s21  ;;  %15034 = vst [vmem:[#allocation97_spill] sm:$0xff] %v12251_v44  ;;  %v14761_v25 = vrot.slane %v12238_v7, 1 }
 0x319   : > { %15032 = vst [vmem:[#allocation96_spill] sm:$0xff] %v12240_v61  ;;  %v4757_v12 = vsel %vm651_vm0, %v4755_v52, %v15039_v21  ;;  %v2609_v52 = vadd.f32 %v2594_v60, %v2521_v36  ;;  %v4758_v21 = vrot.slane %v12266_v59, 2  ;;  %v12319_v36 = vmul.f32 %v12156_v20, %v12181_v17 }
 0x31a   : > { %v12258_v18 = vpop.permute.xlu0 %2771  ;;  %4777 = vrot.lane.b32.xlu1 %v15037_v1, %s10725_s21  ;;  %v12275_v6 = vsel %vm643_vm3, %v3956_v28, %v14761_v25  ;;  %v4692_v1 = vrot.slane %v12247_v49, 1  ;;  %v12296_v25 = vmul.f32 %v15007_v43, %v11910_v3  ;;  %v4000_v49 = vmul.f32 %v12156_v20, %v12178_v24 }
 0x31b   : > { %15036 = vst [vmem:[#allocation98_spill] sm:$0xff] %v12258_v18  ;;  %15038 = vst [vmem:[#allocation99_spill] sm:$0xff] %v12275_v6  ;;  %v12283_v18 = vrot.slane %v2293_v38, %v15040_v54  ;;  %v4120_v59 = vmul.f32 %v12175_v33, %v12178_v24  ;;  %v9419_v60 = vadd.f32 %v11843_v9, %v11897_v37  ;;  %v15103_v6 = vld [vmem:[#allocation72_spill] sm:$0xff] }
 0x31c   : > { %v2682_v50 = vpop.permute.xlu1 %2681  ;;  %3903 = vrot.lane.b32.xlu0 %v3882_v42, %s10726_s23  ;;  %v4508_v42 = vsel %vm643_vm3, %v4506_v53, %v15041_v55  ;;  %v9418_v53 = vadd.f32 %v11838_v22, %v11881_v62  ;;  %v12315_v55 = vmax.f32 %v11980_v32, 0.0  ;;  %15044 = vst [vmem:[#allocation102_spill] sm:$0xff] %v12319_v36  ;;  %v15046_v22 = vrot.slane %v12226_v19, 1 }
 0x31d   : > { %v2692_v28 = vsel %vm2590_vm6, %v2682_v50, %v12140_v16  ;;  %v12306_v50 = vmul.f32 %v11508_v45, %v11776_v39  ;;  %v12333_v32 = vmul.f32 %v12175_v33, %v12181_v17  ;;  %v2877_v39 = vsel %vm2834_vm5, %v12118_v26, %v12240_v61 }
 0x31e   : > { %v12300_v38 = vpop.permute.xlu0 %2966  ;;  %4767 = vrot.lane.b32.xlu1 %v4757_v12, %s10725_s21  ;;  %15043 = vst [vmem:[#allocation101_spill] sm:$0xff] %v12315_v55  ;;  %v12326_v12 = vmax.f32 %v11967_v48, 0.0  ;;  %v2707_v63 = vadd.f32 %v2692_v28, %v2609_v52  ;;  %v4022_v7 = vrot.slane %v4000_v49, 2  ;;  %v14767_v48 = vrot.slane %v12319_v36, 2 }
 0x31f   : > { %15042 = vst [vmem:[#allocation100_spill] sm:$0xff] %v12300_v38  ;;  %15047 = vst [vmem:[#allocation104_spill] sm:$0xff] %v12333_v32  ;;  %v14771_v16 = vrot.slane %v12333_v32, 1  ;;  %v4208_v36 = vrot.slane %v4186_v31, 2  ;;  %v4013_v31 = vrot.slane %v12296_v25, 2 }
 0x320   : > { %15045 = vst [vmem:[#allocation103_spill] sm:$0xff] %v12326_v12  ;;  %v2780_v54 = vpop.permute.xlu1 %2779  ;;  %3967 = vrot.lane.b32.xlu0 %v15046_v22, %s10726_s23  ;;  %v4142_v22 = vrot.slane %v4120_v59, 1  ;;  %v12350_v26 = vsel %vm651_vm0, %v4022_v7, %v14767_v48  ;;  %v3932_v7 = vmul.f32 %v11508_v45, %v11788_v41  ;;  %v3947_v45 = vrot.slane %v12287_v13, 1 }
 0x321   : > { %v2790_v9 = vsel %vm2590_vm6, %v2780_v54, %v12217_v35  ;;  %15048 = vst [vmem:[#allocation105_spill] sm:$0xff] %v12350_v26  ;;  %v12354_v54 = vmul.f32 %v12202_v11, %v12181_v17  ;;  %v15054_v35 = vrot.slane %v12134_v51, 1  ;;  %v12390_v51 = vmul.f32 %v12185_v46, %v12181_v17 }
 0x322   : > { %v2805_v28 = vadd.f32 %v2790_v9, %v2707_v63  ;;  %v12341_v52 = vpop.permute.xlu0 %2956  ;;  %4517 = vrot.lane.b32.xlu1 %v4508_v42, %s10726_s23  ;;  %v12358_v63 = vmul.f32 %v12185_v46, %v12178_v24  ;;  %v12362_v42 = vmul.f32 %v12185_v46, %v12315_v55  ;;  %v15052_v9 = vrot.slane %v12232_v27, 2 }
 0x323   : > { %15049 = vst [vmem:[#allocation106_spill] sm:$0xff] %v12354_v54  ;;  %v12372_v48 = vsel %vm643_vm3, %v4142_v22, %v14771_v16  ;;  %15056 = vst [vmem:[#allocation111_spill] sm:$0xff] %v12390_v51  ;;  %v12403_v13 = vmul.f32 %v12185_v46, %v12326_v12  ;;  %v15059_v22 = vrot.slane %v11924_v2, 1  ;;  %v3950_v32 = vrot.slane %v3932_v7, 1 }
 0x324   : > { %15050 = vst [vmem:[#allocation107_spill] sm:$0xff] %v12358_v63  ;;  %15051 = vst [vmem:[#allocation108_spill] sm:$0xff] %v12362_v42  ;;  %v2892_v49 = vadd.f32 %v2877_v39, %v2805_v28  ;;  %v2965_v59 = vpop.permute.xlu1 %2964  ;;  %4033 = vrot.lane.b32.xlu0 %v15052_v9, %s10726_s23  ;;  %v4694_v39 = vsel %vm643_vm3, %v4692_v1, %v15054_v35  ;;  %v3998_v28 = vmul.f32 %v11586_v4, %v11788_v41 }
 0x325   : > { %15053 = vst [vmem:[#allocation109_spill] sm:$0xff] %v12372_v48  ;;  %v2975_v61 = vsel %vm2834_vm5, %v2965_v59, %v12300_v38  ;;  %v14773_v9 = vrot.slane %v12354_v54, 2  ;;  %v12392_v35 = vmax.f32 %v9418_v53, 0.0  ;;  %v12394_v1 = vmax.f32 %v9419_v60, 0.0  ;;  %15058 = vst [vmem:[#allocation113_spill] sm:$0xff] %v12403_v13 }
 0x326   : > { %v12382_v42 = vpop.permute.xlu0 %3064  ;;  %4703 = vrot.lane.b32.xlu1 %v4694_v39, %s10725_s21  ;;  %v2990_v39 = vadd.f32 %v2975_v61, %v2892_v49  ;;  %v15060_v53 = vrot.slane %v12194_v56, 2  ;;  %v4016_v54 = vrot.slane %v3998_v28, 2  ;;  %v12418_v61 = vmul.f32 %v12160_v23, %v12315_v55 }
 0x327   : > { %15055 = vst [vmem:[#allocation110_spill] sm:$0xff] %v12382_v42  ;;  %v12399_v59 = vsel %vm651_vm0, %v4208_v36, %v14773_v9  ;;  %v9417_v36 = vadd.f32 %v11826_v5, %v11897_v37  ;;  %v15062_v56 = vrot.slane %v12226_v19, 1  ;;  %v15064_v5 = vrot.slane %v12306_v50, 1 }
 0x328   : > { %15057 = vst [vmem:[#allocation112_spill] sm:$0xff] %v12399_v59  ;;  %v3063_v16 = vpop.permute.xlu1 %3062  ;;  %4153 = vrot.lane.b32.xlu0 %v15059_v22, %s10725_s21  ;;  %v4760_v60 = vsel %vm651_vm0, %v4758_v21, %v15060_v53  ;;  %15061 = vst [vmem:[#allocation114_spill] sm:$0xff] %v12418_v61  ;;  %v15063_v21 = vrot.slane %v12232_v27, 2  ;;  %v2561_v7 = vmul.f32 %v12164_v40, %v12392_v35  ;;  %v15065_v19 = vrot.slane %v12310_v14, 2 }
 0x329   : > { %v3073_v9 = vsel %vm2834_vm5, %v3063_v16, %v12382_v42  ;;  %v3949_v25 = vsel %vm643_vm3, %v3947_v45, %v15062_v56  ;;  %v12432_v16 = vsel %vm643_vm3, %v3950_v32, %v15064_v5  ;;  %v12438_v28 = vmul.f32 %v12008_v10, %v12394_v1 }
 0x32a   : > { %v3088_v2 = vadd.f32 %v3073_v9, %v2990_v39  ;;  %v12420_v49 = vpop.permute.xlu0 %3054  ;;  %4769 = vrot.lane.b32.xlu1 %v4760_v60, %s10725_s21  ;;  %v4015_v37 = vsel %vm651_vm0, %v4013_v31, %v15063_v21  ;;  %v12443_v9 = vsel %vm651_vm0, %v4016_v54, %v15065_v19  ;;  %v4676_v27 = vmul.f32 %v12175_v33, %v12326_v12 }
 0x32b   : > { %v12453_v32 = vmul.f32 %v12156_v20, %v12315_v55  ;;  %v12457_v22 = vmul.f32 %v12175_v33, %v12315_v55  ;;  %v4490_v54 = vmul.f32 %v12160_v23, %v12326_v12  ;;  %v12461_v39 = vmax.f32 %v9417_v36, 0.0 }
 0x32c   : > { %v3117_v45 = vadd.f32 %v12283_v18, %v3088_v2  ;;  %v12448_v31 = vpop.permute.xlu1 %3508  ;;  %3959 = vrot.lane.b32.xlu0 %v3949_v25, %s10726_s23  ;;  %v2591_v53 = vsel %vm2590_vm6, %v12095_v47, %v12128_v30  ;;  %v12469_v2 = vmul.f32 %v12202_v11, %v12315_v55  ;;  %v12478_v36 = vmul.f32 %v11945_v0, %v12394_v1 }
 0x32d   : > { %15066 = vst [vmem:[#allocation115_spill] sm:$0xff] %v12453_v32  ;;  %15067 = vst [vmem:[#allocation116_spill] sm:$0xff] %v12457_v22  ;;  %v12482_v21 = vmul.f32 %v12029_v15, %v12394_v1  ;;  %v4512_v60 = vrot.slane %v4490_v54, 1  ;;  %v15081_v63 = vrot.slane %v12306_v50, 1 }
 0x32e   : > { %15068 = vst [vmem:[#allocation117_spill] sm:$0xff] %v12469_v2  ;;  %v12471_v56 = vmax.f32 %v3117_v45, 0.0  ;;  %v12473_v25 = vpop.permute.xlu0 %2675  ;;  %2580 = vrot.lane.b32.xlu1 %v2561_v7, %s10726_s23  ;;  %v4698_v45 = vrot.slane %v4676_v27, 1  ;;  %v2605_v7 = vadd.f32 %v2591_v53, %v11773_v58  ;;  %v15072_v58 = vrot.slane %v12418_v61, 1 }
 0x32f   : > { %15069 = vst [vmem:[#allocation118_spill] sm:$0xff] %v12473_v25  ;;  %v2689_v5 = vsel %vm2590_vm6, %v12166_v34, %v12473_v25  ;;  %v15070_v34 = vrot.slane %v12457_v22, 1  ;;  %v4556_v53 = vmul.f32 %v12156_v20, %v12326_v12  ;;  %v4390_v27 = vmul.f32 %v12251_v44, %v12035_v29 }
 0x330   : > { %3133 = vst [vmem:[#allocation3 + $0x60] sm:$0xf] %v12471_v56  ;;  %v14778_v41 = vrot.slane %v12471_v56, 1  ;;  %v14779_v13 = vrot.slane %v12471_v56, 2  ;;  %v12493_v42 = vpop.permute.xlu1 %3388  ;;  %4025 = vrot.lane.b32.xlu0 %v4015_v37, %s10726_s23  ;;  %v12506_v54 = vsel %vm643_vm3, %v4512_v60, %v15072_v58  ;;  %v2703_v37 = vadd.f32 %v2689_v5, %v2605_v7 }
 0x331   : > { %v12500_v19 = vsel %vm643_vm3, %v4698_v45, %v15070_v34  ;;  %15073 = vst [vmem:[#allocation120_spill] sm:$0xff] %v12506_v54  ;;  %v15075_v45 = vrot.slane %v12438_v28, 1  ;;  %v4742_v60 = vmul.f32 %v12202_v11, %v12326_v12  ;;  %v15076_v34 = vld [vmem:[#allocation93_spill] sm:$0xff]  ;;  %v4578_v7 = vrot.slane %v4556_v53, 2  ;;  %v15078_v54 = vld [vmem:[#allocation83_spill] sm:$0xff] }
 0x332   : > { %15071 = vst [vmem:[#allocation119_spill] sm:$0xff] %v12500_v19  ;;  %3170 = vst [vmem:[#allocation3 + $0x80] sm:$0xf] %v14778_v41  ;;  %v12514_v47 = vpop.permute.xlu0 %2773  ;;  %v4346_v58 = vmul.f32 %v15076_v34, %v12035_v29  ;;  %v15077_v41 = vld [vmem:[#allocation98_spill] sm:$0xff]  ;;  %v4350_v22 = vmul.f32 %v15076_v34, %v15078_v54  ;;  %v15080_v19 = vld [vmem:[#allocation84_spill] sm:$0xff]  ;;  %v15086_v50 = vrot.slane %v12478_v36, 2 }
 0x333   : > { %3198 = vst [vmem:[#allocation3 + $0xa0] sm:$0xf] %v14779_v13  ;;  %15074 = vst [vmem:[#allocation121_spill] sm:$0xff] %v12514_v47  ;;  %2685 = vrot.lane.b32.xlu1 %v15075_v45, %s10726_s23  ;;  %v2787_v13 = vsel %vm2590_vm6, %v15077_v41, %v12514_v47  ;;  %v15079_v45 = vld [vmem:[#allocation88_spill] sm:$0xff]  ;;  %v4764_v59 = vrot.slane %v4742_v60, 2  ;;  %v15082_v41 = vrot.slane %v12453_v32, 2  ;;  %v4394_v47 = vmul.f32 %v12251_v44, %v15078_v54 }
 0x334   : > { %v2874_v61 = vsel %vm2834_vm5, %v15080_v19, %v15079_v45  ;;  %v2801_v38 = vadd.f32 %v2787_v13, %v2703_v37  ;;  %v12534_v51 = vpop.permute.xlu1 %3454  ;;  %3969 = vrot.lane.b32.xlu0 %v15081_v63, %s10726_s23  ;;  %v4364_v48 = vrot.slane %v4346_v58, 1  ;;  %v4365_v5 = vrot.slane %v4350_v22, 1  ;;  %v15084_v19 = vld [vmem:[#allocation92_spill] sm:$0xff] }
 0x335   : > { %v12542_v53 = vsel %vm651_vm0, %v4578_v7, %v15082_v41  ;;  %v4342_v13 = vmul.f32 %v15084_v19, %v15078_v54  ;;  %v15087_v63 = vrot.slane %v12469_v2, 2  ;;  %v4338_v22 = vmul.f32 %v15084_v19, %v12035_v29 }
 0x336   : > { %15083 = vst [vmem:[#allocation98_spill] sm:$0xff] %v12542_v53  ;;  %v2888_v37 = vadd.f32 %v2874_v61, %v2801_v38  ;;  %v12548_v45 = vpop.permute.xlu0 %2958  ;;  %v4408_v58 = vrot.slane %v4390_v27, 2  ;;  %v4366_v38 = vsel %vm643_vm3, %v4364_v48, %v4365_v5  ;;  %v4409_v61 = vrot.slane %v4394_v47, 2  ;;  %v15089_v53 = vld [vmem:[#allocation61_spill] sm:$0xff] }
 0x337   : > { %15085 = vst [vmem:[#allocation83_spill] sm:$0xff] %v12548_v45  ;;  %2783 = vrot.lane.b32.xlu1 %v15086_v50, %s10726_s23  ;;  %v12556_v60 = vsel %vm651_vm0, %v4764_v59, %v15087_v63  ;;  %v2972_v7 = vsel %vm2834_vm5, %v12341_v52, %v12548_v45  ;;  %v4386_v41 = vadd.f32 %v4365_v5, %v4342_v13  ;;  %v15090_v59 = vrot.slane %v12310_v14, 2  ;;  %v15091_v27 = vld [vmem:[#allocation73_spill] sm:$0xff]  ;;  %v15093_v5 = vld [vmem:[#allocation48_spill] sm:$0xff] }
 0x338   : > { %15088 = vst [vmem:[#allocation84_spill] sm:$0xff] %v12556_v60  ;;  %v9420_v50 = vadd.f32 %v15089_v53, %v11881_v62  ;;  %v12566_v32 = vpop.permute.xlu1 %3574  ;;  %v14788_v63 = vrot.slane %v12482_v21, 1  ;;  %v12574_v60 = vmul.f32 %v15091_v27, %v12394_v1  ;;  %v4382_v52 = vadd.f32 %v4366_v38, %v4338_v22  ;;  %v15092_v47 = vld [vmem:[#allocation33_spill] sm:$0xff]  ;;  %v15096_v22 = vld [vmem:[#allocation50_spill] sm:$0xff] }
 0x339   : > { %4035 = vrot.lane.b32.xlu0 %v15090_v59, %s10726_s23  ;;  %v2647_v48 = vmul.f32 %v12008_v10, %v12461_v39  ;;  %v12580_v13 = vrot.slane %v15093_v5, %v15092_v47  ;;  %v4410_v53 = vsel %vm651_vm0, %v4408_v58, %v4409_v61  ;;  %v12583_v2 = vadd.f32 %v4409_v61, %v4386_v41  ;;  %v15098_v45 = vld [vmem:[#allocation49_spill] sm:$0xff] }
 0x33a   : > { %v2986_v14 = vadd.f32 %v2972_v7, %v2888_v37  ;;  %v12585_v59 = vpop.permute.xlu0 %3056  ;;  %v12592_v38 = vrot.slane %v15096_v22, %v15092_v47  ;;  %v12596_v25 = vrot.slane %v15098_v45, %v15092_v47  ;;  %v12598_v26 = vadd.f32 %v4410_v53, %v4382_v52 }
 0x33b   : > { %15094 = vst [vmem:[#allocation61_spill] sm:$0xff] %v12583_v2  ;;  %15095 = vst [vmem:[#allocation73_spill] sm:$0xff] %v12585_v59  ;;  %2968 = vrot.lane.b32.xlu1 %v14788_v63, %s10725_s21  ;;  %v3070_v37 = vsel %vm2834_vm5, %v12420_v49, %v12585_v59  ;;  %v2745_v58 = vmul.f32 %v11945_v0, %v12461_v39  ;;  %v3792_v7 = vmul.f32 %v12580_v13, %v12178_v24 }
 0x33c   : > { %15097 = vst [vmem:[#allocation48_spill] sm:$0xff] %v12592_v38  ;;  %15099 = vst [vmem:[#allocation50_spill] sm:$0xff] %v12596_v25  ;;  %v12609_v61 = vmul.f32 %v12580_v13, %v12181_v17  ;;  %v3084_v41 = vadd.f32 %v3070_v37, %v2986_v14  ;;  %v12611_v63 = vpop.permute.xlu1 %3640  ;;  %v14795_v52 = vrot.slane %v12574_v60, 2  ;;  %v3784_v49 = vmul.f32 %v12592_v38, %v12178_v24 }
 0x33d   : > { %15100 = vst [vmem:[#allocation49_spill] sm:$0xff] %v12598_v26  ;;  %3961 = vrot.lane.b32.xlu0 %v12432_v16, %s10726_s23  ;;  %v3836_v53 = vmul.f32 %v12596_v25, %v12178_v24  ;;  %v12620_v47 = vmax.f32 %v9420_v50, 0.0  ;;  %v12624_v26 = vmul.f32 %v12029_v15, %v12461_v39  ;;  %v3814_v14 = vrot.slane %v3792_v7, 1  ;;  %v15104_v7 = vld [vmem:[#allocation30_spill] sm:$0xff] }
 0x33e   : > { %15101 = vst [vmem:[#allocation122_spill] sm:$0xff] %v12609_v61  ;;  %v3113_v2 = vadd.f32 %v12283_v18, %v3084_v41  ;;  %v12628_v16 = vpop.permute.xlu0 %3314  ;;  %v2667_v59 = vrot.slane %v2647_v48, 1  ;;  %v12635_v50 = vmul.f32 %v12596_v25, %v12181_v17  ;;  %v12638_v19 = vmax.f32 %v15103_v6, 0.0 }
 0x33f   : > { %3066 = vrot.lane.b32.xlu1 %v14795_v52, %s10725_s21  ;;  %v3858_v30 = vrot.slane %v3836_v53, 2  ;;  %v12642_v37 = vrot.slane %v15096_v22, %v15104_v7  ;;  %v12646_v41 = vrot.slane %v15093_v5, %v15104_v7  ;;  %v15107_v44 = vrot.slane %v12609_v61, 1 }
 0x340   : > { %15102 = vst [vmem:[#allocation123_spill] sm:$0xff] %v12635_v50  ;;  %v3121_v52 = vmax.f32 %v3113_v2, 0.0  ;;  %v12651_v24 = vpop.permute.xlu1 %3446  ;;  %v12657_v6 = vmul.f32 %v15091_v27, %v12461_v39  ;;  %v14803_v53 = vrot.slane %v12635_v50, 2  ;;  %v15108_v5 = vrot.slane %v12438_v28, 1 }
 0x341   : > { %15105 = vst [vmem:[#allocation72_spill] sm:$0xff] %v12642_v37  ;;  %15106 = vst [vmem:[#allocation124_spill] sm:$0xff] %v12646_v41  ;;  %v3816_v48 = vsel %vm643_vm3, %v3814_v14, %v15107_v44  ;;  %4027 = vrot.lane.b32.xlu0 %v12443_v9, %s10726_s23  ;;  %v12665_v44 = vrot.slane %v15098_v45, %v15104_v7  ;;  %v4343_v2 = vmul.f32 %v12642_v37, %v12638_v19 }
 0x342   : > { %v3828_v22 = vadd.f32 %v3816_v48, %v3784_v49  ;;  %v2669_v17 = vsel %vm643_vm3, %v2667_v59, %v15108_v5  ;;  %v4351_v9 = vmul.f32 %v12646_v41, %v12638_v19  ;;  %3129 = vst [vmem:[#allocation3] sm:$0xff] %v3121_v52  ;;  %v3146_v14 = vrot.slane %v3121_v52, 1  ;;  %v12671_v49 = vpop.permute.xlu0 %3500 }
 0x343   : > { %15109 = vst [vmem:[#allocation125_spill] sm:$0xff] %v12665_v44  ;;  %v3174_v61 = vrot.slane %v3121_v52, 2  ;;  %2677 = vrot.lane.b32.xlu1 %v2669_v17, %s10726_s23  ;;  %v3860_v28 = vsel %vm651_vm0, %v3858_v30, %v14803_v53  ;;  %v12679_v45 = vmul.f32 %v12580_v13, %v12315_v55  ;;  %v2765_v59 = vrot.slane %v2745_v58, 2  ;;  %v15112_v52 = vld [vmem:[#allocation71_spill] sm:$0xff]  ;;  %v15115_v58 = vld [vmem:[#allocation58_spill] sm:$0xff] }
 0x344   : > { %v12681_v48 = vadd.f32 %v3860_v28, %v3828_v22  ;;  %v4368_v5 = vrot.slane %v4351_v9, 1  ;;  %v4395_v7 = vmul.f32 %v12665_v44, %v12638_v19  ;;  %v12686_v34 = vmax.f32 %v15112_v52, 0.0  ;;  %v12694_v11 = vpop.permute.xlu1 %3632 }
 0x345   : > { %15110 = vst [vmem:[#allocation126_spill] sm:$0xff] %v12679_v45  ;;  %v15113_v17 = vrot.slane %v12471_v56, 1  ;;  %v15114_v30 = vrot.slane %v12471_v56, 2  ;;  %4147 = vrot.lane.b32.xlu0 %v15115_v58, %s10725_s21  ;;  %v12700_v22 = vmul.f32 %v12596_v25, %v12315_v55  ;;  %v15117_v9 = vrot.slane %v12478_v36, 2  ;;  %v15121_v58 = vld [vmem:[#allocation62_spill] sm:$0xff] }
 0x346   : > { %15111 = vst [vmem:[#allocation127_spill] sm:$0xff] %v12681_v48  ;;  %v4387_v56 = vadd.f32 %v4368_v5, %v4343_v2  ;;  %v4412_v52 = vrot.slane %v4395_v7, 2  ;;  %v4391_v36 = vmul.f32 %v12665_v44, %v12686_v34  ;;  %v4340_v7 = vmul.f32 %v12592_v38, %v12326_v12  ;;  %v15124_v38 = vld [vmem:[#allocation46_spill] sm:$0xff] }
 0x347   : > { %v3148_v50 = vsel %vm643_vm3, %v3146_v14, %v15113_v17  ;;  %v3176_v53 = vsel %vm651_vm0, %v3174_v61, %v15114_v30  ;;  %15116 = vst [vmem:[#allocation71_spill] sm:$0xff] %v12700_v22  ;;  %v2767_v28 = vsel %vm651_vm0, %v2765_v59, %v15117_v9  ;;  %v2950_v14 = vrot.slane %v12624_v26, 1  ;;  %v12706_v61 = vpop.permute.xlu0 %3316 }
 0x348   : > { %3166 = vst [vmem:[#allocation3 + $0x20] sm:$0xff] %v3148_v50  ;;  %3194 = vst [vmem:[#allocation3 + $0x40] sm:$0xff] %v3176_v53  ;;  %2775 = vrot.lane.b32.xlu1 %v2767_v28, %s10726_s23  ;;  %v4347_v30 = vmul.f32 %v12646_v41, %v12686_v34  ;;  %v4348_v50 = vmul.f32 %v12580_v13, %v12326_v12  ;;  %v12716_v53 = vadd.f32 %v4412_v52, %v4387_v56  ;;  %v12724_v59 = vpop.permute.xlu1 %3390 }
 0x349   : > { %15118 = vst [vmem:[#allocation58_spill] sm:$0xff] %v12706_v61  ;;  %v4339_v26 = vmul.f32 %v12642_v37, %v12686_v34  ;;  %v4392_v2 = vmul.f32 %v12596_v25, %v12326_v12  ;;  %15120 = vst [vmem:[#allocation129_spill] sm:$0xff] %v12724_v59  ;;  %4213 = vrot.lane.b32.xlu0 %v15121_v58, %s10725_s21  ;;  %v15122_v56 = vrot.slane %v12482_v21, 1  ;;  %v4411_v55 = vrot.slane %v4391_v36, 2  ;;  %v15125_v58 = vld [vmem:[#allocation35_spill] sm:$0xff] }
 0x34a   : > { %15119 = vst [vmem:[#allocation128_spill] sm:$0xff] %v12716_v53  ;;  %v4367_v28 = vrot.slane %v4347_v30, 1  ;;  %v4370_v17 = vrot.slane %v4348_v50, 1  ;;  %v12734_v53 = vmul.f32 %v12160_v23, %v12620_v47  ;;  %v4433_v44 = vmul.f32 %v15125_v58, %v15124_v38 }
 0x34b   : > { %v2952_v48 = vsel %vm643_vm3, %v2950_v14, %v15122_v56  ;;  %v4414_v37 = vrot.slane %v4392_v2, 2  ;;  %v12736_v12 = vpop.permute.xlu0 %3502  ;;  %v3048_v30 = vrot.slane %v12657_v6, 2  ;;  %v15126_v21 = vrot.slane %v12679_v45, 1  ;;  %v15150_v45 = vld [vmem:[#allocation57_spill] sm:$0xff] }
 0x34c   : > { %15123 = vst [vmem:[#allocation62_spill] sm:$0xff] %v12736_v12  ;;  %2960 = vrot.lane.b32.xlu1 %v2952_v48, %s10725_s21  ;;  %v4369_v50 = vsel %vm643_vm3, %v4367_v28, %v4368_v5  ;;  %v2648_v56 = vmul.f32 %v12160_v23, %v12392_v35  ;;  %v4413_v9 = vsel %vm651_vm0, %v4411_v55, %v4412_v52  ;;  %v12749_v25 = vpop.permute.xlu1 %3382  ;;  %v15128_v48 = vrot.slane %v12700_v22, 2  ;;  %v15132_v55 = vld [vmem:[#allocation40_spill] sm:$0xff] }
 0x34d   : > { %v4372_v14 = vsel %vm643_vm3, %v4370_v17, %v15126_v21  ;;  %v4383_v36 = vadd.f32 %v4369_v50, %v4339_v26  ;;  %15127 = vst [vmem:[#allocation46_spill] sm:$0xff] %v12749_v25  ;;  %4449 = vrot.lane.b32.xlu0 %v4433_v44, %s10726_s23  ;;  %v15129_v5 = vrot.slane %v12574_v60, 2  ;;  %v14817_v17 = vrot.slane %v12734_v53, 1  ;;  %v15136_v21 = vld [vmem:[#allocation37_spill] sm:$0xff] }
 0x34e   : > { %v4384_v2 = vadd.f32 %v4372_v14, %v4340_v7  ;;  %v4416_v6 = vsel %vm651_vm0, %v4414_v37, %v15128_v48  ;;  %v4619_v44 = vmul.f32 %v15132_v55, %v15124_v38  ;;  %v2670_v52 = vrot.slane %v2648_v56, 1  ;;  %v15137_v14 = vld [vmem:[#allocation36_spill] sm:$0xff] }
 0x34f   : > { %v3050_v28 = vsel %vm651_vm0, %v3048_v30, %v15129_v5  ;;  %v12759_v58 = vadd.f32 %v4413_v9, %v4383_v36  ;;  %v3323_v7 = vpop.permute.xlu0 %3322  ;;  %v15135_v9 = vld [vmem:[#allocation44_spill] sm:$0xff]  ;;  %v12780_v36 = vsel %vm2550_vm4, %v15137_v14, %v15136_v21  ;;  %v15145_v21 = vld [vmem:[#allocation53_spill] sm:$0xff] }
 0x350   : > { %v12761_v26 = vadd.f32 %v4416_v6, %v4384_v2  ;;  %3058 = vrot.lane.b32.xlu1 %v3050_v28, %s10725_s21  ;;  %v12766_v50 = vpop.permute.xlu1 %3568  ;;  %v2672_v60 = vsel %vm643_vm3, %v2670_v52, %v14817_v17  ;;  %v4620_v30 = vmul.f32 %v15135_v9, %v12035_v29  ;;  %v15138_v56 = vld [vmem:[#allocation64_spill] sm:$0xff]  ;;  %v15140_v6 = vld [vmem:[#allocation67_spill] sm:$0xff]  ;;  %v4624_v55 = vmul.f32 %v15135_v9, %v15078_v54  ;;  %v15143_v52 = vld [vmem:[#allocation41_spill] sm:$0xff] }
 0x351   : > { %15130 = vst [vmem:[#allocation35_spill] sm:$0xff] %v12759_v58  ;;  %15133 = vst [vmem:[#allocation40_spill] sm:$0xff] %v12766_v50  ;;  %4635 = vrot.lane.b32.xlu0 %v4619_v44, %s10725_s21  ;;  %v9422_v2 = vadd.f32 %v15138_v56, %v11881_v62  ;;  %v3300_v5 = vmul.f32 %v12780_v36, %v15140_v6  ;;  %v15142_v44 = vld [vmem:[#allocation47_spill] sm:$0xff]  ;;  %v15144_v62 = vld [vmem:[#allocation45_spill] sm:$0xff]  ;;  %v15151_v58 = vrot.slane %v15150_v45, 2 }
 0x352   : > { %15131 = vst [vmem:[#allocation130_spill] sm:$0xff] %v12761_v26  ;;  %v3206_v14 = vmul.f32 %v15145_v21, %v15144_v62  ;;  %v15146_v17 = vld [vmem:[#allocation56_spill] sm:$0xff]  ;;  %v3399_v45 = vsel %vm2590_vm6, %v12493_v42, %v12724_v59  ;;  %v9981_v59 = vld [vmem:[#allocation13 + $0xf4] ss:$12 sps:$4 sm:$0xff]  }
 0x353   : > { %v12772_v37 = vpop.permute.xlu0 %3324  ;;  %v12801_v56 = vmax.f32 %v9422_v2, 0.0  ;;  %v15147_v26 = vrot.slane %v15146_v17, 1  ;;  %v15148_v2 = vld [vmem:[#allocation86_spill] sm:$0xff]  ;;  %v4487_v17 = vmul.f32 %v15005_v57, %v15124_v38 }
 0x354   : > { %15134 = vst [vmem:[#allocation131_spill] sm:$0xff] %v12772_v37  ;;  %2679 = vrot.lane.b32.xlu1 %v2672_v60, %s10726_s23  ;;  %v12784_v48 = vpop.permute.xlu1 %4089  ;;  %v12797_v60 = vsel %vm2834_vm5, %v15143_v52, %v15142_v44  ;;  %v3333_v44 = vsel %vm2590_vm6, %v3323_v7, %v12772_v37  ;;  %v15149_v62 = vrot.slane %v15148_v2, 1  ;;  %v15154_v2 = vld [vmem:[#allocation74_spill] sm:$0xff] }
 0x355   : > { %15139 = vst [vmem:[#allocation44_spill] sm:$0xff] %v12784_v48  ;;  %4637 = vrot.lane.b32.xlu0 %v4620_v30, %s10725_s21  ;;  %v3250_v9 = vadd.f32 %v15147_v26, %v3206_v14  ;;  %v4503_v37 = vrot.slane %v4487_v17, 1  ;;  %v3490_v42 = vmul.f32 %v12797_v60, %v15154_v2 }
 0x357   : > { %v12789_v28 = vpop.permute.xlu0 %3510  ;;  %v3294_v48 = vadd.f32 %v15151_v58, %v3250_v9  ;;  %v4558_v58 = vmul.f32 %v11586_v4, %v15078_v54  ;;  %v15156_v9 = vld [vmem:[#allocation34_spill] sm:$0xff] }
 0x358   : > { %15141 = vst [vmem:[#allocation37_spill] sm:$0xff] %v12789_v28  ;;  %3318 = vrot.lane.b32.xlu1 %v3300_v5, %s10726_s23  ;;  %v12803_v30 = vpop.permute.xlu1 %4145  ;;  %v3486_v5 = vmul.f32 %v12797_v60, %v15140_v6 }
 0x359   : > { %4645 = vrot.lane.b32.xlu0 %v4624_v55, %s10725_s21  ;;  %v3301_v55 = vmul.f32 %v12164_v40, %v12801_v56  ;;  %v3348_v7 = vadd.f32 %v3333_v44, %v3294_v48  ;;  %v15157_v44 = vrot.slane %v15156_v9, 1 }
 0x35b   : > { %v3381_v22 = vpop.permute.xlu0 %3380  ;;  %v3414_v48 = vadd.f32 %v3399_v45, %v3348_v7  ;;  %v4553_v7 = vmul.f32 %v15007_v43, %v15124_v38  ;;  %v9945_v43 = vld [vmem:[#allocation13] ss:$12 sps:$4 sm:$0xff]  }
 0x35c   : > { %3504 = vrot.lane.b32.xlu1 %v3486_v5, %s10725_s21  ;;  %v12813_v52 = vpop.permute.xlu1 %4211  ;;  %v15153_v5 = vrot.slane %v12198_v8, 2 }
 0x35d   : > { %4709 = vrot.lane.b32.xlu0 %v15149_v62, %s10725_s21  ;;  %v3304_v62 = vmul.f32 %v12780_v36, %v15154_v2 }
 0x35f   : > { %v12824_v26 = vpop.permute.xlu0 %3566 }
 0x360   : > { %3320 = vrot.lane.b32.xlu1 %v3301_v55, %s10726_s23  ;;  %v12827_v14 = vpop.permute.xlu1 %4155  ;;  %v4505_v55 = vsel %vm643_vm3, %v4503_v37, %v15157_v44  ;;  %v4573_v37 = vrot.slane %v4558_v58, 2  ;;  %v3330_v58 = vsel %vm2590_vm6, %v12628_v16, %v12706_v61  ;;  %v15162_v16 = vld [vmem:[#allocation38_spill] sm:$0xff] }
 0x361   : > { %15152 = vst [vmem:[#allocation36_spill] sm:$0xff] %v12827_v14  ;;  %4775 = vrot.lane.b32.xlu0 %v15153_v5, %s10725_s21  ;;  %v12855_v5 = vmul.f32 %v11945_v0, %v15154_v2  ;;  %v3396_v14 = vsel %vm2590_vm6, %v3381_v22, %v12749_v25  ;;  %v12901_v22 = vmul.f32 %v15091_v27, %v15154_v2 }
 0x363   : > { %v12837_v57 = vpop.permute.xlu0 %3456 }
 0x364   : > { %15155 = vst [vmem:[#allocation64_spill] sm:$0xff] %v12837_v57  ;;  %3326 = vrot.lane.b32.xlu1 %v3304_v62, %s10726_s23  ;;  %v3465_v8 = vsel %vm2590_vm6, %v12534_v51, %v12837_v57  ;;  %v12848_v17 = vpop.permute.xlu1 %4221  ;;  %v3519_v62 = vsel %vm2834_vm5, %v12448_v31, %v12789_v28  ;;  %v4554_v31 = vmul.f32 %v11586_v4, %v12035_v29  ;;  %v15164_v4 = vld [vmem:[#allocation63_spill] sm:$0xff] }
 0x365   : > { %15158 = vst [vmem:[#allocation67_spill] sm:$0xff] %v12848_v17  ;;  %4515 = vrot.lane.b32.xlu0 %v4505_v55, %s10726_s23  ;;  %v3480_v54 = vadd.f32 %v3465_v8, %v3414_v48  ;;  %v12871_v48 = vmul.f32 %v12029_v15, %v15154_v2  ;;  %v9947_v8 = vld [vmem:[#allocation13 + $0x4] ss:$12 sps:$4 sm:$0xff]   ;;  %v4569_v55 = vrot.slane %v4553_v7, 2  ;;  %v15161_v17 = vrot.slane %v12855_v5, 2 }
 0x366   : > { %6958 = vmatprep.subr.bf16.mxu0 %v9947_v8  ;;  %v3344_v29 = vadd.f32 %v3330_v58, %v15164_v4  ;;  %v3516_v4 = vsel %vm2834_vm5, %v12671_v49, %v12736_v12  ;;  %v9948_v49 = vld [vmem:[#allocation13 + $0x18] ss:$12 sps:$4 sm:$0xff]   ;;  %v2848_v12 = vmul.f32 %v12797_v60, %v12394_v1  ;;  %v9977_v57 = vld [vmem:[#allocation13 + $0xe0] ss:$12 sps:$4 sm:$0xff]  }
 0x367   : > { %v12859_v51 = vpop.permute.xlu0 %3576  ;;  %v3534_v44 = vadd.f32 %v3519_v62, %v3480_v54  ;;  %v15163_v54 = vrot.slane %v15162_v16, 2  ;;  %6959 = vmatpush1.bf16.msra.mxu0 %v9945_v43  ;;  %v4572_v16 = vrot.slane %v4554_v31, 2  ;;  %v12905_v43 = vmul.f32 %v12156_v20, %v12620_v47 }
 0x368   : > { %15159 = vst [vmem:[#allocation47_spill] sm:$0xff] %v12859_v51  ;;  %3512 = vrot.lane.b32.xlu1 %v3490_v42, %s10725_s21  ;;  %v12865_v45 = vpop.permute.xlu1 %4451  ;;  %v3585_v42 = vsel %vm2834_vm5, %v12566_v32, %v12859_v51  ;;  %v3410_v58 = vadd.f32 %v3396_v14, %v3344_v29  ;;  %v14825_v14 = vrot.slane %v12901_v22, 2 }
 0x369   : > { %4591 = vrot.lane.b32.xlu0 %v4573_v37, %s10726_s23  ;;  %v4571_v7 = vsel %vm651_vm0, %v4569_v55, %v15163_v54  ;;  %v3600_v8 = vadd.f32 %v3585_v42, %v3534_v44  ;;  %v2746_v44 = vmul.f32 %v12156_v20, %v12392_v35  ;;  %v14827_v29 = vrot.slane %v12905_v43, 2 }
 0x36b   : > { %v12881_v9 = vpop.permute.xlu0 %3642 }
 0x36c   : > { %15160 = vst [vmem:[#allocation41_spill] sm:$0xff] %v12881_v9  ;;  %3458 = vrot.lane.b32.xlu1 %v15161_v17, %s10726_s23  ;;  %v3651_v32 = vsel %vm2834_vm5, %v12611_v63, %v12881_v9  ;;  %v12895_v62 = vpop.permute.xlu1 %4457  ;;  %v14824_v17 = vrot.slane %v12871_v48, 1 }
 0x36d   : > { %4581 = vrot.lane.b32.xlu0 %v4571_v7, %s10726_s23  ;;  %v3666_v63 = vadd.f32 %v3651_v32, %v3600_v8  ;;  %v4574_v7 = vsel %vm651_vm0, %v4572_v16, %v4573_v37  ;;  %v2560_v37 = vmul.f32 %v12780_v36, %v12461_v39  ;;  %v3582_v8 = vsel %vm2834_vm5, %v12824_v26, %v12766_v50 }
 0x36f   : > { %v12907_v55 = vpop.permute.xlu0 %3448  ;;  %v3674_v16 = vadd.f32 %v3666_v63, %v12283_v18 }
 0x370   : > { %15165 = vst [vmem:[#allocation45_spill] sm:$0xff] %v12907_v55  ;;  %3578 = vrot.lane.b32.xlu1 %v14824_v17, %s10725_s21  ;;  %v3462_v54 = vsel %vm2590_vm6, %v12651_v24, %v12907_v55  ;;  %v12918_v42 = vpop.permute.xlu1 %4643  ;;  %v15173_v55 = vld [vmem:[#allocation76_spill] sm:$0xff] }
 0x371   : > { %v3476_v31 = vadd.f32 %v3462_v54, %v3410_v58  ;;  %15166 = vst [vmem:[#allocation53_spill] sm:$0xff] %v12918_v42  ;;  %4583 = vrot.lane.b32.xlu0 %v4574_v7, %s10726_s23  ;;  %v2768_v58 = vrot.slane %v2746_v44, 2  ;;  %v9950_v54 = vld [vmem:[#allocation13 + $0x1c] ss:$12 sps:$4 sm:$0xff]   ;;  %v2844_v44 = vmul.f32 %v12797_v60, %v12461_v39  ;;  %v3626_v51 = vrot.slane %v15173_v55, 2 }
 0x372   : > { %6960 = vmatprep.subr.bf16.mxu0 %v9950_v54  ;;  %v9960_v55 = vld [vmem:[#allocation13 + $0x78] ss:$12 sps:$4 sm:$0xff]  }
 0x373   : > { %v3530_v32 = vadd.f32 %v3516_v4, %v3476_v31  ;;  %v12926_v24 = vpop.permute.xlu0 %3634  ;;  %v9953_v4 = vld [vmem:[#allocation13 + $0x34] ss:$12 sps:$4 sm:$0xff]   ;;  %6961 = vmatpush1.bf16.msra.mxu0 %v9948_v49 }
 0x374   : > { %15167 = vst [vmem:[#allocation56_spill] sm:$0xff] %v12926_v24  ;;  %3644 = vrot.lane.b32.xlu1 %v14825_v14, %s10725_s21  ;;  %v12938_v31 = vpop.permute.xlu1 %4459  ;;  %v3648_v17 = vsel %vm2834_vm5, %v12694_v11, %v12926_v24  ;;  %v2770_v14 = vsel %vm651_vm0, %v2768_v58, %v14827_v29  ;;  %6962 = vmatprep.subr.bf16.mxu0 %v9953_v4  ;;  %v9956_v29 = vld [vmem:[#allocation13 + $0x4c] ss:$12 sps:$4 sm:$0xff]   ;;  %v15207_v42 = vld [vmem:[#allocation75_spill] sm:$0xff] }
 0x375   : > { %v3596_v7 = vadd.f32 %v3582_v8, %v3530_v32  ;;  %2578 = vrot.lane.b32.xlu0 %v2560_v37, %s10726_s23  ;;  %v9951_v32 = vld [vmem:[#allocation13 + $0x30] ss:$12 sps:$4 sm:$0xff]   ;;  %v3682_v37 = vmax.f32 %v3674_v16, 0.0  ;;  %v2564_v16 = vmul.f32 %v12780_v36, %v12394_v1  ;;  %v3487_v4 = vmul.f32 %v12185_v46, %v12801_v56 }
 0x376   : > { %v15168_v8 = vld [vmem:[#allocation70_spill] sm:$0xff] }
 0x377   : > { %v3662_v26 = vadd.f32 %v3648_v17, %v3596_v7  ;;  %v12946_v63 = vpop.permute.xlu0 %3893  ;;  %v3440_v50 = vrot.slane %v15168_v8, 2  ;;  %v15169_v17 = vld [vmem:[#allocation65_spill] sm:$0xff]  ;;  %6963 = vmatpush1.bf16.msra.mxu0 %v9951_v32  ;;  %v3729_v8 = vrot.slane %v3682_v37, 5 }
 0x378   : > { %2777 = vrot.lane.b32.xlu1 %v2770_v14, %s10726_s23  ;;  %v12954_v58 = vpop.permute.xlu1 %4523  ;;  %v12957_v54 = vmax.f32 %v15169_v17, 0.0  ;;  %v15171_v14 = vrot.slane %v12855_v5, 2  ;;  %6964 = vmatprep.subr.bf16.mxu0 %v9956_v29  ;;  %v3757_v5 = vrot.slane %v3682_v37, 6 }
 0x379   : > { %v3670_v11 = vadd.f32 %v3662_v26, %v12283_v18  ;;  %2862 = vrot.lane.b32.xlu0 %v2844_v44, %s10725_s21  ;;  %v9954_v26 = vld [vmem:[#allocation13 + $0x48] ss:$12 sps:$4 sm:$0xff]   ;;  %v3699_v44 = vrot.slane %v3682_v37, 4 }
 0x37a   : > { %15170 = vst [vmem:[#allocation86_spill] sm:$0xff] %v12957_v54  ;;  %v3442_v7 = vsel %vm651_vm0, %v3440_v50, %v15171_v14  ;;  %v9959_v50 = vld [vmem:[#allocation13 + $0x64] ss:$12 sps:$4 sm:$0xff]   ;;  %v12976_v32 = vmul.f32 %v12160_v23, %v12957_v54 }
 0x37b   : > { %v3678_v49 = vmax.f32 %v3670_v11, 0.0  ;;  %v12962_v24 = vpop.permute.xlu0 %4079  ;;  %6965 = vmatpush1.bf16.msra.mxu0 %v9954_v26 }
 0x37c   : > { %3450 = vrot.lane.b32.xlu1 %v3442_v7, %s10726_s23  ;;  %v12970_v7 = vpop.permute.xlu1 %4589  ;;  %6966 = vmatprep.subr.bf16.mxu0 %v9959_v50 }
 0x37d   : > { %v3695_v11 = vrot.slane %v3678_v49, 4  ;;  %v3725_v17 = vrot.slane %v3678_v49, 5  ;;  %v3753_v14 = vrot.slane %v3678_v49, 6  ;;  %2586 = vrot.lane.b32.xlu0 %v2564_v16, %s10726_s23  ;;  %v9957_v16 = vld [vmem:[#allocation13 + $0x60] ss:$12 sps:$4 sm:$0xff]  }
 0x37f   : > { %v3700_v9 = vsel %vm3694_vm7, %v3695_v11, %v3699_v44  ;;  %3715 = vst [vmem:[#allocation3 + $0x60] sm:$0xf0] %v3695_v11  ;;  %v3730_v29 = vsel %vm3724_vm8, %v3725_v17, %v3729_v8  ;;  %3745 = vst [vmem:[#allocation3 + $0x80] sm:$0xf0] %v3725_v17  ;;  %v3758_v37 = vsel %vm625_vm2, %v3753_v14, %v3757_v5  ;;  %v12981_v49 = vpop.permute.xlu0 %3895  ;;  %v15174_v5 = vrot.slane %v12901_v22, 2 }
 0x380   : > { %3773 = vst [vmem:[#allocation3 + $0xa0] sm:$0xf0] %v3753_v14  ;;  %15172 = vst [vmem:[#allocation57_spill] sm:$0xff] %v12981_v49  ;;  %3506 = vrot.lane.b32.xlu1 %v3487_v4, %s10725_s21  ;;  %v3355_v44 = vmul.f32 %v12160_v23, %v12801_v56  ;;  %v12988_v8 = vpop.permute.xlu1 %4525  ;;  %v14833_v4 = vrot.slane %v12976_v32, 1  ;;  %v2565_v23 = vmul.f32 %v12164_v40, %v12620_v47  ;;  %6967 = vmatpush1.bf16.msra.mxu0 %v9957_v16  ;;  %v9965_v17 = vld [vmem:[#allocation13 + $0x94] ss:$12 sps:$4 sm:$0xff]  }
 0x381   : > { %3720 = vst [vmem:[#allocation3 + $0xc0] sm:$0xff] %v3700_v9  ;;  %3749 = vst [vmem:[#allocation3 + $0xe0] sm:$0xff] %v3730_v29  ;;  %2870 = vrot.lane.b32.xlu0 %v2848_v12, %s10725_s21  ;;  %v3628_v11 = vsel %vm651_vm0, %v3626_v51, %v15174_v5  ;;  %v12996_v9 = vmul.f32 %v12156_v20, %v12957_v54  ;;  %v3421_v22 = vmul.f32 %v12156_v20, %v12801_v56  ;;  %v9962_v51 = vld [vmem:[#allocation13 + $0x7c] ss:$12 sps:$4 sm:$0xff]  }
 0x382   : > { %3777 = vst [vmem:[#allocation3 + $0x100] sm:$0xff] %v3758_v37  ;;  %v3377_v12 = vrot.slane %v3355_v44, 1  ;;  %6968 = vmatprep.subr.bf16.mxu0 %v9962_v51  ;;  %v9963_v20 = vld [vmem:[#allocation13 + $0x90] ss:$12 sps:$4 sm:$0xff]   ;;  %v9968_v44 = vld [vmem:[#allocation13 + $0xac] ss:$12 sps:$4 sm:$0xff]  }
 0x383   : > { %v12998_v26 = vpop.permute.xlu0 %4081  ;;  %v14834_v29 = vrot.slane %v12996_v9, 2  ;;  %v3443_v16 = vrot.slane %v3421_v22, 2  ;;  %v15178_v5 = vld [vmem:[#allocation66_spill] sm:$0xff] }
 0x384   : > { %15175 = vst [vmem:[#allocation34_spill] sm:$0xff] %v12998_v26  ;;  %3636 = vrot.lane.b32.xlu1 %v3628_v11, %s10725_s21  ;;  %v13006_v50 = vpop.permute.xlu1 %4711  ;;  %v3379_v14 = vsel %vm643_vm3, %v3377_v12, %v14833_v4  ;;  %6969 = vmatpush1.bf16.msra.mxu0 %v9960_v55  ;;  %v13016_v11 = vmax.f32 %v15178_v5, 0.0  ;;  %v9966_v22 = vld [vmem:[#allocation13 + $0xa8] ss:$12 sps:$4 sm:$0xff]  }
 0x385   : > { %2588 = vrot.lane.b32.xlu0 %v2565_v23, %s10726_s23  ;;  %15176 = vst [vmem:[#allocation38_spill] sm:$0xff] %v13006_v50  ;;  %6970 = vmatprep.subr.bf16.mxu0 %v9965_v17  ;;  %v15180_v23 = vrot.slane %v12734_v53, 1  ;;  %v3445_v51 = vsel %vm651_vm0, %v3443_v16, %v14834_v29  ;;  %v15183_v55 = vld [vmem:[#allocation78_spill] sm:$0xff]  ;;  %v9969_v16 = vld [vmem:[#allocation13 + $0xc0] ss:$12 sps:$4 sm:$0xff]  }
 0x386   : > { %15179 = vst [vmem:[#allocation70_spill] sm:$0xff] %v13016_v11  ;;  %v15184_v17 = vrot.slane %v15183_v55, 1  ;;  %v3879_v53 = vmul.f32 %v12780_v36, %v13016_v11  ;;  %v9976_v29 = vld [vmem:[#allocation13 + $0xdc] ss:$12 sps:$4 sm:$0xff]   ;;  %v15189_v55 = vld [vmem:[#allocation81_spill] sm:$0xff]  ;;  %v4065_v28 = vmul.f32 %v12797_v60, %v13016_v11 }
 0x387   : > { %v13012_v37 = vpop.permute.xlu0 %3901 }
 0x388   : > { %15177 = vst [vmem:[#allocation63_spill] sm:$0xff] %v13012_v37  ;;  %3386 = vrot.lane.b32.xlu1 %v3379_v14, %s10726_s23  ;;  %v13021_v12 = vpop.permute.xlu1 %4701  ;;  %6971 = vmatpush1.bf16.msra.mxu0 %v9963_v20  ;;  %v9973_v20 = vld [vmem:[#allocation13 + $0x8] ss:$12 sps:$4 sm:$0xff]   ;;  %v9983_v37 = vld [vmem:[#allocation13 + $0x38] ss:$12 sps:$4 sm:$0xff]  }
 0x389   : > { %2687 = vrot.lane.b32.xlu0 %v15180_v23, %s10726_s23  ;;  %15181 = vst [vmem:[#allocation65_spill] sm:$0xff] %v13021_v12  ;;  %6972 = vmatprep.subr.bf16.mxu0 %v9968_v44  ;;  %v9971_v23 = vld [vmem:[#allocation13 + $0xc4] ss:$12 sps:$4 sm:$0xff]  }
 0x38a   : > { %v15187_v44 = vld [vmem:[#allocation68_spill] sm:$0xff] }
 0x38b   : > { %v13026_v4 = vpop.permute.xlu0 %4087  ;;  %v13040_v25 = vmax.f32 %v15187_v44, 0.0  ;;  %v9978_v44 = vld [vmem:[#allocation13 + $0x20] ss:$12 sps:$4 sm:$0xff]  }
 0x38c   : > { %15182 = vst [vmem:[#allocation76_spill] sm:$0xff] %v13026_v4  ;;  %3452 = vrot.lane.b32.xlu1 %v3445_v51, %s10726_s23  ;;  %v13032_v14 = vpop.permute.xlu1 %4777  ;;  %6973 = vmatpush1.bf16.msra.mxu0 %v9966_v22  ;;  %v9972_v51 = vld [vmem:[#allocation13 + $0xc8] ss:$12 sps:$4 sm:$0xff]  }
 0x38d   : > { %3392 = vrot.lane.b32.xlu0 %v15184_v17, %s10726_s23  ;;  %15185 = vst [vmem:[#allocation66_spill] sm:$0xff] %v13032_v14  ;;  %15188 = vst [vmem:[#allocation68_spill] sm:$0xff] %v13040_v25  ;;  %6974 = vmatprep.subr.bf16.mxu0 %v9971_v23  ;;  %v3883_v23 = vmul.f32 %v12780_v36, %v13040_v25  ;;  %v10002_v14 = vld [vmem:[#allocation13 + $0x158] ss:$12 sps:$4 sm:$0xff]  }
 0x38e   : > { %8944 = vmatprep.subr.bf16.mxu1 %v9972_v51  ;;  %v3937_v51 = vmul.f32 %v12008_v10, %v13040_v25 }
 0x38f   : > { %v13036_v5 = vpop.permute.xlu0 %3903  ;;  %8945 = vmatpush3.bf16.msra.mxu1 %v9973_v20 }
 0x390   : > { %15186 = vst [vmem:[#allocation78_spill] sm:$0xff] %v13036_v5  ;;  %3897 = vrot.lane.b32.xlu1 %v3879_v53, %s10726_s23  ;;  %v13044_v17 = vpop.permute.xlu1 %4767  ;;  %6975 = vmatpush1.bf16.msra.mxu0 %v9969_v16  ;;  %v9974_v53 = vld [vmem:[#allocation13 + $0xd8] ss:$12 sps:$4 sm:$0xff]  }
 0x391   : > { %3384 = vrot.lane.b32.xlu0 %v15189_v55, %s10726_s23  ;;  %15190 = vst [vmem:[#allocation81_spill] sm:$0xff] %v13044_v17  ;;  %6976 = vmatprep.subr.bf16.mxu0 %v9976_v29  ;;  %v15192_v55 = vld [vmem:[#allocation69_spill] sm:$0xff]  ;;  %v15195_v16 = vld [vmem:[#allocation79_spill] sm:$0xff]  ;;  %v3999_v17 = vmul.f32 %v11945_v0, %v13016_v11 }
 0x392   : > { %v15193_v61 = vrot.slane %v15192_v55, 2  ;;  %8946 = vmatprep.subr.bf16.mxu1 %v9977_v57  ;;  %v9979_v29 = vld [vmem:[#allocation13 + $0xf0] ss:$12 sps:$4 sm:$0xff]   ;;  %v3954_v57 = vrot.slane %v3937_v51, 1  ;;  %v15200_v51 = vrot.slane %v12905_v43, 2 }
 0x393   : > { %v13048_v22 = vpop.permute.xlu0 %3967  ;;  %8947 = vmatpush3.bf16.msra.mxu1 %v9978_v44  ;;  %v9991_v44 = vld [vmem:[#allocation13 + $0x124] ss:$12 sps:$4 sm:$0xff]   ;;  %v9993_v43 = vld [vmem:[#allocation13 + $0x68] ss:$12 sps:$4 sm:$0xff]  }
 0x394   : > { %15191 = vst [vmem:[#allocation132_spill] sm:$0xff] %v13048_v22  ;;  %4083 = vrot.lane.b32.xlu1 %v4065_v28, %s10725_s21  ;;  %v13054_v4 = vpop.permute.xlu1 %4517  ;;  %v9982_v28 = vld [vmem:[#allocation13 + $0xf8] ss:$12 sps:$4 sm:$0xff]   ;;  %v3560_v22 = vrot.slane %v15195_v16, 1  ;;  %6977 = vmatpush1.bf16.msra.mxu0 %v9974_v53  ;;  %v4003_v16 = vmul.f32 %v11945_v0, %v13040_v25 }
 0x395   : > { %4219 = vrot.lane.b32.xlu0 %v15193_v61, %s10725_s21  ;;  %15194 = vst [vmem:[#allocation69_spill] sm:$0xff] %v13054_v4  ;;  %v15197_v61 = vrot.slane %v12871_v48, 1  ;;  %6978 = vmatprep.subr.bf16.mxu0 %v9981_v59  ;;  %v9984_v48 = vld [vmem:[#allocation13 + $0x108] ss:$12 sps:$4 sm:$0xff]   ;;  %v3933_v59 = vmul.f32 %v12008_v10, %v13016_v11 }
 0x396   : > { %8948 = vmatprep.subr.bf16.mxu1 %v9982_v28 }
 0x397   : > { %v13061_v20 = vpop.permute.xlu0 %4033  ;;  %v3562_v55 = vsel %vm643_vm3, %v3560_v22, %v15197_v61  ;;  %8949 = vmatpush3.bf16.msra.mxu1 %v9983_v37  ;;  %v9988_v22 = vld [vmem:[#allocation13 + $0x50] ss:$12 sps:$4 sm:$0xff]   ;;  %v4020_v61 = vrot.slane %v4003_v16, 2  ;;  %v9989_v37 = vld [vmem:[#allocation13 + $0x120] ss:$12 sps:$4 sm:$0xff]  }
 0x398   : > { %15196 = vst [vmem:[#allocation79_spill] sm:$0xff] %v13061_v20  ;;  %3905 = vrot.lane.b32.xlu1 %v3883_v23, %s10726_s23  ;;  %v13068_v5 = vpop.permute.xlu1 %4703  ;;  %v9986_v20 = vld [vmem:[#allocation13 + $0x10c] ss:$12 sps:$4 sm:$0xff]   ;;  %v9987_v23 = vld [vmem:[#allocation13 + $0x110] ss:$12 sps:$4 sm:$0xff]   ;;  %6979 = vmatpush1.bf16.msra.mxu0 %v9979_v29  ;;  %v2845_v29 = vmul.f32 %v12185_v46, %v12392_v35 }
 0x399   : > { %3570 = vrot.lane.b32.xlu0 %v3562_v55, %s10725_s21  ;;  %15198 = vst [vmem:[#allocation133_spill] sm:$0xff] %v13068_v5  ;;  %6980 = vmatprep.subr.bf16.mxu0 %v9986_v20  ;;  %v9992_v55 = vld [vmem:[#allocation13 + $0x128] ss:$12 sps:$4 sm:$0xff]   ;;  %v3953_v20 = vrot.slane %v3933_v59, 1  ;;  %v4123_v59 = vmul.f32 %v12029_v15, %v13040_v25 }
 0x39a   : > { %8950 = vmatprep.subr.bf16.mxu1 %v9987_v23  ;;  %v9997_v23 = vld [vmem:[#allocation13 + $0x140] ss:$12 sps:$4 sm:$0xff]  }
 0x39b   : > { %v13072_v53 = vpop.permute.xlu0 %4153  ;;  %8951 = vmatpush3.bf16.msra.mxu1 %v9988_v22  ;;  %v4069_v22 = vmul.f32 %v12797_v60, %v13040_v25  ;;  %v4140_v50 = vrot.slane %v4123_v59, 1  ;;  %v10003_v59 = vld [vmem:[#allocation13 + $0x98] ss:$12 sps:$4 sm:$0xff]  }
 0x39c   : > { %15199 = vst [vmem:[#allocation134_spill] sm:$0xff] %v13072_v53  ;;  %3971 = vrot.lane.b32.xlu1 %v3954_v57, %s10726_s23  ;;  %v13080_v28 = vpop.permute.xlu1 %4769  ;;  %6981 = vmatpush1.bf16.msra.mxu0 %v9984_v48  ;;  %v3955_v48 = vsel %vm643_vm3, %v3953_v20, %v3954_v57  ;;  %v10001_v57 = vld [vmem:[#allocation13 + $0x154] ss:$12 sps:$4 sm:$0xff]  }
 0x39d   : > { %2785 = vrot.lane.b32.xlu0 %v15200_v51, %s10726_s23  ;;  %15201 = vst [vmem:[#allocation135_spill] sm:$0xff] %v13080_v28  ;;  %6982 = vmatprep.subr.bf16.mxu0 %v9991_v44  ;;  %v9996_v51 = vld [vmem:[#allocation13 + $0x13c] ss:$12 sps:$4 sm:$0xff]   ;;  %v9994_v44 = vld [vmem:[#allocation13 + $0x138] ss:$12 sps:$4 sm:$0xff]  }
 0x39e   : > { %8952 = vmatprep.subr.bf16.mxu1 %v9992_v55  ;;  %v15203_v28 = vld [vmem:[#allocation51_spill] sm:$0xff]  ;;  %v4119_v55 = vmul.f32 %v12029_v15, %v13016_v11 }
 0x39f   : > { %v13082_v53 = vpop.permute.xlu0 %3959  ;;  %v3789_v12 = vmul.f32 %v15203_v28, %v11910_v3  ;;  %8953 = vmatpush3.bf16.msra.mxu1 %v9993_v43  ;;  %v9999_v43 = vld [vmem:[#allocation13 + $0x150] ss:$12 sps:$4 sm:$0xff]  }
 0x3a0   : > { %4037 = vrot.lane.b32.xlu1 %v4020_v61, %s10726_s23  ;;  %v13090_v16 = vpop.permute.xlu1 %2580  ;;  %6983 = vmatpush1.bf16.msra.mxu0 %v9989_v37 }
 0x3a1   : > { %2864 = vrot.lane.b32.xlu0 %v2845_v29, %s10725_s21  ;;  %15202 = vst [vmem:[#allocation136_spill] sm:$0xff] %v13090_v16  ;;  %v4019_v29 = vrot.slane %v3999_v17, 2  ;;  %6984 = vmatprep.subr.bf16.mxu0 %v9996_v51  ;;  %v9998_v16 = vld [vmem:[#allocation13 + $0x80] ss:$12 sps:$4 sm:$0xff]   ;;  %v4189_v17 = vmul.f32 %v15091_v27, %v13040_v25  ;;  %v10007_v25 = vld [vmem:[#allocation13 + $0x170] ss:$12 sps:$4 sm:$0xff]  }
 0x3a2   : > { %8954 = vmatprep.subr.bf16.mxu1 %v9997_v23  ;;  %v15206_v51 = vld [vmem:[#allocation52_spill] sm:$0xff] }
 0x3a3   : > { %v13097_v5 = vpop.permute.xlu0 %4025  ;;  %v4021_v4 = vsel %vm651_vm0, %v4019_v29, %v4020_v61  ;;  %v4185_v61 = vmul.f32 %v15091_v27, %v13016_v11  ;;  %8955 = vmatpush3.bf16.msra.mxu1 %v9998_v16  ;;  %v10006_v29 = vld [vmem:[#allocation13 + $0x16c] ss:$12 sps:$4 sm:$0xff]   ;;  %v10004_v16 = vld [vmem:[#allocation13 + $0x168] ss:$12 sps:$4 sm:$0xff]  }
 0x3a4   : > { %3963 = vrot.lane.b32.xlu1 %v3955_v48, %s10726_s23  ;;  %v3805_v48 = vrot.slane %v3789_v12, 1  ;;  %6985 = vmatpush1.bf16.msra.mxu0 %v9994_v44  ;;  %v4139_v12 = vrot.slane %v4119_v55, 1 }
 0x3a5   : > { %4091 = vrot.lane.b32.xlu0 %v4069_v22, %s10725_s21  ;;  %v13105_v20 = vpop.permute.xlu1 %2685  ;;  %v3833_v22 = vmul.f32 %v15206_v51, %v11910_v3  ;;  %6986 = vmatprep.subr.bf16.mxu0 %v10001_v57  ;;  %v4205_v11 = vrot.slane %v4185_v61, 2 }
 0x3a6   : > { %15204 = vst [vmem:[#allocation51_spill] sm:$0xff] %v13105_v20  ;;  %v15208_v20 = vrot.slane %v15207_v42, 1  ;;  %8956 = vmatprep.subr.bf16.mxu1 %v10002_v14  ;;  %v4141_v42 = vsel %vm643_vm3, %v4139_v12, %v4140_v50 }
 0x3a7   : > { %v13110_v37 = vpop.permute.xlu0 %3969  ;;  %v3849_v57 = vrot.slane %v3833_v22, 2  ;;  %8957 = vmatpush3.bf16.msra.mxu1 %v10003_v59  ;;  %v4435_v59 = vmul.f32 %v12780_v36, %v12686_v34 }
 0x3a8   : > { %15205 = vst [vmem:[#allocation137_spill] sm:$0xff] %v13110_v37  ;;  %4029 = vrot.lane.b32.xlu1 %v4021_v4, %s10726_s23  ;;  %v3807_v23 = vsel %vm643_vm3, %v3805_v48, %v15208_v20  ;;  %v3781_v4 = vmul.f32 %v15145_v21, %v11910_v3  ;;  %v4206_v20 = vrot.slane %v4189_v17, 2  ;;  %6987 = vmatpush1.bf16.msra.mxu0 %v9999_v43  ;;  %v10008_v3 = vld [vmem:[#allocation13 + $0xb0] ss:$12 sps:$4 sm:$0xff]  }
 0x3a9   : > { %4157 = vrot.lane.b32.xlu0 %v4140_v50, %s10725_s21  ;;  %v13123_v44 = vpop.permute.xlu1 %2783  ;;  %6988 = vmatprep.subr.bf16.mxu0 %v10006_v29  ;;  %v10011_v37 = vld [vmem:[#allocation13 + $0x184] ss:$12 sps:$4 sm:$0xff]   ;;  %v3909_v43 = vsel %vm2590_vm6, %v12946_v63, %v12981_v49 }
 0x3aa   : > { %15209 = vst [vmem:[#allocation52_spill] sm:$0xff] %v13123_v44  ;;  %v3825_v55 = vadd.f32 %v3807_v23, %v3781_v4  ;;  %8958 = vmatprep.subr.bf16.mxu1 %v10007_v25  ;;  %v15212_v50 = vld [vmem:[#allocation77_spill] sm:$0xff]  ;;  %v4207_v22 = vsel %vm651_vm0, %v4205_v11, %v4206_v20  ;;  %v4621_v11 = vmul.f32 %v12797_v60, %v12686_v34 }
 0x3ab   : > { %v13126_v48 = vpop.permute.xlu0 %4035  ;;  %v15213_v17 = vrot.slane %v15212_v50, 2  ;;  %8959 = vmatpush3.bf16.msra.mxu1 %v10008_v3  ;;  %v4559_v3 = vmul.f32 %v11945_v0, %v12638_v19 }
 0x3ac   : > { %15210 = vst [vmem:[#allocation75_spill] sm:$0xff] %v13126_v48  ;;  %4149 = vrot.lane.b32.xlu1 %v4141_v42, %s10725_s21  ;;  %6989 = vmatpush1.bf16.msra.mxu0 %v10004_v16 }
 0x3ad   : > { %4223 = vrot.lane.b32.xlu0 %v4206_v20, %s10725_s21  ;;  %v13130_v14 = vpop.permute.xlu1 %2968  ;;  %v3851_v23 = vsel %vm651_vm0, %v3849_v57, %v15213_v17  ;;  %7021 = vmatprep.subr.bf16.mxu0 %v10011_v37  ;;  %v4439_v20 = vmul.f32 %v12780_v36, %v12638_v19  ;;  %v4625_v57 = vmul.f32 %v12797_v60, %v12638_v19 }
 0x3ae   : > { %15211 = vst [vmem:[#allocation138_spill] sm:$0xff] %v13130_v14  ;;  %v3869_v12 = vadd.f32 %v3851_v23, %v3825_v55  ;;  %v4095_v36 = vsel %vm2834_vm5, %v12962_v24, %v12998_v26  ;;  %v13177_v23 = vmul.f32 %v12029_v15, %v12638_v19  ;;  %v15236_v14 = vld [vmem:[#allocation48_spill] sm:$0xff] }
 0x3af   : > { %v13139_v61 = vpop.permute.xlu0 %3961  ;;  %v3205_v44 = vmul.f32 %v15236_v14, %v12801_v56 }
 0x3b0   : > { %15214 = vst [vmem:[#allocation77_spill] sm:$0xff] %v13139_v61  ;;  %4215 = vrot.lane.b32.xlu1 %v4207_v22, %s10725_s21  ;;  %v3975_v25 = vsel %vm2590_vm6, %v13082_v53, %v13139_v61  ;;  %v3923_v29 = vadd.f32 %v3909_v43, %v3869_v12  ;;  %v4493_v53 = vmul.f32 %v12008_v10, %v12638_v19  ;;  %v4576_v22 = vrot.slane %v4559_v3, 2 }
 0x3b1   : > { %4453 = vrot.lane.b32.xlu0 %v4435_v59, %s10726_s23  ;;  %v13148_v63 = vpop.permute.xlu1 %3066  ;;  %v4555_v43 = vmul.f32 %v11945_v0, %v12686_v34  ;;  %v3541_v3 = vmul.f32 %v12175_v33, %v12801_v56  ;;  %v4675_v61 = vmul.f32 %v12029_v15, %v12686_v34 }
 0x3b2   : > { %15215 = vst [vmem:[#allocation139_spill] sm:$0xff] %v13148_v63  ;;  %v3989_v4 = vadd.f32 %v3975_v25, %v3923_v29  ;;  %v14853_v25 = vrot.slane %v13177_v23, 1  ;;  %v13193_v29 = vmul.f32 %v15091_v27, %v12638_v19  ;;  %v4489_v19 = vmul.f32 %v12008_v10, %v12686_v34 }
 0x3b3   : > { %v13152_v42 = vpop.permute.xlu0 %4027  ;;  %v2849_v10 = vmul.f32 %v12185_v46, %v12620_v47  ;;  %v4695_v48 = vrot.slane %v4675_v61, 1 }
 0x3b4   : > { %15216 = vst [vmem:[#allocation140_spill] sm:$0xff] %v13152_v42  ;;  %4639 = vrot.lane.b32.xlu1 %v4621_v11, %s10725_s21  ;;  %v4041_v37 = vsel %vm2590_vm6, %v13097_v5, %v13152_v42  ;;  %v4510_v5 = vrot.slane %v4493_v53, 1  ;;  %v13200_v11 = vmul.f32 %v12175_v33, %v12620_v47 }
 0x3b5   : > { %v4055_v55 = vadd.f32 %v4041_v37, %v3989_v4  ;;  %4461 = vrot.lane.b32.xlu0 %v4439_v20, %s10726_s23  ;;  %v13163_v16 = vpop.permute.xlu1 %2677 }
 0x3b6   : > { %15217 = vst [vmem:[#allocation141_spill] sm:$0xff] %v13163_v16 }
 0x3b7   : > { %v4109_v50 = vadd.f32 %v4095_v36, %v4055_v55  ;;  %v13172_v17 = vpop.permute.xlu0 %4147  ;;  %v13221_v36 = vmul.f32 %v12175_v33, %v12957_v54 }
 0x3b8   : > { %15218 = vst [vmem:[#allocation142_spill] sm:$0xff] %v13172_v17  ;;  %4647 = vrot.lane.b32.xlu1 %v4625_v57, %s10725_s21  ;;  %v4161_v60 = vsel %vm2834_vm5, %v12803_v30, %v13172_v17  ;;  %v4575_v30 = vrot.slane %v4555_v43, 2  ;;  %v14854_v57 = vrot.slane %v13193_v29, 2 }
 0x3b9   : > { %4527 = vrot.lane.b32.xlu0 %v4510_v5, %s10726_s23  ;;  %v4175_v12 = vadd.f32 %v4161_v60, %v4109_v50  ;;  %v15222_v60 = vld [vmem:[#allocation91_spill] sm:$0xff]  ;;  %v3563_v50 = vrot.slane %v3541_v3, 1  ;;  %v15229_v3 = vld [vmem:[#allocation50_spill] sm:$0xff] }
 0x3ba   : > { %v13185_v24 = vpop.permute.xlu1 %2775  ;;  %v4577_v53 = vsel %vm651_vm0, %v4575_v30, %v4576_v22  ;;  %v3607_v43 = vmul.f32 %v15222_v60, %v12801_v56  ;;  %v3213_v30 = vmul.f32 %v12580_v13, %v12801_v56  ;;  %v13292_v63 = vmul.f32 %v15222_v60, %v12620_v47 }
 0x3bb   : > { %15219 = vst [vmem:[#allocation143_spill] sm:$0xff] %v13185_v24  ;;  %v13187_v59 = vpop.permute.xlu0 %4213 }
 0x3bc   : > { %15220 = vst [vmem:[#allocation144_spill] sm:$0xff] %v13187_v59  ;;  %4593 = vrot.lane.b32.xlu1 %v4576_v22, %s10726_s23  ;;  %v4227_v0 = vsel %vm2834_vm5, %v12813_v52, %v13187_v59  ;;  %v2931_v52 = vmul.f32 %v12175_v33, %v12392_v35  ;;  %v13230_v22 = vmul.f32 %v15222_v60, %v12957_v54  ;;  %v3629_v26 = vrot.slane %v3607_v43, 2 }
 0x3bd   : > { %v4241_v4 = vadd.f32 %v4227_v0, %v4175_v12  ;;  %4713 = vrot.lane.b32.xlu0 %v14853_v25, %s10725_s21  ;;  %v4509_v0 = vrot.slane %v4489_v19, 1  ;;  %v3212_v25 = vmul.f32 %v12646_v41, %v15140_v6  ;;  %v13271_v59 = vmul.f32 %v15229_v3, %v12957_v54 }
 0x3be   : > { %v13205_v20 = vpop.permute.xlu1 %2960 }
 0x3bf   : > { %15221 = vst [vmem:[#allocation145_spill] sm:$0xff] %v13205_v20  ;;  %v4249_v37 = vadd.f32 %v4241_v4, %v12283_v18  ;;  %v13213_v55 = vpop.permute.xlu0 %4449  ;;  %v13243_v4 = vmul.f32 %v12580_v13, %v12957_v54  ;;  %v4511_v19 = vsel %vm643_vm3, %v4509_v0, %v4510_v5  ;;  %v3257_v0 = vmul.f32 %v15229_v3, %v12801_v56 }
 0x3c0   : > { %4585 = vrot.lane.b32.xlu1 %v4577_v53, %s10726_s23  ;;  %v2953_v53 = vrot.slane %v2931_v52, 1  ;;  %v15227_v52 = vrot.slane %v13200_v11, 1  ;;  %15230 = vst [vmem:[#allocation50_spill] sm:$0xff] %v13271_v59  ;;  %v3232_v43 = vrot.slane %v3212_v25, 1  ;;  %v14873_v24 = vrot.slane %v13271_v59, 2 }
 0x3c1   : > { %v13232_v12 = vmax.f32 %v4249_v37, 0.0  ;;  %4779 = vrot.lane.b32.xlu0 %v14854_v57, %s10725_s21  ;;  %15225 = vst [vmem:[#allocation147_spill] sm:$0xff] %v13243_v4  ;;  %v13249_v37 = vmul.f32 %v12646_v41, %v15154_v2 }
 0x3c2   : > { %v13237_v33 = vpop.permute.xlu1 %3058  ;;  %v2955_v17 = vsel %vm643_vm3, %v2953_v53, %v15227_v52  ;;  %v15231_v52 = vld [vmem:[#allocation125_spill] sm:$0xff] }
 0x3c3   : > { %15223 = vst [vmem:[#allocation91_spill] sm:$0xff] %v13232_v12  ;;  %15224 = vst [vmem:[#allocation146_spill] sm:$0xff] %v13237_v33  ;;  %v13252_v57 = vpop.permute.xlu0 %4635  ;;  %v3256_v15 = vmul.f32 %v15231_v52, %v15140_v6  ;;  %v10036_v53 = vld [vmem:[#allocation13 + $0x248] ss:$12 sps:$4 sm:$0xff]   ;;  %v15240_v56 = vrot.slane %v13249_v37, 1 }
 0x3c4   : > { %15226 = vst [vmem:[#allocation148_spill] sm:$0xff] %v13249_v37  ;;  %4265 = vst [vmem:[#allocation3 + $0x120] sm:$0xff] %v13232_v12  ;;  %2872 = vrot.lane.b32.xlu1 %v2849_v10, %s10725_s21  ;;  %v3235_v10 = vrot.slane %v3213_v30, 1  ;;  %v15233_v30 = vld [vmem:[#allocation82_spill] sm:$0xff]  ;;  %v15235_v12 = vrot.slane %v13221_v36, 1  ;;  %8978 = vmatprep.subr.bf16.mxu1 %v10036_v53  ;;  %v15261_v37 = vld [vmem:[#allocation60_spill] sm:$0xff] }
 0x3c5   : > { %4519 = vrot.lane.b32.xlu0 %v4511_v19, %s10726_s23  ;;  %v13278_v19 = vmul.f32 %v15231_v52, %v15154_v2  ;;  %v13282_v42 = vmul.f32 %v15203_v28, %v15233_v30  ;;  %v4741_v2 = vmul.f32 %v15091_v27, %v12686_v34  ;;  %v15239_v34 = vrot.slane %v13230_v22, 2 }
 0x3c6   : > { %v13264_v49 = vpop.permute.xlu1 %2679  ;;  %v3565_v25 = vsel %vm643_vm3, %v3563_v50, %v15235_v12  ;;  %v15238_v50 = vrot.slane %v13243_v4, 1  ;;  %v3279_v12 = vrot.slane %v3257_v0, 2  ;;  %v3276_v16 = vrot.slane %v3256_v15, 2 }
 0x3c7   : > { %15228 = vst [vmem:[#allocation149_spill] sm:$0xff] %v13264_v49  ;;  %15232 = vst [vmem:[#allocation150_spill] sm:$0xff] %v13278_v19  ;;  %v13284_v5 = vpop.permute.xlu0 %4637  ;;  %v3631_v27 = vsel %vm651_vm0, %v3629_v26, %v15239_v34  ;;  %v14874_v49 = vrot.slane %v13278_v19, 2  ;;  %v15241_v0 = vrot.slane %v13177_v23, 1  ;;  %v3052_v15 = vrot.slane %v13292_v63, 2  ;;  %v15258_v19 = vld [vmem:[#allocation66_spill] sm:$0xff] }
 0x3c8   : > { %15234 = vst [vmem:[#allocation82_spill] sm:$0xff] %v13284_v5  ;;  %2962 = vrot.lane.b32.xlu1 %v2955_v17, %s10725_s21  ;;  %v15237_v17 = vld [vmem:[#allocation72_spill] sm:$0xff]  ;;  %v3237_v61 = vsel %vm643_vm3, %v3235_v10, %v15238_v50  ;;  %v13319_v10 = vmul.f32 %v15206_v51, %v15233_v30  ;;  %v4362_v50 = vrot.slane %v13282_v42, 1  ;;  %v13341_v42 = vmul.f32 %v12580_v13, %v12620_v47 }
 0x3c9   : > { %3572 = vrot.lane.b32.xlu0 %v3565_v25, %s10725_s21  ;;  %v3204_v20 = vmul.f32 %v15237_v17, %v15140_v6  ;;  %v3234_v25 = vsel %vm643_vm3, %v3232_v43, %v15240_v56  ;;  %v4697_v53 = vsel %vm643_vm3, %v4695_v48, %v15241_v0  ;;  %v3249_v26 = vadd.f32 %v3237_v61, %v3205_v44 }
 0x3ca   : > { %v13299_v33 = vpop.permute.xlu1 %3318  ;;  %v4761_v56 = vrot.slane %v4741_v2, 2  ;;  %v3278_v23 = vsel %vm651_vm0, %v3276_v16, %v14874_v49  ;;  %v4341_v44 = vmul.f32 %v15145_v21, %v15233_v30  ;;  %v2419_v48 = vmul.f32 %v12580_v13, %v12392_v35 }
 0x3cb   : > { %v13314_v6 = vpop.permute.xlu0 %4645  ;;  %v3248_v34 = vadd.f32 %v3234_v25, %v3204_v20  ;;  %v4345_v63 = vmul.f32 %v15203_v28, %v15124_v38  ;;  %v15242_v2 = vrot.slane %v13193_v29, 2  ;;  %v3029_v30 = vmul.f32 %v15222_v60, %v12392_v35 }
 0x3cc   : > { %3638 = vrot.lane.b32.xlu1 %v3631_v27, %s10725_s21  ;;  %v3281_v27 = vsel %vm651_vm0, %v3279_v12, %v14873_v24  ;;  %v4385_v12 = vadd.f32 %v4362_v50, %v4341_v44  ;;  %v4406_v25 = vrot.slane %v13319_v10, 2  ;;  %v2484_v28 = vmul.f32 %v15229_v3, %v12392_v35 }
 0x3cd   : > { %4705 = vrot.lane.b32.xlu0 %v4697_v53, %s10725_s21  ;;  %v4763_v16 = vsel %vm651_vm0, %v4761_v56, %v15242_v2  ;;  %v3293_v61 = vadd.f32 %v3281_v27, %v3249_v26  ;;  %v3292_v13 = vadd.f32 %v3278_v23, %v3248_v34  ;;  %v13359_v53 = vmul.f32 %v15229_v3, %v12620_v47 }
 0x3ce   : > { %v13326_v43 = vpop.permute.xlu1 %3504  ;;  %v2441_v60 = vrot.slane %v2419_v48, 1  ;;  %v14876_v27 = vrot.slane %v13341_v42, 1  ;;  %v4361_v10 = vrot.slane %v4345_v63, 1  ;;  %v15243_v23 = vrot.slane %v12976_v32, 1 }
 0x3cf   : > { %v13345_v20 = vpop.permute.xlu0 %4709  ;;  %v4389_v3 = vmul.f32 %v15206_v51, %v15124_v38  ;;  %v3051_v44 = vrot.slane %v3029_v30, 2  ;;  %v4429_v2 = vadd.f32 %v4406_v25, %v4385_v12  ;;  %v15244_v63 = vrot.slane %v13200_v11, 1 }
 0x3d0   : > { %3068 = vrot.lane.b32.xlu1 %v3052_v15, %s10725_s21  ;;  %v4363_v48 = vsel %vm643_vm3, %v4361_v10, %v4362_v50  ;;  %v4468_v32 = vsel %vm2590_vm6, %v12895_v62, %v12938_v31  ;;  %v14875_v51 = vrot.slane %v13359_v53, 2  ;;  %v4337_v30 = vmul.f32 %v15145_v21, %v15124_v38  ;;  %v15247_v62 = vld [vmem:[#allocation93_spill] sm:$0xff] }
 0x3d1   : > { %4771 = vrot.lane.b32.xlu0 %v4763_v16, %s10725_s21  ;;  %v2390_v16 = vmul.f32 %v15236_v14, %v12392_v35  ;;  %v2443_v35 = vsel %vm643_vm3, %v2441_v60, %v14876_v27  ;;  %v15245_v11 = vrot.slane %v12996_v9, 2  ;;  %v2418_v12 = vmul.f32 %v12646_v41, %v12461_v39 }
 0x3d2   : > { %v3321_v0 = vpop.permute.xlu1 %3320  ;;  %v4534_v38 = vsel %vm2590_vm6, %v12954_v58, %v12988_v8  ;;  %v4381_v21 = vadd.f32 %v4363_v48, %v4337_v30  ;;  %v4405_v60 = vrot.slane %v4389_v3, 2  ;;  %v3053_v9 = vsel %vm651_vm0, %v3051_v44, %v3052_v15 }
 0x3d3   : > { %v3332_v29 = vsel %vm2590_vm6, %v13299_v33, %v3321_v0  ;;  %v13363_v26 = vadd.f32 %v3321_v0, %v3293_v61  ;;  %v13368_v34 = vpop.permute.xlu0 %4775  ;;  %v15246_v0 = vld [vmem:[#allocation42_spill] sm:$0xff]  ;;  %v4483_v10 = vadd.f32 %v4468_v32, %v4429_v2  ;;  %v2455_v49 = vadd.f32 %v2443_v35, %v2390_v16 }
 0x3d4   : > { %v13366_v56 = vadd.f32 %v3332_v29, %v3292_v13  ;;  %3394 = vrot.lane.b32.xlu1 %v15243_v23, %s10726_s23  ;;  %v2506_v13 = vrot.slane %v2484_v28, 2  ;;  %v13399_v28 = vmul.f32 %v15247_v62, %v15246_v0  ;;  %v13403_v29 = vmul.f32 %v12646_v41, %v12394_v1 }
 0x3d5   : > { %2970 = vrot.lane.b32.xlu0 %v15244_v63, %s10725_s21  ;;  %v3491_v63 = vmul.f32 %v12185_v46, %v12957_v54  ;;  %v4407_v3 = vsel %vm651_vm0, %v4405_v60, %v4406_v25  ;;  %v3305_v15 = vmul.f32 %v12164_v40, %v12957_v54  ;;  %v4549_v44 = vadd.f32 %v4534_v38, %v4483_v10 }
 0x3d6   : > { %v13381_v61 = vpop.permute.xlu1 %3326  ;;  %v2508_v58 = vsel %vm651_vm0, %v2506_v13, %v14875_v51  ;;  %v14882_v46 = vrot.slane %v13399_v28, 1  ;;  %v2438_v48 = vrot.slane %v2418_v12, 1  ;;  %v14881_v32 = vrot.slane %v13403_v29, 1  ;;  %v15249_v12 = vld [vmem:[#allocation89_spill] sm:$0xff] }
 0x3d7   : > { %v4516_v50 = vpop.permute.xlu0 %4515  ;;  %v4425_v16 = vadd.f32 %v4407_v3, %v4381_v21  ;;  %v2483_v25 = vmul.f32 %v15231_v52, %v12461_v39  ;;  %v13434_v30 = vmul.f32 %v15231_v52, %v12394_v1  ;;  %v3880_v60 = vmul.f32 %v12164_v40, %v15249_v12  ;;  %v15254_v52 = vld [vmem:[#allocation38_spill] sm:$0xff] }
 0x3d8   : > { %3460 = vrot.lane.b32.xlu1 %v15245_v11, %s10726_s23  ;;  %v15248_v11 = vld [vmem:[#allocation43_spill] sm:$0xff]  ;;  %v15253_v51 = vrot.slane %v13221_v36, 1 }
 0x3d9   : > { %3060 = vrot.lane.b32.xlu0 %v3053_v9, %s10725_s21  ;;  %v2417_v24 = vmul.f32 %v15247_v62, %v15248_v11  ;;  %v15250_v9 = vld [vmem:[#allocation97_spill] sm:$0xff]  ;;  %v2503_v36 = vrot.slane %v2483_v25, 2 }
 0x3da   : > { %v13410_v23 = vpop.permute.xlu1 %3512  ;;  %v13443_v10 = vmul.f32 %v15250_v9, %v15246_v0  ;;  %v2482_v27 = vmul.f32 %v15250_v9, %v15248_v11 }
 0x3db   : > { %v13422_v2 = vpop.permute.xlu0 %4591  ;;  %v2435_v21 = vrot.slane %v2417_v24, 1 }
 0x3dc   : > { %3514 = vrot.lane.b32.xlu1 %v3491_v63, %s10725_s21  ;;  %v4600_v13 = vsel %vm2590_vm6, %v12970_v7, %v13422_v2  ;;  %v4465_v7 = vsel %vm2590_vm6, %v13213_v55, %v12865_v45  ;;  %v15251_v63 = vld [vmem:[#allocation53_spill] sm:$0xff] }
 0x3dd   : > { %v4615_v35 = vadd.f32 %v4600_v13, %v4549_v44  ;;  %3328 = vrot.lane.b32.xlu0 %v3305_v15, %s10726_s23  ;;  %v4654_v3 = vsel %vm2834_vm5, %v15251_v63, %v13314_v6  ;;  %v15252_v15 = vld [vmem:[#allocation92_spill] sm:$0xff]  ;;  %v2389_v13 = vmul.f32 %v15237_v17, %v12461_v39  ;;  %v2437_v55 = vsel %vm643_vm3, %v2435_v21, %v14882_v46  ;;  %v15257_v46 = vld [vmem:[#allocation59_spill] sm:$0xff] }
 0x3de   : > { %v13437_v38 = vpop.permute.xlu1 %3458  ;;  %v2388_v44 = vmul.f32 %v15252_v15, %v15248_v11  ;;  %v2440_v63 = vsel %vm643_vm3, %v2438_v48, %v14881_v32  ;;  %v4720_v39 = vsel %vm2834_vm5, %v13345_v20, %v15254_v52  ;;  %v4479_v41 = vadd.f32 %v4465_v7, %v4425_v16  ;;  %v15256_v48 = vld [vmem:[#allocation101_spill] sm:$0xff] }
 0x3df   : > { %v4669_v12 = vadd.f32 %v4654_v3, %v4615_v35  ;;  %v4582_v24 = vpop.permute.xlu0 %4581  ;;  %v15255_v35 = vld [vmem:[#allocation69_spill] sm:$0xff]  ;;  %v4440_v32 = vmul.f32 %v12164_v40, %v15256_v48  ;;  %v2501_v11 = vrot.slane %v13443_v10, 2  ;;  %v13480_v20 = vmul.f32 %v15247_v62, %v15257_v46 }
 0x3e0   : > { %3580 = vrot.lane.b32.xlu1 %v15253_v51, %s10725_s21  ;;  %v4531_v3 = vsel %vm2590_vm6, %v4516_v50, %v15255_v35  ;;  %v4786_v50 = vsel %vm2834_vm5, %v13368_v34, %v15258_v19  ;;  %v2453_v25 = vadd.f32 %v2437_v55, %v2388_v44  ;;  %v2520_v51 = vadd.f32 %v2508_v58, %v2455_v49  ;;  %v15263_v58 = vld [vmem:[#allocation136_spill] sm:$0xff] }
 0x3e1   : > { %v4735_v59 = vadd.f32 %v4720_v39, %v4669_v12  ;;  %3899 = vrot.lane.b32.xlu0 %v3880_v60, %s10726_s23  ;;  %v4545_v16 = vadd.f32 %v4531_v3, %v4479_v41  ;;  %v2454_v60 = vadd.f32 %v2440_v63, %v2389_v13  ;;  %v2500_v39 = vrot.slane %v2482_v27, 2 }
 0x3e2   : > { %v13473_v21 = vpop.permute.xlu1 %3578  ;;  %v15260_v48 = vrot.slane %v13434_v30, 2  ;;  %v13495_v34 = vmul.f32 %v15247_v62, %v15261_v37  ;;  %v13499_v41 = vmul.f32 %v15250_v9, %v15257_v46  ;;  %v2608_v44 = vadd.f32 %v15263_v58, %v2520_v51  ;;  %v15265_v51 = vld [vmem:[#allocation133_spill] sm:$0xff] }
 0x3e3   : > { %v4801_v7 = vadd.f32 %v4786_v50, %v4735_v59  ;;  %v13485_v12 = vpop.permute.xlu0 %4583  ;;  %v2502_v27 = vsel %vm651_vm0, %v2500_v39, %v2501_v11  ;;  %v4651_v13 = vsel %vm2834_vm5, %v13252_v57, %v13284_v5  ;;  %v15264_v50 = vrot.slane %v13230_v22, 2  ;;  %v15266_v39 = vld [vmem:[#allocation65_spill] sm:$0xff] }
 0x3e4   : > { %15259 = vst [vmem:[#allocation72_spill] sm:$0xff] %v13485_v12  ;;  %4463 = vrot.lane.b32.xlu1 %v4440_v32, %s10726_s23  ;;  %v4597_v10 = vsel %vm2590_vm6, %v4582_v24, %v13485_v12  ;;  %v2505_v4 = vsel %vm651_vm0, %v2503_v36, %v15260_v48  ;;  %v15262_v32 = vld [vmem:[#allocation99_spill] sm:$0xff]  ;;  %v2518_v55 = vadd.f32 %v2502_v27, %v2453_v25  ;;  %v15267_v57 = vld [vmem:[#allocation149_spill] sm:$0xff]  ;;  %v15271_v27 = vrot.slane %v13399_v28, 1 }
 0x3e5   : > { %v4611_v59 = vadd.f32 %v4597_v10, %v4545_v16  ;;  %3965 = vrot.lane.b32.xlu0 %v15262_v32, %s10726_s23  ;;  %v4809_v63 = vadd.f32 %v4801_v7, %v12283_v18  ;;  %v2519_v36 = vadd.f32 %v2505_v4, %v2454_v60  ;;  %v2392_v16 = vmul.f32 %v15252_v15, %v15246_v0  ;;  %v15268_v24 = vld [vmem:[#allocation85_spill] sm:$0xff] }
 0x3e6   : > { %v13503_v49 = vpop.permute.xlu1 %3644  ;;  %v4717_v10 = vsel %vm2834_vm5, %v15266_v39, %v15265_v51  ;;  %v2706_v32 = vadd.f32 %v15267_v57, %v2608_v44  ;;  %v15269_v60 = vld [vmem:[#allocation105_spill] sm:$0xff]  ;;  %v2394_v44 = vmul.f32 %v15236_v14, %v12620_v47 }
 0x3e7   : > { %v4665_v3 = vadd.f32 %v4651_v13, %v4611_v59  ;;  %v2579_v48 = vpop.permute.xlu0 %2578  ;;  %v15270_v59 = vld [vmem:[#allocation103_spill] sm:$0xff]  ;;  %v2457_v13 = vadd.f32 %v15271_v27, %v2392_v16  ;;  %v15273_v39 = vld [vmem:[#allocation81_spill] sm:$0xff]  ;;  %v4817_v16 = vmax.f32 %v4809_v63, 0.0 }
 0x3e8   : > { %3646 = vrot.lane.b32.xlu1 %v15264_v50, %s10725_s21  ;;  %v2592_v25 = vsel %vm2590_vm6, %v15268_v24, %v2579_v48  ;;  %v2593_v4 = vsel %vm2590_vm6, %v2579_v48, %v15263_v58  ;;  %v4436_v0 = vmul.f32 %v12164_v40, %v15270_v59  ;;  %v15272_v50 = vld [vmem:[#allocation135_spill] sm:$0xff]  ;;  %v15275_v48 = vld [vmem:[#allocation141_spill] sm:$0xff] }
 0x3e9   : > { %v4731_v7 = vadd.f32 %v4717_v10, %v4665_v3  ;;  %4031 = vrot.lane.b32.xlu0 %v15269_v60, %s10726_s23  ;;  %v4783_v24 = vsel %vm2834_vm5, %v15273_v39, %v15272_v50  ;;  %v2606_v51 = vadd.f32 %v2592_v25, %v2518_v55  ;;  %v2607_v58 = vadd.f32 %v2593_v4, %v2519_v36  ;;  %v15276_v10 = vld [vmem:[#allocation118_spill] sm:$0xff]  ;;  %v15277_v47 = vld [vmem:[#allocation109_spill] sm:$0xff]  ;;  %v15279_v4 = vld [vmem:[#allocation143_spill] sm:$0xff] }
 0x3ea   : > { %v2778_v22 = vpop.permute.xlu1 %2777  ;;  %v2690_v60 = vsel %vm2590_vm6, %v15276_v10, %v15275_v48  ;;  %v2691_v28 = vsel %vm2590_vm6, %v15275_v48, %v15267_v57  ;;  %v15278_v36 = vld [vmem:[#allocation90_spill] sm:$0xff]  ;;  %v2393_v25 = vmul.f32 %v15237_v17, %v12394_v1  ;;  %v15280_v10 = vld [vmem:[#allocation121_spill] sm:$0xff]  ;;  %v15291_v50 = vld [vmem:[#allocation87_spill] sm:$0xff] }
 0x3eb   : > { %v13536_v3 = vadd.f32 %v2778_v22, %v2706_v32  ;;  %v4797_v59 = vadd.f32 %v4783_v24, %v4731_v7  ;;  %v13544_v27 = vpop.permute.xlu0 %2862  ;;  %v2704_v39 = vadd.f32 %v2690_v60, %v2606_v51  ;;  %v2705_v55 = vadd.f32 %v2691_v28, %v2607_v58  ;;  %v15282_v58 = vld [vmem:[#allocation32_spill] sm:$0xff]  ;;  %v15293_v14 = vld [vmem:[#allocation73_spill] sm:$0xff] }
 0x3ec   : > { %4151 = vrot.lane.b32.xlu1 %v15277_v47, %s10725_s21  ;;  %v3884_v32 = vmul.f32 %v12164_v40, %v15278_v36  ;;  %v2789_v57 = vsel %vm2590_vm6, %v15279_v4, %v2778_v22  ;;  %v2522_v51 = vadd.f32 %v2501_v11, %v2457_v13  ;;  %v13563_v40 = vld [vmem:[#allocation12] sm:$0xf]  ;;  %v15283_v60 = vrot.slane %v13341_v42, 1  ;;  %v15286_v11 = vld [vmem:[#allocation88_spill] sm:$0xff] }
 0x3ed   : > { %15274 = vst [vmem:[#allocation42_spill] sm:$0xff] %v13536_v3  ;;  %v2788_v3 = vsel %vm2590_vm6, %v15280_v10, %v15279_v4  ;;  %v4805_v63 = vadd.f32 %v4797_v59, %v12283_v18  ;;  %4455 = vrot.lane.b32.xlu0 %v4436_v0, %s10726_s23  ;;  %v13561_v24 = vadd.f32 %v2789_v57, %v2705_v55  ;;  %15281 = vst [vmem:[#allocation93_spill] sm:$0xff] %v13563_v40  ;;  %v15284_v59 = vld [vmem:[#allocation145_spill] sm:$0xff]  ;;  %v15285_v47 = vld [vmem:[#allocation83_spill] sm:$0xff] }
 0x3ee   : > { %v13559_v7 = vpop.permute.xlu1 %3450  ;;  %v13567_v1 = vrot.slane %v13563_v40, %v15282_v58  ;;  %v2802_v48 = vadd.f32 %v2788_v3, %v2704_v39  ;;  %v2459_v28 = vadd.f32 %v15283_v60, %v2394_v44  ;;  %v2973_v22 = vsel %vm2834_vm5, %v15285_v47, %v15284_v59  ;;  %v15287_v10 = vld [vmem:[#allocation112_spill] sm:$0xff]  ;;  %v15288_v39 = vld [vmem:[#allocation39_spill] sm:$0xff] }
 0x3ef   : > { %v4833_v0 = vrot.slane %v4817_v16, 4  ;;  %v4813_v4 = vmax.f32 %v4805_v63, 0.0  ;;  %v2875_v13 = vsel %vm2834_vm5, %v15286_v11, %v13544_v27  ;;  %v2587_v55 = vpop.permute.xlu0 %2586  ;;  %v4861_v57 = vrot.slane %v4817_v16, 5  ;;  %v15289_v63 = vld [vmem:[#allocation107_spill] sm:$0xff] }
 0x3f0   : > { %4217 = vrot.lane.b32.xlu1 %v15287_v10, %s10725_s21  ;;  %v4889_v58 = vrot.slane %v4817_v16, 6  ;;  %v2889_v3 = vadd.f32 %v2875_v13, %v2802_v48  ;;  %v2595_v42 = vsel %vm2590_vm6, %v15288_v39, %v2587_v55  ;;  %v15290_v11 = vld [vmem:[#allocation51_spill] sm:$0xff]  ;;  %v15292_v10 = vld [vmem:[#allocation146_spill] sm:$0xff] }
 0x3f1   : > { %v4829_v44 = vrot.slane %v4813_v4, 4  ;;  %v4857_v60 = vrot.slane %v4813_v4, 5  ;;  %v4885_v36 = vrot.slane %v4813_v4, 6  ;;  %v2610_v47 = vadd.f32 %v2595_v42, %v2522_v51  ;;  %4085 = vrot.lane.b32.xlu0 %v15289_v63, %s10725_s21  ;;  %v15314_v40 = vld [vmem:[#allocation139_spill] sm:$0xff] }
 0x3f2   : > { %v13583_v59 = vpop.permute.xlu1 %3506  ;;  %v2693_v5 = vsel %vm2590_vm6, %v15291_v50, %v15290_v11  ;;  %v3071_v16 = vsel %vm2834_vm5, %v15293_v14, %v15292_v10  ;;  %v2987_v48 = vadd.f32 %v2973_v22, %v2889_v3  ;;  %v15295_v14 = vld [vmem:[#allocation108_spill] sm:$0xff]  ;;  %v15297_v3 = vld [vmem:[#allocation94_spill] sm:$0xff] }
 0x3f3   : > { %v13594_v13 = vsel %vm2834_vm5, %v13326_v43, %v13583_v59  ;;  %v4834_v51 = vsel %vm3694_vm7, %v4829_v44, %v4833_v0  ;;  %v4862_v4 = vsel %vm3724_vm8, %v4857_v60, %v4861_v57  ;;  %v4890_v39 = vsel %vm625_vm2, %v4885_v36, %v4889_v58  ;;  %4849 = vst [vmem:[#allocation3 + $0x180] sm:$0xf0] %v4829_v44  ;;  %v13599_v42 = vpop.permute.xlu0 %2870  ;;  %v15296_v22 = vld [vmem:[#allocation52_spill] sm:$0xff] }
 0x3f4   : > { %4877 = vst [vmem:[#allocation3 + $0x1a0] sm:$0xf0] %v4857_v60  ;;  %4905 = vst [vmem:[#allocation3 + $0x1c0] sm:$0xf0] %v4885_v36  ;;  %v2708_v50 = vadd.f32 %v2693_v5, %v2610_v47  ;;  %4649 = vrot.lane.b32.xlu1 %v15295_v14, %s10725_s21  ;;  %v2791_v63 = vsel %vm2590_vm6, %v15297_v3, %v15296_v22  ;;  %v3203_v0 = vmul.f32 %v15252_v15, %v15261_v37  ;;  %v15299_v14 = vld [vmem:[#allocation78_spill] sm:$0xff]  ;;  %v15300_v3 = vld [vmem:[#allocation63_spill] sm:$0xff] }
 0x3f5   : > { %15294 = vst [vmem:[#allocation43_spill] sm:$0xff] %v13599_v42  ;;  %4853 = vst [vmem:[#allocation3 + $0x1e0] sm:$0xff] %v4834_v51  ;;  %v3085_v58 = vadd.f32 %v3071_v16, %v2987_v48  ;;  %v3229_v57 = vrot.slane %v13495_v34, 1  ;;  %v3255_v5 = vmul.f32 %v15250_v9, %v15261_v37  ;;  %3907 = vrot.lane.b32.xlu0 %v3884_v32, %s10726_s23  ;;  %v15298_v60 = vrot.slane %v13403_v29, 1  ;;  %v15301_v34 = vld [vmem:[#allocation96_spill] sm:$0xff]  ;;  %v15312_v22 = vld [vmem:[#allocation95_spill] sm:$0xff] }
 0x3f6   : > { %4881 = vst [vmem:[#allocation3 + $0x200] sm:$0xff] %v4862_v4  ;;  %4909 = vst [vmem:[#allocation3 + $0x220] sm:$0xff] %v4890_v39  ;;  %v2806_v36 = vadd.f32 %v2791_v63, %v2708_v50  ;;  %v13612_v44 = vpop.permute.xlu1 %3636  ;;  %v3912_v51 = vsel %vm2590_vm6, %v15300_v3, %v15299_v14  ;;  %v3274_v4 = vrot.slane %v13499_v41, 2  ;;  %v2878_v37 = vsel %vm2834_vm5, %v15301_v34, %v13599_v42  ;;  %v15304_v41 = vld [vmem:[#allocation111_spill] sm:$0xff]  ;;  %v15307_v34 = vld [vmem:[#allocation138_spill] sm:$0xff] }
 0x3f7   : > { %v2458_v47 = vadd.f32 %v15298_v60, %v2393_v25  ;;  %v3114_v16 = vadd.f32 %v13567_v1, %v3085_v58  ;;  %v15302_v48 = vrot.slane %v13480_v20, 1  ;;  %v3207_v29 = vmul.f32 %v15252_v15, %v15257_v46  ;;  %v2589_v63 = vpop.permute.xlu0 %2588  ;;  %v15305_v58 = vld [vmem:[#allocation137_spill] sm:$0xff]  ;;  %v15306_v60 = vld [vmem:[#allocation132_spill] sm:$0xff]  ;;  %v15317_v20 = vld [vmem:[#allocation79_spill] sm:$0xff] }
 0x3f8   : > { %v2893_v25 = vadd.f32 %v2878_v37, %v2806_v36  ;;  %v15303_v39 = vrot.slane %v13359_v53, 2  ;;  %4093 = vrot.lane.b32.xlu1 %v15304_v41, %s10725_s21  ;;  %v3978_v3 = vsel %vm2590_vm6, %v15306_v60, %v15305_v58  ;;  %v15308_v10 = vld [vmem:[#allocation100_spill] sm:$0xff]  ;;  %v2596_v46 = vsel %vm2590_vm6, %v2587_v55, %v2589_v63 }
 0x3f9   : > { %v3231_v32 = vsel %vm643_vm3, %v3229_v57, %v15302_v48  ;;  %v2976_v42 = vsel %vm2834_vm5, %v15308_v10, %v15307_v34  ;;  %v13639_v57 = vmax.f32 %v3114_v16, 0.0  ;;  %v15309_v36 = vld [vmem:[#allocation80_spill] sm:$0xff]  ;;  %v15310_v53 = vmov %v15302_v48  ;;  %v15315_v10 = vld [vmem:[#allocation110_spill] sm:$0xff] }
 0x3fa   : > { %v2524_v50 = vadd.f32 %v15303_v39, %v2459_v28  ;;  %v3927_v37 = vadd.f32 %v3912_v51, %v15309_v36  ;;  %v3251_v28 = vadd.f32 %v15310_v53, %v3207_v29  ;;  %v2991_v48 = vadd.f32 %v2976_v42, %v2893_v25  ;;  %v3387_v54 = vpop.permute.xlu1 %3386  ;;  %v15316_v36 = vld [vmem:[#allocation75_spill] sm:$0xff]  ;;  %v15318_v25 = vld [vmem:[#allocation114_spill] sm:$0xff] }
 0x3fb   : > { %v15311_v39 = vrot.slane %v13434_v30, 2  ;;  %v15313_v60 = vrot.slane %v15312_v22, 1  ;;  %v3074_v16 = vsel %vm2834_vm5, %v15315_v10, %v15314_v40  ;;  %v3247_v34 = vadd.f32 %v3231_v32, %v3203_v0  ;;  %v15320_v53 = vld [vmem:[#allocation131_spill] sm:$0xff] }
 0x3fc   : > { %v3273_v55 = vrot.slane %v3255_v5, 2  ;;  %v2612_v12 = vadd.f32 %v2589_v63, %v2524_v50  ;;  %v3993_v51 = vadd.f32 %v3978_v3, %v3927_v37  ;;  %v4044_v42 = vsel %vm2590_vm6, %v15317_v20, %v15316_v36  ;;  %v15321_v37 = vld [vmem:[#allocation113_spill] sm:$0xff] }
 0x3fd   : > { %v2523_v41 = vadd.f32 %v15311_v39, %v2458_v47  ;;  %3973 = vrot.lane.b32.xlu0 %v15313_v60, %s10726_s23  ;;  %v3089_v29 = vadd.f32 %v3074_v16, %v2991_v48  ;;  %v2688_v47 = vpop.permute.xlu0 %2687  ;;  %v15319_v22 = vrot.slane %v15318_v25, 1  ;;  %v3334_v39 = vsel %vm2590_vm6, %v15320_v53, %v13381_v61  ;;  %v15323_v16 = vld [vmem:[#allocation76_spill] sm:$0xff] }
 0x3fe   : > { %v3413_v0 = vadd.f32 %v3387_v54, %v13363_v26  ;;  %v2694_v5 = vsel %vm2590_vm6, %v15290_v11, %v2688_v47  ;;  %v13665_v32 = vadd.f32 %v2688_v47, %v2612_v12  ;;  %v3275_v50 = vsel %vm651_vm0, %v3273_v55, %v3274_v4  ;;  %v3453_v48 = vpop.permute.xlu1 %3452  ;;  %v15322_v26 = vld [vmem:[#allocation44_spill] sm:$0xff]  ;;  %v15326_v55 = vld [vmem:[#allocation54_spill] sm:$0xff] }
 0x3ff   : > { %v2611_v30 = vadd.f32 %v2596_v46, %v2523_v41  ;;  %4529 = vrot.lane.b32.xlu1 %v15319_v22, %s10726_s23  ;;  %v3295_v63 = vadd.f32 %v3274_v4, %v3251_v28  ;;  %v3118_v3 = vadd.f32 %v13567_v1, %v3089_v29  ;;  %v4059_v41 = vadd.f32 %v4044_v42, %v3993_v51  ;;  %v15324_v4 = vld [vmem:[#allocation115_spill] sm:$0xff]  ;;  %v15327_v51 = vld [vmem:[#allocation58_spill] sm:$0xff] }
 0x400   : > { %v3291_v60 = vadd.f32 %v3275_v50, %v3247_v34  ;;  %v3479_v10 = vadd.f32 %v3453_v48, %v3413_v0  ;;  %v4098_v11 = vsel %vm2834_vm5, %v15323_v16, %v15322_v26  ;;  %v15325_v28 = vrot.slane %v15324_v4, 2  ;;  %v15329_v50 = vld [vmem:[#allocation102_spill] sm:$0xff] }
 0x401   : > { %v13669_v46 = vadd.f32 %v2694_v5, %v2611_v30  ;;  %4641 = vrot.lane.b32.xlu0 %v15321_v37, %s10725_s21  ;;  %v3349_v12 = vadd.f32 %v3334_v39, %v3295_v63  ;;  %v3126_v20 = vmax.f32 %v3118_v3, 0.0  ;;  %v13676_v47 = vpop.permute.xlu0 %3392  ;;  %v13683_v29 = vmul.f32 %v15247_v62, %v15326_v55  ;;  %v15328_v30 = vld [vmem:[#allocation129_spill] sm:$0xff]  ;;  %v15331_v37 = vld [vmem:[#allocation64_spill] sm:$0xff] }
 0x402   : > { %v3331_v34 = vsel %vm2590_vm6, %v15327_v51, %v13299_v33  ;;  %v3149_v42 = vrot.slane %v13639_v57, 1  ;;  %v3400_v25 = vsel %vm2590_vm6, %v15328_v30, %v13676_v47  ;;  %v13693_v22 = vadd.f32 %v13583_v59, %v3479_v10  ;;  %v13699_v33 = vpop.permute.xlu1 %3897  ;;  %v15333_v51 = vld [vmem:[#allocation37_spill] sm:$0xff] }
 0x403   : > { %4595 = vrot.lane.b32.xlu1 %v15325_v28, %s10726_s23  ;;  %v3177_v53 = vrot.slane %v13639_v57, 2  ;;  %3134 = vst [vmem:[#allocation3 + $0x68] sm:$0xf] %v3126_v20  ;;  %v3150_v39 = vrot.slane %v3126_v20, 1  ;;  %v3178_v0 = vrot.slane %v3126_v20, 2  ;;  %v3415_v5 = vadd.f32 %v3400_v25, %v3349_v12  ;;  %v15332_v28 = vld [vmem:[#allocation119_spill] sm:$0xff] }
 0x404   : > { %v15330_v63 = vrot.slane %v15329_v50, 2  ;;  %v4113_v3 = vadd.f32 %v4098_v11, %v4059_v41  ;;  %v3466_v16 = vsel %vm2590_vm6, %v15331_v37, %v13437_v38  ;;  %v3345_v4 = vadd.f32 %v3331_v34, %v3291_v60  ;;  %v15334_v11 = vld [vmem:[#allocation55_spill] sm:$0xff]  ;;  %v15335_v34 = vld [vmem:[#allocation46_spill] sm:$0xff]  ;;  %v15338_v37 = vld [vmem:[#allocation36_spill] sm:$0xff] }
 0x405   : > { %v3151_v59 = vsel %vm643_vm3, %v3149_v42, %v3150_v39  ;;  %3171 = vst [vmem:[#allocation3 + $0x88] sm:$0xf] %v3150_v39  ;;  %v3179_v10 = vsel %vm651_vm0, %v3177_v53, %v3178_v0  ;;  %3199 = vst [vmem:[#allocation3 + $0xa8] sm:$0xf] %v3178_v0  ;;  %v3481_v20 = vadd.f32 %v3466_v16, %v3415_v5  ;;  %v3385_v12 = vpop.permute.xlu0 %3384  ;;  %v3809_v53 = vrot.slane %v13683_v29, 1  ;;  %v15336_v5 = vld [vmem:[#allocation116_spill] sm:$0xff] }
 0x406   : > { %4039 = vrot.lane.b32.xlu0 %v15330_v63, %s10726_s23  ;;  %v3520_v41 = vsel %vm2834_vm5, %v15333_v51, %v13410_v23  ;;  %3167 = vst [vmem:[#allocation3 + $0x28] sm:$0xff] %v3151_v59  ;;  %3195 = vst [vmem:[#allocation3 + $0x48] sm:$0xff] %v3179_v10  ;;  %v3790_v60 = vmul.f32 %v15247_v62, %v15334_v11  ;;  %v3397_v42 = vsel %vm2590_vm6, %v15335_v34, %v3385_v12  ;;  %v13721_v63 = vpop.permute.xlu1 %4083  ;;  %v15339_v16 = vld [vmem:[#allocation134_spill] sm:$0xff]  ;;  %v15340_v59 = vld [vmem:[#allocation47_spill] sm:$0xff] }
 0x407   : > { %4707 = vrot.lane.b32.xlu1 %v15332_v28, %s10725_s21  ;;  %v3398_v30 = vsel %vm2590_vm6, %v3385_v12, %v3387_v54  ;;  %v3535_v25 = vadd.f32 %v3520_v41, %v3481_v20  ;;  %v3411_v39 = vadd.f32 %v3397_v42, %v3345_v4  ;;  %v15337_v50 = vrot.slane %v15336_v5, 1  ;;  %v15341_v10 = vld [vmem:[#allocation45_spill] sm:$0xff]  ;;  %v15345_v5 = vld [vmem:[#allocation67_spill] sm:$0xff] }
 0x408   : > { %v3412_v0 = vadd.f32 %v3398_v30, %v13366_v56  ;;  %v4164_v62 = vsel %vm2834_vm5, %v15339_v16, %v15338_v37  ;;  %v3586_v54 = vsel %vm2834_vm5, %v15340_v59, %v13473_v21  ;;  %v3463_v29 = vsel %vm2590_vm6, %v15341_v10, %v13559_v7  ;;  %v15342_v41 = vld [vmem:[#allocation117_spill] sm:$0xff] }
 0x409   : > { %v3464_v56 = vsel %vm2590_vm6, %v13559_v7, %v3453_v48  ;;  %v3601_v4 = vadd.f32 %v3586_v54, %v3535_v25  ;;  %v3477_v20 = vadd.f32 %v3463_v29, %v3411_v39  ;;  %v4179_v28 = vadd.f32 %v4164_v62, %v4113_v3  ;;  %v4220_v51 = vpop.permute.xlu0 %4219  ;;  %v15344_v42 = vld [vmem:[#allocation41_spill] sm:$0xff]  ;;  %v15346_v7 = vld [vmem:[#allocation120_spill] sm:$0xff]  ;;  %v15347_v25 = vld [vmem:[#allocation62_spill] sm:$0xff] }
 0x40a   : > { %4715 = vrot.lane.b32.xlu0 %v15337_v50, %s10725_s21  ;;  %v3478_v12 = vadd.f32 %v3464_v56, %v3412_v0  ;;  %v15343_v34 = vrot.slane %v15342_v41, 2  ;;  %v3652_v30 = vsel %vm2834_vm5, %v15344_v42, %v13503_v49  ;;  %v4230_v50 = vsel %vm2834_vm5, %v4220_v51, %v15345_v5  ;;  %v13744_v48 = vpop.permute.xlu1 %3905  ;;  %v15348_v56 = vld [vmem:[#allocation106_spill] sm:$0xff] }
 0x40b   : > { %v3667_v16 = vadd.f32 %v3652_v30, %v3601_v4  ;;  %v3808_v59 = vrot.slane %v3790_v60, 1  ;;  %v4245_v10 = vadd.f32 %v4230_v50, %v4179_v28  ;;  %v3517_v39 = vsel %vm2834_vm5, %v15347_v25, %v13326_v43 }
 0x40c   : > { %4781 = vrot.lane.b32.xlu1 %v15343_v34, %s10725_s21  ;;  %v13747_v3 = vadd.f32 %v13594_v13, %v3478_v12  ;;  %v3838_v0 = vmul.f32 %v15250_v9, %v15326_v55  ;;  %v3531_v29 = vadd.f32 %v3517_v39, %v3477_v20  ;;  %v15349_v4 = vrot.slane %v15348_v56, 2  ;;  %v15350_v12 = vld [vmem:[#allocation40_spill] sm:$0xff]  ;;  %v15351_v34 = vld [vmem:[#allocation98_spill] sm:$0xff] }
 0x40d   : > { %v3810_v62 = vsel %vm643_vm3, %v3808_v59, %v3809_v53  ;;  %v4253_v60 = vadd.f32 %v4245_v10, %v12283_v18  ;;  %v13756_v54 = vpop.permute.xlu0 %3570  ;;  %v3782_v13 = vmul.f32 %v15252_v15, %v15334_v11  ;;  %v3834_v43 = vmul.f32 %v15250_v9, %v15334_v11  ;;  %v15352_v59 = vld [vmem:[#allocation91_spill] sm:$0xff]  ;;  %v15353_v11 = vld [vmem:[#allocation56_spill] sm:$0xff] }
 0x40e   : > { %4521 = vrot.lane.b32.xlu0 %v15346_v7, %s10726_s23  ;;  %v3583_v28 = vsel %vm2834_vm5, %v15350_v12, %v13756_v54  ;;  %v3675_v51 = vadd.f32 %v3667_v16, %v13567_v1  ;;  %v3786_v20 = vmul.f32 %v15252_v15, %v15326_v55  ;;  %v13773_v42 = vpop.permute.xlu1 %3971  ;;  %v3853_v50 = vrot.slane %v3838_v0, 2  ;;  %v15354_v0 = vld [vmem:[#allocation84_spill] sm:$0xff]  ;;  %v15355_v12 = vld [vmem:[#allocation57_spill] sm:$0xff] }
 0x40f   : > { %v4261_v18 = vmax.f32 %v4253_v60, 0.0  ;;  %v3597_v41 = vadd.f32 %v3583_v28, %v3531_v29  ;;  %v3826_v30 = vadd.f32 %v3810_v62, %v3782_v13  ;;  %v4281_v9 = vrot.slane %v15352_v59, 1 }
 0x410   : > { %4225 = vrot.lane.b32.xlu1 %v15349_v4, %s10725_s21  ;;  %v3649_v10 = vsel %vm2834_vm5, %v15353_v11, %v13612_v44  ;;  %v3830_v7 = vadd.f32 %v3809_v53, %v3786_v20  ;;  %v4309_v15 = vrot.slane %v15352_v59, 2  ;;  %v3852_v55 = vrot.slane %v3834_v43, 2 }
 0x411   : > { %4269 = vst [vmem:[#allocation3 + $0x180] sm:$0xf] %v4261_v18  ;;  %v4282_v16 = vrot.slane %v4261_v18, 1  ;;  %v13779_v25 = vpop.permute.xlu0 %2785  ;;  %v4310_v39 = vrot.slane %v4261_v18, 2  ;;  %v3663_v60 = vadd.f32 %v3649_v10, %v3597_v41  ;;  %v3683_v29 = vmax.f32 %v3675_v51, 0.0  ;;  %v15356_v10 = vld [vmem:[#allocation104_spill] sm:$0xff] }
 0x412   : > { %4587 = vrot.lane.b32.xlu0 %v15351_v34, %s10726_s23  ;;  %v13785_v56 = vpop.permute.xlu1 %4037  ;;  %v3854_v4 = vsel %vm651_vm0, %v3852_v55, %v3853_v50  ;;  %v3910_v28 = vsel %vm2590_vm6, %v15355_v12, %v13699_v33  ;;  %v3874_v51 = vadd.f32 %v3853_v50, %v3830_v7  ;;  %v3913_v20 = vsel %vm2590_vm6, %v15299_v14, %v13744_v48  ;;  %s15433_s23 = sld [smem:[#allocation156_spill]] }
 0x413   : > { %v4283_v62 = vsel %vm643_vm3, %v4281_v9, %v4282_v16  ;;  %4305 = vst [vmem:[#allocation3 + $0x1a0] sm:$0xf] %v4282_v16  ;;  %v4311_v53 = vsel %vm651_vm0, %v4309_v15, %v4310_v39  ;;  %4333 = vst [vmem:[#allocation3 + $0x1c0] sm:$0xf] %v4310_v39  ;;  %v3671_v13 = vadd.f32 %v3663_v60, %v13567_v1  ;;  %v3701_v59 = vrot.slane %v3683_v29, 4 }
 0x414   : > { %4301 = vst [vmem:[#allocation3 + $0x140] sm:$0xff] %v4283_v62  ;;  %v3870_v43 = vadd.f32 %v3854_v4, %v3826_v30  ;;  %4329 = vst [vmem:[#allocation3 + $0x160] sm:$0xff] %v4311_v53  ;;  %v3979_v34 = vsel %vm2590_vm6, %v15305_v58, %v13773_v42  ;;  %v3731_v9 = vrot.slane %v3683_v29, 5  ;;  %v3759_v11 = vrot.slane %v3683_v29, 6  ;;  %v15358_v58 = vld [vmem:[#allocation77_spill] sm:$0xff] }
 0x415   : > { %v13793_v18 = vpop.permute.xlu0 %2864  ;;  %v3679_v41 = vmax.f32 %v3671_v13, 0.0  ;;  %v15357_v16 = vrot.slane %v15356_v10, 1  ;;  %v3928_v60 = vadd.f32 %v3913_v20, %v3874_v51  ;;  %v4045_v4 = vsel %vm2590_vm6, %v15316_v36, %v13785_v56  ;;  %v15362_v36 = vld [vmem:[#allocation34_spill] sm:$0xff] }
 0x416   : > { %4773 = vrot.lane.b32.xlu0 %v15354_v0, %s10725_s21  ;;  %v2876_v30 = vsel %vm2834_vm5, %v13544_v27, %v13793_v18  ;;  %v13810_v14 = vpop.permute.xlu1 %3963  ;;  %v3924_v27 = vadd.f32 %v3910_v28, %v3870_v43  ;;  %v15360_v28 = vld [vmem:[#allocation140_spill] sm:$0xff] }
 0x417   : > { %v13805_v50 = vadd.f32 %v2876_v30, %v13561_v24  ;;  %v3696_v7 = vrot.slane %v3679_v41, 4  ;;  %v3726_v15 = vrot.slane %v3679_v41, 5  ;;  %v3754_v55 = vrot.slane %v3679_v41, 6 }
 0x418   : > { %v3976_v39 = vsel %vm2590_vm6, %v15358_v58, %v13810_v14  ;;  %v3994_v53 = vadd.f32 %v3979_v34, %v3928_v60  ;;  %v4913_v60 = vld [vmem:[#allocation3] sm:$0xff] }
 0x419   : > { %v13815_v62 = vpop.permute.xlu0 %4091  ;;  %v13818_v24 = vsel %vm3694_vm7, %v3696_v7, %v3701_v59  ;;  %3716 = vst [vmem:[#allocation3 + $0x68] sm:$0xf0] %v3696_v7  ;;  %v3732_v29 = vsel %vm3724_vm8, %v3726_v15, %v3731_v9  ;;  %3746 = vst [vmem:[#allocation3 + $0x88] sm:$0xf0] %v3726_v15  ;;  %v3760_v0 = vsel %vm625_vm2, %v3754_v55, %v3759_v11  ;;  %v4925_v7 = vld [vmem:[#allocation3 + $0x60] sm:$0xff] }
 0x41a   : > { %4159 = vrot.lane.b32.xlu0 %v15357_v16, %s10725_s21  ;;  %15359 = vst [vmem:[#allocation89_spill] sm:$0xff] %v13815_v62  ;;  %3774 = vst [vmem:[#allocation3 + $0xa8] sm:$0xf0] %v3754_v55  ;;  %v3990_v13 = vadd.f32 %v3976_v39, %v3924_v27  ;;  %v13825_v43 = vpop.permute.xlu1 %4029  ;;  %v4099_v12 = vsel %vm2834_vm5, %v15322_v26, %v13815_v62  ;;  %v4060_v20 = vadd.f32 %v4045_v4, %v3994_v53  ;;  %v15363_v26 = vld [vmem:[#allocation142_spill] sm:$0xff]  ;;  %v15383_v62 = vld [vmem:[#allocation147_spill] sm:$0xff]  ;;  %s8293_s21 = sshll.u32 %s578_s30, 4  ;;  %s14607_s21 = int_to_ptr.vmem [resolvable:$true] %s8293_s21 }
 0x41b   : > { %3750 = vst [vmem:[#allocation3 + $0xe8] sm:$0xff] %v3732_v29  ;;  %3778 = vst [vmem:[#allocation3 + $0x108] sm:$0xff] %v3760_v0  ;;  %v4042_v51 = vsel %vm2590_vm6, %v15360_v28, %v13825_v43  ;;  %v4096_v59 = vsel %vm2834_vm5, %v15362_v36, %v13721_v63  ;;  %v10037_v29 = vld [vmem:[#allocation13 + $0x188] ss:$12 sps:$4 sm:$0xff]   ;;  %v10041_v28 = vld [vmem:[#allocation13 + $0x260] ss:$12 sps:$4 sm:$0xff]   ;;  %p10623_p6 = scmp.lt.s32.totalorder %s14607_s21, %s10621_s11 }
 0x41c   : > { %v4056_v41 = vadd.f32 %v4042_v51, %v3990_v13  ;;  %v4114_v9 = vadd.f32 %v4099_v12, %v4060_v20  ;;  %v4985_v13 = vpack.c.bf16 %v4925_v7, %v4913_v60  ;;  %v10014_v12 = vld [vmem:[#allocation13 + $0x19c] ss:$12 sps:$4 sm:$0xff]   ;;  %v10012_v36 = vld [vmem:[#allocation13 + $0x198] ss:$12 sps:$4 sm:$0xff]   ;;  %s10616_s22 = scalar_lea.vmem %s14607_s21, 64 }
 0x41d   : > { %v13833_v30 = vpop.permute.xlu0 %4157  ;;  %v15365_v51 = vld [vmem:[#allocation144_spill] sm:$0xff]  ;;  %v10015_v60 = vld [vmem:[#allocation13 + $0x1b0] ss:$12 sps:$4 sm:$0xff]   ;;  %p10617_p11 = scmp.ne.s32.totalorder %s14607_s21, %s10616_s22  ;;  %p10624_p9 = scmp.lt.s32.totalorder %s10622_s0, %s10616_s22 }
 0x41e   : > { %15361 = vst [vmem:[#allocation97_spill] sm:$0xff] %v13833_v30  ;;  %v4165_v34 = vsel %vm2834_vm5, %v15338_v37, %v13833_v30  ;;  %v4110_v11 = vadd.f32 %v4096_v59, %v4056_v41  ;;  %v13841_v10 = vpop.permute.xlu1 %4149  ;;  %v10009_v37 = vld [vmem:[#allocation13 + $0x180] ss:$12 sps:$4 sm:$0xff]  }
 0x41f   : > { %v4162_v16 = vsel %vm2834_vm5, %v15363_v26, %v13841_v10  ;;  %v4180_v15 = vadd.f32 %v4165_v34, %v4114_v9  ;;  %v10042_v59 = vld [vmem:[#allocation13 + $0x1a0] ss:$12 sps:$4 sm:$0xff]   ;;  %p10618_p13 = pnand %p10617_p11, %p15435_p12  ;;  %p10625_p4 = por %p10624_p9, %p10623_p6 }
 0x420   : > { %v4926_v58 = vld [vmem:[#allocation3 + $0x68] sm:$0xff]  ;;  %v4176_v0 = vadd.f32 %v4162_v16, %v4110_v11 }
 0x421   : > { %v13846_v55 = vpop.permute.xlu0 %4223  ;;  %v4986_v27 = vpack.c.bf16 %v4926_v58, %v13639_v57  ;;  %v10017_v26 = vld [vmem:[#allocation13 + $0x1b4] ss:$12 sps:$4 sm:$0xff]   ;;  %v10046_v16 = vld [vmem:[#allocation13 + $0x278] ss:$12 sps:$4 sm:$0xff]   ;;  %p10619_p8 = pneg %p10618_p13 }
 0x422   : > { %15364 = vst [vmem:[#allocation53_spill] sm:$0xff] %v13846_v55  ;;  %v4231_v39 = vsel %vm2834_vm5, %v15345_v5, %v13846_v55  ;;  %v13852_v53 = vpop.permute.xlu1 %4215 }
 0x423   : > { %v4246_v4 = vadd.f32 %v4231_v39, %v4180_v15  ;;  %6990 = vmatprep.mubr.bf16.mxu0 %v4986_v27  ;;  %7368 = vmatprep.mubr.bf16.mxu1 %v4986_v27  ;;  %v4228_v20 = vsel %vm2834_vm5, %v15365_v51, %v13852_v53  ;;  %v4949_v27 = vld [vmem:[#allocation3 + $0x120] sm:$0xff]  ;;  %p10626_p3 = pnand %p10625_p4, %p10619_p8 }
 0x424   : > { %v4242_v41 = vadd.f32 %v4228_v20, %v4176_v0  ;;  %6991 = vmatmul.mubr.bf16.vlgmr.msra.gmra.mrb[16].mxu0 %v4985_v13  ;;  %7369 = vmatmul.mubr.bf16.vlgmr.msra.gmra.mrb[32].mxu1 %v4985_v13  ;;  %v10020_v13 = vld [vmem:[#allocation13 + $0x1cc] ss:$12 sps:$4 sm:$0xff]  }
 0x425   : > { %v4254_v5 = vadd.f32 %v4246_v4, %v13567_v1  ;;  %v13858_v57 = vpop.permute.xlu0 %4453  ;;  %7022 = vmatpush1.bf16.msra.mxu0 %v10009_v37  ;;  %8979 = vmatpush3.bf16.msra.mxu1 %v10037_v29  ;;  %v10047_v20 = vld [vmem:[#allocation13 + $0x1b8] ss:$12 sps:$4 sm:$0xff]  }
 0x426   : > { %v4250_v9 = vadd.f32 %v4242_v41, %v13567_v1  ;;  %7023 = vmatprep.subr.bf16.mxu0 %v10014_v12  ;;  %v13861_v11 = vpop.permute.xlu1 %4639  ;;  %8980 = vmatprep.subr.bf16.mxu1 %v10041_v28  ;;  %v4937_v28 = vld [vmem:[#allocation3 + $0xc0] sm:$0xff]  ;;  %v15367_v41 = vld [vmem:[#allocation61_spill] sm:$0xff] }
 0x427   : > { %v4262_v34 = vmax.f32 %v4254_v5, 0.0  ;;  %15366 = vst [vmem:[#allocation92_spill] sm:$0xff] %v13861_v11  ;;  %v4997_v51 = vpack.c.bf16 %v4949_v27, %v4937_v28 }
 0x428   : > { %v4258_v58 = vmax.f32 %v4250_v9, 0.0  ;;  %v10018_v9 = vld [vmem:[#allocation13 + $0x1c8] ss:$12 sps:$4 sm:$0xff]  }
 0x429   : > { %4270 = vst [vmem:[#allocation3 + $0x188] sm:$0xf] %v4262_v34  ;;  %v4285_v7 = vrot.slane %v4262_v34, 1  ;;  %v4313_v15 = vrot.slane %v4262_v34, 2  ;;  %v13863_v39 = vpop.permute.xlu0 %4461  ;;  %7024 = vmatpush1.bf16.msra.mxu0 %v10012_v36  ;;  %8981 = vmatpush3.bf16.msra.mxu1 %v10042_v59  ;;  %v10051_v34 = vld [vmem:[#allocation13 + $0x290] ss:$12 sps:$4 sm:$0xff]  }
 0x42a   : > { %v4469_v37 = vsel %vm2590_vm6, %v12938_v31, %v13863_v39  ;;  %v4284_v29 = vrot.slane %v4258_v58, 1  ;;  %v4312_v0 = vrot.slane %v4258_v58, 2  ;;  %7025 = vmatprep.subr.bf16.mxu0 %v10017_v26  ;;  %v13868_v4 = vpop.permute.xlu1 %4647  ;;  %v4998_v12 = vpack.c.bf16 %v4258_v58, %v13818_v24  ;;  %8982 = vmatprep.subr.bf16.mxu1 %v10046_v16  ;;  %v10052_v58 = vld [vmem:[#allocation13 + $0x1d0] ss:$12 sps:$4 sm:$0xff]  }
 0x42b   : > { %4306 = vst [vmem:[#allocation3 + $0x1a8] sm:$0xf] %v4285_v7  ;;  %4334 = vst [vmem:[#allocation3 + $0x1c8] sm:$0xf] %v4313_v15  ;;  %v4484_v36 = vadd.f32 %v4469_v37, %v15367_v41  ;;  %v10029_v41 = vld [vmem:[#allocation13 + $0x214] ss:$12 sps:$4 sm:$0xff]  }
 0x42c   : > { %v4286_v5 = vsel %vm643_vm3, %v4284_v29, %v4285_v7  ;;  %v4314_v31 = vsel %vm651_vm0, %v4312_v0, %v4313_v15  ;;  %7000 = vmatprep.mubr.bf16.mxu0 %v4998_v12  ;;  %7376 = vmatprep.mubr.bf16.mxu1 %v4998_v12  ;;  %v10023_v7 = vld [vmem:[#allocation13 + $0x1e4] ss:$12 sps:$4 sm:$0xff]   ;;  %v10026_v0 = vld [vmem:[#allocation13 + $0x1fc] ss:$12 sps:$4 sm:$0xff]  }
 0x42d   : > { %v13874_v59 = vpop.permute.xlu0 %4527  ;;  %4302 = vst [vmem:[#allocation3 + $0x148] sm:$0xff] %v4286_v5  ;;  %4330 = vst [vmem:[#allocation3 + $0x168] sm:$0xff] %v4314_v31  ;;  %7026 = vmatpush1.bf16.msra.mxu0 %v10015_v60  ;;  %7377 = vmatmul.mubr.bf16.gmra.mrb[36].mxu1 %v4997_v51  ;;  %v10056_v60 = vld [vmem:[#allocation13 + $0x2a8] ss:$12 sps:$4 sm:$0xff]   ;;  %v10024_v5 = vld [vmem:[#allocation13 + $0x1f8] ss:$12 sps:$4 sm:$0xff]  }
 0x42e   : > { %v4535_v24 = vsel %vm2590_vm6, %v12988_v8, %v13874_v59  ;;  %7027 = vmatprep.subr.bf16.mxu0 %v10020_v13  ;;  %v13879_v16 = vpop.permute.xlu1 %4593  ;;  %7001 = vmatmul.mubr.bf16.gmra.mrb[20].mxu0 %v4997_v51  ;;  %v10021_v8 = vld [vmem:[#allocation13 + $0x1e0] ss:$12 sps:$4 sm:$0xff]   ;;  %v4655_v13 = vsel %vm2834_vm5, %v13314_v6, %v13868_v4  ;;  %v10057_v12 = vld [vmem:[#allocation13 + $0x1e8] ss:$12 sps:$4 sm:$0xff]  }
 0x42f   : > { %v4550_v26 = vadd.f32 %v4535_v24, %v4484_v36  ;;  %v4601_v15 = vsel %vm2590_vm6, %v13422_v2, %v13879_v16  ;;  %8983 = vmatpush3.bf16.msra.mxu1 %v10047_v20  ;;  %v10061_v51 = vld [vmem:[#allocation13 + $0x2c0] ss:$12 sps:$4 sm:$0xff]   ;;  %v4466_v20 = vsel %vm2590_vm6, %v12865_v45, %v13858_v57 }
 0x430   : > { %8984 = vmatprep.subr.bf16.mxu1 %v10051_v34  ;;  %v10062_v36 = vld [vmem:[#allocation13 + $0x200] ss:$12 sps:$4 sm:$0xff]  }
 0x431   : > { %v4616_v27 = vadd.f32 %v4601_v15, %v4550_v26  ;;  %v13884_v37 = vpop.permute.xlu0 %4713  ;;  %7028 = vmatpush1.bf16.msra.mxu0 %v10018_v9  ;;  %v15369_v34 = vld [vmem:[#allocation49_spill] sm:$0xff] }
 0x432   : > { %7029 = vmatprep.subr.bf16.mxu0 %v10023_v7  ;;  %v13886_v29 = vpop.permute.xlu1 %4585  ;;  %v4721_v6 = vsel %vm2834_vm5, %v15254_v52, %v13884_v37  ;;  %v4480_v24 = vadd.f32 %v4466_v20, %v15369_v34  ;;  %v10066_v7 = vld [vmem:[#allocation13 + $0x2d8] ss:$12 sps:$4 sm:$0xff]  }
 0x433   : > { %15368 = vst [vmem:[#allocation38_spill] sm:$0xff] %v13886_v29  ;;  %8985 = vmatpush3.bf16.msra.mxu1 %v10052_v58  ;;  %v4670_v2 = vadd.f32 %v4655_v13, %v4616_v27  ;;  %v10027_v58 = vld [vmem:[#allocation13 + $0x210] ss:$12 sps:$4 sm:$0xff]  }
 0x434   : > { %8986 = vmatprep.subr.bf16.mxu1 %v10056_v60  ;;  %v10032_v60 = vld [vmem:[#allocation13 + $0x22c] ss:$12 sps:$4 sm:$0xff]  }
 0x435   : > { %v13891_v28 = vpop.permute.xlu0 %4779  ;;  %7030 = vmatpush1.bf16.msra.mxu0 %v10021_v8  ;;  %v4736_v9 = vadd.f32 %v4721_v6, %v4670_v2  ;;  %v10067_v8 = vld [vmem:[#allocation13 + $0x218] ss:$12 sps:$4 sm:$0xff]   ;;  %v15372_v6 = vld [vmem:[#allocation33_spill] sm:$0xff] }
 0x436   : > { %7031 = vmatprep.subr.bf16.mxu0 %v10026_v0  ;;  %v13896_v31 = vpop.permute.xlu1 %2872  ;;  %v4787_v45 = vsel %vm2834_vm5, %v15258_v19, %v13891_v28  ;;  %v10071_v19 = vld [vmem:[#allocation13 + $0x2f0] ss:$12 sps:$4 sm:$0xff]  }
 0x437   : > { %8987 = vmatpush3.bf16.msra.mxu1 %v10057_v12  ;;  %v4802_v0 = vadd.f32 %v4787_v45, %v4736_v9  ;;  %v15370_v12 = vld [vmem:[#allocation74_spill] sm:$0xff] }
 0x438   : > { %8988 = vmatprep.subr.bf16.mxu1 %v10061_v51  ;;  %v3208_v2 = vmul.f32 %v15237_v17, %v15370_v12  ;;  %v15371_v51 = vld [vmem:[#allocation72_spill] sm:$0xff]  ;;  %v15375_v12 = vld [vmem:[#allocation86_spill] sm:$0xff] }
 0x439   : > { %v13902_v26 = vpop.permute.xlu0 %4519  ;;  %7032 = vmatpush1.bf16.msra.mxu0 %v10024_v5  ;;  %v4598_v20 = vsel %vm2590_vm6, %v15371_v51, %v13886_v29  ;;  %v15376_v51 = vld [vmem:[#allocation48_spill] sm:$0xff]  ;;  %v15384_v29 = vrot.slane %v15383_v62, 1 }
 0x43a   : > { %v4532_v15 = vsel %vm2590_vm6, %v15255_v35, %v13902_v26  ;;  %7033 = vmatprep.subr.bf16.mxu0 %v10029_v41  ;;  %v13910_v27 = vpop.permute.xlu1 %2962  ;;  %v10030_v41 = vld [vmem:[#allocation13 + $0x228] ss:$12 sps:$4 sm:$0xff]  }
 0x43b   : > { %v4546_v52 = vadd.f32 %v4532_v15, %v4480_v24  ;;  %8989 = vmatpush3.bf16.msra.mxu1 %v10062_v36  ;;  %v15373_v36 = vld [vmem:[#allocation93_spill] sm:$0xff] }
 0x43c   : > { %8990 = vmatprep.subr.bf16.mxu1 %v10066_v7  ;;  %v13922_v34 = vrot.slane %v15373_v36, %v15372_v6  ;;  %v15374_v7 = vld [vmem:[#allocation30_spill] sm:$0xff] }
 0x43d   : > { %v3573_v13 = vpop.permute.xlu0 %3572  ;;  %7034 = vmatpush1.bf16.msra.mxu0 %v10027_v58  ;;  %v4612_v24 = vadd.f32 %v4598_v20, %v4546_v52  ;;  %v13927_v45 = vrot.slane %v15373_v36, %v15374_v7  ;;  %v10035_v58 = vld [vmem:[#allocation13 + $0x244] ss:$12 sps:$4 sm:$0xff]   ;;  %v10100_v36 = vld [vmem:[#allocation13 + $0x3c8] ss:$12 sps:$4 sm:$0xff]  }
 0x43e   : > { %v3584_v35 = vsel %vm2834_vm5, %v13756_v54, %v3573_v13  ;;  %v3599_v5 = vadd.f32 %v3573_v13, %v13693_v22  ;;  %7035 = vmatprep.subr.bf16.mxu0 %v10032_v60  ;;  %v3639_v15 = vpop.permute.xlu1 %3638  ;;  %v3209_v54 = vmul.f32 %v15376_v51, %v15375_v12  ;;  %v10072_v6 = vld [vmem:[#allocation13 + $0x230] ss:$12 sps:$4 sm:$0xff]   ;;  %v15377_v52 = vld [vmem:[#allocation52_spill] sm:$0xff]  ;;  %v4810_v60 = vadd.f32 %v4802_v0, %v13567_v1 }
 0x43f   : > { %v3598_v9 = vadd.f32 %v3584_v35, %v13747_v3  ;;  %v3650_v22 = vsel %vm2834_vm5, %v13612_v44, %v3639_v15  ;;  %8991 = vmatpush3.bf16.msra.mxu1 %v10067_v8  ;;  %v2792_v3 = vsel %vm2590_vm6, %v15377_v52, %v13779_v25  ;;  %v15379_v7 = vld [vmem:[#allocation82_spill] sm:$0xff]  ;;  %v15380_v8 = vld [vmem:[#allocation133_spill] sm:$0xff] }
 0x440   : > { %v3665_v13 = vadd.f32 %v3639_v15, %v3599_v5  ;;  %8992 = vmatprep.subr.bf16.mxu1 %v10071_v19  ;;  %v4652_v12 = vsel %vm2834_vm5, %v15379_v7, %v13861_v11  ;;  %v10033_v15 = vld [vmem:[#allocation13 + $0x240] ss:$12 sps:$4 sm:$0xff]   ;;  %v3253_v7 = vadd.f32 %v15384_v29, %v3209_v54  ;;  %v10038_v54 = vld [vmem:[#allocation13 + $0x258] ss:$12 sps:$4 sm:$0xff]  }
 0x441   : > { %v3664_v20 = vadd.f32 %v3650_v22, %v3598_v9  ;;  %v13937_v35 = vpop.permute.xlu0 %4705  ;;  %7036 = vmatpush1.bf16.msra.mxu0 %v10030_v41  ;;  %v4666_v0 = vadd.f32 %v4652_v12, %v4612_v24  ;;  %v10040_v22 = vld [vmem:[#allocation13 + $0x25c] ss:$12 sps:$4 sm:$0xff]   ;;  %v2808_v41 = vadd.f32 %v13779_v25, %v13665_v32 }
 0x442   : > { %15378 = vst [vmem:[#allocation69_spill] sm:$0xff] %v13937_v35  ;;  %v3673_v44 = vadd.f32 %v3665_v13, %v13922_v34  ;;  %v4718_v5 = vsel %vm2834_vm5, %v15380_v8, %v13937_v35  ;;  %7037 = vmatprep.subr.bf16.mxu0 %v10035_v58  ;;  %v3069_v9 = vpop.permute.xlu1 %3068  ;;  %v15381_v19 = vld [vmem:[#allocation148_spill] sm:$0xff]  ;;  %v2807_v13 = vadd.f32 %v2792_v3, %v13669_v46  ;;  %v15385_v24 = vld [vmem:[#allocation43_spill] sm:$0xff] }
 0x443   : > { %v3672_v52 = vadd.f32 %v3664_v20, %v13927_v45  ;;  %v15382_v55 = vrot.slane %v15381_v19, 1  ;;  %8993 = vmatpush3.bf16.msra.mxu1 %v10072_v6  ;;  %v13956_v20 = vmax.f32 %v4810_v60, 0.0  ;;  %v2879_v58 = vsel %vm2834_vm5, %v15385_v24, %v13896_v31  ;;  %v15387_v29 = vld [vmem:[#allocation135_spill] sm:$0xff]  ;;  %v15390_v19 = vld [vmem:[#allocation50_spill] sm:$0xff] }
 0x444   : > { %v13954_v8 = vmax.f32 %v3673_v44, 0.0  ;;  %9012 = vmatprep.subr.bf16.mxu1 %v10100_v36  ;;  %v15391_v24 = vrot.slane %v15390_v19, 2  ;;  %v15396_v19 = vld [vmem:[#allocation145_spill] sm:$0xff] }
 0x445   : > { %v3252_v30 = vadd.f32 %v15382_v55, %v3208_v2  ;;  %v13961_v12 = vmax.f32 %v3672_v52, 0.0  ;;  %v4732_v55 = vadd.f32 %v4718_v5, %v4666_v0  ;;  %v13963_v62 = vpop.permute.xlu0 %4771  ;;  %7038 = vmatpush1.bf16.msra.mxu0 %v10033_v15  ;;  %v10045_v5 = vld [vmem:[#allocation13 + $0x274] ss:$12 sps:$4 sm:$0xff]   ;;  %v2895_v52 = vadd.f32 %v13896_v31, %v2808_v41  ;;  %v15393_v41 = vld [vmem:[#allocation124_spill] sm:$0xff] }
 0x446   : > { %15386 = vst [vmem:[#allocation59_spill] sm:$0xff] %v13963_v62  ;;  %v14897_v46 = vrot.slane %v13954_v8, 4  ;;  %v14898_v32 = vrot.slane %v13954_v8, 5  ;;  %v14902_v25 = vrot.slane %v13954_v8, 6  ;;  %v4784_v2 = vsel %vm2834_vm5, %v15387_v29, %v13963_v62  ;;  %7039 = vmatprep.subr.bf16.mxu0 %v10040_v22  ;;  %v13974_v36 = vpop.permute.xlu1 %3394  ;;  %v15388_v15 = vld [vmem:[#allocation150_spill] sm:$0xff] }
 0x447   : > { %v14901_v6 = vrot.slane %v13961_v12, 4  ;;  %v14900_v3 = vrot.slane %v13961_v12, 5  ;;  %v14899_v60 = vrot.slane %v13961_v12, 6  ;;  %v4798_v44 = vadd.f32 %v4784_v2, %v4732_v55  ;;  %v15392_v31 = vld [vmem:[#allocation70_spill] sm:$0xff] }
 0x448   : > { %3719 = vst.msk [vmem:[#allocation3 + $0x78] sm:$0xf0] %vm3718_vm9, %v14897_v46  ;;  %3748 = vst.msk [vmem:[#allocation3 + $0x98] sm:$0xf0] %vm3718_vm9, %v14898_v32  ;;  %v15389_v0 = vrot.slane %v15388_v15, 2  ;;  %v13992_v55 = vadd.f32 %v15391_v24, %v3253_v7  ;;  %v13996_v29 = vmul.f32 %v15393_v41, %v15392_v31  ;;  %v15394_v2 = vld [vmem:[#allocation42_spill] sm:$0xff]  ;;  %v2894_v32 = vadd.f32 %v2879_v58, %v2807_v13 }
 0x449   : > { %3776 = vst.msk [vmem:[#allocation3 + $0xb8] sm:$0xf0] %vm3718_vm9, %v14902_v25  ;;  %v2891_v46 = vadd.f32 %v13793_v18, %v15394_v2  ;;  %3747 = vst [vmem:[#allocation3 + $0x90] sm:$0xf0] %v14900_v3  ;;  %v2971_v7 = vpop.permute.xlu0 %2970  ;;  %v15395_v15 = vld [vmem:[#allocation68_spill] sm:$0xff]  ;;  %v2974_v18 = vsel %vm2834_vm5, %v15396_v19, %v13910_v27  ;;  %7040 = vmatpush1.bf16.msra.mxu0 %v10038_v54  ;;  %v15397_v13 = vld [vmem:[#allocation138_spill] sm:$0xff]  ;;  %v3075_v19 = vsel %vm2834_vm5, %v15314_v40, %v3069_v9 }
 0x44a   : > { %v13988_v22 = vadd.f32 %v15389_v0, %v3252_v30  ;;  %3775 = vst [vmem:[#allocation3 + $0xb0] sm:$0xf0] %v14899_v60  ;;  %3717 = vst [vmem:[#allocation3 + $0x70] sm:$0xf0] %v14901_v6  ;;  %v4806_v30 = vadd.f32 %v4798_v44, %v13567_v1  ;;  %v14009_v0 = vmul.f32 %v15393_v41, %v15395_v15  ;;  %v10043_v2 = vld [vmem:[#allocation13 + $0x270] ss:$12 sps:$4 sm:$0xff]   ;;  %7041 = vmatprep.subr.bf16.mxu0 %v10045_v5  ;;  %v14018_v41 = vpop.permute.xlu1 %3460 }
 0x44b   : > { %v2977_v58 = vsel %vm2834_vm5, %v15397_v13, %v2971_v7  ;;  %v2993_v24 = vadd.f32 %v2971_v7, %v2895_v52  ;;  %v4835_v60 = vrot.slane %v13956_v20, 4  ;;  %v2989_v1 = vadd.f32 %v13910_v27, %v2891_v46  ;;  %v10050_v6 = vld [vmem:[#allocation13 + $0x28c] ss:$12 sps:$4 sm:$0xff]  }
 0x44c   : > { %v4814_v44 = vmax.f32 %v4806_v30, 0.0  ;;  %v2992_v3 = vadd.f32 %v2977_v58, %v2894_v32  ;;  %v4863_v25 = vrot.slane %v13956_v20, 5  ;;  %v4891_v54 = vrot.slane %v13956_v20, 6  ;;  %v15398_v32 = vld [vmem:[#allocation146_spill] sm:$0xff] }
 0x44d   : > { %v3091_v13 = vadd.f32 %v3069_v9, %v2993_v24  ;;  %v3061_v11 = vpop.permute.xlu0 %3060  ;;  %v2988_v27 = vadd.f32 %v2974_v18, %v13805_v50  ;;  %7042 = vmatpush1.bf16.msra.mxu0 %v10043_v2  ;;  %v10048_v58 = vld [vmem:[#allocation13 + $0x288] ss:$12 sps:$4 sm:$0xff]   ;;  %v10055_v18 = vld [vmem:[#allocation13 + $0x2a4] ss:$12 sps:$4 sm:$0xff]   ;;  %v3811_v2 = vrot.slane %v13996_v29, 1 }
 0x44e   : > { %v4830_v52 = vrot.slane %v4814_v44, 4  ;;  %v4858_v7 = vrot.slane %v4814_v44, 5  ;;  %v4886_v62 = vrot.slane %v4814_v44, 6  ;;  %v3090_v35 = vadd.f32 %v3075_v19, %v2992_v3  ;;  %7043 = vmatprep.subr.bf16.mxu0 %v10050_v6  ;;  %v14034_v3 = vpop.permute.xlu1 %3514  ;;  %v10053_v29 = vld [vmem:[#allocation13 + $0x2a0] ss:$12 sps:$4 sm:$0xff]  }
 0x44f   : > { %v3120_v46 = vadd.f32 %v13922_v34, %v3091_v13  ;;  %v3072_v5 = vsel %vm2834_vm5, %v15398_v32, %v3061_v11  ;;  %v3087_v30 = vadd.f32 %v3061_v11, %v2989_v1  ;;  %v3812_v44 = vrot.slane %v14009_v0, 1 }
 0x450   : > { %v14029_v20 = vsel %vm3694_vm7, %v4830_v52, %v4835_v60  ;;  %4850 = vst [vmem:[#allocation3 + $0x188] sm:$0xf0] %v4830_v52  ;;  %v4864_v40 = vsel %vm3724_vm8, %v4858_v7, %v4863_v25  ;;  %4878 = vst [vmem:[#allocation3 + $0x1a8] sm:$0xf0] %v4858_v7  ;;  %v4892_v9 = vsel %vm625_vm2, %v4886_v62, %v4891_v54 }
 0x451   : > { %4906 = vst [vmem:[#allocation3 + $0x1c8] sm:$0xf0] %v4886_v62  ;;  %v3119_v50 = vadd.f32 %v13927_v45, %v3090_v35  ;;  %4882 = vst [vmem:[#allocation3 + $0x208] sm:$0xff] %v4864_v40  ;;  %v3128_v11 = vmax.f32 %v3120_v46, 0.0  ;;  %v3086_v24 = vadd.f32 %v3072_v5, %v2988_v27  ;;  %v3116_v60 = vadd.f32 %v13922_v34, %v3087_v30  ;;  %v3329_v25 = vpop.permute.xlu0 %3328  ;;  %v15399_v62 = vld [vmem:[#allocation125_spill] sm:$0xff] }
 0x452   : > { %4910 = vst [vmem:[#allocation3 + $0x228] sm:$0xff] %v4892_v9  ;;  %v14041_v54 = vmul.f32 %v15399_v62, %v15392_v31  ;;  %v14045_v35 = vmul.f32 %v15399_v62, %v15395_v15  ;;  %7044 = vmatpush1.bf16.msra.mxu0 %v10048_v58  ;;  %v3335_v46 = vsel %vm2590_vm6, %v13381_v61, %v3329_v25  ;;  %v3581_v5 = vpop.permute.xlu1 %3580  ;;  %v10060_v30 = vld [vmem:[#allocation13 + $0x2bc] ss:$12 sps:$4 sm:$0xff]  }
 0x453   : > { %v3127_v1 = vmax.f32 %v3119_v50, 0.0  ;;  %3137 = vst.msk [vmem:[#allocation3 + $0x78] sm:$0xf] %vm3136_vm10, %v3128_v11  ;;  %v3156_v6 = vrot.slane %v3128_v11, 1  ;;  %v3184_v19 = vrot.slane %v3128_v11, 2  ;;  %v3115_v13 = vadd.f32 %v13927_v45, %v3086_v24  ;;  %7045 = vmatprep.subr.bf16.mxu0 %v10055_v18 }
 0x454   : > { %v3124_v52 = vmax.f32 %v3116_v60, 0.0  ;;  %v3351_v32 = vadd.f32 %v3329_v25, %v13992_v55  ;;  %v3350_v50 = vadd.f32 %v3335_v46, %v13988_v22  ;;  %v3401_v61 = vsel %vm2590_vm6, %v13676_v47, %v13974_v36  ;;  %v10058_v47 = vld [vmem:[#allocation13 + $0x2b8] ss:$12 sps:$4 sm:$0xff]  }
 0x455   : > { %3135 = vst [vmem:[#allocation3 + $0x70] sm:$0xf] %v3127_v1  ;;  %v3153_v7 = vrot.slane %v3127_v1, 1  ;;  %v3181_v27 = vrot.slane %v3127_v1, 2  ;;  %3173 = vst.msk [vmem:[#allocation3 + $0x98] sm:$0xf] %vm3136_vm10, %v3156_v6  ;;  %v3783_v18 = vmul.f32 %v15237_v17, %v15392_v31  ;;  %v14065_v24 = vpop.permute.xlu0 %3899  ;;  %v3813_v62 = vsel %vm643_vm3, %v3811_v2, %v3812_v44 }
 0x456   : > { %3201 = vst.msk [vmem:[#allocation3 + $0xb8] sm:$0xf] %vm3136_vm10, %v3184_v19  ;;  %v14054_v40 = vmax.f32 %v3115_v13, 0.0  ;;  %v3155_v58 = vrot.slane %v3124_v52, 1  ;;  %v3183_v9 = vrot.slane %v3124_v52, 2  ;;  %v3417_v55 = vadd.f32 %v13974_v36, %v3351_v32  ;;  %7046 = vmatpush1.bf16.msra.mxu0 %v10053_v29  ;;  %v4961_v2 = vld [vmem:[#allocation3 + $0x180] sm:$0xff] }
 0x457   : > { %3132 = vst.msk [vmem:[#allocation3 + $0x18] sm:$0xff] %vm2834_vm5, %v3124_v52  ;;  %3172 = vst [vmem:[#allocation3 + $0x90] sm:$0xf] %v3153_v7  ;;  %v3855_v11 = vrot.slane %v14041_v54, 2  ;;  %v3416_v36 = vadd.f32 %v3401_v61, %v3350_v50  ;;  %v3856_v54 = vrot.slane %v14045_v35, 2  ;;  %7047 = vmatprep.subr.bf16.mxu0 %v10060_v30  ;;  %v4962_v13 = vld [vmem:[#allocation3 + $0x188] sm:$0xff]  ;;  %v3467_v52 = vsel %vm2590_vm6, %v13437_v38, %v14018_v41 }
 0x458   : > { %3200 = vst [vmem:[#allocation3 + $0xb0] sm:$0xf] %v3181_v27  ;;  %v3152_v60 = vrot.slane %v14054_v40, 1  ;;  %v3157_v1 = vsel %vm643_vm3, %v3155_v58, %v3156_v6  ;;  %v3180_v22 = vrot.slane %v14054_v40, 2  ;;  %v3185_v25 = vsel %vm651_vm0, %v3183_v9, %v3184_v19  ;;  %v14078_v6 = vpop.permute.xlu1 %4463  ;;  %v10065_v19 = vld [vmem:[#allocation13 + $0x2d4] ss:$12 sps:$4 sm:$0xff]  }
 0x459   : > { %3169 = vst.msk [vmem:[#allocation3 + $0x38] sm:$0xff] %vm2834_vm5, %v3157_v1  ;;  %3197 = vst.msk [vmem:[#allocation3 + $0x58] sm:$0xff] %vm2834_vm5, %v3185_v25  ;;  %v3483_v31 = vadd.f32 %v14018_v41, %v3417_v55  ;;  %v4470_v32 = vsel %vm2590_vm6, %v13863_v39, %v14078_v6  ;;  %v3482_v30 = vadd.f32 %v3467_v52, %v3416_v36  ;;  %v15400_v9 = vld [vmem:[#allocation128_spill] sm:$0xff]  ;;  %v3966_v61 = vpop.permute.xlu0 %3965  ;;  %v4973_v39 = vld [vmem:[#allocation3 + $0x1e0] sm:$0xff] }
 0x45a   : > { %v3154_v29 = vsel %vm643_vm3, %v3152_v60, %v3153_v7  ;;  %v3182_v46 = vsel %vm651_vm0, %v3180_v22, %v3181_v27  ;;  %v14090_v50 = vadd.f32 %v4470_v32, %v15400_v9  ;;  %v3521_v38 = vsel %vm2834_vm5, %v13410_v23, %v14034_v3  ;;  %7048 = vmatpush1.bf16.msra.mxu0 %v10058_v47  ;;  %v10063_v27 = vld [vmem:[#allocation13 + $0x2d0] ss:$12 sps:$4 sm:$0xff]   ;;  %v10070_v52 = vld [vmem:[#allocation13 + $0x2ec] ss:$12 sps:$4 sm:$0xff]  }
 0x45b   : > { %3168 = vst [vmem:[#allocation3 + $0x30] sm:$0xff] %v3154_v29  ;;  %3196 = vst [vmem:[#allocation3 + $0x50] sm:$0xff] %v3182_v46  ;;  %v3537_v58 = vadd.f32 %v14034_v3, %v3483_v31  ;;  %v3827_v41 = vadd.f32 %v3813_v62, %v3783_v18  ;;  %v5010_v7 = vpack.c.bf16 %v14029_v20, %v4962_v13  ;;  %7049 = vmatprep.subr.bf16.mxu0 %v10065_v19  ;;  %v4928_v31 = vld [vmem:[#allocation3 + $0x78] sm:$0xff] }
 0x45c   : > { %v3536_v55 = vadd.f32 %v3521_v38, %v3482_v30  ;;  %v3857_v1 = vsel %vm651_vm0, %v3855_v11, %v3856_v54  ;;  %v3647_v22 = vpop.permute.xlu1 %3646  ;;  %v5009_v25 = vpack.c.bf16 %v4973_v39, %v4961_v2  ;;  %v3587_v23 = vsel %vm2834_vm5, %v13473_v21, %v3581_v5  ;;  %v10068_v19 = vld [vmem:[#allocation13 + $0x2e8] ss:$12 sps:$4 sm:$0xff]   ;;  %v10075_v32 = vld [vmem:[#allocation13 + $0x304] ss:$12 sps:$4 sm:$0xff]  }
 0x45d   : > { %v3603_v60 = vadd.f32 %v3581_v5, %v3537_v58  ;;  %7010 = vmatprep.mubr.bf16.mxu0 %v5010_v7  ;;  %7384 = vmatprep.mubr.bf16.mxu1 %v5010_v7  ;;  %v3653_v20 = vsel %vm2834_vm5, %v13503_v49, %v3647_v22  ;;  %v3911_v11 = vsel %vm2590_vm6, %v13699_v33, %v14065_v24  ;;  %v4032_v62 = vpop.permute.xlu0 %4031  ;;  %v4927_v46 = vld [vmem:[#allocation3 + $0x70] sm:$0xff]  ;;  %v15401_v2 = vld [vmem:[#allocation127_spill] sm:$0xff] }
 0x45e   : > { %v4916_v36 = vld [vmem:[#allocation3 + $0x18] sm:$0xff]  ;;  %v3602_v18 = vadd.f32 %v3587_v23, %v3536_v55  ;;  %7011 = vmatmul.mubr.bf16.gmra.mrb[24].mxu0 %v5009_v25  ;;  %7385 = vmatmul.mubr.bf16.gmra.mrb[40].mxu1 %v5009_v25  ;;  %v3871_v13 = vadd.f32 %v3857_v1, %v3827_v41  ;;  %v3977_v21 = vsel %vm2590_vm6, %v13810_v14, %v3966_v61  ;;  %v10073_v55 = vld [vmem:[#allocation13 + $0x300] ss:$12 sps:$4 sm:$0xff]  }
 0x45f   : > { %v4988_v3 = vpack.c.bf16 %v4928_v31, %v4916_v36  ;;  %v3669_v47 = vadd.f32 %v3647_v22, %v3603_v60  ;;  %7050 = vmatpush1.bf16.msra.mxu0 %v10063_v27  ;;  %v3926_v30 = vadd.f32 %v14065_v24, %v15401_v2  ;;  %v4043_v38 = vsel %vm2590_vm6, %v13825_v43, %v4032_v62  ;;  %v10078_v60 = vld [vmem:[#allocation13 + $0x31c] ss:$12 sps:$4 sm:$0xff]   ;;  %v10105_v43 = vld [vmem:[#allocation13 + $0x3e0] ss:$12 sps:$4 sm:$0xff]  }
 0x460   : > { %v3668_v5 = vadd.f32 %v3653_v20, %v3602_v18  ;;  %7051 = vmatprep.subr.bf16.mxu0 %v10070_v52  ;;  %v4152_v29 = vpop.permute.xlu1 %4151  ;;  %v3925_v33 = vadd.f32 %v3911_v11, %v3871_v13  ;;  %v4987_v39 = vpack.c.bf16 %v4927_v46, %v14054_v40  ;;  %v10101_v24 = vld [vmem:[#allocation13 + $0x308] ss:$12 sps:$4 sm:$0xff]   ;;  %v15404_v11 = vrot.slane %v13954_v8, 5  ;;  %v10076_v46 = vld [vmem:[#allocation13 + $0x318] ss:$12 sps:$4 sm:$0xff]  }
 0x461   : > { %7053 = vmatprep.mubr.bf16.mxu0 %v4988_v3  ;;  %v3677_v49 = vadd.f32 %v3669_v47, %v13922_v34  ;;  %7425 = vmatprep.mubr.bf16.mxu1 %v4988_v3  ;;  %v14114_v41 = vpop.permute.xlu0 %4455  ;;  %v3992_v7 = vadd.f32 %v3966_v61, %v3926_v30  ;;  %v15402_v61 = vld [vmem:[#allocation35_spill] sm:$0xff]  ;;  %v15407_v30 = vrot.slane %v13961_v12, 5 }
 0x462   : > { %v3676_v58 = vadd.f32 %v3668_v5, %v13927_v45  ;;  %v3991_v14 = vadd.f32 %v3977_v21, %v3925_v33  ;;  %v4467_v27 = vsel %vm2590_vm6, %v13858_v57, %v14114_v41  ;;  %v15403_v57 = vrot.slane %v13954_v8, 4 }
 0x463   : > { %v3685_v9 = vmax.f32 %v3677_v49, 0.0  ;;  %7052 = vmatpush1.bf16.msra.mxu0 %v10068_v19  ;;  %v4058_v23 = vadd.f32 %v4032_v62, %v3992_v7  ;;  %v14121_v20 = vadd.f32 %v4467_v27, %v15402_v61  ;;  %v15405_v19 = vrot.slane %v13954_v8, 6 }
 0x464   : > { %v3684_v1 = vmax.f32 %v3676_v58, 0.0  ;;  %v4218_v31 = vpop.permute.xlu1 %4217  ;;  %7084 = vmatprep.subr.bf16.mxu0 %v10075_v32  ;;  %v4057_v52 = vadd.f32 %v4043_v38, %v3991_v14  ;;  %v10106_v32 = vld [vmem:[#allocation13 + $0x320] ss:$12 sps:$4 sm:$0xff]   ;;  %v15406_v33 = vrot.slane %v13961_v12, 4  ;;  %v10110_v38 = vld [vmem:[#allocation13 + $0x3f8] ss:$12 sps:$4 sm:$0xff]  }
 0x465   : > { %v3705_v22 = vrot.slane %v3685_v9, 4  ;;  %v3735_v25 = vrot.slane %v3685_v9, 5  ;;  %v3763_v36 = vrot.slane %v3685_v9, 6  ;;  %v4086_v13 = vpop.permute.xlu0 %4085  ;;  %v15408_v14 = vld [vmem:[#allocation101_spill] sm:$0xff]  ;;  %v15409_v27 = vrot.slane %v13961_v12, 6 }
 0x466   : > { %v3703_v3 = vrot.slane %v3684_v1, 4  ;;  %v3733_v18 = vrot.slane %v3684_v1, 5  ;;  %7054 = vmatmul.mubr.bf16.vlgmr.msra.gmra.mrb[16].mxu0 %v4987_v39  ;;  %7426 = vmatmul.mubr.bf16.vlgmr.msra.gmra.mrb[44].mxu1 %v4987_v39  ;;  %v3761_v62 = vrot.slane %v3684_v1, 6  ;;  %v4097_v5 = vsel %vm2834_vm5, %v13721_v63, %v4086_v13  ;;  %v10081_v63 = vld [vmem:[#allocation13 + $0x334] ss:$12 sps:$4 sm:$0xff]  }
 0x467   : > { %v3706_v40 = vsel %vm3694_vm7, %v15403_v57, %v3705_v22  ;;  %v3736_v47 = vsel %vm3724_vm8, %v15404_v11, %v3735_v25  ;;  %v3764_v21 = vsel %vm625_vm2, %v15405_v19, %v3763_v36  ;;  %v4112_v49 = vadd.f32 %v4086_v13, %v4058_v23  ;;  %7085 = vmatpush1.bf16.msra.mxu0 %v10073_v55  ;;  %v10079_v36 = vld [vmem:[#allocation13 + $0x330] ss:$12 sps:$4 sm:$0xff]   ;;  %v10084_v23 = vld [vmem:[#allocation13 + $0x34c] ss:$12 sps:$4 sm:$0xff]   ;;  %v10120_v19 = vld [vmem:[#allocation13 + $0x428] ss:$12 sps:$4 sm:$0xff]  }
 0x468   : > { %3723 = vst.msk [vmem:[#allocation3 + $0xd8] sm:$0xff] %vm2834_vm5, %v3706_v40  ;;  %3752 = vst.msk [vmem:[#allocation3 + $0xf8] sm:$0xff] %vm2834_vm5, %v3736_v47  ;;  %9013 = vmatpush3.bf16.msra.mxu1 %v10101_v24  ;;  %v3704_v2 = vsel %vm3694_vm7, %v15406_v33, %v3703_v3  ;;  %v3734_v58 = vsel %vm3724_vm8, %v15407_v30, %v3733_v18  ;;  %v4111_v8 = vadd.f32 %v4097_v5, %v4057_v52  ;;  %v14143_v9 = vpop.permute.xlu1 %4649  ;;  %v10082_v18 = vld [vmem:[#allocation13 + $0x348] ss:$12 sps:$4 sm:$0xff]   ;;  %v10116_v11 = vld [vmem:[#allocation13 + $0x350] ss:$12 sps:$4 sm:$0xff]  }
 0x469   : > { %3780 = vst.msk [vmem:[#allocation3 + $0x118] sm:$0xff] %vm2834_vm5, %v3764_v21  ;;  %7086 = vmatprep.subr.bf16.mxu0 %v10078_v60  ;;  %9014 = vmatprep.subr.bf16.mxu1 %v10105_v43  ;;  %v4344_v7 = vmul.f32 %v15376_v51, %v15408_v14  ;;  %3751 = vst [vmem:[#allocation3 + $0xf0] sm:$0xff] %v3734_v58  ;;  %v3762_v39 = vsel %vm625_vm2, %v15409_v27, %v3761_v62  ;;  %v14152_v22 = vpop.permute.xlu0 %3907  ;;  %v10111_v43 = vld [vmem:[#allocation13 + $0x338] ss:$12 sps:$4 sm:$0xff]   ;;  %v10085_v58 = vld [vmem:[#allocation13 + $0x360] ss:$12 sps:$4 sm:$0xff]  }
 0x46a   : > { %v4163_v55 = vsel %vm2834_vm5, %v13841_v10, %v4152_v29  ;;  %v4178_v24 = vadd.f32 %v4152_v29, %v4112_v49  ;;  %3779 = vst [vmem:[#allocation3 + $0x110] sm:$0xff] %v3762_v39  ;;  %v4229_v60 = vsel %vm2834_vm5, %v13852_v53, %v4218_v31  ;;  %v10115_v10 = vld [vmem:[#allocation13 + $0x410] ss:$12 sps:$4 sm:$0xff]  }
 0x46b   : > { %v4177_v1 = vadd.f32 %v4163_v55, %v4111_v8  ;;  %7087 = vmatpush1.bf16.msra.mxu0 %v10076_v46  ;;  %v15410_v29 = vld [vmem:[#allocation126_spill] sm:$0xff]  ;;  %v10087_v62 = vld [vmem:[#allocation13 + $0x364] ss:$12 sps:$4 sm:$0xff]  }
 0x46c   : > { %v4244_v25 = vadd.f32 %v4218_v31, %v4178_v24  ;;  %9015 = vmatpush3.bf16.msra.mxu1 %v10106_v32  ;;  %v14156_v12 = vpop.permute.xlu1 %4093  ;;  %7088 = vmatprep.subr.bf16.mxu0 %v10081_v63  ;;  %v15411_v61 = vrot.slane %v15410_v29, 1  ;;  %v15412_v21 = vld [vmem:[#allocation71_spill] sm:$0xff]  ;;  %v10121_v8 = vld [vmem:[#allocation13 + $0x368] ss:$12 sps:$4 sm:$0xff]   ;;  %v4656_v24 = vsel %vm2834_vm5, %v13868_v4, %v14143_v9 }
 0x46d   : > { %v4243_v52 = vadd.f32 %v4229_v60, %v4177_v1  ;;  %9016 = vmatprep.subr.bf16.mxu1 %v10110_v38  ;;  %v15413_v5 = vrot.slane %v15412_v21, 2  ;;  %v10090_v14 = vld [vmem:[#allocation13 + $0x37c] ss:$12 sps:$4 sm:$0xff]   ;;  %v10088_v1 = vld [vmem:[#allocation13 + $0x378] ss:$12 sps:$4 sm:$0xff]   ;;  %v3787_v60 = vmul.f32 %v15237_v17, %v15395_v15 }
 0x46e   : > { %v4388_v3 = vadd.f32 %v15411_v61, %v4344_v7  ;;  %v4252_v57 = vadd.f32 %v4244_v25, %v13922_v34  ;;  %v10125_v7 = vld [vmem:[#allocation13 + $0x440] ss:$12 sps:$4 sm:$0xff]   ;;  %v15414_v39 = vld [vmem:[#allocation90_spill] sm:$0xff] }
 0x46f   : > { %v4251_v40 = vadd.f32 %v4243_v52, %v13927_v45  ;;  %v14162_v53 = vpop.permute.xlu0 %3973  ;;  %7089 = vmatpush1.bf16.msra.mxu0 %v10079_v36  ;;  %v4940_v36 = vld [vmem:[#allocation3 + $0xd8] sm:$0xff]  ;;  %v10126_v61 = vld [vmem:[#allocation13 + $0x380] ss:$12 sps:$4 sm:$0xff]   ;;  %v10130_v15 = vld [vmem:[#allocation13 + $0x458] ss:$12 sps:$4 sm:$0xff]  }
 0x470   : > { %v14164_v31 = vmax.f32 %v4252_v57, 0.0  ;;  %9017 = vmatpush3.bf16.msra.mxu1 %v10111_v43  ;;  %7090 = vmatprep.subr.bf16.mxu0 %v10084_v23  ;;  %v4432_v49 = vadd.f32 %v15413_v5, %v4388_v3  ;;  %v10093_v52 = vld [vmem:[#allocation13 + $0x394] ss:$12 sps:$4 sm:$0xff]   ;;  %v10091_v17 = vld [vmem:[#allocation13 + $0x390] ss:$12 sps:$4 sm:$0xff]  }
 0x471   : > { %v14166_v47 = vmax.f32 %v4251_v40, 0.0  ;;  %v4530_v13 = vpop.permute.xlu1 %4529  ;;  %9018 = vmatprep.subr.bf16.mxu1 %v10115_v10  ;;  %v15415_v23 = vld [vmem:[#allocation122_spill] sm:$0xff]  ;;  %v3831_v40 = vadd.f32 %v3812_v44, %v3787_v60 }
 0x472   : > { %4268 = vst.msk [vmem:[#allocation3 + $0x138] sm:$0xff] %vm2834_vm5, %v14164_v31  ;;  %v4536_v46 = vsel %vm2590_vm6, %v13874_v59, %v4530_v13  ;;  %v4486_v30 = vadd.f32 %v14078_v6, %v4432_v49  ;;  %v15416_v10 = vrot.slane %v15415_v23, 1  ;;  %v3914_v49 = vsel %vm2590_vm6, %v13744_v48, %v14152_v22 }
 0x473   : > { %v14174_v32 = vpop.permute.xlu0 %4641  ;;  %v4999_v33 = vpack.c.bf16 %v14166_v47, %v3704_v2  ;;  %7091 = vmatpush1.bf16.msra.mxu0 %v10082_v18  ;;  %v4551_v63 = vadd.f32 %v4536_v46, %v14090_v50  ;;  %v3788_v2 = vmul.f32 %v15376_v51, %v15414_v39  ;;  %v10094_v46 = vld [vmem:[#allocation13 + $0x3a8] ss:$12 sps:$4 sm:$0xff]  }
 0x474   : > { %9019 = vmatpush3.bf16.msra.mxu1 %v10116_v11  ;;  %7092 = vmatprep.subr.bf16.mxu0 %v10087_v62  ;;  %v4552_v27 = vadd.f32 %v4530_v13, %v4486_v30  ;;  %v10096_v11 = vld [vmem:[#allocation13 + $0x3ac] ss:$12 sps:$4 sm:$0xff]   ;;  %v15417_v62 = vld [vmem:[#allocation123_spill] sm:$0xff]  ;;  %v3875_v30 = vadd.f32 %v3856_v54, %v3831_v40 }
 0x475   : > { %v4596_v38 = vpop.permute.xlu1 %4595  ;;  %9020 = vmatprep.subr.bf16.mxu1 %v10120_v19  ;;  %v3832_v29 = vadd.f32 %v15416_v10, %v3788_v2  ;;  %v15418_v19 = vrot.slane %v15417_v62, 2  ;;  %v10136_v54 = vld [vmem:[#allocation13 + $0x3b0] ss:$12 sps:$4 sm:$0xff]   ;;  %v10140_v2 = vld [vmem:[#allocation13 + $0x548] ss:$12 sps:$4 sm:$0xff]  }
 0x476   : > { %v4602_v59 = vsel %vm2590_vm6, %v13879_v16, %v4596_v38  ;;  %v4618_v50 = vadd.f32 %v4596_v38, %v4552_v27  ;;  %v15424_v40 = vld [vmem:[#allocation59_spill] sm:$0xff] }
 0x477   : > { %v4617_v55 = vadd.f32 %v4602_v59, %v4551_v63  ;;  %7093 = vmatpush1.bf16.msra.mxu0 %v10085_v58  ;;  %v15419_v63 = vld [vmem:[#allocation130_spill] sm:$0xff] }
 0x478   : > { %v14183_v6 = vpop.permute.xlu0 %4039  ;;  %9021 = vmatpush3.bf16.msra.mxu1 %v10121_v8  ;;  %7094 = vmatprep.subr.bf16.mxu0 %v10090_v14  ;;  %v4672_v3 = vadd.f32 %v14143_v9, %v4618_v50  ;;  %v3876_v9 = vadd.f32 %v15418_v19, %v3832_v29  ;;  %v10099_v8 = vld [vmem:[#allocation13 + $0x3c4] ss:$12 sps:$4 sm:$0xff]   ;;  %v4482_v48 = vadd.f32 %v14114_v41, %v15419_v63  ;;  %v15420_v41 = vld [vmem:[#allocation38_spill] sm:$0xff] }
 0x479   : > { %v14190_v25 = vpop.permute.xlu1 %4707  ;;  %v4671_v16 = vadd.f32 %v4656_v24, %v4617_v55  ;;  %v4952_v51 = vld [vmem:[#allocation3 + $0x138] sm:$0xff]  ;;  %9022 = vmatprep.subr.bf16.mxu1 %v10125_v7  ;;  %v10104_v24 = vld [vmem:[#allocation13 + $0x3dc] ss:$12 sps:$4 sm:$0xff]   ;;  %v10102_v29 = vld [vmem:[#allocation13 + $0x3d8] ss:$12 sps:$4 sm:$0xff]  }
 0x47a   : > { %v5000_v43 = vpack.c.bf16 %v4952_v51, %v4940_v36  ;;  %v3930_v58 = vadd.f32 %v14152_v22, %v3876_v9  ;;  %v4046_v22 = vsel %vm2590_vm6, %v13785_v56, %v14183_v6 }
 0x47b   : > { %7095 = vmatpush1.bf16.msra.mxu0 %v10088_v1 }
 0x47c   : > { %v4716_v4 = vpop.permute.xlu0 %4715  ;;  %7063 = vmatprep.mubr.bf16.mxu0 %v5000_v43  ;;  %7433 = vmatprep.mubr.bf16.mxu1 %v5000_v43  ;;  %v3996_v14 = vadd.f32 %v14162_v53, %v3930_v58  ;;  %v10114_v58 = vld [vmem:[#allocation13 + $0x40c] ss:$12 sps:$4 sm:$0xff]  }
 0x47d   : > { %v4722_v57 = vsel %vm2834_vm5, %v13884_v37, %v4716_v4  ;;  %7064 = vmatmul.mubr.bf16.gmra.mrb[20].mxu0 %v4999_v33  ;;  %v4738_v13 = vadd.f32 %v4716_v4, %v4672_v3  ;;  %7434 = vmatmul.mubr.bf16.gmra.mrb[48].mxu1 %v4999_v33  ;;  %v10131_v37 = vld [vmem:[#allocation13 + $0x398] ss:$12 sps:$4 sm:$0xff]   ;;  %v10135_v33 = vld [vmem:[#allocation13 + $0x470] ss:$12 sps:$4 sm:$0xff]   ;;  %v10109_v3 = vld [vmem:[#allocation13 + $0x3f4] ss:$12 sps:$4 sm:$0xff]  }
 0x47e   : > { %v4782_v18 = vpop.permute.xlu1 %4781  ;;  %7096 = vmatprep.subr.bf16.mxu0 %v10093_v52  ;;  %v4737_v21 = vadd.f32 %v4722_v57, %v4671_v16  ;;  %9023 = vmatpush3.bf16.msra.mxu1 %v10126_v61  ;;  %v4062_v1 = vadd.f32 %v14183_v6, %v3996_v14  ;;  %v15422_v52 = vld [vmem:[#allocation69_spill] sm:$0xff] }
 0x47f   : > { %v4788_v0 = vsel %vm2834_vm5, %v13891_v28, %v4782_v18  ;;  %7097 = vmatpush1.bf16.msra.mxu0 %v10091_v17  ;;  %9024 = vmatprep.subr.bf16.mxu1 %v10130_v15  ;;  %v3980_v28 = vsel %vm2590_vm6, %v13773_v42, %v14162_v53  ;;  %v4804_v38 = vadd.f32 %v4782_v18, %v4738_v13  ;;  %v10097_v42 = vld [vmem:[#allocation13 + $0x3c0] ss:$12 sps:$4 sm:$0xff]  }
 0x480   : > { %v4522_v5 = vpop.permute.xlu0 %4521  ;;  %7098 = vmatprep.subr.bf16.mxu0 %v10096_v11  ;;  %v4803_v7 = vadd.f32 %v4788_v0, %v4737_v21  ;;  %v4719_v23 = vsel %vm2834_vm5, %v15422_v52, %v14190_v25  ;;  %v15423_v6 = vld [vmem:[#allocation89_spill] sm:$0xff]  ;;  %v4116_v11 = vadd.f32 %v14156_v12, %v4062_v1  ;;  %v4318_v21 = vrot.slane %v14164_v31, 2 }
 0x481   : > { %v4533_v44 = vsel %vm2590_vm6, %v13902_v26, %v4522_v5  ;;  %v3929_v26 = vadd.f32 %v3914_v49, %v3875_v30  ;;  %v4548_v59 = vadd.f32 %v4522_v5, %v4482_v48  ;;  %v4812_v56 = vadd.f32 %v4804_v38, %v13922_v34 }
 0x482   : > { %v4547_v27 = vadd.f32 %v4533_v44, %v14121_v20  ;;  %9025 = vmatpush3.bf16.msra.mxu1 %v10131_v37  ;;  %v15421_v20 = vld [vmem:[#allocation92_spill] sm:$0xff]  ;;  %v4811_v36 = vadd.f32 %v4803_v7, %v13927_v45  ;;  %v4100_v4 = vsel %vm2834_vm5, %v15423_v6, %v14156_v12  ;;  %v4226_v17 = vpop.permute.xlu1 %4225  ;;  %v15425_v37 = vld [vmem:[#allocation97_spill] sm:$0xff]  ;;  %v4287_v44 = vrot.slane %v14166_v47, 1 }
 0x483   : > { %7099 = vmatpush1.bf16.msra.mxu0 %v10094_v46  ;;  %9026 = vmatprep.subr.bf16.mxu1 %v10135_v33  ;;  %v3995_v55 = vadd.f32 %v3980_v28, %v3929_v26  ;;  %v4653_v50 = vsel %vm2834_vm5, %v15421_v20, %v14174_v32  ;;  %v4820_v57 = vmax.f32 %v4812_v56, 0.0  ;;  %v15426_v46 = vld [vmem:[#allocation53_spill] sm:$0xff]  ;;  %v4315_v52 = vrot.slane %v14166_v47, 2  ;;  %v10124_v6 = vld [vmem:[#allocation13 + $0x43c] ss:$12 sps:$4 sm:$0xff]  }
 0x484   : > { %v4588_v35 = vpop.permute.xlu0 %4587  ;;  %7100 = vmatprep.subr.bf16.mxu0 %v10099_v8  ;;  %v4819_v13 = vmax.f32 %v4811_v36, 0.0  ;;  %v4232_v12 = vsel %vm2834_vm5, %v15426_v46, %v4226_v17 }
 0x485   : > { %v4599_v39 = vsel %vm2590_vm6, %v15420_v41, %v4588_v35  ;;  %v4614_v60 = vadd.f32 %v4588_v35, %v4548_v59  ;;  %v4061_v16 = vadd.f32 %v4046_v22, %v3995_v55  ;;  %v4839_v8 = vrot.slane %v4820_v57, 4  ;;  %v10112_v59 = vld [vmem:[#allocation13 + $0x408] ss:$12 sps:$4 sm:$0xff]   ;;  %v10119_v55 = vld [vmem:[#allocation13 + $0x424] ss:$12 sps:$4 sm:$0xff]  }
 0x486   : > { %v4613_v53 = vadd.f32 %v4599_v39, %v4547_v27  ;;  %9027 = vmatpush3.bf16.msra.mxu1 %v10136_v54  ;;  %v4867_v63 = vrot.slane %v4820_v57, 5  ;;  %v4837_v38 = vrot.slane %v4819_v13, 4  ;;  %v4895_v26 = vrot.slane %v4820_v57, 6  ;;  %v10122_v57 = vld [vmem:[#allocation13 + $0x438] ss:$12 sps:$4 sm:$0xff]  }
 0x487   : > { %v4668_v10 = vadd.f32 %v14174_v32, %v4614_v60  ;;  %7101 = vmatpush1.bf16.msra.mxu0 %v10097_v42  ;;  %9046 = vmatprep.subr.bf16.mxu1 %v10140_v2  ;;  %v4290_v32 = vrot.slane %v14164_v31, 1  ;;  %v4115_v9 = vadd.f32 %v4100_v4, %v4061_v16  ;;  %v4865_v27 = vrot.slane %v4819_v13, 5 }
 0x488   : > { %v4667_v51 = vadd.f32 %v4653_v50, %v4613_v53  ;;  %v4774_v43 = vpop.permute.xlu0 %4773  ;;  %7102 = vmatprep.subr.bf16.mxu0 %v10104_v24  ;;  %v4893_v35 = vrot.slane %v4819_v13, 6  ;;  %v10127_v13 = vld [vmem:[#allocation13 + $0x450] ss:$12 sps:$4 sm:$0xff]  }
 0x489   : > { %v4734_v15 = vadd.f32 %v14190_v25, %v4668_v10  ;;  %v4785_v18 = vsel %vm2834_vm5, %v15424_v40, %v4774_v43  ;;  %v10107_v25 = vld [vmem:[#allocation13 + $0x3f0] ss:$12 sps:$4 sm:$0xff]  }
 0x48a   : > { %v4733_v61 = vadd.f32 %v4719_v23, %v4667_v51 }
 0x48b   : > { %v4800_v5 = vadd.f32 %v4774_v43, %v4734_v15  ;;  %7103 = vmatpush1.bf16.msra.mxu0 %v10102_v29  ;;  %v10117_v43 = vld [vmem:[#allocation13 + $0x420] ss:$12 sps:$4 sm:$0xff]  }
 0x48c   : > { %v4799_v62 = vadd.f32 %v4785_v18, %v4733_v61  ;;  %v4160_v19 = vpop.permute.xlu0 %4159  ;;  %7104 = vmatprep.subr.bf16.mxu0 %v10109_v3 }
 0x48d   : > { %v4166_v49 = vsel %vm2834_vm5, %v15425_v37, %v4160_v19  ;;  %v4182_v0 = vadd.f32 %v4160_v19, %v4116_v11  ;;  %v4808_v48 = vadd.f32 %v4800_v5, %v13922_v34  ;;  %v4930_v11 = vld [vmem:[#allocation3 + $0x88] sm:$0xff]  ;;  %v10134_v19 = vld [vmem:[#allocation13 + $0x46c] ss:$12 sps:$4 sm:$0xff]  }
 0x48e   : > { %v4807_v33 = vadd.f32 %v4799_v62, %v13927_v45  ;;  %v4181_v30 = vadd.f32 %v4166_v49, %v4115_v9  ;;  %v4918_v62 = vld [vmem:[#allocation3 + $0x28] sm:$0xff]  ;;  %v4929_v37 = vld [vmem:[#allocation3 + $0x80] sm:$0xff] }
 0x48f   : > { %v4248_v28 = vadd.f32 %v4226_v17, %v4182_v0  ;;  %v4816_v54 = vmax.f32 %v4808_v48, 0.0  ;;  %7105 = vmatpush1.bf16.msra.mxu0 %v10107_v25  ;;  %v10129_v17 = vld [vmem:[#allocation13 + $0x454] ss:$12 sps:$4 sm:$0xff]   ;;  %v4990_v9 = vpack.c.bf16 %v4930_v11, %v4918_v62  ;;  %v10139_v5 = vld [vmem:[#allocation13 + $0x484] ss:$12 sps:$4 sm:$0xff]   ;;  %v4917_v49 = vld [vmem:[#allocation3 + $0x20] sm:$0xff] }
 0x490   : > { %v4815_v14 = vmax.f32 %v4807_v33, 0.0  ;;  %v4247_v7 = vadd.f32 %v4232_v12, %v4181_v30  ;;  %7106 = vmatprep.subr.bf16.mxu0 %v10114_v58  ;;  %v10137_v0 = vld [vmem:[#allocation13 + $0x480] ss:$12 sps:$4 sm:$0xff]   ;;  %v10141_v25 = vld [vmem:[#allocation13 + $0x488] ss:$12 sps:$4 sm:$0xff]   ;;  %v4989_v46 = vpack.c.bf16 %v4929_v37, %v4917_v49 }
 0x491   : > { %v4256_v22 = vadd.f32 %v4248_v28, %v13922_v34  ;;  %v4832_v53 = vrot.slane %v4816_v54, 4  ;;  %v4860_v24 = vrot.slane %v4816_v54, 5  ;;  %v4888_v20 = vrot.slane %v4816_v54, 6  ;;  %v4942_v12 = vld [vmem:[#allocation3 + $0xe8] sm:$0xff]  ;;  %v10144_v33 = vld [vmem:[#allocation13 + $0x49c] ss:$12 sps:$4 sm:$0xff]  }
 0x492   : > { %v4831_v41 = vrot.slane %v4815_v14, 4  ;;  %v4859_v39 = vrot.slane %v4815_v14, 5  ;;  %v4887_v42 = vrot.slane %v4815_v14, 6  ;;  %v4255_v2 = vadd.f32 %v4247_v7, %v13927_v45  ;;  %v10145_v30 = vld [vmem:[#allocation13 + $0x560] ss:$12 sps:$4 sm:$0xff]   ;;  %v4941_v14 = vld [vmem:[#allocation3 + $0xe0] sm:$0xff] }
 0x493   : > { %v4264_v50 = vmax.f32 %v4256_v22, 0.0  ;;  %v4840_v16 = vsel %vm3694_vm7, %v4832_v53, %v4839_v8  ;;  %4852 = vst.msk [vmem:[#allocation3 + $0x198] sm:$0xf0] %vm3718_vm9, %v4832_v53  ;;  %v4868_v45 = vsel %vm3724_vm8, %v4860_v24, %v4867_v63  ;;  %4880 = vst.msk [vmem:[#allocation3 + $0x1b8] sm:$0xf0] %vm3718_vm9, %v4860_v24  ;;  %v4896_v36 = vsel %vm625_vm2, %v4888_v20, %v4895_v26  ;;  %v4965_v53 = vld [vmem:[#allocation3 + $0x1a0] sm:$0xff] }
 0x494   : > { %v4838_v1 = vsel %vm3694_vm7, %v4831_v41, %v4837_v38  ;;  %v14253_v56 = vsel %vm3724_vm8, %v4859_v39, %v4865_v27  ;;  %4879 = vst [vmem:[#allocation3 + $0x1b0] sm:$0xf0] %v4859_v39  ;;  %v4894_v34 = vsel %vm625_vm2, %v4887_v42, %v4893_v35  ;;  %4907 = vst [vmem:[#allocation3 + $0x1d0] sm:$0xf0] %v4887_v42  ;;  %v4263_v60 = vmax.f32 %v4255_v2, 0.0  ;;  %v4953_v38 = vld [vmem:[#allocation3 + $0x140] sm:$0xff] }
 0x495   : > { %4851 = vst [vmem:[#allocation3 + $0x190] sm:$0xf0] %v4831_v41  ;;  %4908 = vst.msk [vmem:[#allocation3 + $0x1d8] sm:$0xf0] %vm3718_vm9, %v4888_v20  ;;  %v4291_v51 = vrot.slane %v4264_v50, 1  ;;  %7107 = vmatpush1.bf16.msra.mxu0 %v10112_v59  ;;  %v4319_v29 = vrot.slane %v4264_v50, 2  ;;  %v5001_v54 = vpack.c.bf16 %v4953_v38, %v4941_v14 }
 0x496   : > { %4911 = vst [vmem:[#allocation3 + $0x230] sm:$0xff] %v4894_v34  ;;  %4272 = vst.msk [vmem:[#allocation3 + $0x198] sm:$0xf] %vm3136_vm10, %v4264_v50  ;;  %v4288_v23 = vrot.slane %v4263_v60, 1  ;;  %v4316_v10 = vrot.slane %v4263_v60, 2  ;;  %7108 = vmatprep.subr.bf16.mxu0 %v10119_v55  ;;  %v4966_v27 = vld [vmem:[#allocation3 + $0x1a8] sm:$0xff] }
 0x497   : > { %4856 = vst.msk [vmem:[#allocation3 + $0x1f8] sm:$0xff] %vm2834_vm5, %v4840_v16  ;;  %4884 = vst.msk [vmem:[#allocation3 + $0x218] sm:$0xff] %vm2834_vm5, %v4868_v45  ;;  %v4292_v4 = vsel %vm643_vm3, %v4290_v32, %v4291_v51  ;;  %v4320_v3 = vsel %vm651_vm0, %v4318_v21, %v4319_v29  ;;  %v10132_v21 = vld [vmem:[#allocation13 + $0x468] ss:$12 sps:$4 sm:$0xff]   ;;  %v10142_v8 = vld [vmem:[#allocation13 + $0x498] ss:$12 sps:$4 sm:$0xff]  }
 0x498   : > { %4912 = vst.msk [vmem:[#allocation3 + $0x238] sm:$0xff] %vm2834_vm5, %v4896_v36  ;;  %4271 = vst [vmem:[#allocation3 + $0x190] sm:$0xf] %v4263_v60  ;;  %v14272_v47 = vsel %vm643_vm3, %v4287_v44, %v4288_v23  ;;  %v4317_v61 = vsel %vm651_vm0, %v4315_v52, %v4316_v10  ;;  %v4954_v44 = vld [vmem:[#allocation3 + $0x148] sm:$0xff]  ;;  %v10147_v26 = vld [vmem:[#allocation13 + $0x4b0] ss:$12 sps:$4 sm:$0xff]  }
 0x499   : > { %4308 = vst.msk [vmem:[#allocation3 + $0x1b8] sm:$0xf] %vm3136_vm10, %v4291_v51  ;;  %4307 = vst [vmem:[#allocation3 + $0x1b0] sm:$0xf] %v4288_v23  ;;  %7109 = vmatpush1.bf16.msra.mxu0 %v10117_v43  ;;  %v5002_v58 = vpack.c.bf16 %v4954_v44, %v4942_v12  ;;  %v10146_v63 = vld [vmem:[#allocation13 + $0x4a0] ss:$12 sps:$4 sm:$0xff]  }
 0x49a   : > { %4304 = vst.msk [vmem:[#allocation3 + $0x158] sm:$0xff] %vm2834_vm5, %v4292_v4  ;;  %4335 = vst [vmem:[#allocation3 + $0x1d0] sm:$0xf] %v4316_v10  ;;  %7110 = vmatprep.subr.bf16.mxu0 %v10124_v6  ;;  %v10149_v48 = vld [vmem:[#allocation13 + $0x4b4] ss:$12 sps:$4 sm:$0xff]   ;;  %v4977_v24 = vld [vmem:[#allocation3 + $0x200] sm:$0xff] }
 0x49b   : > { %4336 = vst.msk [vmem:[#allocation3 + $0x1d8] sm:$0xf] %vm3136_vm10, %v4319_v29  ;;  %4331 = vst [vmem:[#allocation3 + $0x170] sm:$0xff] %v4317_v61  ;;  %v10150_v28 = vld [vmem:[#allocation13 + $0x578] ss:$12 sps:$4 sm:$0xff]   ;;  %v5013_v34 = vpack.c.bf16 %v4977_v24, %v4965_v53  ;;  %v4932_v60 = vld [vmem:[#allocation3 + $0x98] sm:$0xff] }
 0x49c   : > { %4332 = vst.msk [vmem:[#allocation3 + $0x178] sm:$0xff] %vm2834_vm5, %v4320_v3  ;;  %v10151_v7 = vld [vmem:[#allocation13 + $0x4b8] ss:$12 sps:$4 sm:$0xff]   ;;  %v10155_v59 = vld [vmem:[#allocation13 + $0x590] ss:$12 sps:$4 sm:$0xff]   ;;  %v4931_v11 = vld [vmem:[#allocation3 + $0x90] sm:$0xff] }
 0x49d   : > { %v4964_v15 = vld [vmem:[#allocation3 + $0x198] sm:$0xff]  ;;  %7111 = vmatpush1.bf16.msra.mxu0 %v10122_v57  ;;  %v4978_v35 = vld [vmem:[#allocation3 + $0x208] sm:$0xff]  ;;  %v10154_v22 = vld [vmem:[#allocation13 + $0x4cc] ss:$12 sps:$4 sm:$0xff]  }
 0x49e   : > { %v4976_v40 = vld [vmem:[#allocation3 + $0x1f8] sm:$0xff]  ;;  %7112 = vmatprep.subr.bf16.mxu0 %v10129_v17  ;;  %v5014_v41 = vpack.c.bf16 %v4978_v35, %v4966_v27  ;;  %v10157_v20 = vld [vmem:[#allocation13 + $0x4e0] ss:$12 sps:$4 sm:$0xff]   ;;  %v10164_v16 = vld [vmem:[#allocation13 + $0x4fc] ss:$12 sps:$4 sm:$0xff]  }
 0x49f   : > { %v4963_v18 = vld [vmem:[#allocation3 + $0x190] sm:$0xff]  ;;  %v5012_v32 = vpack.c.bf16 %v4976_v40, %v4964_v15  ;;  %v10156_v42 = vld [vmem:[#allocation13 + $0x4d0] ss:$12 sps:$4 sm:$0xff]   ;;  %v10162_v51 = vld [vmem:[#allocation13 + $0x4f8] ss:$12 sps:$4 sm:$0xff]  }
 0x4a0   : > { %v5011_v31 = vpack.c.bf16 %v4838_v1, %v4963_v18  ;;  %v10152_v39 = vld [vmem:[#allocation13 + $0x4c8] ss:$12 sps:$4 sm:$0xff]   ;;  %v10159_v2 = vld [vmem:[#allocation13 + $0x4e4] ss:$12 sps:$4 sm:$0xff]   ;;  %v10165_v45 = vld [vmem:[#allocation13 + $0x5c0] ss:$12 sps:$4 sm:$0xff]  }
 0x4a1   : > { %7073 = vmatprep.mubr.bf16.mxu0 %v5012_v32  ;;  %7441 = vmatprep.mubr.bf16.mxu1 %v5012_v32  ;;  %v10160_v55 = vld [vmem:[#allocation13 + $0x5a8] ss:$12 sps:$4 sm:$0xff]   ;;  %v10166_v43 = vld [vmem:[#allocation13 + $0x500] ss:$12 sps:$4 sm:$0xff]   ;;  %v10170_v23 = vld [vmem:[#allocation13 + $0x5d8] ss:$12 sps:$4 sm:$0xff]  }
 0x4a2   : > { %7074 = vmatmul.mubr.bf16.gmra.mrb[24].mxu0 %v5011_v31  ;;  %7442 = vmatmul.mubr.bf16.gmra.mrb[52].mxu1 %v5011_v31  ;;  %v10161_v50 = vld [vmem:[#allocation13 + $0x4e8] ss:$12 sps:$4 sm:$0xff]   ;;  %v10167_v10 = vld [vmem:[#allocation13 + $0x510] ss:$12 sps:$4 sm:$0xff]   ;;  %v10171_v29 = vld [vmem:[#allocation13 + $0x518] ss:$12 sps:$4 sm:$0xff]  }
 0x4a3   : > { %7113 = vmatpush1.bf16.msra.mxu0 %v10127_v13  ;;  %7116 = vmatprep.mubr.bf16.mxu0 %v4990_v9  ;;  %v4920_v1 = vld [vmem:[#allocation3 + $0x38] sm:$0xff]  ;;  %v10174_v6 = vld [vmem:[#allocation13 + $0x52c] ss:$12 sps:$4 sm:$0xff]   ;;  %v10184_v62 = vld [vmem:[#allocation13 + $0x55c] ss:$12 sps:$4 sm:$0xff]  }
 0x4a4   : > { %7482 = vmatprep.mubr.bf16.mxu1 %v4990_v9  ;;  %7114 = vmatprep.subr.bf16.mxu0 %v10134_v19  ;;  %v4992_v36 = vpack.c.bf16 %v4932_v60, %v4920_v1  ;;  %v10169_v52 = vld [vmem:[#allocation13 + $0x514] ss:$12 sps:$4 sm:$0xff]   ;;  %v10175_v4 = vld [vmem:[#allocation13 + $0x5f0] ss:$12 sps:$4 sm:$0xff]   ;;  %v4919_v15 = vld [vmem:[#allocation3 + $0x30] sm:$0xff] }
 0x4a5   : > { %v10172_v61 = vld [vmem:[#allocation13 + $0x528] ss:$12 sps:$4 sm:$0xff]   ;;  %v10176_v3 = vld [vmem:[#allocation13 + $0x530] ss:$12 sps:$4 sm:$0xff]   ;;  %v10177_v18 = vld [vmem:[#allocation13 + $0x540] ss:$12 sps:$4 sm:$0xff]   ;;  %v14281_v32 = vpack.c.bf16 %v4931_v11, %v4919_v15 }
 0x4a6   : > { %v10179_v57 = vld [vmem:[#allocation13 + $0x544] ss:$12 sps:$4 sm:$0xff]   ;;  %v10180_v17 = vld [vmem:[#allocation13 + $0x6c8] ss:$12 sps:$4 sm:$0xff]   ;;  %v10185_v9 = vld [vmem:[#allocation13 + $0x6e0] ss:$12 sps:$4 sm:$0xff]  }
 0x4a7   : > { %7115 = vmatpush1.bf16.msra.mxu0 %v10132_v21  ;;  %v4956_v40 = vld [vmem:[#allocation3 + $0x158] sm:$0xff]  ;;  %v10182_v21 = vld [vmem:[#allocation13 + $0x558] ss:$12 sps:$4 sm:$0xff]   ;;  %v4943_v44 = vld [vmem:[#allocation3 + $0xf0] sm:$0xff] }
 0x4a8   : > { %7147 = vmatprep.subr.bf16.mxu0 %v10139_v5  ;;  %v4944_v13 = vld [vmem:[#allocation3 + $0xf8] sm:$0xff]  ;;  %v10186_v5 = vld [vmem:[#allocation13 + $0x620] ss:$12 sps:$4 sm:$0xff]   ;;  %v10190_v49 = vld [vmem:[#allocation13 + $0x6f8] ss:$12 sps:$4 sm:$0xff]  }
 0x4a9   : > { %v10181_v31 = vld [vmem:[#allocation13 + $0x608] ss:$12 sps:$4 sm:$0xff]   ;;  %v14283_v19 = vpack.c.bf16 %v4956_v40, %v4944_v13  ;;  %v10197_v14 = vld [vmem:[#allocation13 + $0x5a0] ss:$12 sps:$4 sm:$0xff]   ;;  %v10215_v24 = vld [vmem:[#allocation13 + $0x770] ss:$12 sps:$4 sm:$0xff]  }
 0x4aa   : > { %7117 = vmatmul.mubr.bf16.vlgmr.msra.gmra.mrb[16].mxu0 %v4989_v46  ;;  %7483 = vmatmul.mubr.bf16.vlgmr.msra.gmra.mrb[56].mxu1 %v4989_v46  ;;  %v10189_v37 = vld [vmem:[#allocation13 + $0x574] ss:$12 sps:$4 sm:$0xff]   ;;  %v14288_v46 = vpack.c.bf16 %v14272_v47, %v4943_v44  ;;  %v4967_v47 = vld [vmem:[#allocation3 + $0x1b0] sm:$0xff]  ;;  %v10219_v1 = vld [vmem:[#allocation13 + $0x604] ss:$12 sps:$4 sm:$0xff]  }
 0x4ab   : > { %7148 = vmatpush1.bf16.msra.mxu0 %v10137_v0  ;;  %9047 = vmatpush3.bf16.msra.mxu1 %v10141_v25  ;;  %v4968_v0 = vld [vmem:[#allocation3 + $0x1b8] sm:$0xff]  ;;  %v4922_v35 = vld [vmem:[#allocation3 + $0x48] sm:$0xff]  ;;  %v10214_v53 = vld [vmem:[#allocation13 + $0x5ec] ss:$12 sps:$4 sm:$0xff]  }
 0x4ac   : > { %7126 = vmatprep.mubr.bf16.mxu0 %v5002_v58  ;;  %7490 = vmatprep.mubr.bf16.mxu1 %v5002_v58  ;;  %v10187_v25 = vld [vmem:[#allocation13 + $0x570] ss:$12 sps:$4 sm:$0xff]   ;;  %v10200_v38 = vld [vmem:[#allocation13 + $0x728] ss:$12 sps:$4 sm:$0xff]   ;;  %v4982_v15 = vld [vmem:[#allocation3 + $0x228] sm:$0xff] }
 0x4ad   : > { %7149 = vmatprep.subr.bf16.mxu0 %v10144_v33  ;;  %9048 = vmatprep.subr.bf16.mxu1 %v10145_v30  ;;  %v4980_v12 = vld [vmem:[#allocation3 + $0x218] sm:$0xff]  ;;  %v10191_v33 = vld [vmem:[#allocation13 + $0x638] ss:$12 sps:$4 sm:$0xff]  }
 0x4ae   : > { %v10194_v30 = vld [vmem:[#allocation13 + $0x58c] ss:$12 sps:$4 sm:$0xff]   ;;  %v14290_v58 = vpack.c.bf16 %v4980_v12, %v4968_v0  ;;  %v10201_v27 = vld [vmem:[#allocation13 + $0x668] ss:$12 sps:$4 sm:$0xff]   ;;  %v10227_v40 = vld [vmem:[#allocation13 + $0x630] ss:$12 sps:$4 sm:$0xff]  }
 0x4af   : > { %7150 = vmatpush1.bf16.msra.mxu0 %v10142_v8  ;;  %9049 = vmatpush3.bf16.msra.mxu1 %v10146_v63  ;;  %v10195_v8 = vld [vmem:[#allocation13 + $0x710] ss:$12 sps:$4 sm:$0xff]   ;;  %v10192_v63 = vld [vmem:[#allocation13 + $0x588] ss:$12 sps:$4 sm:$0xff]   ;;  %v10234_v13 = vld [vmem:[#allocation13 + $0x64c] ss:$12 sps:$4 sm:$0xff]  }
 0x4b0   : > { %7151 = vmatprep.subr.bf16.mxu0 %v10149_v48  ;;  %9050 = vmatprep.subr.bf16.mxu1 %v10150_v28  ;;  %v10196_v48 = vld [vmem:[#allocation13 + $0x650] ss:$12 sps:$4 sm:$0xff]   ;;  %v10237_v0 = vld [vmem:[#allocation13 + $0x660] ss:$12 sps:$4 sm:$0xff]  }
 0x4b1   : > { %v10199_v28 = vld [vmem:[#allocation13 + $0x5a4] ss:$12 sps:$4 sm:$0xff]   ;;  %v4933_v60 = vld [vmem:[#allocation3 + $0xa0] sm:$0xff] }
 0x4b2   : > { %7127 = vmatmul.mubr.bf16.gmra.mrb[20].mxu0 %v5001_v54  ;;  %7491 = vmatmul.mubr.bf16.gmra.mrb[60].mxu1 %v5001_v54  ;;  %v10204_v54 = vld [vmem:[#allocation13 + $0x5bc] ss:$12 sps:$4 sm:$0xff]   ;;  %v4936_v12 = vld [vmem:[#allocation3 + $0xb8] sm:$0xff] }
 0x4b3   : > { %7152 = vmatpush1.bf16.msra.mxu0 %v10147_v26  ;;  %9051 = vmatpush3.bf16.msra.mxu1 %v10151_v7  ;;  %v4934_v26 = vld [vmem:[#allocation3 + $0xa8] sm:$0xff]  ;;  %v14295_v7 = vpack.c.bf16 %v14253_v56, %v4967_v47 }
 0x4b4   : > { %7136 = vmatprep.mubr.bf16.mxu0 %v5014_v41  ;;  %7498 = vmatprep.mubr.bf16.mxu1 %v5014_v41  ;;  %v10202_v41 = vld [vmem:[#allocation13 + $0x5b8] ss:$12 sps:$4 sm:$0xff]   ;;  %v10249_v47 = vld [vmem:[#allocation13 + $0x694] ss:$12 sps:$4 sm:$0xff]  }
 0x4b5   : > { %7153 = vmatprep.subr.bf16.mxu0 %v10154_v22  ;;  %9052 = vmatprep.subr.bf16.mxu1 %v10155_v59  ;;  %v14297_v22 = vpack.c.bf16 %v4934_v26, %v4922_v35  ;;  %v10205_v59 = vld [vmem:[#allocation13 + $0x740] ss:$12 sps:$4 sm:$0xff]   ;;  %v10210_v56 = vld [vmem:[#allocation13 + $0x758] ss:$12 sps:$4 sm:$0xff]   ;;  %v10247_v35 = vld [vmem:[#allocation13 + $0x690] ss:$12 sps:$4 sm:$0xff]  }
 0x4b7   : > { %7154 = vmatpush1.bf16.msra.mxu0 %v10152_v39  ;;  %9053 = vmatpush3.bf16.msra.mxu1 %v10156_v42  ;;  %v10206_v39 = vld [vmem:[#allocation13 + $0x680] ss:$12 sps:$4 sm:$0xff]  }
 0x4b8   : > { %7155 = vmatprep.subr.bf16.mxu0 %v10159_v2  ;;  %9054 = vmatprep.subr.bf16.mxu1 %v10160_v55  ;;  %v10209_v42 = vld [vmem:[#allocation13 + $0x5d4] ss:$12 sps:$4 sm:$0xff]   ;;  %v10207_v2 = vld [vmem:[#allocation13 + $0x5d0] ss:$12 sps:$4 sm:$0xff]   ;;  %v10211_v55 = vld [vmem:[#allocation13 + $0x698] ss:$12 sps:$4 sm:$0xff]  }
 0x4ba   : > { %7137 = vmatmul.mubr.bf16.gmra.mrb[24].mxu0 %v5013_v34  ;;  %7499 = vmatmul.mubr.bf16.gmra.mrb[64].mxu1 %v5013_v34  ;;  %v10220_v34 = vld [vmem:[#allocation13 + $0x848] ss:$12 sps:$4 sm:$0xff]  }
 0x4bb   : > { %7156 = vmatpush1.bf16.msra.mxu0 %v10157_v20  ;;  %9055 = vmatpush3.bf16.msra.mxu1 %v10161_v50  ;;  %v10212_v20 = vld [vmem:[#allocation13 + $0x5e8] ss:$12 sps:$4 sm:$0xff]   ;;  %v10216_v50 = vld [vmem:[#allocation13 + $0x6b0] ss:$12 sps:$4 sm:$0xff]  }
 0x4bc   : > { %7179 = vmatprep.mubr.bf16.mxu0 %v4992_v36  ;;  %7539 = vmatprep.mubr.bf16.mxu1 %v4992_v36  ;;  %v4921_v36 = vld [vmem:[#allocation3 + $0x40] sm:$0xff] }
 0x4bd   : > { %7157 = vmatprep.subr.bf16.mxu0 %v10164_v16  ;;  %9056 = vmatprep.subr.bf16.mxu1 %v10165_v45  ;;  %v4958_v16 = vld [vmem:[#allocation3 + $0x168] sm:$0xff] }
 0x4be   : > { %v10217_v45 = vld [vmem:[#allocation13 + $0x600] ss:$12 sps:$4 sm:$0xff]  }
 0x4bf   : > { %7158 = vmatpush1.bf16.msra.mxu0 %v10162_v51  ;;  %9057 = vmatpush3.bf16.msra.mxu1 %v10166_v43  ;;  %v14301_v51 = vpack.c.bf16 %v4933_v60, %v4921_v36  ;;  %v4946_v43 = vld [vmem:[#allocation3 + $0x108] sm:$0xff]  ;;  %v10262_v60 = vld [vmem:[#allocation13 + $0x6dc] ss:$12 sps:$4 sm:$0xff]   ;;  %v4948_v36 = vld [vmem:[#allocation3 + $0x118] sm:$0xff] }
 0x4c0   : > { %7159 = vmatprep.subr.bf16.mxu0 %v10169_v52  ;;  %9058 = vmatprep.subr.bf16.mxu1 %v10170_v23  ;;  %v10221_v52 = vld [vmem:[#allocation13 + $0x788] ss:$12 sps:$4 sm:$0xff]  }
 0x4c1   : > { %v10224_v23 = vld [vmem:[#allocation13 + $0x61c] ss:$12 sps:$4 sm:$0xff]  }
 0x4c3   : > { %7160 = vmatpush1.bf16.msra.mxu0 %v10167_v10  ;;  %9059 = vmatpush3.bf16.msra.mxu1 %v10171_v29  ;;  %v14304_v10 = vpack.c.bf16 %v4958_v16, %v4946_v43  ;;  %v10225_v29 = vld [vmem:[#allocation13 + $0x860] ss:$12 sps:$4 sm:$0xff]  }
 0x4c4   : > { %7161 = vmatprep.subr.bf16.mxu0 %v10174_v6  ;;  %9060 = vmatprep.subr.bf16.mxu1 %v10175_v4  ;;  %v10222_v6 = vld [vmem:[#allocation13 + $0x618] ss:$12 sps:$4 sm:$0xff]   ;;  %v10226_v4 = vld [vmem:[#allocation13 + $0x7a0] ss:$12 sps:$4 sm:$0xff]  }
 0x4c7   : > { %7162 = vmatpush1.bf16.msra.mxu0 %v10172_v61  ;;  %9061 = vmatpush3.bf16.msra.mxu1 %v10176_v3  ;;  %v10229_v61 = vld [vmem:[#allocation13 + $0x634] ss:$12 sps:$4 sm:$0xff]   ;;  %v4957_v3 = vld [vmem:[#allocation3 + $0x160] sm:$0xff] }
 0x4c8   : > { %7163 = vmatprep.subr.bf16.mxu0 %v10179_v57  ;;  %9080 = vmatprep.subr.bf16.mxu1 %v10180_v17  ;;  %v10230_v57 = vld [vmem:[#allocation13 + $0x878] ss:$12 sps:$4 sm:$0xff]  }
 0x4c9   : > { %v4970_v17 = vld [vmem:[#allocation3 + $0x1c8] sm:$0xff] }
 0x4ca   : > { %7540 = vmatmul.mubr.bf16.vlgmr.msra.gmra.mrb[68].mxu1 %v14281_v32 }
 0x4cb   : > { %7164 = vmatpush1.bf16.msra.mxu0 %v10177_v18  ;;  %7547 = vmatprep.mubr.bf16.mxu1 %v14283_v19  ;;  %v4945_v18 = vld [vmem:[#allocation3 + $0x100] sm:$0xff] }
 0x4cc   : > { %9081 = vmatpush3.bf16.msra.mxu1 %v10181_v31  ;;  %7165 = vmatprep.subr.bf16.mxu0 %v10184_v62  ;;  %v14309_v11 = vpack.c.bf16 %v4957_v3, %v4945_v18  ;;  %v14312_v31 = vpack.c.bf16 %v4982_v15, %v4970_v17  ;;  %v10235_v62 = vld [vmem:[#allocation13 + $0x890] ss:$12 sps:$4 sm:$0xff]   ;;  %v10268_v3 = vld [vmem:[#allocation13 + $0x70c] ss:$12 sps:$4 sm:$0xff]  }
 0x4cd   : > { %9082 = vmatprep.subr.bf16.mxu1 %v10185_v9  ;;  %v10236_v9 = vld [vmem:[#allocation13 + $0x7d0] ss:$12 sps:$4 sm:$0xff]  }
 0x4ce   : > { %v4984_v17 = vld [vmem:[#allocation3 + $0x238] sm:$0xff] }
 0x4cf   : > { %7166 = vmatpush1.bf16.msra.mxu0 %v10182_v21  ;;  %v10239_v21 = vld [vmem:[#allocation13 + $0x664] ss:$12 sps:$4 sm:$0xff]  }
 0x4d0   : > { %9083 = vmatpush3.bf16.msra.mxu1 %v10186_v5  ;;  %7167 = vmatprep.subr.bf16.mxu0 %v10189_v37  ;;  %v4969_v5 = vld [vmem:[#allocation3 + $0x1c0] sm:$0xff]  ;;  %v10240_v37 = vld [vmem:[#allocation13 + $0x8a8] ss:$12 sps:$4 sm:$0xff]   ;;  %v10271_v18 = vld [vmem:[#allocation13 + $0x724] ss:$12 sps:$4 sm:$0xff]  }
 0x4d1   : > { %9084 = vmatprep.subr.bf16.mxu1 %v10190_v49  ;;  %v4924_v49 = vld [vmem:[#allocation3 + $0x58] sm:$0xff] }
 0x4d2   : > { %7548 = vmatmul.mubr.bf16.gmra.mrb[72].mxu1 %v14288_v46 }
 0x4d3   : > { %7168 = vmatpush1.bf16.msra.mxu0 %v10187_v25  ;;  %7555 = vmatprep.mubr.bf16.mxu1 %v14290_v58  ;;  %v4981_v25 = vld [vmem:[#allocation3 + $0x220] sm:$0xff] }
 0x4d4   : > { %9085 = vmatpush3.bf16.msra.mxu1 %v10191_v33  ;;  %7169 = vmatprep.subr.bf16.mxu0 %v10194_v30  ;;  %v14317_v44 = vpack.c.bf16 %v4981_v25, %v4969_v5  ;;  %v10244_v33 = vld [vmem:[#allocation13 + $0x67c] ss:$12 sps:$4 sm:$0xff]   ;;  %v14320_v30 = vpack.c.bf16 %v4936_v12, %v4924_v49  ;;  %v10277_v5 = vld [vmem:[#allocation13 + $0x754] ss:$12 sps:$4 sm:$0xff]  }
 0x4d5   : > { %9086 = vmatprep.subr.bf16.mxu1 %v10195_v8  ;;  %v10275_v49 = vld [vmem:[#allocation13 + $0x750] ss:$12 sps:$4 sm:$0xff]   ;;  %v10278_v25 = vld [vmem:[#allocation13 + $0x768] ss:$12 sps:$4 sm:$0xff]   ;;  %v10281_v12 = vld [vmem:[#allocation13 + $0x780] ss:$12 sps:$4 sm:$0xff]  }
 0x4d7   : > { %7170 = vmatpush1.bf16.msra.mxu0 %v10192_v63  ;;  %v10242_v63 = vld [vmem:[#allocation13 + $0x678] ss:$12 sps:$4 sm:$0xff]  }
 0x4d8   : > { %9087 = vmatpush3.bf16.msra.mxu1 %v10196_v48  ;;  %7171 = vmatprep.subr.bf16.mxu0 %v10199_v28  ;;  %v10246_v28 = vld [vmem:[#allocation13 + $0x800] ss:$12 sps:$4 sm:$0xff]  }
 0x4d9   : > { %9088 = vmatprep.subr.bf16.mxu1 %v10200_v38 }
 0x4da   : > { %7556 = vmatmul.mubr.bf16.gmra.mrb[76].mxu1 %v14295_v7 }
 0x4db   : > { %7172 = vmatpush1.bf16.msra.mxu0 %v10197_v14  ;;  %7596 = vmatprep.mubr.bf16.mxu1 %v14297_v22  ;;  %v10250_v14 = vld [vmem:[#allocation13 + $0x8d8] ss:$12 sps:$4 sm:$0xff]  }
 0x4dc   : > { %9089 = vmatpush3.bf16.msra.mxu1 %v10201_v27  ;;  %7173 = vmatprep.subr.bf16.mxu0 %v10204_v54  ;;  %v10251_v54 = vld [vmem:[#allocation13 + $0x818] ss:$12 sps:$4 sm:$0xff]  }
 0x4dd   : > { %9090 = vmatprep.subr.bf16.mxu1 %v10205_v59  ;;  %v10255_v59 = vld [vmem:[#allocation13 + $0x8f0] ss:$12 sps:$4 sm:$0xff]  }
 0x4df   : > { %7174 = vmatpush1.bf16.msra.mxu0 %v10202_v41  ;;  %v10252_v41 = vld [vmem:[#allocation13 + $0x6a8] ss:$12 sps:$4 sm:$0xff]  }
 0x4e0   : > { %9091 = vmatpush3.bf16.msra.mxu1 %v10206_v39  ;;  %7175 = vmatprep.subr.bf16.mxu0 %v10209_v42  ;;  %v10256_v39 = vld [vmem:[#allocation13 + $0x830] ss:$12 sps:$4 sm:$0xff]  }
 0x4e1   : > { %9092 = vmatprep.subr.bf16.mxu1 %v10210_v56  ;;  %v10259_v42 = vld [vmem:[#allocation13 + $0x6c4] ss:$12 sps:$4 sm:$0xff]  }
 0x4e3   : > { %7176 = vmatpush1.bf16.msra.mxu0 %v10207_v2 }
 0x4e4   : > { %9093 = vmatpush3.bf16.msra.mxu1 %v10211_v55  ;;  %7177 = vmatprep.subr.bf16.mxu0 %v10214_v53  ;;  %v4923_v55 = vld [vmem:[#allocation3 + $0x50] sm:$0xff] }
 0x4e5   : > { %9094 = vmatprep.subr.bf16.mxu1 %v10215_v24 }
 0x4e7   : > { %7178 = vmatpush1.bf16.msra.mxu0 %v10212_v20  ;;  %v10257_v20 = vld [vmem:[#allocation13 + $0x6c0] ss:$12 sps:$4 sm:$0xff]  }
 0x4e8   : > { %9095 = vmatpush3.bf16.msra.mxu1 %v10216_v50  ;;  %7210 = vmatprep.subr.bf16.mxu0 %v10219_v1  ;;  %v4960_v50 = vld [vmem:[#allocation3 + $0x178] sm:$0xff] }
 0x4e9   : > { %9114 = vmatprep.subr.bf16.mxu1 %v10220_v34  ;;  %v4935_v34 = vld [vmem:[#allocation3 + $0xb0] sm:$0xff]  ;;  %v14335_v43 = vpack.c.bf16 %v4960_v50, %v4948_v36 }
 0x4ea   : > { %7180 = vmatmul.mubr.bf16.vlgmr.msra.gmra.mrb[16].mxu0 %v14281_v32  ;;  %v10231_v32 = vld [vmem:[#allocation13 + $0x7b8] ss:$12 sps:$4 sm:$0xff]   ;;  %v10302_v36 = vld [vmem:[#allocation13 + $0x828] ss:$12 sps:$4 sm:$0xff]  }
 0x4eb   : > { %7597 = vmatmul.mubr.bf16.vlgmr.msra.gmra.mrb[80].mxu1 %v14301_v51  ;;  %7189 = vmatprep.mubr.bf16.mxu0 %v14283_v19  ;;  %v10232_v19 = vld [vmem:[#allocation13 + $0x648] ss:$12 sps:$4 sm:$0xff]  }
 0x4ec   : > { %7211 = vmatpush1.bf16.msra.mxu0 %v10217_v45  ;;  %7604 = vmatprep.mubr.bf16.mxu1 %v14304_v10  ;;  %v14333_v45 = vpack.c.bf16 %v4935_v34, %v4923_v55  ;;  %v10299_v34 = vld [vmem:[#allocation13 + $0x810] ss:$12 sps:$4 sm:$0xff]  }
 0x4ed   : > { %9115 = vmatpush3.bf16.msra.mxu1 %v10221_v52  ;;  %7212 = vmatprep.subr.bf16.mxu0 %v10224_v23  ;;  %v10260_v52 = vld [vmem:[#allocation13 + $0x6d8] ss:$12 sps:$4 sm:$0xff]   ;;  %v10265_v23 = vld [vmem:[#allocation13 + $0x6f4] ss:$12 sps:$4 sm:$0xff]  }
 0x4ee   : > { %9116 = vmatprep.subr.bf16.mxu1 %v10225_v29  ;;  %v4959_v29 = vld [vmem:[#allocation3 + $0x170] sm:$0xff] }
 0x4f0   : > { %7213 = vmatpush1.bf16.msra.mxu0 %v10222_v6  ;;  %v10263_v6 = vld [vmem:[#allocation13 + $0x6f0] ss:$12 sps:$4 sm:$0xff]  }
 0x4f1   : > { %9117 = vmatpush3.bf16.msra.mxu1 %v10226_v4  ;;  %7214 = vmatprep.subr.bf16.mxu0 %v10229_v61  ;;  %v4972_v4 = vld [vmem:[#allocation3 + $0x1d8] sm:$0xff]  ;;  %v4947_v61 = vld [vmem:[#allocation3 + $0x110] sm:$0xff] }
 0x4f2   : > { %7190 = vmatmul.mubr.bf16.gmra.mrb[20].mxu0 %v14288_v46  ;;  %9118 = vmatprep.subr.bf16.mxu1 %v10230_v57  ;;  %v10241_v46 = vld [vmem:[#allocation13 + $0x7e8] ss:$12 sps:$4 sm:$0xff]   ;;  %v14339_v57 = vpack.c.bf16 %v4959_v29, %v4947_v61  ;;  %v14341_v15 = vpack.c.bf16 %v4984_v17, %v4972_v4  ;;  %v10308_v29 = vld [vmem:[#allocation13 + $0x858] ss:$12 sps:$4 sm:$0xff]  }
 0x4f3   : > { %7605 = vmatmul.mubr.bf16.gmra.mrb[84].mxu1 %v14309_v11  ;;  %7199 = vmatprep.mubr.bf16.mxu0 %v14290_v58  ;;  %v10245_v58 = vld [vmem:[#allocation13 + $0x8c0] ss:$12 sps:$4 sm:$0xff]   ;;  %v10314_v17 = vld [vmem:[#allocation13 + $0x888] ss:$12 sps:$4 sm:$0xff]  }
 0x4f4   : > { %7215 = vmatpush1.bf16.msra.mxu0 %v10227_v40  ;;  %7612 = vmatprep.mubr.bf16.mxu1 %v14312_v31  ;;  %v10266_v40 = vld [vmem:[#allocation13 + $0x708] ss:$12 sps:$4 sm:$0xff]   ;;  %v10316_v4 = vld [vmem:[#allocation13 + $0x88c] ss:$12 sps:$4 sm:$0xff]  }
 0x4f5   : > { %9119 = vmatpush3.bf16.msra.mxu1 %v10231_v32  ;;  %7216 = vmatprep.subr.bf16.mxu0 %v10234_v13  ;;  %v4971_v32 = vld [vmem:[#allocation3 + $0x1d0] sm:$0xff] }
 0x4f6   : > { %9120 = vmatprep.subr.bf16.mxu1 %v10235_v62  ;;  %v10269_v13 = vld [vmem:[#allocation13 + $0x720] ss:$12 sps:$4 sm:$0xff]  }
 0x4f7   : > { %v8960_v8 = vpop.f32.mrb[32].mxu1  ;;  %v4983_v62 = vld [vmem:[#allocation3 + $0x230] sm:$0xff] }
 0x4f8   : > { %7217 = vmatpush1.bf16.msra.mxu0 %v10232_v19  ;;  %v8961_v48 = vpop.f32.mrb[33].mxu1  ;;  %v10274_v19 = vld [vmem:[#allocation13 + $0x73c] ss:$12 sps:$4 sm:$0xff]  }
 0x4f9   : > { %9121 = vmatpush3.bf16.msra.mxu1 %v10236_v9  ;;  %7218 = vmatprep.subr.bf16.mxu0 %v10239_v21  ;;  %v14325_v38 = vadd.f32 %v8961_v48, %v8960_v8  ;;  %v8963_v26 = vpop.f32.mrb[34].mxu1  ;;  %v14345_v9 = vpack.c.bf16 %v4983_v62, %v4971_v32  ;;  %v10272_v21 = vld [vmem:[#allocation13 + $0x738] ss:$12 sps:$4 sm:$0xff]   ;;  %v10289_v8 = vld [vmem:[#allocation13 + $0x7b4] ss:$12 sps:$4 sm:$0xff]  }
 0x4fa   : > { %7200 = vmatmul.mubr.bf16.gmra.mrb[24].mxu0 %v14295_v7  ;;  %9122 = vmatprep.subr.bf16.mxu1 %v10240_v37  ;;  %v8964_v7 = vpop.f32.mrb[35].mxu1  ;;  %v15427_v37 = vmov 0.0   ;;  %v10292_v48 = vld [vmem:[#allocation13 + $0x7cc] ss:$12 sps:$4 sm:$0xff]  }
 0x4fb   : > { %7613 = vmatmul.mubr.bf16.gmra.mrb[88].mxu1 %v14317_v44  ;;  %7242 = vmatprep.mubr.bf16.mxu0 %v14297_v22  ;;  %v14327_v27 = vadd.f32 %v8964_v7, %v8963_v26  ;;  %v10254_v22 = vld [vmem:[#allocation13 + $0x6ac] ss:$12 sps:$4 sm:$0xff]   ;;  %v14355_v7 = vld [vmem:[#allocation15] sm:$0x7] }
 0x4fc   : > { %7219 = vmatpush1.bf16.msra.mxu0 %v10237_v0  ;;  %7653 = vmatprep.mubr.bf16.mxu1 %v14320_v30  ;;  %v10280_v0 = vld [vmem:[#allocation13 + $0x76c] ss:$12 sps:$4 sm:$0xff]  }
 0x4fd   : > { %9123 = vmatpush3.bf16.msra.mxu1 %v10241_v46  ;;  %7220 = vmatprep.subr.bf16.mxu0 %v10244_v33  ;;  %v10283_v46 = vld [vmem:[#allocation13 + $0x784] ss:$12 sps:$4 sm:$0xff]   ;;  %v10286_v33 = vld [vmem:[#allocation13 + $0x79c] ss:$12 sps:$4 sm:$0xff]  }
 0x4fe   : > { %9124 = vmatprep.subr.bf16.mxu1 %v10245_v58  ;;  %v10284_v58 = vld [vmem:[#allocation13 + $0x798] ss:$12 sps:$4 sm:$0xff]  }
 0x500   : > { %7221 = vmatpush1.bf16.msra.mxu0 %v10242_v63  ;;  %v8966_v56 = vpop.f32.mrb[36].mxu1  ;;  %v10287_v63 = vld [vmem:[#allocation13 + $0x7b0] ss:$12 sps:$4 sm:$0xff]  }
 0x501   : > { %9125 = vmatpush3.bf16.msra.mxu1 %v10246_v28  ;;  %7222 = vmatprep.subr.bf16.mxu0 %v10249_v47  ;;  %v8967_v2 = vpop.f32.mrb[37].mxu1  ;;  %v10290_v47 = vld [vmem:[#allocation13 + $0x7c8] ss:$12 sps:$4 sm:$0xff]  }
 0x502   : > { %9126 = vmatprep.subr.bf16.mxu1 %v10250_v14  ;;  %v14329_v53 = vadd.f32 %v8967_v2, %v8966_v56  ;;  %v8969_v24 = vpop.f32.mrb[38].mxu1  ;;  %v10301_v56 = vld [vmem:[#allocation13 + $0x814] ss:$12 sps:$4 sm:$0xff]  }
 0x503   : > { %v8970_v1 = vpop.f32.mrb[39].mxu1 }
 0x504   : > { %7223 = vmatpush1.bf16.msra.mxu0 %v10247_v35  ;;  %v14331_v16 = vadd.f32 %v8970_v1, %v8969_v24 }
 0x505   : > { %9127 = vmatpush3.bf16.msra.mxu1 %v10251_v54  ;;  %7224 = vmatprep.subr.bf16.mxu0 %v10254_v22  ;;  %v10293_v22 = vld [vmem:[#allocation13 + $0x7e0] ss:$12 sps:$4 sm:$0xff]  }
 0x506   : > { %9128 = vmatprep.subr.bf16.mxu1 %v10255_v59  ;;  %v15428_v59 = vld [vmem:[#allocation30_spill] sm:$0xff] }
 0x508   : > { %7225 = vmatpush1.bf16.msra.mxu0 %v10252_v41 }
 0x509   : > { %9129 = vmatpush3.bf16.msra.mxu1 %v10256_v39  ;;  %7226 = vmatprep.subr.bf16.mxu0 %v10259_v42  ;;  %v10296_v39 = vld [vmem:[#allocation13 + $0x7f8] ss:$12 sps:$4 sm:$0xff]  }
 0x50c   : > { %7654 = vmatmul.mubr.bf16.vlgmr.msra.gmra.mrb[92].mxu1 %v14333_v45  ;;  %7227 = vmatpush1.bf16.msra.mxu0 %v10257_v20 }
 0x50d   : > { %7661 = vmatprep.mubr.bf16.mxu1 %v14335_v43  ;;  %7228 = vmatprep.subr.bf16.mxu0 %v10262_v60 }
 0x510   : > { %7229 = vmatpush1.bf16.msra.mxu0 %v10260_v52  ;;  %v10307_v52 = vld [vmem:[#allocation13 + $0x844] ss:$12 sps:$4 sm:$0xff]  }
 0x511   : > { %7230 = vmatprep.subr.bf16.mxu0 %v10265_v23  ;;  %v10310_v23 = vld [vmem:[#allocation13 + $0x85c] ss:$12 sps:$4 sm:$0xff]  }
 0x514   : > { %7662 = vmatmul.mubr.bf16.gmra.mrb[96].mxu1 %v14339_v57  ;;  %7231 = vmatpush1.bf16.msra.mxu0 %v10263_v6  ;;  %v10311_v6 = vld [vmem:[#allocation13 + $0x870] ss:$12 sps:$4 sm:$0xff]  }
 0x515   : > { %7669 = vmatprep.mubr.bf16.mxu1 %v14341_v15  ;;  %7232 = vmatprep.subr.bf16.mxu0 %v10268_v3 }
 0x518   : > { %7233 = vmatpush1.bf16.msra.mxu0 %v10266_v40 }
 0x519   : > { %7234 = vmatprep.subr.bf16.mxu0 %v10271_v18 }
 0x51c   : > { %7670 = vmatmul.mubr.bf16.gmra.mrb[100].mxu1 %v14345_v9  ;;  %7235 = vmatpush1.bf16.msra.mxu0 %v10269_v13  ;;  %v10319_v13 = vld [vmem:[#allocation13 + $0x8a4] ss:$12 sps:$4 sm:$0xff]  }
 0x51d   : > { %7236 = vmatprep.subr.bf16.mxu0 %v10274_v19  ;;  %7765 = vmatprep.mubr.f32.mxu1 %v15427_v37 }
 0x520   : > { %7237 = vmatpush1.bf16.msra.mxu0 %v10272_v21 }
 0x521   : > { %7238 = vmatprep.subr.bf16.mxu0 %v10277_v5 }
 0x524   : > { %7239 = vmatpush1.bf16.msra.mxu0 %v10275_v49  ;;  %v10317_v49 = vld [vmem:[#allocation13 + $0x8a0] ss:$12 sps:$4 sm:$0xff]  }
 0x525   : > { %7240 = vmatprep.subr.bf16.mxu0 %v10280_v0 }
 0x528   : > { %7241 = vmatpush1.bf16.msra.mxu0 %v10278_v25  ;;  %v10322_v25 = vld [vmem:[#allocation13 + $0x8bc] ss:$12 sps:$4 sm:$0xff]  }
 0x529   : > { %7273 = vmatprep.subr.bf16.mxu0 %v10283_v46  ;;  %v10320_v46 = vld [vmem:[#allocation13 + $0x8b8] ss:$12 sps:$4 sm:$0xff]  }
 0x52b   : > { %7243 = vmatmul.mubr.bf16.vlgmr.msra.gmra.mrb[16].mxu0 %v14301_v51  ;;  %v10295_v51 = vld [vmem:[#allocation13 + $0x7e4] ss:$12 sps:$4 sm:$0xff]  }
 0x52c   : > { %7252 = vmatprep.mubr.bf16.mxu0 %v14304_v10  ;;  %7274 = vmatpush1.bf16.msra.mxu0 %v10281_v12  ;;  %v10325_v12 = vld [vmem:[#allocation13 + $0x8d4] ss:$12 sps:$4 sm:$0xff]  }
 0x52d   : > { %7275 = vmatprep.subr.bf16.mxu0 %v10286_v33  ;;  %v10328_v33 = vld [vmem:[#allocation13 + $0x8ec] ss:$12 sps:$4 sm:$0xff]  }
 0x530   : > { %7276 = vmatpush1.bf16.msra.mxu0 %v10284_v58  ;;  %v10326_v58 = vld [vmem:[#allocation13 + $0x8e8] ss:$12 sps:$4 sm:$0xff]  }
 0x531   : > { %7277 = vmatprep.subr.bf16.mxu0 %v10289_v8  ;;  %v8972_v28 = vpop.f32.mrb[40].mxu1 }
 0x532   : > { %v8973_v26 = vpop.f32.mrb[41].mxu1 }
 0x533   : > { %7253 = vmatmul.mubr.bf16.gmra.mrb[20].mxu0 %v14309_v11  ;;  %v14353_v14 = vadd.f32 %v8973_v26, %v8972_v28  ;;  %v8975_v10 = vpop.f32.mrb[42].mxu1  ;;  %v10298_v11 = vld [vmem:[#allocation13 + $0x7fc] ss:$12 sps:$4 sm:$0xff]  }
 0x534   : > { %7262 = vmatprep.mubr.bf16.mxu0 %v14312_v31  ;;  %7278 = vmatpush1.bf16.msra.mxu0 %v10287_v63  ;;  %v8976_v35 = vpop.f32.mrb[43].mxu1  ;;  %v14361_v31 = vrot.slane %v14355_v7, %v15428_v59 }
 0x535   : > { %7279 = vmatprep.subr.bf16.mxu0 %v10292_v48  ;;  %v14357_v54 = vadd.f32 %v8976_v35, %v8975_v10 }
 0x536   : > { %v7371_v2 = vadd.f32 %v14325_v38, %v14361_v31  ;;  %v7374_v50 = vadd.f32 %v14327_v27, %v14361_v31  ;;  %v10305_v38 = vld [vmem:[#allocation13 + $0x840] ss:$12 sps:$4 sm:$0xff]   ;;  %v7379_v40 = vadd.f32 %v14329_v53, %v14361_v31  ;;  %v7382_v19 = vadd.f32 %v14331_v16, %v14361_v31  ;;  %v10323_v53 = vld [vmem:[#allocation13 + $0x8d0] ss:$12 sps:$4 sm:$0xff]  }
 0x537   : > { %v10313_v27 = vld [vmem:[#allocation13 + $0x874] ss:$12 sps:$4 sm:$0xff]   ;;  %v7387_v63 = vadd.f32 %v14353_v14, %v14361_v31  ;;  %v7390_v26 = vadd.f32 %v14357_v54, %v14361_v31 }
 0x538   : > { %7280 = vmatpush1.bf16.msra.mxu0 %v10290_v47 }
 0x539   : > { %7281 = vmatprep.subr.bf16.mxu0 %v10295_v51  ;;  %v8994_v41 = vpop.f32.mrb[44].mxu1 }
 0x53a   : > { %v8995_v42 = vpop.f32.mrb[45].mxu1 }
 0x53b   : > { %7263 = vmatmul.mubr.bf16.gmra.mrb[24].mxu0 %v14317_v44  ;;  %v8996_v55 = vadd.f32 %v8995_v42, %v8994_v41  ;;  %v8997_v24 = vpop.f32.mrb[46].mxu1 }
 0x53c   : > { %7282 = vmatpush1.bf16.msra.mxu0 %v10293_v22  ;;  %7305 = vmatprep.mubr.bf16.mxu0 %v14320_v30  ;;  %v8998_v20 = vpop.f32.mrb[47].mxu1  ;;  %v10304_v30 = vld [vmem:[#allocation13 + $0x82c] ss:$12 sps:$4 sm:$0xff]  }
 0x53d   : > { %7283 = vmatprep.subr.bf16.mxu0 %v10298_v11  ;;  %v14369_v1 = vadd.f32 %v8996_v55, %v7371_v2  ;;  %v8999_v44 = vadd.f32 %v8998_v20, %v8997_v24 }
 0x53f   : > { %v14371_v60 = vadd.f32 %v8999_v44, %v7374_v50 }
 0x540   : > { %7284 = vmatpush1.bf16.msra.mxu0 %v10296_v39 }
 0x541   : > { %7285 = vmatprep.subr.bf16.mxu0 %v10301_v56 }
 0x544   : > { %7286 = vmatpush1.bf16.msra.mxu0 %v10299_v34 }
 0x545   : > { %7287 = vmatprep.subr.bf16.mxu0 %v10304_v30 }
 0x548   : > { %7288 = vmatpush1.bf16.msra.mxu0 %v10302_v36 }
 0x549   : > { %7289 = vmatprep.subr.bf16.mxu0 %v10307_v52 }
 0x54c   : > { %7290 = vmatpush1.bf16.msra.mxu0 %v10305_v38 }
 0x54d   : > { %7291 = vmatprep.subr.bf16.mxu0 %v10310_v23 }
 0x550   : > { %7292 = vmatpush1.bf16.msra.mxu0 %v10308_v29  ;;  %v9000_v61 = vpop.f32.mrb[48].mxu1 }
 0x551   : > { %7293 = vmatprep.subr.bf16.mxu0 %v10313_v27  ;;  %v9001_v3 = vpop.f32.mrb[49].mxu1 }
 0x552   : > { %v9002_v18 = vadd.f32 %v9001_v3, %v9000_v61  ;;  %v9003_v32 = vpop.f32.mrb[50].mxu1 }
 0x553   : > { %v9004_v62 = vpop.f32.mrb[51].mxu1 }
 0x554   : > { %7294 = vmatpush1.bf16.msra.mxu0 %v10311_v6  ;;  %v7436_v21 = vadd.f32 %v9002_v18, %v7379_v40  ;;  %v9005_v5 = vadd.f32 %v9004_v62, %v9003_v32 }
 0x555   : > { %7295 = vmatprep.subr.bf16.mxu0 %v10316_v4 }
 0x556   : > { %v7439_v0 = vadd.f32 %v9005_v5, %v7382_v19 }
 0x558   : > { %7296 = vmatpush1.bf16.msra.mxu0 %v10314_v17 }
 0x559   : > { %7297 = vmatprep.subr.bf16.mxu0 %v10319_v13 }
 0x55c   : > { %7298 = vmatpush1.bf16.msra.mxu0 %v10317_v49 }
 0x55d   : > { %7299 = vmatprep.subr.bf16.mxu0 %v10322_v25 }
 0x560   : > { %7300 = vmatpush1.bf16.msra.mxu0 %v10320_v46 }
 0x561   : > { %7301 = vmatprep.subr.bf16.mxu0 %v10325_v12 }
 0x564   : > { %7302 = vmatpush1.bf16.msra.mxu0 %v10323_v53 }
 0x565   : > { %7303 = vmatprep.subr.bf16.mxu0 %v10328_v33 }
 0x568   : > { %7304 = vmatpush1.bf16.msra.mxu0 %v10326_v58 }
 0x56b   : > { %7306 = vmatmul.mubr.bf16.vlgmr.msra.gmra.mrb[16].mxu0 %v14333_v45 }
 0x56c   : > { %7315 = vmatprep.mubr.bf16.mxu0 %v14335_v43 }
 0x573   : > { %7316 = vmatmul.mubr.bf16.gmra.mrb[20].mxu0 %v14339_v57 }
 0x574   : > { %7325 = vmatprep.mubr.bf16.mxu0 %v14341_v15 }
 0x575   : > { %v9006_v16 = vpop.f32.mrb[52].mxu1 }
 0x576   : > { %v9007_v8 = vpop.f32.mrb[53].mxu1 }
 0x577   : > { %v9008_v48 = vadd.f32 %v9007_v8, %v9006_v16  ;;  %v9009_v28 = vpop.f32.mrb[54].mxu1 }
 0x578   : > { %v9010_v47 = vpop.f32.mrb[55].mxu1 }
 0x579   : > { %v7444_v51 = vadd.f32 %v9008_v48, %v7387_v63  ;;  %v9011_v10 = vadd.f32 %v9010_v47, %v9009_v28 }
 0x57b   : > { %v7447_v45 = vadd.f32 %v9011_v10, %v7390_v26  ;;  %7326 = vmatmul.mubr.bf16.gmra.mrb[24].mxu0 %v14345_v9 }
 0x57d   : > { %v9028_v43 = vpop.f32.mrb[56].mxu1 }
 0x57e   : > { %v9029_v57 = vpop.f32.mrb[57].mxu1 }
 0x57f   : > { %v9030_v35 = vadd.f32 %v9029_v57, %v9028_v43  ;;  %v9031_v15 = vpop.f32.mrb[58].mxu1 }
 0x580   : > { %v9032_v22 = vpop.f32.mrb[59].mxu1 }
 0x581   : > { %v7485_v11 = vadd.f32 %v9030_v35, %v14369_v1  ;;  %v9033_v59 = vadd.f32 %v9032_v22, %v9031_v15 }
 0x583   : > { %v7488_v14 = vadd.f32 %v9033_v59, %v14371_v60 }
 0x585   : > { %v9034_v41 = vpop.f32.mrb[60].mxu1 }
 0x586   : > { %v9035_v39 = vpop.f32.mrb[61].mxu1 }
 0x587   : > { %v9036_v42 = vadd.f32 %v9035_v39, %v9034_v41  ;;  %v9037_v56 = vpop.f32.mrb[62].mxu1 }
 0x588   : > { %v9038_v54 = vpop.f32.mrb[63].mxu1 }
 0x589   : > { %v7493_v31 = vadd.f32 %v9036_v42, %v7436_v21  ;;  %v9039_v2 = vadd.f32 %v9038_v54, %v9037_v56 }
 0x58b   : > { %v7496_v55 = vadd.f32 %v9039_v2, %v7439_v0 }
 0x58d   : > { %v9040_v24 = vpop.f32.mrb[64].mxu1 }
 0x58e   : > { %v9041_v9 = vpop.f32.mrb[65].mxu1 }
 0x58f   : > { %v9042_v20 = vadd.f32 %v9041_v9, %v9040_v24  ;;  %v9043_v50 = vpop.f32.mrb[66].mxu1 }
 0x590   : > { %v9044_v44 = vpop.f32.mrb[67].mxu1 }
 0x591   : > { %v7501_v34 = vadd.f32 %v9042_v20, %v7444_v51  ;;  %v9045_v30 = vadd.f32 %v9044_v44, %v9043_v50 }
 0x593   : > { %v7504_v36 = vadd.f32 %v9045_v30, %v7447_v45 }
 0x59d   : > { %v9062_v1 = vpop.f32.mrb[68].mxu1 }
 0x59e   : > { %v9063_v52 = vpop.f32.mrb[69].mxu1 }
 0x59f   : > { %v9064_v38 = vadd.f32 %v9063_v52, %v9062_v1  ;;  %v9065_v60 = vpop.f32.mrb[70].mxu1 }
 0x5a0   : > { %v9066_v23 = vpop.f32.mrb[71].mxu1 }
 0x5a1   : > { %v7542_v29 = vadd.f32 %v9064_v38, %v7485_v11  ;;  %v9067_v27 = vadd.f32 %v9066_v23, %v9065_v60 }
 0x5a3   : > { %v7545_v6 = vadd.f32 %v9067_v27, %v7488_v14 }
 0x5a5   : > { %v9068_v4 = vpop.f32.mrb[72].mxu1 }
 0x5a6   : > { %v9069_v61 = vpop.f32.mrb[73].mxu1 }
 0x5a7   : > { %v9070_v3 = vadd.f32 %v9069_v61, %v9068_v4  ;;  %v9071_v17 = vpop.f32.mrb[74].mxu1 }
 0x5a8   : > { %v9072_v40 = vpop.f32.mrb[75].mxu1 }
 0x5a9   : > { %v7550_v18 = vadd.f32 %v9070_v3, %v7493_v31  ;;  %v9073_v32 = vadd.f32 %v9072_v40, %v9071_v17 }
 0x5ab   : > { %v7553_v13 = vadd.f32 %v9073_v32, %v7496_v55 }
 0x5ad   : > { %v9074_v62 = vpop.f32.mrb[76].mxu1 }
 0x5ae   : > { %v9075_v19 = vpop.f32.mrb[77].mxu1 }
 0x5af   : > { %v9076_v21 = vadd.f32 %v9075_v19, %v9074_v62  ;;  %v9077_v5 = vpop.f32.mrb[78].mxu1 }
 0x5b0   : > { %v9078_v49 = vpop.f32.mrb[79].mxu1 }
 0x5b1   : > { %v7558_v0 = vadd.f32 %v9076_v21, %v7501_v34  ;;  %v9079_v25 = vadd.f32 %v9078_v49, %v9077_v5  ;;  %v15429_v5 = vld [vmem:[#allocation31_spill] sm:$0xff] }
 0x5b2   : > { %v5410_v49 = vrot.slane %v14355_v7, %v15429_v5  ;;  %v7846_v5 = vld [vmem:[%s15431_s20 + $0x20] sm:$0xff] }
 0x5b3   : > { %v7561_v46 = vadd.f32 %v9079_v25, %v7504_v36 }
 0x5be   : > { %v9096_v12 = vpop.f32.mrb[80].mxu1 }
 0x5bf   : > { %v9097_v53 = vpop.f32.mrb[81].mxu1 }
 0x5c0   : > { %v9098_v33 = vadd.f32 %v9097_v53, %v9096_v12  ;;  %v9099_v58 = vpop.f32.mrb[82].mxu1 }
 0x5c1   : > { %v9100_v16 = vpop.f32.mrb[83].mxu1 }
 0x5c2   : > { %v7599_v8 = vadd.f32 %v9098_v33, %v7542_v29  ;;  %v9101_v63 = vadd.f32 %v9100_v16, %v9099_v58 }
 0x5c4   : > { %v7602_v48 = vadd.f32 %v9101_v63, %v7545_v6 }
 0x5c6   : > { %v9102_v28 = vpop.f32.mrb[84].mxu1 }
 0x5c7   : > { %v9103_v47 = vpop.f32.mrb[85].mxu1 }
 0x5c8   : > { %v9104_v26 = vadd.f32 %v9103_v47, %v9102_v28  ;;  %v9105_v51 = vpop.f32.mrb[86].mxu1 }
 0x5c9   : > { %v9106_v10 = vpop.f32.mrb[87].mxu1 }
 0x5ca   : > { %v7607_v45 = vadd.f32 %v9104_v26, %v7550_v18  ;;  %v9107_v43 = vadd.f32 %v9106_v10, %v9105_v51 }
 0x5cc   : > { %v7610_v57 = vadd.f32 %v9107_v43, %v7553_v13 }
 0x5ce   : > { %v9108_v35 = vpop.f32.mrb[88].mxu1 }
 0x5cf   : > { %v9109_v15 = vpop.f32.mrb[89].mxu1 }
 0x5d0   : > { %v9110_v22 = vadd.f32 %v9109_v15, %v9108_v35  ;;  %v9111_v11 = vpop.f32.mrb[90].mxu1 }
 0x5d1   : > { %v9112_v59 = vpop.f32.mrb[91].mxu1 }
 0x5d2   : > { %v7615_v14 = vadd.f32 %v9110_v22, %v7558_v0  ;;  %v9113_v41 = vadd.f32 %v9112_v59, %v9111_v11  ;;  %v15430_v0 = vld [vmem:[#allocation32_spill] sm:$0xff] }
 0x5d3   : > { %v5414_v25 = vrot.slane %v14355_v7, %v15430_v0  ;;  %v7864_v0 = vld [vmem:[%s15431_s20 + $0xb0] sm:$0xff] }
 0x5d4   : > { %v7618_v39 = vadd.f32 %v9113_v41, %v7561_v46 }
 0x5df   : > { %v9130_v42 = vpop.f32.mrb[92].mxu1 }
 0x5e0   : > { %v9131_v56 = vpop.f32.mrb[93].mxu1 }
 0x5e1   : > { %v9132_v54 = vadd.f32 %v9131_v56, %v9130_v42  ;;  %v9133_v31 = vpop.f32.mrb[94].mxu1 }
 0x5e2   : > { %v9134_v2 = vpop.f32.mrb[95].mxu1 }
 0x5e3   : > { %v7656_v55 = vadd.f32 %v9132_v54, %v7599_v8  ;;  %v9135_v24 = vadd.f32 %v9134_v2, %v9133_v31 }
 0x5e5   : > { %v7659_v9 = vadd.f32 %v9135_v24, %v7602_v48  ;;  %v7680_v20 = vmax.f32 %v7656_v55, 0.0 }
 0x5e7   : > { %v7683_v50 = vmax.f32 %v7659_v9, 0.0  ;;  %v9136_v44 = vpop.f32.mrb[96].mxu1 }
 0x5e8   : > { %v9137_v34 = vpop.f32.mrb[97].mxu1 }
 0x5e9   : > { %v14388_v30 = vpack.c.bf16 %v7683_v50, %v7680_v20  ;;  %v9138_v36 = vadd.f32 %v9137_v34, %v9136_v44  ;;  %v9139_v1 = vpop.f32.mrb[98].mxu1 }
 0x5ea   : > { %v9140_v52 = vpop.f32.mrb[99].mxu1 }
 0x5eb   : > { %v7664_v38 = vadd.f32 %v9138_v36, %v7607_v45  ;;  %v9141_v60 = vadd.f32 %v9140_v52, %v9139_v1 }
 0x5ed   : > { %v7667_v23 = vadd.f32 %v9141_v60, %v7610_v57  ;;  %v7686_v29 = vmax.f32 %v7664_v38, 0.0  ;;  %v7696_v60 = vld [vmem:[#allocation16] sm:$0xf] }
 0x5ef   : > { %v7689_v27 = vmax.f32 %v7667_v23, 0.0  ;;  %v9142_v6 = vpop.f32.mrb[100].mxu1  ;;  %v10727_v23 = vmov 0.0|0.0  }
 0x5f0   : > { %v9143_v4 = vpop.f32.mrb[101].mxu1 }
 0x5f1   : > { %v14390_v61 = vpack.c.bf16 %v7689_v27, %v7686_v29  ;;  %v9144_v3 = vadd.f32 %v9143_v4, %v9142_v6  ;;  %v9145_v17 = vpop.f32.mrb[102].mxu1  ;;  %v7858_v29 = vld [vmem:[%s15431_s20 + $0x80] sm:$0xff]  ;;  %v7859_v27 = vld [vmem:[%s15431_s20 + $0x88] sm:$0xff] }
 0x5f2   : > { %v9146_v40 = vpop.f32.mrb[103].mxu1  ;;  %v9317_v6 = vpack.c.bf16 %v7859_v27, %v7858_v29  ;;  %v7843_v4 = vld [vmem:[%s15431_s20 + $0x8] sm:$0xff]  ;;  %v7882_v27 = vld [vmem:[%s15431_s20 + $0x140] sm:$0xff] }
 0x5f3   : > { %v7672_v18 = vadd.f32 %v9144_v3, %v7615_v14  ;;  %v9147_v32 = vadd.f32 %v9146_v40, %v9145_v17  ;;  %v7860_v3 = vld [vmem:[%s15431_s20 + $0x90] sm:$0xff]  ;;  %v7861_v17 = vld [vmem:[%s15431_s20 + $0x98] sm:$0xff] }
 0x5f4   : > { %v9321_v40 = vpack.c.bf16 %v7861_v17, %v7860_v3  ;;  %v7884_v3 = vld [vmem:[%s15431_s20 + $0x150] sm:$0xff]  ;;  %v7885_v17 = vld [vmem:[%s15431_s20 + $0x158] sm:$0xff] }
 0x5f5   : > { %v7675_v13 = vadd.f32 %v9147_v32, %v7618_v39  ;;  %v7692_v62 = vmax.f32 %v7672_v18, 0.0  ;;  %v7844_v18 = vld [vmem:[%s15431_s20 + $0x10] sm:$0xff]  ;;  %v7845_v32 = vld [vmem:[%s15431_s20 + $0x18] sm:$0xff] }
 0x5f7   : > { %v7695_v19 = vmax.f32 %v7675_v13, 0.0  ;;  %v7862_v13 = vld [vmem:[%s15431_s20 + $0xa0] sm:$0xff] }
 0x5f9   : > { %v14392_v21 = vpack.c.bf16 %v7695_v19, %v7692_v62  ;;  %v7863_v62 = vld [vmem:[%s15431_s20 + $0xa8] sm:$0xff]  ;;  %v9323_v19 = vpack.c.bf16 %v7845_v32, %v7844_v18 }
 0x5fa   : > { %v7887_v18 = vld [vmem:[%s15431_s20 + $0x168] sm:$0xff] }
 0x63e   : > { %v7307_v46 = vpop.f32.mrb[16].mxu0 }
 0x63f   : > { %v9433_v12 = vadd.f32 %v7307_v46, %v5410_v49  ;;  %v7309_v53 = vpop.f32.mrb[17].mxu0 }
 0x640   : > { %v9434_v33 = vadd.f32 %v7309_v53, %v5414_v25  ;;  %v7311_v58 = vpop.f32.mrb[18].mxu0  ;;  %v7848_v53 = vld [vmem:[%s15431_s20 + $0x30] sm:$0xff] }
 0x641   : > { %v9435_v16 = vadd.f32 %v7311_v58, %v5410_v49  ;;  %v7313_v8 = vpop.f32.mrb[19].mxu0  ;;  %v7678_v48 = vmax.f32 %v9433_v12, 0.0  ;;  %v7866_v58 = vld [vmem:[%s15431_s20 + $0xc0] sm:$0xff] }
 0x642   : > { %v9436_v63 = vadd.f32 %v7313_v8, %v5414_v25  ;;  %v7679_v47 = vmax.f32 %v9434_v33, 0.0  ;;  %v7849_v33 = vld [vmem:[%s15431_s20 + $0x38] sm:$0xff] }
 0x643   : > { %v7681_v28 = vmax.f32 %v9435_v16, 0.0  ;;  %v7867_v16 = vld [vmem:[%s15431_s20 + $0xc8] sm:$0xff]  ;;  %v9331_v8 = vpack.c.bf16 %v7849_v33, %v7848_v53 }
 0x644   : > { %v7682_v26 = vmax.f32 %v9436_v63, 0.0  ;;  %v9333_v63 = vpack.c.bf16 %v7867_v16, %v7866_v58 }
 0x645   : > { %v9298_v51 = vpack.c.bf16 %v7681_v28, %v7678_v48  ;;  %v7850_v48 = vld [vmem:[%s15431_s20 + $0x40] sm:$0xff]  ;;  %v7851_v28 = vld [vmem:[%s15431_s20 + $0x48] sm:$0xff] }
 0x646   : > { %v9296_v10 = vpack.c.bf16 %v7682_v26, %v7679_v47  ;;  %v7317_v45 = vpop.f32.mrb[20].mxu0  ;;  %v7868_v47 = vld [vmem:[%s15431_s20 + $0xd0] sm:$0xff]  ;;  %v7869_v26 = vld [vmem:[%s15431_s20 + $0xd8] sm:$0xff] }
 0x647   : > { %v9437_v43 = vadd.f32 %v7317_v45, %v5410_v49  ;;  %v7319_v57 = vpop.f32.mrb[21].mxu0  ;;  %v7852_v45 = vld [vmem:[%s15431_s20 + $0x50] sm:$0xff] }
 0x648   : > { %v9438_v35 = vadd.f32 %v7319_v57, %v5414_v25  ;;  %v7321_v15 = vpop.f32.mrb[22].mxu0  ;;  %9297 = vmatprep.subr.bf16.mxu1 %v9296_v10  ;;  %v9337_v10 = vpack.c.bf16 %v7869_v26, %v7868_v47  ;;  %v7870_v57 = vld [vmem:[%s15431_s20 + $0xe0] sm:$0xff] }
 0x649   : > { %v9439_v7 = vadd.f32 %v7321_v15, %v5410_v49  ;;  %v7323_v22 = vpop.f32.mrb[23].mxu0  ;;  %9299 = vmatpush1.bf16.msra.mxu1 %v9298_v51  ;;  %v7684_v59 = vmax.f32 %v9437_v43, 0.0  ;;  %v9335_v51 = vpack.c.bf16 %v7851_v28, %v7850_v48  ;;  %v7853_v43 = vld [vmem:[%s15431_s20 + $0x58] sm:$0xff]  ;;  %v8109_v48 = vld [vmem:[#allocation18] sm:$0xf] }
 0x64a   : > { %v9440_v11 = vadd.f32 %v7323_v22, %v5414_v25  ;;  %v7685_v41 = vmax.f32 %v9438_v35, 0.0  ;;  %v7871_v35 = vld [vmem:[%s15431_s20 + $0xe8] sm:$0xff]  ;;  %v9339_v15 = vpack.c.bf16 %v7853_v43, %v7852_v45  ;;  %v7854_v22 = vld [vmem:[%s15431_s20 + $0x60] sm:$0xff]  ;;  %v8195_v45 = vld [vmem:[%s15433_s23 + $0x10] sm:$0xff] }
 0x64b   : > { %v7687_v14 = vmax.f32 %v9439_v7, 0.0  ;;  %v9341_v7 = vpack.c.bf16 %v7871_v35, %v7870_v57  ;;  %v8196_v57 = vld [vmem:[%s15433_s23 + $0x18] sm:$0xff] }
 0x64c   : > { %v7688_v39 = vmax.f32 %v9440_v11, 0.0  ;;  %v7855_v11 = vld [vmem:[%s15431_s20 + $0x68] sm:$0xff] }
 0x64d   : > { %v9302_v42 = vpack.c.bf16 %v7687_v14, %v7684_v59  ;;  %v7872_v59 = vld [vmem:[%s15431_s20 + $0xf0] sm:$0xff]  ;;  %v7873_v14 = vld [vmem:[%s15431_s20 + $0xf8] sm:$0xff] }
 0x64e   : > { %v9300_v56 = vpack.c.bf16 %v7688_v39, %v7685_v41  ;;  %v7327_v54 = vpop.f32.mrb[24].mxu0  ;;  %v9343_v41 = vpack.c.bf16 %v7855_v11, %v7854_v22  ;;  %v9345_v39 = vpack.c.bf16 %v7873_v14, %v7872_v59 }
 0x64f   : > { %v9441_v31 = vadd.f32 %v7327_v54, %v5410_v49  ;;  %v7329_v2 = vpop.f32.mrb[25].mxu0 }
 0x650   : > { %v9442_v55 = vadd.f32 %v7329_v2, %v5414_v25  ;;  %v7331_v24 = vpop.f32.mrb[26].mxu0  ;;  %9301 = vmatprep.subr.bf16.mxu1 %v9300_v56  ;;  %v7857_v56 = vld [vmem:[%s15431_s20 + $0x78] sm:$0xff]  ;;  %v7875_v2 = vld [vmem:[%s15431_s20 + $0x108] sm:$0xff] }
 0x651   : > { %v9443_v9 = vadd.f32 %v7331_v24, %v5410_v49  ;;  %v7333_v20 = vpop.f32.mrb[27].mxu0  ;;  %9303 = vmatpush1.bf16.msra.mxu1 %v9302_v42  ;;  %v7690_v44 = vmax.f32 %v9441_v31, 0.0  ;;  %v7847_v49 = vld [vmem:[%s15431_s20 + $0x28] sm:$0xff]  ;;  %v7856_v42 = vld [vmem:[%s15431_s20 + $0x70] sm:$0xff]  ;;  %v7874_v31 = vld [vmem:[%s15431_s20 + $0x100] sm:$0xff] }
 0x652   : > { %v9444_v50 = vadd.f32 %v7333_v20, %v5414_v25  ;;  %v7691_v36 = vmax.f32 %v9442_v55, 0.0  ;;  %v7865_v25 = vld [vmem:[%s15431_s20 + $0xb8] sm:$0xff]  ;;  %v9327_v46 = vpack.c.bf16 %v7847_v49, %v7846_v5  ;;  %v9347_v54 = vpack.c.bf16 %v7857_v56, %v7856_v42  ;;  %v7876_v20 = vld [vmem:[%s15431_s20 + $0x110] sm:$0xff]  ;;  %v8032_v5 = vld [vmem:[%s15432_s3 + $0x8] sm:$0xff] }
 0x653   : > { %v7693_v34 = vmax.f32 %v9443_v9, 0.0  ;;  %v9329_v12 = vpack.c.bf16 %v7865_v25, %v7864_v0  ;;  %v9350_v24 = vpack.c.bf16 %v7875_v2, %v7874_v31  ;;  %v8033_v0 = vld [vmem:[%s15432_s3 + $0x10] sm:$0xff]  ;;  %v8034_v25 = vld [vmem:[%s15432_s3 + $0x18] sm:$0xff] }
 0x654   : > { %v7694_v1 = vmax.f32 %v9444_v50, 0.0  ;;  %v7877_v50 = vld [vmem:[%s15431_s20 + $0x118] sm:$0xff] }
 0x655   : > { %v9306_v52 = vpack.c.bf16 %v7693_v34, %v7690_v44  ;;  %v9353_v44 = vpack.c.bf16 %v7877_v50, %v7876_v20  ;;  %v7878_v34 = vld [vmem:[%s15431_s20 + $0x120] sm:$0xff] }
 0x656   : > { %v9304_v38 = vpack.c.bf16 %v7694_v1, %v7691_v36  ;;  %v7879_v36 = vld [vmem:[%s15431_s20 + $0x128] sm:$0xff] }
 0x657   : > { %v9356_v1 = vpack.c.bf16 %v7879_v36, %v7878_v34 }
 0x658   : > { %9305 = vmatprep.subr.bf16.mxu1 %v9304_v38  ;;  %v7881_v38 = vld [vmem:[%s15431_s20 + $0x138] sm:$0xff] }
 0x659   : > { %9307 = vmatpush1.bf16.msra.mxu1 %v9306_v52  ;;  %v7880_v52 = vld [vmem:[%s15431_s20 + $0x130] sm:$0xff] }
 0x65a   : > { %9308 = vmatprep.subr.bf16.mxu1 %v10727_v23 }
 0x65c   : > { %8931 = vmatmul.mubr.msk.f32.vlgmr.msra.gmra.mrb[104].mxu1 %vm7697_vm11, %v7696_v60 }
 0x65d   : > { %9310 = vmatpush3.bf16.msra.mxu1 %v14388_v30  ;;  %9231 = vmatprep.mubr.msk.f32.mxu1 %vm10728_vm12, %v15427_v37  ;;  %v7842_v30 = vld [vmem:[%s15431_s20] sm:$0xff] }
 0x65e   : > { %9311 = vmatprep.subr.bf16.mxu1 %v10727_v23 }
 0x661   : > { %9313 = vmatpush3.bf16.msra.mxu1 %v14390_v61  ;;  %v9319_v61 = vpack.c.bf16 %v7843_v4, %v7842_v30 }
 0x662   : > { %9314 = vmatprep.subr.bf16.mxu1 %v10727_v23 }
 0x665   : > { %9316 = vmatpush3.bf16.msra.mxu1 %v14392_v21  ;;  %v9325_v21 = vpack.c.bf16 %v7863_v62, %v7862_v13  ;;  %v7888_v13 = vld [vmem:[%s15431_s20 + $0x170] sm:$0xff]  ;;  %v7889_v62 = vld [vmem:[%s15431_s20 + $0x178] sm:$0xff] }
 0x666   : > { %9318 = vmatprep.subr.bf16.mxu1 %v9317_v6  ;;  %v7883_v6 = vld [vmem:[%s15431_s20 + $0x148] sm:$0xff] }
 0x667   : > { %v9362_v4 = vpack.c.bf16 %v7883_v6, %v7882_v27 }
 0x668   : > { %9232 = vmatmul.mubr.msk.f32.vlgmr.msra.gmra.mrb[106].mxu1 %vm7697_vm11, %v7696_v60  ;;  %v9359_v60 = vpack.c.bf16 %v7881_v38, %v7880_v52 }
 0x669   : > { %9320 = vmatpush3.bf16.msra.mxu1 %v9319_v61  ;;  %v9365_v61 = vpack.c.bf16 %v7885_v17, %v7884_v3 }
 0x66a   : > { %9322 = vmatprep.subr.bf16.mxu1 %v9321_v40  ;;  %v7886_v40 = vld [vmem:[%s15431_s20 + $0x160] sm:$0xff] }
 0x66b   : > { %v9368_v32 = vpack.c.bf16 %v7887_v18, %v7886_v40 }
 0x66d   : > { %9324 = vmatpush3.bf16.msra.mxu1 %v9323_v19  ;;  %v9371_v19 = vpack.c.bf16 %v7889_v62, %v7888_v13 }
 0x66e   : > { %9326 = vmatprep.subr.bf16.mxu1 %v9325_v21  ;;  %v8031_v21 = vld [vmem:[%s15432_s3] sm:$0xff] }
 0x66f   : > { %v9374_v49 = vpack.c.bf16 %v8032_v5, %v8031_v21 }
 0x671   : > { %9328 = vmatpush3.bf16.msra.mxu1 %v9327_v46  ;;  %v9377_v46 = vpack.c.bf16 %v8034_v25, %v8033_v0 }
 0x672   : > { %9330 = vmatprep.subr.bf16.mxu1 %v9329_v12 }
 0x675   : > { %9332 = vmatpush3.bf16.msra.mxu1 %v9331_v8 }
 0x676   : > { %9334 = vmatprep.subr.bf16.mxu1 %v9333_v63 }
 0x679   : > { %9336 = vmatpush3.bf16.msra.mxu1 %v9335_v51  ;;  %v8193_v51 = vld [vmem:[%s15433_s23] sm:$0xff] }
 0x67a   : > { %9338 = vmatprep.subr.bf16.mxu1 %v9337_v10  ;;  %v8194_v10 = vld [vmem:[%s15433_s23 + $0x8] sm:$0xff] }
 0x67b   : > { %v9380_v43 = vpack.c.bf16 %v8194_v10, %v8193_v51 }
 0x67d   : > { %9340 = vmatpush3.bf16.msra.mxu1 %v9339_v15 }
 0x67e   : > { %9342 = vmatprep.subr.bf16.mxu1 %v9341_v7 }
 0x681   : > { %9344 = vmatpush3.bf16.msra.mxu1 %v9343_v41 }
 0x682   : > { %9346 = vmatprep.subr.bf16.mxu1 %v9345_v39  ;;  %v8936_v39 = vld [vmem:[#allocation19] ss:$0 sm:$0xff] }
 0x685   : > { %9348 = vmatpush3.bf16.msra.mxu1 %v9347_v54 }
 0x686   : > { %9349 = vmatprep.subr.bf16.mxu1 %v10727_v23 }
 0x72f   : > { %v7767_v55 = vpop.f32.mrb[104].mxu1 }
 0x730   : > { %v7769_v9 = vpop.f32.mrb[105].mxu1 }
 0x731   : > { %7954 = vmatprep.mubr.f32.mxu1 %v7769_v9 }
 0x732   : > { %7955 = vmatmul.mubr.f32.vlgmr.msra.gmra.mrb[108].mxu1 %v7767_v55 }
 0x733   : > { %9351 = vmatpush3.bf16.msra.mxu1 %v9350_v24  ;;  %9266 = vmatprep.mubr.msk.f32.mxu1 %vm10728_vm12, %v15427_v37 }
 0x734   : > { %9352 = vmatprep.subr.bf16.mxu1 %v10727_v23 }
 0x737   : > { %9354 = vmatpush3.bf16.msra.mxu1 %v9353_v44 }
 0x738   : > { %9355 = vmatprep.subr.bf16.mxu1 %v10727_v23 }
 0x73b   : > { %9357 = vmatpush3.bf16.msra.mxu1 %v9356_v1  ;;  %v7838_v29 = vpop.f32.mrb[106].mxu1 }
 0x73c   : > { %9358 = vmatprep.subr.bf16.mxu1 %v10727_v23  ;;  %v9233_v30 = vpop.f32.mrb[107].mxu1 }
 0x73f   : > { %9360 = vmatpush3.bf16.msra.mxu1 %v9359_v60 }
 0x740   : > { %9361 = vmatprep.subr.bf16.mxu1 %v10727_v23 }
 0x743   : > { %9363 = vmatpush3.bf16.msra.mxu1 %v9362_v4 }
 0x744   : > { %9364 = vmatprep.subr.bf16.mxu1 %v10727_v23 }
 0x747   : > { %9366 = vmatpush3.bf16.msra.mxu1 %v9365_v61 }
 0x748   : > { %9367 = vmatprep.subr.bf16.mxu1 %v10727_v23 }
 0x74b   : > { %9369 = vmatpush3.bf16.msra.mxu1 %v9368_v32 }
 0x74c   : > { %9370 = vmatprep.subr.bf16.mxu1 %v10727_v23 }
 0x74f   : > { %9372 = vmatpush3.bf16.msra.mxu1 %v9371_v19 }
 0x750   : > { %9373 = vmatprep.subr.bf16.mxu1 %v10727_v23 }
 0x752   : > { %9267 = vmatmul.mubr.f32.vlgmr.msra.gmra.mrb[110].mxu1 %v7838_v29 }
 0x753   : > { %9277 = vmatprep.mubr.msk.f32.mxu1 %vm10728_vm12, %v15427_v37  ;;  %9375 = vmatpush3.bf16.msra.mxu1 %v9374_v49 }
 0x754   : > { %9376 = vmatprep.subr.bf16.mxu1 %v10727_v23 }
 0x757   : > { %9378 = vmatpush3.bf16.msra.mxu1 %v9377_v46 }
 0x758   : > { %9280 = vmatprep.subr.mxu1 %v15427_v37 }
 0x805   : > { %v9187_v12 = vpop.f32.mrb[108].mxu1 }
 0x806   : > { %v9188_v53 = vpop.f32.mrb[109].mxu1 }
 0x807   : > { %v9189_v33 = vadd.f32 %v9188_v53, %v9187_v12 }
 0x825   : > { %v8026_v58 = vpop.f32.mrb[110].mxu1 }
 0x826   : > { %v8027_v16 = vadd.f32 %v9189_v33, %v8026_v58  ;;  %v9268_v8 = vpop.f32.mrb[111].mxu1 }
 0x828   : > { %v8030_v63 = vmul.f32 0.0069444445, %v8027_v16 }
 0x82a   : > { %9278 = vmatmul.mubr.msk.f32.vlgmr.msra.gmra.mrb[112].mxu1 %vm2550_vm4, %v8030_v63 }
 0x82b   : > { %9282 = vmatprep.mubr.msk.f32.mxu1 %vm10728_vm12, %v15427_v37  ;;  %9281 = vmatpush3.msk.msra.mxu1 %vm3694_vm7, %v8109_v48 }
 0x82c   : > { %9379 = vmatprep.subr.bf16.mxu1 %v10727_v23 }
 0x8fd   : > { %v8104_v28 = vpop.f32.mrb[112].mxu1 }
 0x8fe   : > { %v8108_v47 = vmax.f32 %v8104_v28, 0.0  ;;  %v9279_v26 = vpop.f32.mrb[113].mxu1 }
 0x900   : > { %9283 = vmatmul.mubr.msk.f32.vlgmr.msra.gmra.mrb[114].mxu1 %vm8110_vm13, %v8108_v47 }
 0x901   : > { %9293 = vmatprep.mubr.msk.f32.mxu1 %vm10728_vm12, %v15427_v37  ;;  %9381 = vmatpush3.bf16.msra.mxu1 %v9380_v43  ;;  %v9383_v37 = vpack.c.bf16 %v8196_v57, %v8195_v45 }
 0x902   : > { %9382 = vmatprep.subr.bf16.mxu1 %v10727_v23 }
 0x905   : > { %9384 = vmatpush3.bf16.msra.mxu1 %v9383_v37 }
 0x9d3   : > { %v8183_v35 = vpop.f32.mrb[114].mxu1 }
 0x9d4   : > { %v8187_v15 = vsub.f32 0.0, %v8183_v35  ;;  %v9284_v7 = vpop.f32.mrb[115].mxu1 }
 0x9d6   : > { %v8188_v22 = vmul.f32 1.442695, %v8187_v15 }
 0x9d8   : > { %10329 = vpow2.f32 %v8188_v22 }
 0x9e2   : > { %v10330_v11 = vpop.eup %10329 }
 0x9e3   : > { %v8190_v59 = vadd.f32 1.0, %v10330_v11 }
 0x9e5   : > { %10331 = vrcp.f32 %v8190_v59 }
 0x9ef   : > { %v10332_v14 = vpop.eup %10331 }
 0x9f0   : > { %v8192_v41 = vmul.f32 %v10332_v14, %v8030_v63 }
 0x9f2   : > { %9294 = vmatmul.mubr.msk.f32.vlgmr.msra.gmra.mrb[116].mxu1 %vm2550_vm4, %v8192_v41 }
 0xac5   : > { %v8273_v23 = vpop.f32.mrb[116].mxu1 }
 0xac6   : > { %v8274_v42 = vadd.f32 %v8936_v39, %v8273_v23  ;;  %v9295_v56 = vpop.f32.mrb[117].mxu1 }
 0xac8   : > { %8278 = vst.msk [vmem:[%s578_s30] sm:$0xf] %vm8277_vm14, %v8274_v42 }
 0xac9   : > { %10629 = shalt.err (!%p10626_p3)
}
 0xaca   : > { %s10630_s24 = scalar_lea.hbm %s14605_s17, 64  ;;  %s10634_s8 = scalar_lea.hbm %s15434_s16, 128 }
 0xacb   : > { %p10631_p0 = scmp.ne.s32.totalorder %s14605_s17, %s10630_s24  ;;  %p10635_p7 = scmp.lt.u32.totalorder %s14605_s17, %s15434_s16 }
 0xacc   : > { %p10636_p10 = scmp.lt.u32.totalorder %s10634_s8, %s10630_s24  ;;  %p10638_p11 = scmp.lt.u32.totalorder %s10630_s24, %s14605_s17 }
 0xacd   : > { %p10632_p5 = pnand %p10631_p0, %p15435_p12 }
 0xace   : > { %p10637_p1 = por %p10636_p10, %p10635_p7 }
 0xacf   : > { %p10633_p2 = pneg %p10632_p5 }
 0xad0   : > { %p10639_p13 = por %p10638_p11, %p10637_p1 }
 0xad2   : > { %p10640_p8 = pnand %p10639_p13, %p10633_p2 }
 0xad4   : > { %10643 = shalt.err (!%p10640_p8)
}
 0xad5   : > { %9591 = dma.vmem_to_hbm [thread:$0]  (%p15435_p12), %s14607_s21, 64, %s14605_s17, %s8280_s13  }
 0xad6 PF: > { %s8305_s0 = sand.u32 1, %s10690_s25   ;;  %p15436_p6 = scmp.ne.s32.totalorder %s14922_s15, 0 }
 0xad7   : > { %p15437_p9 = scmp.ge.s32.totalorder %s10702_s28, 2  ;;  %s8306_s22 = scalar_lea.sflag [#allocation6], %s8305_s0 }
 0xad9   : > { %p9626_p4 = pnand %p15437_p9, %p15436_p6 }
 0xadb   : > { %10685 = dma.done.wait (!%p9626_p4), %s8306_s22, 64  }
 0xadc   : > { %10687 = vsyncadd (!%p9626_p4), %s8306_s22, 4294967232  ;;  %p31_p3 = scmp.ge.s32.totalorder %s11026_s18, 4   ;;  %s15438_s25 = smov %s10694_s26 }
 0xadd   : > { %s15439_s26 = smov %s10698_s27  ;;  %s15440_s27 = smov %s11038_s9 }
 0xade   : > { %s15441_s28 = smov %s11026_s18  ;;  %33 = sbr.rel (!%p31_p3) target bundleno = 18 (0x12), region = 164 }
 0xae5   :  { %8311 = vsyncpa [#allocation5], 1 }
 0xae6   :  { %8313 = vsyncpa [#allocation5 + $0x1], 1 }
 0xae7   :  { %8314 = vsyncpa [#allocation8], 1 }
 0xae8   :  { %8315 = vsyncpa [#allocation11], 1 }
 0xae9   :  { %8316 = vsyncpa [#allocation14], 1 }
 0xaea   :  { %8317 = vsyncpa [#allocation17], 1 }
 0xaeb   :  { %8318 = vsyncpa [#allocation20], 1 }
 0xaec   :  { %8319 = vsyncpa [#allocation6], 1 }
 0xaed   :  { %8321 = vsyncpa [#allocation6 + $0x1], 1 }

</bundles_post_ra>
